<compile_context>
chip_gen: v6e
topology: v6e:2x2x1
jax: 0.10.0
libtpu: 0.0.40
codegen_flags: <defaults>
</compile_context>

<pallas_src>
import functools

import jax
import jax.numpy as jnp
from jax.experimental import pallas as pl
from jax.experimental.pallas import tpu as pltpu


def _round_up(x, m):
    return (x + m - 1) // m * m


# ----------------------------------------------------------------------------
# Pallas kernels
# ----------------------------------------------------------------------------
def _matmul_bias_act_kernel(x_ref, w_ref, b_ref, o_ref, acc_ref, *, activation):
    @pl.when(pl.program_id(2) == 0)
    def _():
        acc_ref[...] = jnp.zeros_like(acc_ref)

    acc_ref[...] += jnp.dot(x_ref[...], w_ref[...],
                            preferred_element_type=jnp.float32)

    @pl.when(pl.program_id(2) == pl.num_programs(2) - 1)
    def _():
        y = acc_ref[...] + b_ref[...]          # f32 epilogue
        if activation == "relu":
            y = jnp.maximum(y, 0.0)
        elif activation == "tanh":
            y = jnp.tanh(y)
        o_ref[...] = y.astype(o_ref.dtype)


def matmul_bias_act(x, w, b, activation="none", bias_axis="n",
                    out_dtype=jnp.float32):
    """act(x @ w + b).  x:(M,K), w:(K,N) (cast to bf16), b f32.

    bias_axis == "n": b has shape (N,) (bias per output column).
    bias_axis == "m": b has shape (M,) (bias per output row, transposed conv path).
    """
    M, K = x.shape
    K2, N = w.shape
    assert K == K2

    # --- tile / padding selection (bf16 operands: sublane quantum = 16) ---
    if M <= 256:
        Mp = _round_up(M, 16)
        tm = Mp
    else:
        Mp = _round_up(M, 256)
        tm = 256

    Np = _round_up(N, 128)
    if Np >= 1024 and Np % 512 == 0:
        tn = 512
    elif Np > 256 and Np % 256 == 0:
        tn = 256
    else:
        tn = 128                       # keeps >=2 parallel N tiles when Np=256

    Kp = _round_up(K, 128)
    tk = 128
    for cand in (1024, 512, 256):
        if Kp % cand == 0:
            tk = cand
            break

    xp = x.astype(jnp.bfloat16)
    if (Mp, Kp) != (M, K):
        xp = jnp.pad(xp, ((0, Mp - M), (0, Kp - K)))
    wp = w.astype(jnp.bfloat16)
    if (Kp, Np) != (K, N):
        wp = jnp.pad(wp, ((0, Kp - K), (0, Np - N)))

    if bias_axis == "n":
        bp = b.astype(jnp.float32)
        if Np != N:
            bp = jnp.pad(bp, (0, Np - N))
        bp = bp.reshape(1, Np)
        b_spec = pl.BlockSpec((1, tn), lambda i, j, k: (0, j))
    else:
        bp = b.astype(jnp.float32)
        if Mp != M:
            bp = jnp.pad(bp, (0, Mp - M))
        bp = bp.reshape(Mp, 1)
        b_spec = pl.BlockSpec((tm, 1), lambda i, j, k: (i, 0))

    grid = (Mp // tm, Np // tn, Kp // tk)
    out = pl.pallas_call(
        functools.partial(_matmul_bias_act_kernel, activation=activation),
        out_shape=jax.ShapeDtypeStruct((Mp, Np), out_dtype),
        grid_spec=pltpu.PrefetchScalarGridSpec(
            num_scalar_prefetch=0,
            grid=grid,
            in_specs=[
                pl.BlockSpec((tm, tk), lambda i, j, k: (i, k)),
                pl.BlockSpec((tk, tn), lambda i, j, k: (k, j)),
                b_spec,
            ],
            out_specs=pl.BlockSpec((tm, tn), lambda i, j, k: (i, j)),
            scratch_shapes=[pltpu.VMEM((tm, tn), jnp.float32)],
        ),
        compiler_params=pltpu.CompilerParams(
            dimension_semantics=("parallel", "parallel", "arbitrary"),
            vmem_limit_bytes=48 * 1024 * 1024),   # well under v7x's 64 MiB/TC
    )(xp, wp, bp)
    if (Mp, Np) != (M, N):
        out = out[:M, :N]
    return out


def _reparam_kernel(mu_ref, logvar_ref, eps_ref, z_ref):
    std = jnp.exp(0.5 * logvar_ref[...])
    z_ref[...] = mu_ref[...] + eps_ref[...] * std


def reparameterize(mu, logvar, eps):
    # z = mu + eps * exp(0.5 * logvar), single-block elementwise kernel.
    return pl.pallas_call(
        _reparam_kernel,
        out_shape=jax.ShapeDtypeStruct(mu.shape, jnp.float32),
    )(mu, logvar, eps)


# ----------------------------------------------------------------------------
# Glue (pure JAX): transposed im2col in CNHW layout, phase assembly
# ----------------------------------------------------------------------------
def _im2col_T(x_cnhw, kh, kw, stride, pads):
    """x:(C,N,H,W) -> patches^T of shape (C*kh*kw, N*Ho*Wo); K order = (ci,ky,kx)."""
    C, Nb, H, W = x_cnhw.shape
    (pt, pb), (pl_, pr) = pads
    Ho = (H + pt + pb - kh) // stride + 1
    Wo = (W + pl_ + pr - kw) // stride + 1
    xp = jnp.pad(x_cnhw, ((0, 0), (0, 0), (pt, pb), (pl_, pr)))
    slices = []
    for dy in range(kh):
        for dx in range(kw):
            slices.append(xp[:, :, dy:dy + stride * Ho:stride,
                             dx:dx + stride * Wo:stride])
    p = jnp.stack(slices, axis=1)                    # (C, kh*kw, N, Ho, Wo)
    return p.reshape(C * kh * kw, Nb * Ho * Wo), Ho, Wo


def conv2d_cnhw(x, w_mat, b, k, stride, pads, activation, out_dtype):
    """x:(Cin,N,H,W), w_mat:(Cout, Cin*k*k) -> (Cout,N,Ho,Wo)."""
    _, Nb, _, _ = x.shape
    Cout = b.shape[0]
    colsT, Ho, Wo = _im2col_T(x.astype(jnp.bfloat16), k, k, stride, pads)
    y = matmul_bias_act(w_mat, colsT, b, activation=activation,
                        bias_axis="m", out_dtype=out_dtype)
    return y.reshape(Cout, Nb, Ho, Wo)


def conv_transpose2d_cnhw(x, phase_w_mats, b, activation, out_dtype):
    """ConvTranspose2d(k=4,s=2,p=1) via 4 stride-phase 2x2 stride-1 convs."""
    _, Nb, H, W = x.shape
    Cout = b.shape[0]
    xb = x.astype(jnp.bfloat16)
    phases = []
    for ry in range(2):
        for rx in range(2):
            pads = ((1, 0) if ry == 0 else (0, 1),
                    (1, 0) if rx == 0 else (0, 1))
            colsT, _, _ = _im2col_T(xb, 2, 2, 1, pads)
            y = matmul_bias_act(phase_w_mats[2 * ry + rx], colsT, b,
                                activation=activation, bias_axis="m",
                                out_dtype=out_dtype)
            phases.append(y.reshape(Cout, Nb, H, W))
    st = jnp.stack(phases, axis=0).reshape(2, 2, Cout, Nb, H, W)
    # pixel shuffle: out[c, n, 2h+ry, 2w+rx] = st[ry, rx, c, n, h, w]
    return st.transpose(2, 3, 4, 0, 5, 1).reshape(Cout, Nb, 2 * H, 2 * W)


# ----------------------------------------------------------------------------
# Parameters (PyTorch layouts) + one-time GEMM-ready preparation
# ----------------------------------------------------------------------------
def init_params(key, z_dim=128):
    ks = jax.random.split(key, 18)

    def conv_w(k, cout, cin, kh, kw):
        return jax.random.normal(k, (cout, cin, kh, kw), jnp.float32) / jnp.sqrt(cin * kh * kw)

    def convT_w(k, cin, cout, kh, kw):
        return jax.random.normal(k, (cin, cout, kh, kw), jnp.float32) / jnp.sqrt(cout * kh * kw)

    def lin_w(k, din, dout):
        return jax.random.normal(k, (din, dout), jnp.float32) / jnp.sqrt(din)

    def bias(k, n):
        return 0.01 * jax.random.normal(k, (n,), jnp.float32)

    feat = 128 * 32 * 32
    return {
        "enc1_w": conv_w(ks[0], 32, 3, 4, 4),   "enc1_b": bias(ks[1], 32),
        "enc2_w": conv_w(ks[2], 64, 32, 4, 4),  "enc2_b": bias(ks[3], 64),
        "enc3_w": conv_w(ks[4], 128, 64, 4, 4), "enc3_b": bias(ks[5], 128),
        "fc_mu_w": lin_w(ks[6], feat, z_dim),   "fc_mu_b": bias(ks[7], z_dim),
        "fc_lv_w": lin_w(ks[8], feat, z_dim),   "fc_lv_b": bias(ks[9], z_dim),
        "fc_dec_w": lin_w(ks[10], z_dim, feat), "fc_dec_b": bias(ks[11], feat),
        "dec1_w": convT_w(ks[12], 128, 64, 4, 4), "dec1_b": bias(ks[13], 64),
        "dec2_w": convT_w(ks[14], 64, 32, 4, 4),  "dec2_b": bias(ks[15], 32),
        "dec3_w": convT_w(ks[16], 32, 3, 4, 4),   "dec3_b": bias(ks[17], 3),
    }


def prepare_params(p):
    """Reshape / phase-decompose / bf16-cast all weights once (outside the step)."""
    bf, f32 = jnp.bfloat16, jnp.float32
    prep = {}

    for name in ("enc1", "enc2", "enc3"):
        w, b = p[name + "_w"], p[name + "_b"]        # (Cout, Cin, 4, 4)
        prep[name + "_w"] = w.reshape(w.shape[0], -1).astype(bf)
        prep[name + "_b"] = b.astype(f32)

    # ConvTranspose2d(k=4,s=2,p=1): phase ry/rx uses kernel taps KY[r] (in input order).
    KY = ((3, 1), (2, 0))
    for name in ("dec1", "dec2", "dec3"):
        w, b = p[name + "_w"], p[name + "_b"]        # (Cin, Cout, 4, 4)
        Cout = w.shape[1]
        wt = w.transpose(1, 0, 2, 3)                 # (Cout, Cin, 4, 4)
        mats = []
        for ry in range(2):
            for rx in range(2):
                sub = jnp.take(wt, jnp.array(KY[ry]), axis=2)
                sub = jnp.take(sub, jnp.array(KY[rx]), axis=3)   # (Cout, Cin, 2, 2)
                mats.append(sub.reshape(Cout, -1).astype(bf))
        prep[name + "_w"] = tuple(mats)
        prep[name + "_b"] = b.astype(f32)

    prep["fc_mulv_w"] = jnp.concatenate([p["fc_mu_w"], p["fc_lv_w"]], axis=1).astype(bf)
    prep["fc_mulv_b"] = jnp.concatenate([p["fc_mu_b"], p["fc_lv_b"]]).astype(f32)
    prep["fc_dec_w"] = p["fc_dec_w"].astype(bf)
    prep["fc_dec_b"] = p["fc_dec_b"].astype(f32)
    return prep


# ----------------------------------------------------------------------------
# ConvVAE forward
# ----------------------------------------------------------------------------
@jax.jit
def conv_vae_forward(prep, x, eps):
    Nb = x.shape[0]
    z_dim = eps.shape[1]
    bf = jnp.bfloat16
    sym = ((1, 1), (1, 1))

    # encoder: Conv(3->32) ReLU, Conv(32->64) ReLU, Conv(64->128) ReLU, Flatten
    h = x.transpose(1, 0, 2, 3).astype(bf)                       # CNHW
    h = conv2d_cnhw(h, prep["enc1_w"], prep["enc1_b"], 4, 2, sym, "relu", bf)
    h = conv2d_cnhw(h, prep["enc2_w"], prep["enc2_b"], 4, 2, sym, "relu", bf)
    h = conv2d_cnhw(h, prep["enc3_w"], prep["enc3_b"], 4, 2, sym, "relu", bf)
    C, _, Ho, Wo = h.shape
    hf = h.transpose(1, 0, 2, 3).reshape(Nb, C * Ho * Wo)        # nn.Flatten order

    # latent: fused fc_mu / fc_logvar GEMM, then reparameterize
    mulv = matmul_bias_act(hf, prep["fc_mulv_w"], prep["fc_mulv_b"],
                           activation="none", bias_axis="n",
                           out_dtype=jnp.float32)
    mu, logvar = mulv[:, :z_dim], mulv[:, z_dim:]
    z = reparameterize(mu, logvar, eps)

    # decoder: Linear -> Unflatten -> 3x ConvTranspose (phase-decomposed)
    d = matmul_bias_act(z.astype(bf), prep["fc_dec_w"], prep["fc_dec_b"],
                        activation="none", bias_axis="n", out_dtype=bf)
    d = d.reshape(Nb, 128, 32, 32).transpose(1, 0, 2, 3)         # CNHW
    d = conv_transpose2d_cnhw(d, prep["dec1_w"], prep["dec1_b"], "relu", bf)
    d = conv_transpose2d_cnhw(d, prep["dec2_w"], prep["dec2_b"], "relu", bf)
    out = conv_transpose2d_cnhw(d, prep["dec3_w"], prep["dec3_b"], "tanh",
                                jnp.float32)
    return out.transpose(1, 0, 2, 3), mu, logvar                 # NCHW


if __name__ == "__main__":
    key = jax.random.PRNGKey(0)
    kx, keps, kp = jax.random.split(key, 3)
    B, z_dim = 2, 128
    # forward implies 3x256x256 input: three stride-2 convs -> (128, 32, 32)
    x = jax.random.normal(kx, (B, 3, 256, 256), jnp.float32)
    eps = jax.random.normal(keps, (B, z_dim), jnp.float32)
    params = init_params(kp, z_dim)
    prep = prepare_params(params)

    out, mu, logvar = conv_vae_forward(prep, x, eps)
    jax.block_until_ready((out, mu, logvar))
    assert out.shape == (B, 3, 256, 256) and out.dtype == jnp.float32
    assert mu.shape == (B, z_dim) and logvar.shape == (B, z_dim)
    assert bool(jnp.isfinite(out).all()) and bool(jnp.isfinite(mu).all())
    print("KERNEL_OK")
</pallas_src>

<mosaic_0001>
module attributes {stable_mosaic.version = 11 : i64} {
  func.func @_matmul_bias_act_kernel(%arg0: i32, %arg1: i32, %arg2: i32, %arg3: memref<32x128xbf16, #tpu.memory_space<vmem>>, %arg4: memref<128x512xbf16, #tpu.memory_space<vmem>>, %arg5: memref<32x1xf32, #tpu.memory_space<vmem>>, %arg6: memref<32x512xbf16, #tpu.memory_space<vmem>>, %arg7: memref<32x512xf32, #tpu.memory_space<vmem>>) attributes {dimension_semantics = [#tpu.dimension_semantics<parallel>, #tpu.dimension_semantics<parallel>, #tpu.dimension_semantics<arbitrary>], iteration_bounds = array<i64: 1, 64, 1>, scalar_prefetch = 0 : i64, scratch_operands = 1 : i64, tpu.core_type = #tpu.core_type<tc>, window_params = [{transform_indices = @transform_0, window_bounds = array<i64: 32, 128>}, {transform_indices = @transform_1, window_bounds = array<i64: 128, 512>}, {transform_indices = @transform_2, window_bounds = array<i64: 32, 1>}, {transform_indices = @transform_3, window_bounds = array<i64: 32, 512>}]} {
    %c0_i32 = arith.constant 0 : i32
    %0 = arith.cmpi eq, %arg2, %c0_i32 : i32
    %1 = arith.extui %0 : i1 to i32
    %c0_i32_0 = arith.constant 0 : i32
    %2 = arith.cmpi ne, %1, %c0_i32_0 : i32
    scf.if %2 {
      %cst_10 = arith.constant 0.000000e+00 : f32
      %12 = vector.broadcast %cst_10 : f32 to vector<32x512xf32>
      %c0_11 = arith.constant 0 : index
      %c0_12 = arith.constant 0 : index
      %13 = vector.load %arg7[%c0_11, %c0_12] : memref<32x512xf32, #tpu.memory_space<vmem>>, vector<32x512xf32>
      tpu.vector_store %arg7[%c0_11, %c0_12], %12 {strides = array<i32>} : memref<32x512xf32, #tpu.memory_space<vmem>>, vector<32x512xf32>,
    } else {
    }
    %c0 = arith.constant 0 : index
    %c0_1 = arith.constant 0 : index
    %3 = vector.load %arg7[%c0, %c0_1] : memref<32x512xf32, #tpu.memory_space<vmem>>, vector<32x512xf32>
    %c0_2 = arith.constant 0 : index
    %c0_3 = arith.constant 0 : index
    %4 = vector.load %arg3[%c0_2, %c0_3] : memref<32x128xbf16, #tpu.memory_space<vmem>>, vector<32x128xbf16>
    %c0_4 = arith.constant 0 : index
    %c0_5 = arith.constant 0 : index
    %5 = vector.load %arg4[%c0_4, %c0_5] : memref<128x512xbf16, #tpu.memory_space<vmem>>, vector<128x512xbf16>
    %cst = arith.constant dense<0.000000e+00> : vector<32x512xf32>
    %6 = tpu.matmul %4, %5, %cst {dimension_numbers = #tpu.dot_dimension_numbers<[1], [0], [0], [1], [0, 0, 1, 1], [], []>} : vector<32x128xbf16>, vector<128x512xbf16>, vector<32x512xf32> -> vector<32x512xf32>
    %7 = arith.addf %3, %6 : vector<32x512xf32>
    %c0_6 = arith.constant 0 : index
    %c0_7 = arith.constant 0 : index
    %8 = vector.load %arg7[%c0_6, %c0_7] : memref<32x512xf32, #tpu.memory_space<vmem>>, vector<32x512xf32>
    tpu.vector_store %arg7[%c0_6, %c0_7], %7 {strides = array<i32>} : memref<32x512xf32, #tpu.memory_space<vmem>>, vector<32x512xf32>,
    %c0_i32_8 = arith.constant 0 : i32
    %9 = arith.cmpi eq, %arg2, %c0_i32_8 : i32
    %10 = arith.extui %9 : i1 to i32
    %c0_i32_9 = arith.constant 0 : i32
    %11 = arith.cmpi ne, %10, %c0_i32_9 : i32
    scf.if %11 {
      %c0_10 = arith.constant 0 : index
      %c0_11 = arith.constant 0 : index
      %12 = vector.load %arg7[%c0_10, %c0_11] : memref<32x512xf32, #tpu.memory_space<vmem>>, vector<32x512xf32>
      %c0_12 = arith.constant 0 : index
      %c0_13 = arith.constant 0 : index
      %13 = vector.load %arg5[%c0_12, %c0_13] : memref<32x1xf32, #tpu.memory_space<vmem>>, vector<32x1xf32>
      %14 = vector.broadcast %13 : vector<32x1xf32> to vector<32x512xf32>
      %15 = arith.addf %12, %14 : vector<32x512xf32>
      %cst_14 = arith.constant 0.000000e+00 : f32
      %16 = vector.broadcast %cst_14 : f32 to vector<32x512xf32>
      %17 = arith.maximumf %15, %16 : vector<32x512xf32>
      %18 = arith.truncf %17 : vector<32x512xf32> to vector<32x512xbf16>
      %c0_15 = arith.constant 0 : index
      %c0_16 = arith.constant 0 : index
      %19 = vector.load %arg6[%c0_15, %c0_16] : memref<32x512xbf16, #tpu.memory_space<vmem>>, vector<32x512xbf16>
      tpu.vector_store %arg6[%c0_15, %c0_16], %18 {strides = array<i32>} : memref<32x512xbf16, #tpu.memory_space<vmem>>, vector<32x512xbf16>,
    } else {
    }
    return
  }
  func.func @transform_0(%arg0: i32, %arg1: i32, %arg2: i32) -> (i32, i32) {
    %c0_i32 = arith.constant 0 : i32
    return %arg0, %arg2 : i32, i32
  }
  func.func @transform_1(%arg0: i32, %arg1: i32, %arg2: i32) -> (i32, i32) {
    %c0_i32 = arith.constant 0 : i32
    return %arg2, %arg1 : i32, i32
  }
  func.func @transform_2(%arg0: i32, %arg1: i32, %arg2: i32) -> (i32, i32) {
    %c0_i32 = arith.constant 0 : i32
    %c0_i32_0 = arith.constant 0 : i32
    return %arg0, %c0_i32 : i32, i32
  }
  func.func @transform_3(%arg0: i32, %arg1: i32, %arg2: i32) -> (i32, i32) {
    %c0_i32 = arith.constant 0 : i32
    return %arg0, %arg1 : i32, i32
  }
}

module attributes {stable_mosaic.version = 11 : i64} {
  func.func @_matmul_bias_act_kernel(%arg0: i32, %arg1: i32, %arg2: i32, %arg3: memref<64x512xbf16, #tpu.memory_space<vmem>>, %arg4: memref<512x512xbf16, #tpu.memory_space<vmem>>, %arg5: memref<64x1xf32, #tpu.memory_space<vmem>>, %arg6: memref<64x512xbf16, #tpu.memory_space<vmem>>, %arg7: memref<64x512xf32, #tpu.memory_space<vmem>>) attributes {dimension_semantics = [#tpu.dimension_semantics<parallel>, #tpu.dimension_semantics<parallel>, #tpu.dimension_semantics<arbitrary>], iteration_bounds = array<i64: 1, 16, 1>, scalar_prefetch = 0 : i64, scratch_operands = 1 : i64, tpu.core_type = #tpu.core_type<tc>, window_params = [{transform_indices = @transform_0, window_bounds = array<i64: 64, 512>}, {transform_indices = @transform_1, window_bounds = array<i64: 512, 512>}, {transform_indices = @transform_2, window_bounds = array<i64: 64, 1>}, {transform_indices = @transform_3, window_bounds = array<i64: 64, 512>}]} {
    %c0_i32 = arith.constant 0 : i32
    %0 = arith.cmpi eq, %arg2, %c0_i32 : i32
    %1 = arith.extui %0 : i1 to i32
    %c0_i32_0 = arith.constant 0 : i32
    %2 = arith.cmpi ne, %1, %c0_i32_0 : i32
    scf.if %2 {
      %cst_10 = arith.constant 0.000000e+00 : f32
      %12 = vector.broadcast %cst_10 : f32 to vector<64x512xf32>
      %c0_11 = arith.constant 0 : index
      %c0_12 = arith.constant 0 : index
      %13 = vector.load %arg7[%c0_11, %c0_12] : memref<64x512xf32, #tpu.memory_space<vmem>>, vector<64x512xf32>
      tpu.vector_store %arg7[%c0_11, %c0_12], %12 {strides = array<i32>} : memref<64x512xf32, #tpu.memory_space<vmem>>, vector<64x512xf32>,
    } else {
    }
    %c0 = arith.constant 0 : index
    %c0_1 = arith.constant 0 : index
    %3 = vector.load %arg7[%c0, %c0_1] : memref<64x512xf32, #tpu.memory_space<vmem>>, vector<64x512xf32>
    %c0_2 = arith.constant 0 : index
    %c0_3 = arith.constant 0 : index
    %4 = vector.load %arg3[%c0_2, %c0_3] : memref<64x512xbf16, #tpu.memory_space<vmem>>, vector<64x512xbf16>
    %c0_4 = arith.constant 0 : index
    %c0_5 = arith.constant 0 : index
    %5 = vector.load %arg4[%c0_4, %c0_5] : memref<512x512xbf16, #tpu.memory_space<vmem>>, vector<512x512xbf16>
    %cst = arith.constant dense<0.000000e+00> : vector<64x512xf32>
    %6 = tpu.matmul %4, %5, %cst {dimension_numbers = #tpu.dot_dimension_numbers<[1], [0], [0], [1], [0, 0, 1, 1], [], []>} : vector<64x512xbf16>, vector<512x512xbf16>, vector<64x512xf32> -> vector<64x512xf32>
    %7 = arith.addf %3, %6 : vector<64x512xf32>
    %c0_6 = arith.constant 0 : index
    %c0_7 = arith.constant 0 : index
    %8 = vector.load %arg7[%c0_6, %c0_7] : memref<64x512xf32, #tpu.memory_space<vmem>>, vector<64x512xf32>
    tpu.vector_store %arg7[%c0_6, %c0_7], %7 {strides = array<i32>} : memref<64x512xf32, #tpu.memory_space<vmem>>, vector<64x512xf32>,
    %c0_i32_8 = arith.constant 0 : i32
    %9 = arith.cmpi eq, %arg2, %c0_i32_8 : i32
    %10 = arith.extui %9 : i1 to i32
    %c0_i32_9 = arith.constant 0 : i32
    %11 = arith.cmpi ne, %10, %c0_i32_9 : i32
    scf.if %11 {
      %c0_10 = arith.constant 0 : index
      %c0_11 = arith.constant 0 : index
      %12 = vector.load %arg7[%c0_10, %c0_11] : memref<64x512xf32, #tpu.memory_space<vmem>>, vector<64x512xf32>
      %c0_12 = arith.constant 0 : index
      %c0_13 = arith.constant 0 : index
      %13 = vector.load %arg5[%c0_12, %c0_13] : memref<64x1xf32, #tpu.memory_space<vmem>>, vector<64x1xf32>
      %14 = vector.broadcast %13 : vector<64x1xf32> to vector<64x512xf32>
      %15 = arith.addf %12, %14 : vector<64x512xf32>
      %cst_14 = arith.constant 0.000000e+00 : f32
      %16 = vector.broadcast %cst_14 : f32 to vector<64x512xf32>
      %17 = arith.maximumf %15, %16 : vector<64x512xf32>
      %18 = arith.truncf %17 : vector<64x512xf32> to vector<64x512xbf16>
      %c0_15 = arith.constant 0 : index
      %c0_16 = arith.constant 0 : index
      %19 = vector.load %arg6[%c0_15, %c0_16] : memref<64x512xbf16, #tpu.memory_space<vmem>>, vector<64x512xbf16>
      tpu.vector_store %arg6[%c0_15, %c0_16], %18 {strides = array<i32>} : memref<64x512xbf16, #tpu.memory_space<vmem>>, vector<64x512xbf16>,
    } else {
    }
    return
  }
  func.func @transform_0(%arg0: i32, %arg1: i32, %arg2: i32) -> (i32, i32) {
    %c0_i32 = arith.constant 0 : i32
    return %arg0, %arg2 : i32, i32
  }
  func.func @transform_1(%arg0: i32, %arg1: i32, %arg2: i32) -> (i32, i32) {
    %c0_i32 = arith.constant 0 : i32
    return %arg2, %arg1 : i32, i32
  }
  func.func @transform_2(%arg0: i32, %arg1: i32, %arg2: i32) -> (i32, i32) {
    %c0_i32 = arith.constant 0 : i32
    %c0_i32_0 = arith.constant 0 : i32
    return %arg0, %c0_i32 : i32, i32
  }
  func.func @transform_3(%arg0: i32, %arg1: i32, %arg2: i32) -> (i32, i32) {
    %c0_i32 = arith.constant 0 : i32
    return %arg0, %arg1 : i32, i32
  }
}

module attributes {stable_mosaic.version = 11 : i64} {
  func.func @_matmul_bias_act_kernel(%arg0: i32, %arg1: i32, %arg2: i32, %arg3: memref<128x1024xbf16, #tpu.memory_space<vmem>>, %arg4: memref<1024x512xbf16, #tpu.memory_space<vmem>>, %arg5: memref<128x1xf32, #tpu.memory_space<vmem>>, %arg6: memref<128x512xbf16, #tpu.memory_space<vmem>>, %arg7: memref<128x512xf32, #tpu.memory_space<vmem>>) attributes {dimension_semantics = [#tpu.dimension_semantics<parallel>, #tpu.dimension_semantics<parallel>, #tpu.dimension_semantics<arbitrary>], iteration_bounds = array<i64: 1, 4, 1>, scalar_prefetch = 0 : i64, scratch_operands = 1 : i64, tpu.core_type = #tpu.core_type<tc>, window_params = [{transform_indices = @transform_0, window_bounds = array<i64: 128, 1024>}, {transform_indices = @transform_1, window_bounds = array<i64: 1024, 512>}, {transform_indices = @transform_2, window_bounds = array<i64: 128, 1>}, {transform_indices = @transform_3, window_bounds = array<i64: 128, 512>}]} {
    %c0_i32 = arith.constant 0 : i32
    %0 = arith.cmpi eq, %arg2, %c0_i32 : i32
    %1 = arith.extui %0 : i1 to i32
    %c0_i32_0 = arith.constant 0 : i32
    %2 = arith.cmpi ne, %1, %c0_i32_0 : i32
    scf.if %2 {
      %cst_10 = arith.constant 0.000000e+00 : f32
      %12 = vector.broadcast %cst_10 : f32 to vector<128x512xf32>
      %c0_11 = arith.constant 0 : index
      %c0_12 = arith.constant 0 : index
      %13 = vector.load %arg7[%c0_11, %c0_12] : memref<128x512xf32, #tpu.memory_space<vmem>>, vector<128x512xf32>
      tpu.vector_store %arg7[%c0_11, %c0_12], %12 {strides = array<i32>} : memref<128x512xf32, #tpu.memory_space<vmem>>, vector<128x512xf32>,
    } else {
    }
    %c0 = arith.constant 0 : index
    %c0_1 = arith.constant 0 : index
    %3 = vector.load %arg7[%c0, %c0_1] : memref<128x512xf32, #tpu.memory_space<vmem>>, vector<128x512xf32>
    %c0_2 = arith.constant 0 : index
    %c0_3 = arith.constant 0 : index
    %4 = vector.load %arg3[%c0_2, %c0_3] : memref<128x1024xbf16, #tpu.memory_space<vmem>>, vector<128x1024xbf16>
    %c0_4 = arith.constant 0 : index
    %c0_5 = arith.constant 0 : index
    %5 = vector.load %arg4[%c0_4, %c0_5] : memref<1024x512xbf16, #tpu.memory_space<vmem>>, vector<1024x512xbf16>
    %cst = arith.constant dense<0.000000e+00> : vector<128x512xf32>
    %6 = tpu.matmul %4, %5, %cst {dimension_numbers = #tpu.dot_dimension_numbers<[1], [0], [0], [1], [0, 0, 1, 1], [], []>} : vector<128x1024xbf16>, vector<1024x512xbf16>, vector<128x512xf32> -> vector<128x512xf32>
    %7 = arith.addf %3, %6 : vector<128x512xf32>
    %c0_6 = arith.constant 0 : index
    %c0_7 = arith.constant 0 : index
    %8 = vector.load %arg7[%c0_6, %c0_7] : memref<128x512xf32, #tpu.memory_space<vmem>>, vector<128x512xf32>
    tpu.vector_store %arg7[%c0_6, %c0_7], %7 {strides = array<i32>} : memref<128x512xf32, #tpu.memory_space<vmem>>, vector<128x512xf32>,
    %c0_i32_8 = arith.constant 0 : i32
    %9 = arith.cmpi eq, %arg2, %c0_i32_8 : i32
    %10 = arith.extui %9 : i1 to i32
    %c0_i32_9 = arith.constant 0 : i32
    %11 = arith.cmpi ne, %10, %c0_i32_9 : i32
    scf.if %11 {
      %c0_10 = arith.constant 0 : index
      %c0_11 = arith.constant 0 : index
      %12 = vector.load %arg7[%c0_10, %c0_11] : memref<128x512xf32, #tpu.memory_space<vmem>>, vector<128x512xf32>
      %c0_12 = arith.constant 0 : index
      %c0_13 = arith.constant 0 : index
      %13 = vector.load %arg5[%c0_12, %c0_13] : memref<128x1xf32, #tpu.memory_space<vmem>>, vector<128x1xf32>
      %14 = vector.broadcast %13 : vector<128x1xf32> to vector<128x512xf32>
      %15 = arith.addf %12, %14 : vector<128x512xf32>
      %cst_14 = arith.constant 0.000000e+00 : f32
      %16 = vector.broadcast %cst_14 : f32 to vector<128x512xf32>
      %17 = arith.maximumf %15, %16 : vector<128x512xf32>
      %18 = arith.truncf %17 : vector<128x512xf32> to vector<128x512xbf16>
      %c0_15 = arith.constant 0 : index
      %c0_16 = arith.constant 0 : index
      %19 = vector.load %arg6[%c0_15, %c0_16] : memref<128x512xbf16, #tpu.memory_space<vmem>>, vector<128x512xbf16>
      tpu.vector_store %arg6[%c0_15, %c0_16], %18 {strides = array<i32>} : memref<128x512xbf16, #tpu.memory_space<vmem>>, vector<128x512xbf16>,
    } else {
    }
    return
  }
  func.func @transform_0(%arg0: i32, %arg1: i32, %arg2: i32) -> (i32, i32) {
    %c0_i32 = arith.constant 0 : i32
    return %arg0, %arg2 : i32, i32
  }
  func.func @transform_1(%arg0: i32, %arg1: i32, %arg2: i32) -> (i32, i32) {
    %c0_i32 = arith.constant 0 : i32
    return %arg2, %arg1 : i32, i32
  }
  func.func @transform_2(%arg0: i32, %arg1: i32, %arg2: i32) -> (i32, i32) {
    %c0_i32 = arith.constant 0 : i32
    %c0_i32_0 = arith.constant 0 : i32
    return %arg0, %c0_i32 : i32, i32
  }
  func.func @transform_3(%arg0: i32, %arg1: i32, %arg2: i32) -> (i32, i32) {
    %c0_i32 = arith.constant 0 : i32
    return %arg0, %arg1 : i32, i32
  }
}

module attributes {stable_mosaic.version = 11 : i64} {
  func.func @_matmul_bias_act_kernel(%arg0: i32, %arg1: i32, %arg2: i32, %arg3: memref<16x1024xbf16, #tpu.memory_space<vmem>>, %arg4: memref<1024x128xbf16, #tpu.memory_space<vmem>>, %arg5: memref<1x128xf32, #tpu.memory_space<vmem>>, %arg6: memref<16x128xf32, #tpu.memory_space<vmem>>, %arg7: memref<16x128xf32, #tpu.memory_space<vmem>>) attributes {dimension_semantics = [#tpu.dimension_semantics<parallel>, #tpu.dimension_semantics<parallel>, #tpu.dimension_semantics<arbitrary>], iteration_bounds = array<i64: 1, 2, 128>, scalar_prefetch = 0 : i64, scratch_operands = 1 : i64, tpu.core_type = #tpu.core_type<tc>, window_params = [{transform_indices = @transform_0, window_bounds = array<i64: 16, 1024>}, {transform_indices = @transform_1, window_bounds = array<i64: 1024, 128>}, {transform_indices = @transform_2, window_bounds = array<i64: 1, 128>}, {transform_indices = @transform_3, window_bounds = array<i64: 16, 128>}]} {
    %c0_i32 = arith.constant 0 : i32
    %0 = arith.cmpi eq, %arg2, %c0_i32 : i32
    %1 = arith.extui %0 : i1 to i32
    %c0_i32_0 = arith.constant 0 : i32
    %2 = arith.cmpi ne, %1, %c0_i32_0 : i32
    scf.if %2 {
      %cst_9 = arith.constant 0.000000e+00 : f32
      %12 = vector.broadcast %cst_9 : f32 to vector<16x128xf32>
      %c0_10 = arith.constant 0 : index
      %c0_11 = arith.constant 0 : index
      %13 = vector.load %arg7[%c0_10, %c0_11] : memref<16x128xf32, #tpu.memory_space<vmem>>, vector<16x128xf32>
      tpu.vector_store %arg7[%c0_10, %c0_11], %12 {strides = array<i32>} : memref<16x128xf32, #tpu.memory_space<vmem>>, vector<16x128xf32>,
    } else {
    }
    %c0 = arith.constant 0 : index
    %c0_1 = arith.constant 0 : index
    %3 = vector.load %arg7[%c0, %c0_1] : memref<16x128xf32, #tpu.memory_space<vmem>>, vector<16x128xf32>
    %c0_2 = arith.constant 0 : index
    %c0_3 = arith.constant 0 : index
    %4 = vector.load %arg3[%c0_2, %c0_3] : memref<16x1024xbf16, #tpu.memory_space<vmem>>, vector<16x1024xbf16>
    %c0_4 = arith.constant 0 : index
    %c0_5 = arith.constant 0 : index
    %5 = vector.load %arg4[%c0_4, %c0_5] : memref<1024x128xbf16, #tpu.memory_space<vmem>>, vector<1024x128xbf16>
    %cst = arith.constant dense<0.000000e+00> : vector<16x128xf32>
    %6 = tpu.matmul %4, %5, %cst {dimension_numbers = #tpu.dot_dimension_numbers<[1], [0], [0], [1], [0, 0, 1, 1], [], []>} : vector<16x1024xbf16>, vector<1024x128xbf16>, vector<16x128xf32> -> vector<16x128xf32>
    %7 = arith.addf %3, %6 : vector<16x128xf32>
    %c0_6 = arith.constant 0 : index
    %c0_7 = arith.constant 0 : index
    %8 = vector.load %arg7[%c0_6, %c0_7] : memref<16x128xf32, #tpu.memory_space<vmem>>, vector<16x128xf32>
    tpu.vector_store %arg7[%c0_6, %c0_7], %7 {strides = array<i32>} : memref<16x128xf32, #tpu.memory_space<vmem>>, vector<16x128xf32>,
    %c127_i32 = arith.constant 127 : i32
    %9 = arith.cmpi eq, %arg2, %c127_i32 : i32
    %10 = arith.extui %9 : i1 to i32
    %c0_i32_8 = arith.constant 0 : i32
    %11 = arith.cmpi ne, %10, %c0_i32_8 : i32
    scf.if %11 {
      %c0_9 = arith.constant 0 : index
      %c0_10 = arith.constant 0 : index
      %12 = vector.load %arg7[%c0_9, %c0_10] : memref<16x128xf32, #tpu.memory_space<vmem>>, vector<16x128xf32>
      %c0_11 = arith.constant 0 : index
      %c0_12 = arith.constant 0 : index
      %13 = vector.load %arg5[%c0_11, %c0_12] : memref<1x128xf32, #tpu.memory_space<vmem>>, vector<1x128xf32>
      %14 = vector.broadcast %13 : vector<1x128xf32> to vector<16x128xf32>
      %15 = arith.addf %12, %14 : vector<16x128xf32>
      %c0_13 = arith.constant 0 : index
      %c0_14 = arith.constant 0 : index
      %16 = vector.load %arg6[%c0_13, %c0_14] : memref<16x128xf32, #tpu.memory_space<vmem>>, vector<16x128xf32>
      tpu.vector_store %arg6[%c0_13, %c0_14], %15 {strides = array<i32>} : memref<16x128xf32, #tpu.memory_space<vmem>>, vector<16x128xf32>,
    } else {
    }
    return
  }
  func.func @transform_0(%arg0: i32, %arg1: i32, %arg2: i32) -> (i32, i32) {
    %c0_i32 = arith.constant 0 : i32
    return %arg0, %arg2 : i32, i32
  }
  func.func @transform_1(%arg0: i32, %arg1: i32, %arg2: i32) -> (i32, i32) {
    %c0_i32 = arith.constant 0 : i32
    return %arg2, %arg1 : i32, i32
  }
  func.func @transform_2(%arg0: i32, %arg1: i32, %arg2: i32) -> (i32, i32) {
    %c0_i32 = arith.constant 0 : i32
    %c0_i32_0 = arith.constant 0 : i32
    return %c0_i32, %arg1 : i32, i32
  }
  func.func @transform_3(%arg0: i32, %arg1: i32, %arg2: i32) -> (i32, i32) {
    %c0_i32 = arith.constant 0 : i32
    return %arg0, %arg1 : i32, i32
  }
}

module attributes {stable_mosaic.version = 11 : i64} {
  func.func @_reparam_kernel(%arg0: memref<2x128xf32, #tpu.memory_space<vmem>>, %arg1: memref<2x128xf32, #tpu.memory_space<vmem>>, %arg2: memref<2x128xf32, #tpu.memory_space<vmem>>, %arg3: memref<2x128xf32, #tpu.memory_space<vmem>>) attributes {dimension_semantics = [], scalar_prefetch = 0 : i64, scratch_operands = 0 : i64, tpu.core_type = #tpu.core_type<tc>} {
    %c0 = arith.constant 0 : index
    %c0_0 = arith.constant 0 : index
    %0 = vector.load %arg1[%c0, %c0_0] : memref<2x128xf32, #tpu.memory_space<vmem>>, vector<2x128xf32>
    %cst = arith.constant 5.000000e-01 : f32
    %1 = vector.broadcast %cst : f32 to vector<2x128xf32>
    %2 = arith.mulf %1, %0 : vector<2x128xf32>
    %3 = math.exp %2 : vector<2x128xf32>
    %c0_1 = arith.constant 0 : index
    %c0_2 = arith.constant 0 : index
    %4 = vector.load %arg0[%c0_1, %c0_2] : memref<2x128xf32, #tpu.memory_space<vmem>>, vector<2x128xf32>
    %c0_3 = arith.constant 0 : index
    %c0_4 = arith.constant 0 : index
    %5 = vector.load %arg2[%c0_3, %c0_4] : memref<2x128xf32, #tpu.memory_space<vmem>>, vector<2x128xf32>
    %6 = arith.mulf %5, %3 : vector<2x128xf32>
    %7 = arith.addf %4, %6 : vector<2x128xf32>
    %c0_5 = arith.constant 0 : index
    %c0_6 = arith.constant 0 : index
    %8 = vector.load %arg3[%c0_5, %c0_6] : memref<2x128xf32, #tpu.memory_space<vmem>>, vector<2x128xf32>
    tpu.vector_store %arg3[%c0_5, %c0_6], %7 {strides = array<i32>} : memref<2x128xf32, #tpu.memory_space<vmem>>, vector<2x128xf32>,
    return
  }
}

module attributes {stable_mosaic.version = 11 : i64} {
  func.func @_matmul_bias_act_kernel(%arg0: i32, %arg1: i32, %arg2: i32, %arg3: memref<16x128xbf16, #tpu.memory_space<vmem>>, %arg4: memref<128x512xbf16, #tpu.memory_space<vmem>>, %arg5: memref<1x512xf32, #tpu.memory_space<vmem>>, %arg6: memref<16x512xbf16, #tpu.memory_space<vmem>>, %arg7: memref<16x512xf32, #tpu.memory_space<vmem>>) attributes {dimension_semantics = [#tpu.dimension_semantics<parallel>, #tpu.dimension_semantics<parallel>, #tpu.dimension_semantics<arbitrary>], iteration_bounds = array<i64: 1, 256, 1>, scalar_prefetch = 0 : i64, scratch_operands = 1 : i64, tpu.core_type = #tpu.core_type<tc>, window_params = [{transform_indices = @transform_0, window_bounds = array<i64: 16, 128>}, {transform_indices = @transform_1, window_bounds = array<i64: 128, 512>}, {transform_indices = @transform_2, window_bounds = array<i64: 1, 512>}, {transform_indices = @transform_3, window_bounds = array<i64: 16, 512>}]} {
    %c0_i32 = arith.constant 0 : i32
    %0 = arith.cmpi eq, %arg2, %c0_i32 : i32
    %1 = arith.extui %0 : i1 to i32
    %c0_i32_0 = arith.constant 0 : i32
    %2 = arith.cmpi ne, %1, %c0_i32_0 : i32
    scf.if %2 {
      %cst_10 = arith.constant 0.000000e+00 : f32
      %12 = vector.broadcast %cst_10 : f32 to vector<16x512xf32>
      %c0_11 = arith.constant 0 : index
      %c0_12 = arith.constant 0 : index
      %13 = vector.load %arg7[%c0_11, %c0_12] : memref<16x512xf32, #tpu.memory_space<vmem>>, vector<16x512xf32>
      tpu.vector_store %arg7[%c0_11, %c0_12], %12 {strides = array<i32>} : memref<16x512xf32, #tpu.memory_space<vmem>>, vector<16x512xf32>,
    } else {
    }
    %c0 = arith.constant 0 : index
    %c0_1 = arith.constant 0 : index
    %3 = vector.load %arg7[%c0, %c0_1] : memref<16x512xf32, #tpu.memory_space<vmem>>, vector<16x512xf32>
    %c0_2 = arith.constant 0 : index
    %c0_3 = arith.constant 0 : index
    %4 = vector.load %arg3[%c0_2, %c0_3] : memref<16x128xbf16, #tpu.memory_space<vmem>>, vector<16x128xbf16>
    %c0_4 = arith.constant 0 : index
    %c0_5 = arith.constant 0 : index
    %5 = vector.load %arg4[%c0_4, %c0_5] : memref<128x512xbf16, #tpu.memory_space<vmem>>, vector<128x512xbf16>
    %cst = arith.constant dense<0.000000e+00> : vector<16x512xf32>
    %6 = tpu.matmul %4, %5, %cst {dimension_numbers = #tpu.dot_dimension_numbers<[1], [0], [0], [1], [0, 0, 1, 1], [], []>} : vector<16x128xbf16>, vector<128x512xbf16>, vector<16x512xf32> -> vector<16x512xf32>
    %7 = arith.addf %3, %6 : vector<16x512xf32>
    %c0_6 = arith.constant 0 : index
    %c0_7 = arith.constant 0 : index
    %8 = vector.load %arg7[%c0_6, %c0_7] : memref<16x512xf32, #tpu.memory_space<vmem>>, vector<16x512xf32>
    tpu.vector_store %arg7[%c0_6, %c0_7], %7 {strides = array<i32>} : memref<16x512xf32, #tpu.memory_space<vmem>>, vector<16x512xf32>,
    %c0_i32_8 = arith.constant 0 : i32
    %9 = arith.cmpi eq, %arg2, %c0_i32_8 : i32
    %10 = arith.extui %9 : i1 to i32
    %c0_i32_9 = arith.constant 0 : i32
    %11 = arith.cmpi ne, %10, %c0_i32_9 : i32
    scf.if %11 {
      %c0_10 = arith.constant 0 : index
      %c0_11 = arith.constant 0 : index
      %12 = vector.load %arg7[%c0_10, %c0_11] : memref<16x512xf32, #tpu.memory_space<vmem>>, vector<16x512xf32>
      %c0_12 = arith.constant 0 : index
      %c0_13 = arith.constant 0 : index
      %13 = vector.load %arg5[%c0_12, %c0_13] : memref<1x512xf32, #tpu.memory_space<vmem>>, vector<1x512xf32>
      %14 = vector.broadcast %13 : vector<1x512xf32> to vector<16x512xf32>
      %15 = arith.addf %12, %14 : vector<16x512xf32>
      %16 = arith.truncf %15 : vector<16x512xf32> to vector<16x512xbf16>
      %c0_14 = arith.constant 0 : index
      %c0_15 = arith.constant 0 : index
      %17 = vector.load %arg6[%c0_14, %c0_15] : memref<16x512xbf16, #tpu.memory_space<vmem>>, vector<16x512xbf16>
      tpu.vector_store %arg6[%c0_14, %c0_15], %16 {strides = array<i32>} : memref<16x512xbf16, #tpu.memory_space<vmem>>, vector<16x512xbf16>,
    } else {
    }
    return
  }
  func.func @transform_0(%arg0: i32, %arg1: i32, %arg2: i32) -> (i32, i32) {
    %c0_i32 = arith.constant 0 : i32
    return %arg0, %arg2 : i32, i32
  }
  func.func @transform_1(%arg0: i32, %arg1: i32, %arg2: i32) -> (i32, i32) {
    %c0_i32 = arith.constant 0 : i32
    return %arg2, %arg1 : i32, i32
  }
  func.func @transform_2(%arg0: i32, %arg1: i32, %arg2: i32) -> (i32, i32) {
    %c0_i32 = arith.constant 0 : i32
    %c0_i32_0 = arith.constant 0 : i32
    return %c0_i32, %arg1 : i32, i32
  }
  func.func @transform_3(%arg0: i32, %arg1: i32, %arg2: i32) -> (i32, i32) {
    %c0_i32 = arith.constant 0 : i32
    return %arg0, %arg1 : i32, i32
  }
}

module attributes {stable_mosaic.version = 11 : i64} {
  func.func @_matmul_bias_act_kernel(%arg0: i32, %arg1: i32, %arg2: i32, %arg3: memref<64x512xbf16, #tpu.memory_space<vmem>>, %arg4: memref<512x512xbf16, #tpu.memory_space<vmem>>, %arg5: memref<64x1xf32, #tpu.memory_space<vmem>>, %arg6: memref<64x512xbf16, #tpu.memory_space<vmem>>, %arg7: memref<64x512xf32, #tpu.memory_space<vmem>>) attributes {dimension_semantics = [#tpu.dimension_semantics<parallel>, #tpu.dimension_semantics<parallel>, #tpu.dimension_semantics<arbitrary>], iteration_bounds = array<i64: 1, 4, 1>, scalar_prefetch = 0 : i64, scratch_operands = 1 : i64, tpu.core_type = #tpu.core_type<tc>, window_params = [{transform_indices = @transform_0, window_bounds = array<i64: 64, 512>}, {transform_indices = @transform_1, window_bounds = array<i64: 512, 512>}, {transform_indices = @transform_2, window_bounds = array<i64: 64, 1>}, {transform_indices = @transform_3, window_bounds = array<i64: 64, 512>}]} {
    %c0_i32 = arith.constant 0 : i32
    %0 = arith.cmpi eq, %arg2, %c0_i32 : i32
    %1 = arith.extui %0 : i1 to i32
    %c0_i32_0 = arith.constant 0 : i32
    %2 = arith.cmpi ne, %1, %c0_i32_0 : i32
    scf.if %2 {
      %cst_10 = arith.constant 0.000000e+00 : f32
      %12 = vector.broadcast %cst_10 : f32 to vector<64x512xf32>
      %c0_11 = arith.constant 0 : index
      %c0_12 = arith.constant 0 : index
      %13 = vector.load %arg7[%c0_11, %c0_12] : memref<64x512xf32, #tpu.memory_space<vmem>>, vector<64x512xf32>
      tpu.vector_store %arg7[%c0_11, %c0_12], %12 {strides = array<i32>} : memref<64x512xf32, #tpu.memory_space<vmem>>, vector<64x512xf32>,
    } else {
    }
    %c0 = arith.constant 0 : index
    %c0_1 = arith.constant 0 : index
    %3 = vector.load %arg7[%c0, %c0_1] : memref<64x512xf32, #tpu.memory_space<vmem>>, vector<64x512xf32>
    %c0_2 = arith.constant 0 : index
    %c0_3 = arith.constant 0 : index
    %4 = vector.load %arg3[%c0_2, %c0_3] : memref<64x512xbf16, #tpu.memory_space<vmem>>, vector<64x512xbf16>
    %c0_4 = arith.constant 0 : index
    %c0_5 = arith.constant 0 : index
    %5 = vector.load %arg4[%c0_4, %c0_5] : memref<512x512xbf16, #tpu.memory_space<vmem>>, vector<512x512xbf16>
    %cst = arith.constant dense<0.000000e+00> : vector<64x512xf32>
    %6 = tpu.matmul %4, %5, %cst {dimension_numbers = #tpu.dot_dimension_numbers<[1], [0], [0], [1], [0, 0, 1, 1], [], []>} : vector<64x512xbf16>, vector<512x512xbf16>, vector<64x512xf32> -> vector<64x512xf32>
    %7 = arith.addf %3, %6 : vector<64x512xf32>
    %c0_6 = arith.constant 0 : index
    %c0_7 = arith.constant 0 : index
    %8 = vector.load %arg7[%c0_6, %c0_7] : memref<64x512xf32, #tpu.memory_space<vmem>>, vector<64x512xf32>
    tpu.vector_store %arg7[%c0_6, %c0_7], %7 {strides = array<i32>} : memref<64x512xf32, #tpu.memory_space<vmem>>, vector<64x512xf32>,
    %c0_i32_8 = arith.constant 0 : i32
    %9 = arith.cmpi eq, %arg2, %c0_i32_8 : i32
    %10 = arith.extui %9 : i1 to i32
    %c0_i32_9 = arith.constant 0 : i32
    %11 = arith.cmpi ne, %10, %c0_i32_9 : i32
    scf.if %11 {
      %c0_10 = arith.constant 0 : index
      %c0_11 = arith.constant 0 : index
      %12 = vector.load %arg7[%c0_10, %c0_11] : memref<64x512xf32, #tpu.memory_space<vmem>>, vector<64x512xf32>
      %c0_12 = arith.constant 0 : index
      %c0_13 = arith.constant 0 : index
      %13 = vector.load %arg5[%c0_12, %c0_13] : memref<64x1xf32, #tpu.memory_space<vmem>>, vector<64x1xf32>
      %14 = vector.broadcast %13 : vector<64x1xf32> to vector<64x512xf32>
      %15 = arith.addf %12, %14 : vector<64x512xf32>
      %cst_14 = arith.constant 0.000000e+00 : f32
      %16 = vector.broadcast %cst_14 : f32 to vector<64x512xf32>
      %17 = arith.maximumf %15, %16 : vector<64x512xf32>
      %18 = arith.truncf %17 : vector<64x512xf32> to vector<64x512xbf16>
      %c0_15 = arith.constant 0 : index
      %c0_16 = arith.constant 0 : index
      %19 = vector.load %arg6[%c0_15, %c0_16] : memref<64x512xbf16, #tpu.memory_space<vmem>>, vector<64x512xbf16>
      tpu.vector_store %arg6[%c0_15, %c0_16], %18 {strides = array<i32>} : memref<64x512xbf16, #tpu.memory_space<vmem>>, vector<64x512xbf16>,
    } else {
    }
    return
  }
  func.func @transform_0(%arg0: i32, %arg1: i32, %arg2: i32) -> (i32, i32) {
    %c0_i32 = arith.constant 0 : i32
    return %arg0, %arg2 : i32, i32
  }
  func.func @transform_1(%arg0: i32, %arg1: i32, %arg2: i32) -> (i32, i32) {
    %c0_i32 = arith.constant 0 : i32
    return %arg2, %arg1 : i32, i32
  }
  func.func @transform_2(%arg0: i32, %arg1: i32, %arg2: i32) -> (i32, i32) {
    %c0_i32 = arith.constant 0 : i32
    %c0_i32_0 = arith.constant 0 : i32
    return %arg0, %c0_i32 : i32, i32
  }
  func.func @transform_3(%arg0: i32, %arg1: i32, %arg2: i32) -> (i32, i32) {
    %c0_i32 = arith.constant 0 : i32
    return %arg0, %arg1 : i32, i32
  }
}

module attributes {stable_mosaic.version = 11 : i64} {
  func.func @_matmul_bias_act_kernel(%arg0: i32, %arg1: i32, %arg2: i32, %arg3: memref<32x256xbf16, #tpu.memory_space<vmem>>, %arg4: memref<256x512xbf16, #tpu.memory_space<vmem>>, %arg5: memref<32x1xf32, #tpu.memory_space<vmem>>, %arg6: memref<32x512xbf16, #tpu.memory_space<vmem>>, %arg7: memref<32x512xf32, #tpu.memory_space<vmem>>) attributes {dimension_semantics = [#tpu.dimension_semantics<parallel>, #tpu.dimension_semantics<parallel>, #tpu.dimension_semantics<arbitrary>], iteration_bounds = array<i64: 1, 16, 1>, scalar_prefetch = 0 : i64, scratch_operands = 1 : i64, tpu.core_type = #tpu.core_type<tc>, window_params = [{transform_indices = @transform_0, window_bounds = array<i64: 32, 256>}, {transform_indices = @transform_1, window_bounds = array<i64: 256, 512>}, {transform_indices = @transform_2, window_bounds = array<i64: 32, 1>}, {transform_indices = @transform_3, window_bounds = array<i64: 32, 512>}]} {
    %c0_i32 = arith.constant 0 : i32
    %0 = arith.cmpi eq, %arg2, %c0_i32 : i32
    %1 = arith.extui %0 : i1 to i32
    %c0_i32_0 = arith.constant 0 : i32
    %2 = arith.cmpi ne, %1, %c0_i32_0 : i32
    scf.if %2 {
      %cst_10 = arith.constant 0.000000e+00 : f32
      %12 = vector.broadcast %cst_10 : f32 to vector<32x512xf32>
      %c0_11 = arith.constant 0 : index
      %c0_12 = arith.constant 0 : index
      %13 = vector.load %arg7[%c0_11, %c0_12] : memref<32x512xf32, #tpu.memory_space<vmem>>, vector<32x512xf32>
      tpu.vector_store %arg7[%c0_11, %c0_12], %12 {strides = array<i32>} : memref<32x512xf32, #tpu.memory_space<vmem>>, vector<32x512xf32>,
    } else {
    }
    %c0 = arith.constant 0 : index
    %c0_1 = arith.constant 0 : index
    %3 = vector.load %arg7[%c0, %c0_1] : memref<32x512xf32, #tpu.memory_space<vmem>>, vector<32x512xf32>
    %c0_2 = arith.constant 0 : index
    %c0_3 = arith.constant 0 : index
    %4 = vector.load %arg3[%c0_2, %c0_3] : memref<32x256xbf16, #tpu.memory_space<vmem>>, vector<32x256xbf16>
    %c0_4 = arith.constant 0 : index
    %c0_5 = arith.constant 0 : index
    %5 = vector.load %arg4[%c0_4, %c0_5] : memref<256x512xbf16, #tpu.memory_space<vmem>>, vector<256x512xbf16>
    %cst = arith.constant dense<0.000000e+00> : vector<32x512xf32>
    %6 = tpu.matmul %4, %5, %cst {dimension_numbers = #tpu.dot_dimension_numbers<[1], [0], [0], [1], [0, 0, 1, 1], [], []>} : vector<32x256xbf16>, vector<256x512xbf16>, vector<32x512xf32> -> vector<32x512xf32>
    %7 = arith.addf %3, %6 : vector<32x512xf32>
    %c0_6 = arith.constant 0 : index
    %c0_7 = arith.constant 0 : index
    %8 = vector.load %arg7[%c0_6, %c0_7] : memref<32x512xf32, #tpu.memory_space<vmem>>, vector<32x512xf32>
    tpu.vector_store %arg7[%c0_6, %c0_7], %7 {strides = array<i32>} : memref<32x512xf32, #tpu.memory_space<vmem>>, vector<32x512xf32>,
    %c0_i32_8 = arith.constant 0 : i32
    %9 = arith.cmpi eq, %arg2, %c0_i32_8 : i32
    %10 = arith.extui %9 : i1 to i32
    %c0_i32_9 = arith.constant 0 : i32
    %11 = arith.cmpi ne, %10, %c0_i32_9 : i32
    scf.if %11 {
      %c0_10 = arith.constant 0 : index
      %c0_11 = arith.constant 0 : index
      %12 = vector.load %arg7[%c0_10, %c0_11] : memref<32x512xf32, #tpu.memory_space<vmem>>, vector<32x512xf32>
      %c0_12 = arith.constant 0 : index
      %c0_13 = arith.constant 0 : index
      %13 = vector.load %arg5[%c0_12, %c0_13] : memref<32x1xf32, #tpu.memory_space<vmem>>, vector<32x1xf32>
      %14 = vector.broadcast %13 : vector<32x1xf32> to vector<32x512xf32>
      %15 = arith.addf %12, %14 : vector<32x512xf32>
      %cst_14 = arith.constant 0.000000e+00 : f32
      %16 = vector.broadcast %cst_14 : f32 to vector<32x512xf32>
      %17 = arith.maximumf %15, %16 : vector<32x512xf32>
      %18 = arith.truncf %17 : vector<32x512xf32> to vector<32x512xbf16>
      %c0_15 = arith.constant 0 : index
      %c0_16 = arith.constant 0 : index
      %19 = vector.load %arg6[%c0_15, %c0_16] : memref<32x512xbf16, #tpu.memory_space<vmem>>, vector<32x512xbf16>
      tpu.vector_store %arg6[%c0_15, %c0_16], %18 {strides = array<i32>} : memref<32x512xbf16, #tpu.memory_space<vmem>>, vector<32x512xbf16>,
    } else {
    }
    return
  }
  func.func @transform_0(%arg0: i32, %arg1: i32, %arg2: i32) -> (i32, i32) {
    %c0_i32 = arith.constant 0 : i32
    return %arg0, %arg2 : i32, i32
  }
  func.func @transform_1(%arg0: i32, %arg1: i32, %arg2: i32) -> (i32, i32) {
    %c0_i32 = arith.constant 0 : i32
    return %arg2, %arg1 : i32, i32
  }
  func.func @transform_2(%arg0: i32, %arg1: i32, %arg2: i32) -> (i32, i32) {
    %c0_i32 = arith.constant 0 : i32
    %c0_i32_0 = arith.constant 0 : i32
    return %arg0, %c0_i32 : i32, i32
  }
  func.func @transform_3(%arg0: i32, %arg1: i32, %arg2: i32) -> (i32, i32) {
    %c0_i32 = arith.constant 0 : i32
    return %arg0, %arg1 : i32, i32
  }
}

module attributes {stable_mosaic.version = 11 : i64} {
  func.func @_matmul_bias_act_kernel(%arg0: i32, %arg1: i32, %arg2: i32, %arg3: memref<16x128xbf16, #tpu.memory_space<vmem>>, %arg4: memref<128x512xbf16, #tpu.memory_space<vmem>>, %arg5: memref<16x1xf32, #tpu.memory_space<vmem>>, %arg6: memref<16x512xf32, #tpu.memory_space<vmem>>, %arg7: memref<16x512xf32, #tpu.memory_space<vmem>>) attributes {dimension_semantics = [#tpu.dimension_semantics<parallel>, #tpu.dimension_semantics<parallel>, #tpu.dimension_semantics<arbitrary>], iteration_bounds = array<i64: 1, 64, 1>, scalar_prefetch = 0 : i64, scratch_operands = 1 : i64, tpu.core_type = #tpu.core_type<tc>, window_params = [{transform_indices = @transform_0, window_bounds = array<i64: 16, 128>}, {transform_indices = @transform_1, window_bounds = array<i64: 128, 512>}, {transform_indices = @transform_2, window_bounds = array<i64: 16, 1>}, {transform_indices = @transform_3, window_bounds = array<i64: 16, 512>}]} {
    %c0_i32 = arith.constant 0 : i32
    %0 = arith.cmpi eq, %arg2, %c0_i32 : i32
    %1 = arith.extui %0 : i1 to i32
    %c0_i32_0 = arith.constant 0 : i32
    %2 = arith.cmpi ne, %1, %c0_i32_0 : i32
    scf.if %2 {
      %cst_10 = arith.constant 0.000000e+00 : f32
      %12 = vector.broadcast %cst_10 : f32 to vector<16x512xf32>
      %c0_11 = arith.constant 0 : index
      %c0_12 = arith.constant 0 : index
      %13 = vector.load %arg7[%c0_11, %c0_12] : memref<16x512xf32, #tpu.memory_space<vmem>>, vector<16x512xf32>
      tpu.vector_store %arg7[%c0_11, %c0_12], %12 {strides = array<i32>} : memref<16x512xf32, #tpu.memory_space<vmem>>, vector<16x512xf32>,
    } else {
    }
    %c0 = arith.constant 0 : index
    %c0_1 = arith.constant 0 : index
    %3 = vector.load %arg7[%c0, %c0_1] : memref<16x512xf32, #tpu.memory_space<vmem>>, vector<16x512xf32>
    %c0_2 = arith.constant 0 : index
    %c0_3 = arith.constant 0 : index
    %4 = vector.load %arg3[%c0_2, %c0_3] : memref<16x128xbf16, #tpu.memory_space<vmem>>, vector<16x128xbf16>
    %c0_4 = arith.constant 0 : index
    %c0_5 = arith.constant 0 : index
    %5 = vector.load %arg4[%c0_4, %c0_5] : memref<128x512xbf16, #tpu.memory_space<vmem>>, vector<128x512xbf16>
    %cst = arith.constant dense<0.000000e+00> : vector<16x512xf32>
    %6 = tpu.matmul %4, %5, %cst {dimension_numbers = #tpu.dot_dimension_numbers<[1], [0], [0], [1], [0, 0, 1, 1], [], []>} : vector<16x128xbf16>, vector<128x512xbf16>, vector<16x512xf32> -> vector<16x512xf32>
    %7 = arith.addf %3, %6 : vector<16x512xf32>
    %c0_6 = arith.constant 0 : index
    %c0_7 = arith.constant 0 : index
    %8 = vector.load %arg7[%c0_6, %c0_7] : memref<16x512xf32, #tpu.memory_space<vmem>>, vector<16x512xf32>
    tpu.vector_store %arg7[%c0_6, %c0_7], %7 {strides = array<i32>} : memref<16x512xf32, #tpu.memory_space<vmem>>, vector<16x512xf32>,
    %c0_i32_8 = arith.constant 0 : i32
    %9 = arith.cmpi eq, %arg2, %c0_i32_8 : i32
    %10 = arith.extui %9 : i1 to i32
    %c0_i32_9 = arith.constant 0 : i32
    %11 = arith.cmpi ne, %10, %c0_i32_9 : i32
    scf.if %11 {
      %c0_10 = arith.constant 0 : index
      %c0_11 = arith.constant 0 : index
      %12 = vector.load %arg7[%c0_10, %c0_11] : memref<16x512xf32, #tpu.memory_space<vmem>>, vector<16x512xf32>
      %c0_12 = arith.constant 0 : index
      %c0_13 = arith.constant 0 : index
      %13 = vector.load %arg5[%c0_12, %c0_13] : memref<16x1xf32, #tpu.memory_space<vmem>>, vector<16x1xf32>
      %14 = vector.broadcast %13 : vector<16x1xf32> to vector<16x512xf32>
      %15 = arith.addf %12, %14 : vector<16x512xf32>
      %16 = math.tanh %15 : vector<16x512xf32>
      %c0_14 = arith.constant 0 : index
      %c0_15 = arith.constant 0 : index
      %17 = vector.load %arg6[%c0_14, %c0_15] : memref<16x512xf32, #tpu.memory_space<vmem>>, vector<16x512xf32>
      tpu.vector_store %arg6[%c0_14, %c0_15], %16 {strides = array<i32>} : memref<16x512xf32, #tpu.memory_space<vmem>>, vector<16x512xf32>,
    } else {
    }
    return
  }
  func.func @transform_0(%arg0: i32, %arg1: i32, %arg2: i32) -> (i32, i32) {
    %c0_i32 = arith.constant 0 : i32
    return %arg0, %arg2 : i32, i32
  }
  func.func @transform_1(%arg0: i32, %arg1: i32, %arg2: i32) -> (i32, i32) {
    %c0_i32 = arith.constant 0 : i32
    return %arg2, %arg1 : i32, i32
  }
  func.func @transform_2(%arg0: i32, %arg1: i32, %arg2: i32) -> (i32, i32) {
    %c0_i32 = arith.constant 0 : i32
    %c0_i32_0 = arith.constant 0 : i32
    return %arg0, %c0_i32 : i32, i32
  }
  func.func @transform_3(%arg0: i32, %arg1: i32, %arg2: i32) -> (i32, i32) {
    %c0_i32 = arith.constant 0 : i32
    return %arg0, %arg1 : i32, i32
  }
}

</mosaic_0001>

<bundles_post_ra>
// kernel: conv_vae_forward.18
= control target key start
LH: loop header
LB: loop body
LE: loop exit
PB: predicated region body
PF: predicated region fallthrough
CT: control target
= control target key end

     0   :  { %s1220_s12 = smov 0   ;;  %s1222_s13 = smov 0   ;;  %s1440_s0 = inlined_call_operand.vmem [shape: bf16[32,128], index: 0, kind: input, shape index: {}]   ;;  %s1441_s1 = inlined_call_operand.vmem [shape: bf16[128,32768], index: 1, kind: input, shape index: {}]   ;;  %s1442_s2 = inlined_call_operand.vmem [shape: f32[32,1], index: 2, kind: input, shape index: {}]   ;;  %s1443_s3 = inlined_call_operand.vmem [shape: bf16[32,32768], index: 3, kind: output, shape index: {}]  }
   0x1   :  { %s1224_s14 = smov 0   ;;  %s1226_s15 = smov 0  }
   0x2   :  { %s1228_s16 = smov 0  }
   0x3 LB: > { %s28_s17 = sadd.s32 1, %s1193_s15  ;;  %s997_s18 = sadd.s32 4294967295, %s1197_s16   ;;  %s1197_s16 = sphi %s1228_s16, %s13_s16   ;;  %s1193_s15 = sphi %s1226_s15, %s1448_s15   ;;  %s1189_s14 = sphi %s1224_s14, %s1447_s14   ;;  %s1185_s13 = sphi %s1222_s13, %s1446_s13   ;;  %s1181_s12 = sphi %s1220_s12, %s1445_s12  }
   0x4   : > { %p30_p0 = scmp.ge.s32.totalorder %s28_s17, 64  ;;  %p76_p1 = scmp.ne.s32.totalorder %s1185_s13, %s1181_s12 }
   0x5   : > { %p77_p2 = scmp.eq.s32.totalorder %s1197_s16, 0  ;;  %p134_p4 = scmp.eq.s32.totalorder %s997_s18, 63 }
   0x6   : > { %s1450_s17 = smov (%p30_p0, %s28_s17), 0  ;;  %s69_s20 = sadd.s32 1, %s1185_s13 }
   0x7   : > { %p78_p3 = por %p77_p2, %p76_p1  ;;  %s65_s19 = ssub.s32 %s1193_s15, %s1450_s17 }
   0x8   : > { %p67_p5 = scmp.eq.s32.totalorder %s65_s19, 0  ;;  %p1255_p6 = por %p134_p4, %p76_p1 }
   0x9   : > { %p1002_p7 = scmp.ge.s32.totalorder %s1197_s16, 64 }
   0xa   : > { %s1260_s22 = scalar_select %p67_p5, %s1185_s13, %s69_s20  }
   0xb   : > { %177 = sbr.rel (%p1002_p7) target bundleno = 36 (0x24), region = 24 }
  0x10   : > { %180 = sbr.rel (!%p78_p3) target bundleno = 36 (0x24), region = 28  ;;  %s182_s23 = sand.u32 (%p78_p3), 1, %s1185_s13  }
  0x11   : > { %s1056_s24 = sshll.u32 (%p78_p3), %s1193_s15, 4  ;;  %s1003_s25 = sshll.u32 (%p78_p3), %s182_s23, 8 }
  0x12   : > { %s1268_s28 = scalar_lea.vmem (%p78_p3), %s1441_s1, %s1056_s24  ;;  %s1273_s29 = scalar_lea.vmem (%p78_p3), [#allocation3], %s1003_s25 }
  0x13   : > { %v203_v0 = vld [vmem:[%s1268_s28] sm:$0xff] (%p78_p3)  ;;  %v205_v1 = vld [vmem:[%s1268_s28 + $0x8] sm:$0xff] (%p78_p3) }
  0x14   : > { %v207_v2 = vld [vmem:[%s1268_s28 + $0x400] sm:$0xff] (%p78_p3)  ;;  %204 = vst [vmem:[%s1273_s29] sm:$0xff] (%p78_p3), %v203_v0  ;;  %206 = vst [vmem:[%s1273_s29 + $0x8] sm:$0xff] (%p78_p3), %v205_v1  ;;  %v209_v3 = vld [vmem:[%s1268_s28 + $0x408] sm:$0xff] (%p78_p3) }
  0x15   : > { %208 = vst [vmem:[%s1273_s29 + $0x10] sm:$0xff] %v207_v2  ;;  %v211_v4 = vld [vmem:[%s1268_s28 + $0x800] sm:$0xff]  ;;  %v213_v5 = vld [vmem:[%s1268_s28 + $0x808] sm:$0xff]  ;;  %210 = vst [vmem:[%s1273_s29 + $0x18] sm:$0xff] %v209_v3 }
  0x16   : > { %212 = vst [vmem:[%s1273_s29 + $0x20] sm:$0xff] %v211_v4  ;;  %214 = vst [vmem:[%s1273_s29 + $0x28] sm:$0xff] %v213_v5  ;;  %v215_v6 = vld [vmem:[%s1268_s28 + $0xc00] sm:$0xff]  ;;  %v217_v7 = vld [vmem:[%s1268_s28 + $0xc08] sm:$0xff] }
  0x17   : > { %v219_v8 = vld [vmem:[%s1268_s28 + $0x1000] sm:$0xff]  ;;  %216 = vst [vmem:[%s1273_s29 + $0x30] sm:$0xff] %v215_v6  ;;  %218 = vst [vmem:[%s1273_s29 + $0x38] sm:$0xff] %v217_v7  ;;  %v221_v9 = vld [vmem:[%s1268_s28 + $0x1008] sm:$0xff] }
  0x18   : > { %220 = vst [vmem:[%s1273_s29 + $0x40] sm:$0xff] %v219_v8  ;;  %v223_v10 = vld [vmem:[%s1268_s28 + $0x1400] sm:$0xff]  ;;  %v225_v11 = vld [vmem:[%s1268_s28 + $0x1408] sm:$0xff]  ;;  %222 = vst [vmem:[%s1273_s29 + $0x48] sm:$0xff] %v221_v9 }
  0x19   : > { %224 = vst [vmem:[%s1273_s29 + $0x50] sm:$0xff] %v223_v10  ;;  %226 = vst [vmem:[%s1273_s29 + $0x58] sm:$0xff] %v225_v11  ;;  %v227_v12 = vld [vmem:[%s1268_s28 + $0x1800] sm:$0xff]  ;;  %v229_v13 = vld [vmem:[%s1268_s28 + $0x1808] sm:$0xff] }
  0x1a   : > { %v231_v14 = vld [vmem:[%s1268_s28 + $0x1c00] sm:$0xff]  ;;  %228 = vst [vmem:[%s1273_s29 + $0x60] sm:$0xff] %v227_v12  ;;  %230 = vst [vmem:[%s1273_s29 + $0x68] sm:$0xff] %v229_v13  ;;  %v233_v15 = vld [vmem:[%s1268_s28 + $0x1c08] sm:$0xff] }
  0x1b   : > { %232 = vst [vmem:[%s1273_s29 + $0x70] sm:$0xff] %v231_v14  ;;  %v235_v16 = vld [vmem:[%s1268_s28 + $0x2000] sm:$0xff]  ;;  %v237_v17 = vld [vmem:[%s1268_s28 + $0x2008] sm:$0xff]  ;;  %234 = vst [vmem:[%s1273_s29 + $0x78] sm:$0xff] %v233_v15 }
  0x1c   : > { %236 = vst [vmem:[%s1273_s29 + $0x80] sm:$0xff] %v235_v16  ;;  %238 = vst [vmem:[%s1273_s29 + $0x88] sm:$0xff] %v237_v17  ;;  %v239_v18 = vld [vmem:[%s1268_s28 + $0x2400] sm:$0xff]  ;;  %v241_v19 = vld [vmem:[%s1268_s28 + $0x2408] sm:$0xff] }
  0x1d   : > { %v243_v20 = vld [vmem:[%s1268_s28 + $0x2800] sm:$0xff]  ;;  %240 = vst [vmem:[%s1273_s29 + $0x90] sm:$0xff] %v239_v18  ;;  %242 = vst [vmem:[%s1273_s29 + $0x98] sm:$0xff] %v241_v19  ;;  %v245_v21 = vld [vmem:[%s1268_s28 + $0x2808] sm:$0xff] }
  0x1e   : > { %244 = vst [vmem:[%s1273_s29 + $0xa0] sm:$0xff] %v243_v20  ;;  %v247_v22 = vld [vmem:[%s1268_s28 + $0x2c00] sm:$0xff]  ;;  %v249_v23 = vld [vmem:[%s1268_s28 + $0x2c08] sm:$0xff]  ;;  %246 = vst [vmem:[%s1273_s29 + $0xa8] sm:$0xff] %v245_v21 }
  0x1f   : > { %248 = vst [vmem:[%s1273_s29 + $0xb0] sm:$0xff] %v247_v22  ;;  %250 = vst [vmem:[%s1273_s29 + $0xb8] sm:$0xff] %v249_v23  ;;  %v251_v24 = vld [vmem:[%s1268_s28 + $0x3000] sm:$0xff]  ;;  %v253_v25 = vld [vmem:[%s1268_s28 + $0x3008] sm:$0xff] }
  0x20   : > { %v255_v26 = vld [vmem:[%s1268_s28 + $0x3400] sm:$0xff]  ;;  %252 = vst [vmem:[%s1273_s29 + $0xc0] sm:$0xff] %v251_v24  ;;  %254 = vst [vmem:[%s1273_s29 + $0xc8] sm:$0xff] %v253_v25  ;;  %v257_v27 = vld [vmem:[%s1268_s28 + $0x3408] sm:$0xff] }
  0x21   : > { %256 = vst [vmem:[%s1273_s29 + $0xd0] sm:$0xff] %v255_v26  ;;  %v259_v28 = vld [vmem:[%s1268_s28 + $0x3800] sm:$0xff]  ;;  %v261_v29 = vld [vmem:[%s1268_s28 + $0x3808] sm:$0xff]  ;;  %258 = vst [vmem:[%s1273_s29 + $0xd8] sm:$0xff] %v257_v27 }
  0x22   : > { %260 = vst [vmem:[%s1273_s29 + $0xe0] sm:$0xff] %v259_v28  ;;  %262 = vst [vmem:[%s1273_s29 + $0xe8] sm:$0xff] %v261_v29  ;;  %v263_v30 = vld [vmem:[%s1268_s28 + $0x3c00] sm:$0xff]  ;;  %v265_v31 = vld [vmem:[%s1268_s28 + $0x3c08] sm:$0xff] }
  0x23   : > { %264 = vst [vmem:[%s1273_s29 + $0xf0] sm:$0xff] %v263_v30  ;;  %266 = vst [vmem:[%s1273_s29 + $0xf8] sm:$0xff] %v265_v31 }
  0x24 PF: > { %p1006_p8 = scmp.ge.s32.totalorder %s1197_s16, 1  ;;  %p271_p9 = scmp.lt.s32.totalorder %s1197_s16, 65 }
  0x26   : > { %p272_p10 = pnand %p1006_p8, %p271_p9 }
  0x27   : > { %s278_s30 = sand.u32 (!%p272_p10), 1, %s1181_s12  }
  0x28   : > { %275 = sbr.rel (%p272_p10) target bundleno = 303 (0x12f), region = 51  ;;  %s1007_s4 = sshll.u32 (!%p272_p10), %s278_s30, 8 }
  0x29   : > { %s1348_s7 = scalar_lea.vmem (!%p272_p10), [#allocation3], %s1007_s4  ;;  %s1008_s26 = sshll.u32 (!%p272_p10), %s278_s30, 6 }
  0x2a   : > { %s1401_s12 = scalar_lea.vmem (!%p272_p10), [#allocation4], %s1008_s26 }
  0x2d   : > { %v1199_v32 = vmov 0   ;;  %v734_v33 = vld [vmem:[%s1442_s2] sm:$0xff]  ;;  %v735_v35 = vld [vmem:[%s1442_s2 + $0x8] sm:$0xff]  ;;  %v736_v61 = vld [vmem:[%s1442_s2 + $0x10] sm:$0xff]  ;;  %s1065_s27 = sshll.u32 (%p1255_p6), %s1189_s14, 4 }
  0x2e   : > { %609 = vmatprep.mubr.bf16.mxu0 %v1199_v32  ;;  %662 = vmatprep.mubr.bf16.mxu1 %v1199_v32  ;;  %v1109_v34 = vld [vmem:[%s1348_s7 + $0xe4] ss:$16 sps:$4 sm:$0xff]   ;;  %v1111_v36 = vld [vmem:[%s1348_s7 + $0xec] ss:$16 sps:$4 sm:$0xff]   ;;  %v1113_v37 = vld [vmem:[%s1348_s7 + $0xe0] ss:$16 sps:$4 sm:$0xff]   ;;  %s858_s30 = scalar_lea.vmem (%p1255_p6), %s1443_s3, %s1065_s27 }
  0x2f   : > { %1107 = vset.pattern.permute.xlu0 %v1199_v32  ;;  %1108 = vset.pattern.permute.xlu1 %v1199_v32  ;;  %v1114_v38 = vld [vmem:[%s1348_s7 + $0xe8] ss:$16 sps:$4 sm:$0xff]   ;;  %v1115_v39 = vld [vmem:[%s1348_s7 + $0xc4] ss:$16 sps:$4 sm:$0xff]   ;;  %v1117_v40 = vld [vmem:[%s1348_s7 + $0xcc] ss:$16 sps:$4 sm:$0xff]  }
  0x30   : > { %740 = vperm.xlu0 %1107, %v734_v33   ;;  %577 = vmatprep.subr.bf16.mxu0 %v1109_v34  ;;  %v1119_v41 = vld [vmem:[%s1348_s7 + $0xc0] ss:$16 sps:$4 sm:$0xff]   ;;  %v1120_v42 = vld [vmem:[%s1348_s7 + $0xc8] ss:$16 sps:$4 sm:$0xff]   ;;  %v1121_v43 = vld [vmem:[%s1348_s7 + $0xa4] ss:$16 sps:$4 sm:$0xff]  }
  0x31   : > { %630 = vmatprep.subr.bf16.mxu1 %v1111_v36  ;;  %578 = vmatpush1.bf16.msra.mxu0 %v1113_v37  ;;  %v1123_v44 = vld [vmem:[%s1348_s7 + $0xac] ss:$16 sps:$4 sm:$0xff]   ;;  %v1125_v45 = vld [vmem:[%s1348_s7 + $0xa0] ss:$16 sps:$4 sm:$0xff]   ;;  %v1126_v46 = vld [vmem:[%s1348_s7 + $0xa8] ss:$16 sps:$4 sm:$0xff]  }
  0x32   : > { %631 = vmatpush1.bf16.msra.mxu1 %v1114_v38  ;;  %579 = vmatprep.subr.bf16.mxu0 %v1115_v39  ;;  %v1127_v47 = vld [vmem:[%s1348_s7 + $0x84] ss:$16 sps:$4 sm:$0xff]   ;;  %v1129_v48 = vld [vmem:[%s1348_s7 + $0x8c] ss:$16 sps:$4 sm:$0xff]   ;;  %v1131_v49 = vld [vmem:[%s1348_s7 + $0x80] ss:$16 sps:$4 sm:$0xff]  }
  0x33   : > { %632 = vmatprep.subr.bf16.mxu1 %v1117_v40  ;;  %v1132_v50 = vld [vmem:[%s1348_s7 + $0x88] ss:$16 sps:$4 sm:$0xff]   ;;  %v1133_v51 = vld [vmem:[%s1348_s7 + $0x64] ss:$16 sps:$4 sm:$0xff]   ;;  %v1135_v52 = vld [vmem:[%s1348_s7 + $0x6c] ss:$16 sps:$4 sm:$0xff]   ;;  %750 = vperm.xlu1 %1108, %v736_v61  }
  0x34   : > { %745 = vperm.xlu0 %1107, %v735_v35   ;;  %v1137_v53 = vld [vmem:[%s1348_s7 + $0x60] ss:$16 sps:$4 sm:$0xff]   ;;  %v1138_v54 = vld [vmem:[%s1348_s7 + $0x68] ss:$16 sps:$4 sm:$0xff]   ;;  %v1139_v55 = vld [vmem:[%s1348_s7 + $0x44] ss:$16 sps:$4 sm:$0xff]  }
  0x35   : > { %580 = vmatpush1.bf16.msra.mxu0 %v1119_v41  ;;  %v1141_v56 = vld [vmem:[%s1348_s7 + $0x4c] ss:$16 sps:$4 sm:$0xff]   ;;  %v1143_v57 = vld [vmem:[%s1348_s7 + $0x40] ss:$16 sps:$4 sm:$0xff]   ;;  %v1144_v58 = vld [vmem:[%s1348_s7 + $0x48] ss:$16 sps:$4 sm:$0xff]  }
  0x36   : > { %633 = vmatpush1.bf16.msra.mxu1 %v1120_v42  ;;  %581 = vmatprep.subr.bf16.mxu0 %v1121_v43  ;;  %v1145_v59 = vld [vmem:[%s1348_s7 + $0x24] ss:$16 sps:$4 sm:$0xff]   ;;  %v1147_v60 = vld [vmem:[%s1348_s7 + $0x2c] ss:$16 sps:$4 sm:$0xff]   ;;  %v1149_v63 = vld [vmem:[%s1348_s7 + $0x20] ss:$16 sps:$4 sm:$0xff]  }
  0x37   : > { %634 = vmatprep.subr.bf16.mxu1 %v1123_v44  ;;  %v737_v62 = vld [vmem:[%s1442_s2 + $0x18] sm:$0xff]  ;;  %v1151_v1 = vld [vmem:[%s1348_s7 + $0x4] ss:$16 sps:$4 sm:$0xff]   ;;  %v1155_v3 = vld [vmem:[%s1348_s7] ss:$16 sps:$4 sm:$0xff]  }
  0x38   : > { %v1150_v0 = vld [vmem:[%s1348_s7 + $0x28] ss:$16 sps:$4 sm:$0xff]   ;;  %v1153_v2 = vld [vmem:[%s1348_s7 + $0xc] ss:$16 sps:$4 sm:$0xff]   ;;  %755 = vperm.xlu1 %1108, %v737_v62   ;;  %v1157_v5 = vld [vmem:[%s1440_s0] sm:$0xff]  }
  0x39   : > { %582 = vmatpush1.bf16.msra.mxu0 %v1125_v45  ;;  %v1156_v4 = vld [vmem:[%s1348_s7 + $0x8] ss:$16 sps:$4 sm:$0xff]  }
  0x3a   : > { %635 = vmatpush1.bf16.msra.mxu1 %v1126_v46  ;;  %583 = vmatprep.subr.bf16.mxu0 %v1127_v47  ;;  %v1158_v6 = vld [vmem:[%s1440_s0 + $0x8] sm:$0xff]  }
  0x3b   : > { %636 = vmatprep.subr.bf16.mxu1 %v1129_v48 }
  0x3d   : > { %584 = vmatpush1.bf16.msra.mxu0 %v1131_v49 }
  0x3e   : > { %637 = vmatpush1.bf16.msra.mxu1 %v1132_v50  ;;  %585 = vmatprep.subr.bf16.mxu0 %v1133_v51 }
  0x3f   : > { %638 = vmatprep.subr.bf16.mxu1 %v1135_v52 }
  0x41   : > { %586 = vmatpush1.bf16.msra.mxu0 %v1137_v53 }
  0x42   : > { %639 = vmatpush1.bf16.msra.mxu1 %v1138_v54  ;;  %587 = vmatprep.subr.bf16.mxu0 %v1139_v55 }
  0x43   : > { %640 = vmatprep.subr.bf16.mxu1 %v1141_v56 }
  0x45   : > { %588 = vmatpush1.bf16.msra.mxu0 %v1143_v57 }
  0x46   : > { %641 = vmatpush1.bf16.msra.mxu1 %v1144_v58  ;;  %589 = vmatprep.subr.bf16.mxu0 %v1145_v59 }
  0x47   : > { %642 = vmatprep.subr.bf16.mxu1 %v1147_v60 }
  0x49   : > { %590 = vmatpush1.bf16.msra.mxu0 %v1149_v63 }
  0x4a   : > { %643 = vmatpush1.bf16.msra.mxu1 %v1150_v0  ;;  %591 = vmatprep.subr.bf16.mxu0 %v1151_v1 }
  0x4b   : > { %644 = vmatprep.subr.bf16.mxu1 %v1153_v2 }
  0x4d   : > { %592 = vmatpush1.bf16.msra.mxu0 %v1155_v3 }
  0x4e   : > { %645 = vmatpush1.bf16.msra.mxu1 %v1156_v4 }
  0x50   : > { %610 = vmatmul.mubr.bf16.vlgmr.msra.gmra.mxu0 %v1157_v5 }
  0x51   : > { %663 = vmatmul.mubr.bf16.vlgmr.msra.gmra.mxu1 %v1157_v5  ;;  %619 = vmatprep.mubr.bf16.mxu0 %v1199_v32 }
  0x52   : > { %672 = vmatprep.mubr.bf16.mxu1 %v1199_v32 }
  0x58   : > { %620 = vmatmul.mubr.bf16.gmra.mxu0 %v1158_v6 }
  0x59   : > { %673 = vmatmul.mubr.bf16.gmra.mxu1 %v1158_v6 }
  0xab   : > { %v741_v7 = vpop.permute.xlu0 %740 }
  0xae   : > { %v751_v29 = vpop.permute.xlu1 %750 }
  0xaf   : > { %v746_v16 = vpop.permute.xlu0 %745 }
  0xb3   : > { %v756_v50 = vpop.permute.xlu1 %755 }
 0x110   : > { %v611_v8 = vpop.f32.mrf.mxu0 }
 0x111   : > { %v664_v9 = vpop.f32.mrf.mxu1  ;;  %v758_v10 = vadd.f32 %v741_v7, %v611_v8 }
 0x112   : > { %v760_v11 = vadd.f32 %v741_v7, %v664_v9  ;;  %v613_v12 = vpop.f32.mrf.mxu0 }
 0x113   : > { %v666_v13 = vpop.f32.mrf.mxu1  ;;  %v759_v14 = vadd.f32 %v741_v7, %v613_v12  ;;  %v774_v19 = vmax.f32 %v758_v10, 0.0 }
 0x114   : > { %v761_v15 = vadd.f32 %v741_v7, %v666_v13  ;;  %v615_v17 = vpop.f32.mrf.mxu0  ;;  %v776_v20 = vmax.f32 %v760_v11, 0.0 }
 0x115   : > { %v668_v18 = vpop.f32.mrf.mxu1  ;;  %v775_v21 = vmax.f32 %v759_v14, 0.0  ;;  %v762_v23 = vadd.f32 %v746_v16, %v615_v17 }
 0x116   : > { %v777_v22 = vmax.f32 %v761_v15, 0.0  ;;  %v764_v24 = vadd.f32 %v746_v16, %v668_v18  ;;  %v617_v25 = vpop.f32.mrf.mxu0 }
 0x117   : > { %v670_v26 = vpop.f32.mrf.mxu1  ;;  %v1057_v27 = vpack.c.bf16 %v775_v21, %v774_v19  ;;  %v763_v30 = vadd.f32 %v746_v16, %v617_v25  ;;  %v778_v36 = vmax.f32 %v762_v23, 0.0 }
 0x118   : > { %v1058_v28 = vpack.c.bf16 %v777_v22, %v776_v20  ;;  %v765_v31 = vadd.f32 %v746_v16, %v670_v26  ;;  %v621_v32 = vpop.f32.mrf.mxu0  ;;  %v780_v37 = vmax.f32 %v764_v24, 0.0 }
 0x119   : > { %v674_v33 = vpop.f32.mrf.mxu1  ;;  %838 = vst [vmem:[%s1401_s12] sm:$0xff] %v1057_v27  ;;  %v766_v34 = vadd.f32 %v751_v29, %v621_v32  ;;  %v779_v38 = vmax.f32 %v763_v30, 0.0 }
 0x11a   : > { %839 = vst [vmem:[%s1401_s12 + $0x8] sm:$0xff] %v1058_v28  ;;  %v768_v35 = vadd.f32 %v751_v29, %v674_v33  ;;  %v781_v39 = vmax.f32 %v765_v31, 0.0  ;;  %v623_v40 = vpop.f32.mrf.mxu0 }
 0x11b   : > { %v676_v41 = vpop.f32.mrf.mxu1  ;;  %v767_v42 = vadd.f32 %v751_v29, %v623_v40  ;;  %v1059_v44 = vpack.c.bf16 %v779_v38, %v778_v36  ;;  %v782_v48 = vmax.f32 %v766_v34, 0.0 }
 0x11c   : > { %v769_v43 = vadd.f32 %v751_v29, %v676_v41  ;;  %v1060_v45 = vpack.c.bf16 %v781_v39, %v780_v37  ;;  %v625_v46 = vpop.f32.mrf.mxu0  ;;  %v784_v49 = vmax.f32 %v768_v35, 0.0 }
 0x11d   : > { %v678_v47 = vpop.f32.mrf.mxu1  ;;  %v783_v51 = vmax.f32 %v767_v42, 0.0  ;;  %840 = vst [vmem:[%s1401_s12 + $0x10] sm:$0xff] %v1059_v44  ;;  %v770_v53 = vadd.f32 %v756_v50, %v625_v46 }
 0x11e   : > { %v785_v52 = vmax.f32 %v769_v43, 0.0  ;;  %841 = vst [vmem:[%s1401_s12 + $0x18] sm:$0xff] %v1060_v45  ;;  %v772_v54 = vadd.f32 %v756_v50, %v678_v47  ;;  %v627_v55 = vpop.f32.mrf.mxu0 }
 0x11f   : > { %v680_v56 = vpop.f32.mrf.mxu1  ;;  %v1061_v57 = vpack.c.bf16 %v783_v51, %v782_v48  ;;  %v771_v59 = vadd.f32 %v756_v50, %v627_v55  ;;  %v786_v61 = vmax.f32 %v770_v53, 0.0 }
 0x120   : > { %v1062_v58 = vpack.c.bf16 %v785_v52, %v784_v49  ;;  %v773_v60 = vadd.f32 %v756_v50, %v680_v56  ;;  %v788_v62 = vmax.f32 %v772_v54, 0.0  ;;  %v871_v3 = vld [vmem:[%s1401_s12] sm:$0xff] (%p1255_p6) }
 0x121   : > { %842 = vst [vmem:[%s1401_s12 + $0x20] sm:$0xff] %v1061_v57  ;;  %v787_v63 = vmax.f32 %v771_v59, 0.0  ;;  %v873_v4 = vld [vmem:[%s1401_s12 + $0x8] sm:$0xff] (%p1255_p6)  ;;  %872 = vst [vmem:[%s858_s30] sm:$0xff] (%p1255_p6), %v871_v3 }
 0x122   : > { %843 = vst [vmem:[%s1401_s12 + $0x28] sm:$0xff] %v1062_v58  ;;  %v789_v0 = vmax.f32 %v773_v60, 0.0  ;;  %852 = sbr.rel (!%p1255_p6) target bundleno = 303 (0x12f), region = 67  ;;  %874 = vst [vmem:[%s858_s30 + $0x8] sm:$0xff] (%p1255_p6), %v873_v4 }
 0x123   : > { %v1063_v1 = vpack.c.bf16 %v787_v63, %v786_v61 }
 0x124   : > { %v1064_v2 = vpack.c.bf16 %v789_v0, %v788_v62  ;;  %v875_v5 = vld [vmem:[%s1401_s12 + $0x10] sm:$0xff] (%p1255_p6) }
 0x125   : > { %844 = vst [vmem:[%s1401_s12 + $0x30] sm:$0xff] %v1063_v1  ;;  %v877_v6 = vld [vmem:[%s1401_s12 + $0x18] sm:$0xff] (%p1255_p6)  ;;  %876 = vst [vmem:[%s858_s30 + $0x400] sm:$0xff] (%p1255_p6), %v875_v5 }
 0x126   : > { %845 = vst [vmem:[%s1401_s12 + $0x38] sm:$0xff] %v1064_v2  ;;  %878 = vst [vmem:[%s858_s30 + $0x408] sm:$0xff] (%p1255_p6), %v877_v6 }
 0x128   : > { %v879_v7 = vld [vmem:[%s1401_s12 + $0x20] sm:$0xff] }
 0x129   : > { %v881_v8 = vld [vmem:[%s1401_s12 + $0x28] sm:$0xff]  ;;  %880 = vst [vmem:[%s858_s30 + $0x800] sm:$0xff] %v879_v7 }
 0x12a   : > { %882 = vst [vmem:[%s858_s30 + $0x808] sm:$0xff] %v881_v8 }
 0x12c   : > { %v883_v9 = vld [vmem:[%s1401_s12 + $0x30] sm:$0xff] }
 0x12d   : > { %v885_v10 = vld [vmem:[%s1401_s12 + $0x38] sm:$0xff]  ;;  %884 = vst [vmem:[%s858_s30 + $0xc00] sm:$0xff] %v883_v9 }
 0x12e   : > { %886 = vst [vmem:[%s858_s30 + $0xc08] sm:$0xff] %v885_v10 }
 0x12f PF: > { %s13_s16 = sadd.s32 1, %s1197_s16   ;;  %s1445_s12 = smov %s1185_s13 }
 0x130   : > { %p10_p11 = scmp.ge.s32.totalorder %s13_s16, 66   ;;  %s1446_s13 = smov %s1260_s22 }
 0x131   : > { %s1447_s14 = smov %s1193_s15  ;;  %s1448_s15 = smov %s1450_s17 }
 0x132   :  { %12 = sbr.rel (!%p10_p11) target bundleno = 3 (0x3), region = 127 }

// kernel: conv_vae_forward.19
= control target key start
LH: loop header
LB: loop body
LE: loop exit
PB: predicated region body
PF: predicated region fallthrough
CT: control target
= control target key end

     0   :  { %s2764_s12 = smov 0   ;;  %s2766_s13 = smov 0   ;;  %s3448_s0 = inlined_call_operand.vmem [shape: bf16[64,512], index: 0, kind: input, shape index: {}]   ;;  %s3449_s1 = inlined_call_operand.vmem [shape: bf16[512,8192], index: 1, kind: input, shape index: {}]   ;;  %s3450_s2 = inlined_call_operand.vmem [shape: f32[64,1], index: 2, kind: input, shape index: {}]   ;;  %s3451_s3 = inlined_call_operand.vmem [shape: bf16[64,8192], index: 3, kind: output, shape index: {}]  }
   0x1   :  { %s2768_s14 = smov 0   ;;  %s2770_s15 = smov 0  }
   0x2   :  { %s2772_s16 = smov 0  }
   0x3 LB: > { %s28_s17 = sadd.s32 1, %s2737_s15  ;;  %s2249_s18 = sadd.s32 4294967295, %s2741_s16   ;;  %s2741_s16 = sphi %s2772_s16, %s13_s16   ;;  %s2737_s15 = sphi %s2770_s15, %s3456_s15   ;;  %s2733_s14 = sphi %s2768_s14, %s3455_s14   ;;  %s2729_s13 = sphi %s2766_s13, %s3454_s13   ;;  %s2725_s12 = sphi %s2764_s12, %s3453_s12  }
   0x4   : > { %p30_p0 = scmp.ge.s32.totalorder %s28_s17, 16  ;;  %p76_p1 = scmp.ne.s32.totalorder %s2729_s13, %s2725_s12 }
   0x5   : > { %p77_p2 = scmp.eq.s32.totalorder %s2741_s16, 0  ;;  %p134_p4 = scmp.eq.s32.totalorder %s2249_s18, 15 }
   0x6   : > { %s3458_s17 = smov (%p30_p0, %s28_s17), 0  ;;  %s69_s20 = sadd.s32 1, %s2729_s13 }
   0x7   : > { %p78_p3 = por %p77_p2, %p76_p1  ;;  %s65_s19 = ssub.s32 %s2737_s15, %s3458_s17 }
   0x8   : > { %p67_p5 = scmp.eq.s32.totalorder %s65_s19, 0  ;;  %p2799_p6 = por %p134_p4, %p76_p1 }
   0x9   : > { %p2254_p7 = scmp.ge.s32.totalorder %s2741_s16, 16 }
   0xa   : > { %s2804_s22 = scalar_select %p67_p5, %s2729_s13, %s69_s20  }
   0xb   : > { %180 = sbr.rel (%p2254_p7) target bundleno = 84 (0x54), region = 24 }
  0x10   : > { %183 = sbr.rel (!%p78_p3) target bundleno = 84 (0x54), region = 28  ;;  %s185_s23 = sand.u32 (%p78_p3), 1, %s2729_s13  }
  0x11   : > { %s2426_s24 = sshll.u32 (%p78_p3), %s2737_s15, 4  ;;  %s2255_s25 = sshll.u32 (%p78_p3), %s185_s23, 10 }
  0x12   : > { %s2812_s28 = scalar_lea.vmem (%p78_p3), %s3449_s1, %s2426_s24  ;;  %s2817_s29 = scalar_lea.vmem (%p78_p3), [#allocation3], %s2255_s25 }
  0x13   : > { %v206_v0 = vld [vmem:[%s2812_s28] sm:$0xff] (%p78_p3)  ;;  %v208_v1 = vld [vmem:[%s2812_s28 + $0x8] sm:$0xff] (%p78_p3) }
  0x14   : > { %v210_v2 = vld [vmem:[%s2812_s28 + $0x100] sm:$0xff] (%p78_p3)  ;;  %207 = vst [vmem:[%s2817_s29] sm:$0xff] (%p78_p3), %v206_v0  ;;  %209 = vst [vmem:[%s2817_s29 + $0x8] sm:$0xff] (%p78_p3), %v208_v1  ;;  %v212_v3 = vld [vmem:[%s2812_s28 + $0x108] sm:$0xff] (%p78_p3) }
  0x15   : > { %211 = vst [vmem:[%s2817_s29 + $0x10] sm:$0xff] %v210_v2  ;;  %v214_v4 = vld [vmem:[%s2812_s28 + $0x200] sm:$0xff]  ;;  %v216_v5 = vld [vmem:[%s2812_s28 + $0x208] sm:$0xff]  ;;  %213 = vst [vmem:[%s2817_s29 + $0x18] sm:$0xff] %v212_v3 }
  0x16   : > { %215 = vst [vmem:[%s2817_s29 + $0x20] sm:$0xff] %v214_v4  ;;  %217 = vst [vmem:[%s2817_s29 + $0x28] sm:$0xff] %v216_v5  ;;  %v218_v6 = vld [vmem:[%s2812_s28 + $0x300] sm:$0xff]  ;;  %v220_v7 = vld [vmem:[%s2812_s28 + $0x308] sm:$0xff] }
  0x17   : > { %v222_v8 = vld [vmem:[%s2812_s28 + $0x400] sm:$0xff]  ;;  %219 = vst [vmem:[%s2817_s29 + $0x30] sm:$0xff] %v218_v6  ;;  %221 = vst [vmem:[%s2817_s29 + $0x38] sm:$0xff] %v220_v7  ;;  %v224_v9 = vld [vmem:[%s2812_s28 + $0x408] sm:$0xff] }
  0x18   : > { %223 = vst [vmem:[%s2817_s29 + $0x40] sm:$0xff] %v222_v8  ;;  %v226_v10 = vld [vmem:[%s2812_s28 + $0x500] sm:$0xff]  ;;  %v228_v11 = vld [vmem:[%s2812_s28 + $0x508] sm:$0xff]  ;;  %225 = vst [vmem:[%s2817_s29 + $0x48] sm:$0xff] %v224_v9 }
  0x19   : > { %227 = vst [vmem:[%s2817_s29 + $0x50] sm:$0xff] %v226_v10  ;;  %229 = vst [vmem:[%s2817_s29 + $0x58] sm:$0xff] %v228_v11  ;;  %v230_v12 = vld [vmem:[%s2812_s28 + $0x600] sm:$0xff]  ;;  %v232_v13 = vld [vmem:[%s2812_s28 + $0x608] sm:$0xff] }
  0x1a   : > { %v234_v14 = vld [vmem:[%s2812_s28 + $0x700] sm:$0xff]  ;;  %231 = vst [vmem:[%s2817_s29 + $0x60] sm:$0xff] %v230_v12  ;;  %233 = vst [vmem:[%s2817_s29 + $0x68] sm:$0xff] %v232_v13  ;;  %v236_v15 = vld [vmem:[%s2812_s28 + $0x708] sm:$0xff] }
  0x1b   : > { %235 = vst [vmem:[%s2817_s29 + $0x70] sm:$0xff] %v234_v14  ;;  %v238_v16 = vld [vmem:[%s2812_s28 + $0x800] sm:$0xff]  ;;  %v240_v17 = vld [vmem:[%s2812_s28 + $0x808] sm:$0xff]  ;;  %237 = vst [vmem:[%s2817_s29 + $0x78] sm:$0xff] %v236_v15 }
  0x1c   : > { %239 = vst [vmem:[%s2817_s29 + $0x80] sm:$0xff] %v238_v16  ;;  %241 = vst [vmem:[%s2817_s29 + $0x88] sm:$0xff] %v240_v17  ;;  %v242_v18 = vld [vmem:[%s2812_s28 + $0x900] sm:$0xff]  ;;  %v244_v19 = vld [vmem:[%s2812_s28 + $0x908] sm:$0xff] }
  0x1d   : > { %v246_v20 = vld [vmem:[%s2812_s28 + $0xa00] sm:$0xff]  ;;  %243 = vst [vmem:[%s2817_s29 + $0x90] sm:$0xff] %v242_v18  ;;  %245 = vst [vmem:[%s2817_s29 + $0x98] sm:$0xff] %v244_v19  ;;  %v248_v21 = vld [vmem:[%s2812_s28 + $0xa08] sm:$0xff] }
  0x1e   : > { %247 = vst [vmem:[%s2817_s29 + $0xa0] sm:$0xff] %v246_v20  ;;  %v250_v22 = vld [vmem:[%s2812_s28 + $0xb00] sm:$0xff]  ;;  %v252_v23 = vld [vmem:[%s2812_s28 + $0xb08] sm:$0xff]  ;;  %249 = vst [vmem:[%s2817_s29 + $0xa8] sm:$0xff] %v248_v21 }
  0x1f   : > { %251 = vst [vmem:[%s2817_s29 + $0xb0] sm:$0xff] %v250_v22  ;;  %253 = vst [vmem:[%s2817_s29 + $0xb8] sm:$0xff] %v252_v23  ;;  %v254_v24 = vld [vmem:[%s2812_s28 + $0xc00] sm:$0xff]  ;;  %v256_v25 = vld [vmem:[%s2812_s28 + $0xc08] sm:$0xff] }
  0x20   : > { %v258_v26 = vld [vmem:[%s2812_s28 + $0xd00] sm:$0xff]  ;;  %255 = vst [vmem:[%s2817_s29 + $0xc0] sm:$0xff] %v254_v24  ;;  %257 = vst [vmem:[%s2817_s29 + $0xc8] sm:$0xff] %v256_v25  ;;  %v260_v27 = vld [vmem:[%s2812_s28 + $0xd08] sm:$0xff] }
  0x21   : > { %259 = vst [vmem:[%s2817_s29 + $0xd0] sm:$0xff] %v258_v26  ;;  %v262_v28 = vld [vmem:[%s2812_s28 + $0xe00] sm:$0xff]  ;;  %v264_v29 = vld [vmem:[%s2812_s28 + $0xe08] sm:$0xff]  ;;  %261 = vst [vmem:[%s2817_s29 + $0xd8] sm:$0xff] %v260_v27 }
  0x22   : > { %263 = vst [vmem:[%s2817_s29 + $0xe0] sm:$0xff] %v262_v28  ;;  %265 = vst [vmem:[%s2817_s29 + $0xe8] sm:$0xff] %v264_v29  ;;  %v266_v30 = vld [vmem:[%s2812_s28 + $0xf00] sm:$0xff]  ;;  %v268_v31 = vld [vmem:[%s2812_s28 + $0xf08] sm:$0xff] }
  0x23   : > { %v270_v32 = vld [vmem:[%s2812_s28 + $0x1000] sm:$0xff]  ;;  %267 = vst [vmem:[%s2817_s29 + $0xf0] sm:$0xff] %v266_v30  ;;  %269 = vst [vmem:[%s2817_s29 + $0xf8] sm:$0xff] %v268_v31  ;;  %v272_v33 = vld [vmem:[%s2812_s28 + $0x1008] sm:$0xff] }
  0x24   : > { %271 = vst [vmem:[%s2817_s29 + $0x100] sm:$0xff] %v270_v32  ;;  %v274_v34 = vld [vmem:[%s2812_s28 + $0x1100] sm:$0xff]  ;;  %v276_v35 = vld [vmem:[%s2812_s28 + $0x1108] sm:$0xff]  ;;  %273 = vst [vmem:[%s2817_s29 + $0x108] sm:$0xff] %v272_v33 }
  0x25   : > { %275 = vst [vmem:[%s2817_s29 + $0x110] sm:$0xff] %v274_v34  ;;  %277 = vst [vmem:[%s2817_s29 + $0x118] sm:$0xff] %v276_v35  ;;  %v278_v36 = vld [vmem:[%s2812_s28 + $0x1200] sm:$0xff]  ;;  %v280_v37 = vld [vmem:[%s2812_s28 + $0x1208] sm:$0xff] }
  0x26   : > { %v282_v38 = vld [vmem:[%s2812_s28 + $0x1300] sm:$0xff]  ;;  %279 = vst [vmem:[%s2817_s29 + $0x120] sm:$0xff] %v278_v36  ;;  %281 = vst [vmem:[%s2817_s29 + $0x128] sm:$0xff] %v280_v37  ;;  %v284_v39 = vld [vmem:[%s2812_s28 + $0x1308] sm:$0xff] }
  0x27   : > { %283 = vst [vmem:[%s2817_s29 + $0x130] sm:$0xff] %v282_v38  ;;  %v286_v40 = vld [vmem:[%s2812_s28 + $0x1400] sm:$0xff]  ;;  %v288_v41 = vld [vmem:[%s2812_s28 + $0x1408] sm:$0xff]  ;;  %285 = vst [vmem:[%s2817_s29 + $0x138] sm:$0xff] %v284_v39 }
  0x28   : > { %287 = vst [vmem:[%s2817_s29 + $0x140] sm:$0xff] %v286_v40  ;;  %289 = vst [vmem:[%s2817_s29 + $0x148] sm:$0xff] %v288_v41  ;;  %v290_v42 = vld [vmem:[%s2812_s28 + $0x1500] sm:$0xff]  ;;  %v292_v43 = vld [vmem:[%s2812_s28 + $0x1508] sm:$0xff] }
  0x29   : > { %v294_v44 = vld [vmem:[%s2812_s28 + $0x1600] sm:$0xff]  ;;  %291 = vst [vmem:[%s2817_s29 + $0x150] sm:$0xff] %v290_v42  ;;  %293 = vst [vmem:[%s2817_s29 + $0x158] sm:$0xff] %v292_v43  ;;  %v296_v45 = vld [vmem:[%s2812_s28 + $0x1608] sm:$0xff] }
  0x2a   : > { %295 = vst [vmem:[%s2817_s29 + $0x160] sm:$0xff] %v294_v44  ;;  %v298_v46 = vld [vmem:[%s2812_s28 + $0x1700] sm:$0xff]  ;;  %v300_v47 = vld [vmem:[%s2812_s28 + $0x1708] sm:$0xff]  ;;  %297 = vst [vmem:[%s2817_s29 + $0x168] sm:$0xff] %v296_v45 }
  0x2b   : > { %299 = vst [vmem:[%s2817_s29 + $0x170] sm:$0xff] %v298_v46  ;;  %301 = vst [vmem:[%s2817_s29 + $0x178] sm:$0xff] %v300_v47  ;;  %v302_v48 = vld [vmem:[%s2812_s28 + $0x1800] sm:$0xff]  ;;  %v304_v49 = vld [vmem:[%s2812_s28 + $0x1808] sm:$0xff] }
  0x2c   : > { %v306_v50 = vld [vmem:[%s2812_s28 + $0x1900] sm:$0xff]  ;;  %303 = vst [vmem:[%s2817_s29 + $0x180] sm:$0xff] %v302_v48  ;;  %305 = vst [vmem:[%s2817_s29 + $0x188] sm:$0xff] %v304_v49  ;;  %v308_v51 = vld [vmem:[%s2812_s28 + $0x1908] sm:$0xff] }
  0x2d   : > { %307 = vst [vmem:[%s2817_s29 + $0x190] sm:$0xff] %v306_v50  ;;  %v310_v52 = vld [vmem:[%s2812_s28 + $0x1a00] sm:$0xff]  ;;  %v312_v53 = vld [vmem:[%s2812_s28 + $0x1a08] sm:$0xff]  ;;  %309 = vst [vmem:[%s2817_s29 + $0x198] sm:$0xff] %v308_v51 }
  0x2e   : > { %311 = vst [vmem:[%s2817_s29 + $0x1a0] sm:$0xff] %v310_v52  ;;  %313 = vst [vmem:[%s2817_s29 + $0x1a8] sm:$0xff] %v312_v53  ;;  %v314_v54 = vld [vmem:[%s2812_s28 + $0x1b00] sm:$0xff]  ;;  %v316_v55 = vld [vmem:[%s2812_s28 + $0x1b08] sm:$0xff] }
  0x2f   : > { %v318_v56 = vld [vmem:[%s2812_s28 + $0x1c00] sm:$0xff]  ;;  %315 = vst [vmem:[%s2817_s29 + $0x1b0] sm:$0xff] %v314_v54  ;;  %317 = vst [vmem:[%s2817_s29 + $0x1b8] sm:$0xff] %v316_v55  ;;  %v320_v57 = vld [vmem:[%s2812_s28 + $0x1c08] sm:$0xff] }
  0x30   : > { %319 = vst [vmem:[%s2817_s29 + $0x1c0] sm:$0xff] %v318_v56  ;;  %v322_v58 = vld [vmem:[%s2812_s28 + $0x1d00] sm:$0xff]  ;;  %v324_v59 = vld [vmem:[%s2812_s28 + $0x1d08] sm:$0xff]  ;;  %321 = vst [vmem:[%s2817_s29 + $0x1c8] sm:$0xff] %v320_v57 }
  0x31   : > { %323 = vst [vmem:[%s2817_s29 + $0x1d0] sm:$0xff] %v322_v58  ;;  %325 = vst [vmem:[%s2817_s29 + $0x1d8] sm:$0xff] %v324_v59  ;;  %v326_v60 = vld [vmem:[%s2812_s28 + $0x1e00] sm:$0xff]  ;;  %v328_v61 = vld [vmem:[%s2812_s28 + $0x1e08] sm:$0xff] }
  0x32   : > { %v330_v62 = vld [vmem:[%s2812_s28 + $0x1f00] sm:$0xff]  ;;  %327 = vst [vmem:[%s2817_s29 + $0x1e0] sm:$0xff] %v326_v60  ;;  %329 = vst [vmem:[%s2817_s29 + $0x1e8] sm:$0xff] %v328_v61  ;;  %v332_v63 = vld [vmem:[%s2812_s28 + $0x1f08] sm:$0xff] }
  0x33   : > { %331 = vst [vmem:[%s2817_s29 + $0x1f0] sm:$0xff] %v330_v62  ;;  %v334_v0 = vld [vmem:[%s2812_s28 + $0x2000] sm:$0xff]  ;;  %v336_v1 = vld [vmem:[%s2812_s28 + $0x2008] sm:$0xff]  ;;  %333 = vst [vmem:[%s2817_s29 + $0x1f8] sm:$0xff] %v332_v63 }
  0x34   : > { %335 = vst [vmem:[%s2817_s29 + $0x200] sm:$0xff] %v334_v0  ;;  %337 = vst [vmem:[%s2817_s29 + $0x208] sm:$0xff] %v336_v1  ;;  %v338_v2 = vld [vmem:[%s2812_s28 + $0x2100] sm:$0xff]  ;;  %v340_v3 = vld [vmem:[%s2812_s28 + $0x2108] sm:$0xff] }
  0x35   : > { %v342_v4 = vld [vmem:[%s2812_s28 + $0x2200] sm:$0xff]  ;;  %339 = vst [vmem:[%s2817_s29 + $0x210] sm:$0xff] %v338_v2  ;;  %341 = vst [vmem:[%s2817_s29 + $0x218] sm:$0xff] %v340_v3  ;;  %v344_v5 = vld [vmem:[%s2812_s28 + $0x2208] sm:$0xff] }
  0x36   : > { %343 = vst [vmem:[%s2817_s29 + $0x220] sm:$0xff] %v342_v4  ;;  %v346_v6 = vld [vmem:[%s2812_s28 + $0x2300] sm:$0xff]  ;;  %v348_v7 = vld [vmem:[%s2812_s28 + $0x2308] sm:$0xff]  ;;  %345 = vst [vmem:[%s2817_s29 + $0x228] sm:$0xff] %v344_v5 }
  0x37   : > { %347 = vst [vmem:[%s2817_s29 + $0x230] sm:$0xff] %v346_v6  ;;  %349 = vst [vmem:[%s2817_s29 + $0x238] sm:$0xff] %v348_v7  ;;  %v350_v8 = vld [vmem:[%s2812_s28 + $0x2400] sm:$0xff]  ;;  %v352_v9 = vld [vmem:[%s2812_s28 + $0x2408] sm:$0xff] }
  0x38   : > { %v354_v10 = vld [vmem:[%s2812_s28 + $0x2500] sm:$0xff]  ;;  %351 = vst [vmem:[%s2817_s29 + $0x240] sm:$0xff] %v350_v8  ;;  %353 = vst [vmem:[%s2817_s29 + $0x248] sm:$0xff] %v352_v9  ;;  %v356_v11 = vld [vmem:[%s2812_s28 + $0x2508] sm:$0xff] }
  0x39   : > { %355 = vst [vmem:[%s2817_s29 + $0x250] sm:$0xff] %v354_v10  ;;  %v358_v12 = vld [vmem:[%s2812_s28 + $0x2600] sm:$0xff]  ;;  %v360_v13 = vld [vmem:[%s2812_s28 + $0x2608] sm:$0xff]  ;;  %357 = vst [vmem:[%s2817_s29 + $0x258] sm:$0xff] %v356_v11 }
  0x3a   : > { %359 = vst [vmem:[%s2817_s29 + $0x260] sm:$0xff] %v358_v12  ;;  %361 = vst [vmem:[%s2817_s29 + $0x268] sm:$0xff] %v360_v13  ;;  %v362_v14 = vld [vmem:[%s2812_s28 + $0x2700] sm:$0xff]  ;;  %v364_v15 = vld [vmem:[%s2812_s28 + $0x2708] sm:$0xff] }
  0x3b   : > { %v366_v16 = vld [vmem:[%s2812_s28 + $0x2800] sm:$0xff]  ;;  %363 = vst [vmem:[%s2817_s29 + $0x270] sm:$0xff] %v362_v14  ;;  %365 = vst [vmem:[%s2817_s29 + $0x278] sm:$0xff] %v364_v15  ;;  %v368_v17 = vld [vmem:[%s2812_s28 + $0x2808] sm:$0xff] }
  0x3c   : > { %367 = vst [vmem:[%s2817_s29 + $0x280] sm:$0xff] %v366_v16  ;;  %v370_v18 = vld [vmem:[%s2812_s28 + $0x2900] sm:$0xff]  ;;  %v372_v19 = vld [vmem:[%s2812_s28 + $0x2908] sm:$0xff]  ;;  %369 = vst [vmem:[%s2817_s29 + $0x288] sm:$0xff] %v368_v17 }
  0x3d   : > { %371 = vst [vmem:[%s2817_s29 + $0x290] sm:$0xff] %v370_v18  ;;  %373 = vst [vmem:[%s2817_s29 + $0x298] sm:$0xff] %v372_v19  ;;  %v374_v20 = vld [vmem:[%s2812_s28 + $0x2a00] sm:$0xff]  ;;  %v376_v21 = vld [vmem:[%s2812_s28 + $0x2a08] sm:$0xff] }
  0x3e   : > { %v378_v22 = vld [vmem:[%s2812_s28 + $0x2b00] sm:$0xff]  ;;  %375 = vst [vmem:[%s2817_s29 + $0x2a0] sm:$0xff] %v374_v20  ;;  %377 = vst [vmem:[%s2817_s29 + $0x2a8] sm:$0xff] %v376_v21  ;;  %v380_v23 = vld [vmem:[%s2812_s28 + $0x2b08] sm:$0xff] }
  0x3f   : > { %379 = vst [vmem:[%s2817_s29 + $0x2b0] sm:$0xff] %v378_v22  ;;  %v382_v24 = vld [vmem:[%s2812_s28 + $0x2c00] sm:$0xff]  ;;  %v384_v25 = vld [vmem:[%s2812_s28 + $0x2c08] sm:$0xff]  ;;  %381 = vst [vmem:[%s2817_s29 + $0x2b8] sm:$0xff] %v380_v23 }
  0x40   : > { %383 = vst [vmem:[%s2817_s29 + $0x2c0] sm:$0xff] %v382_v24  ;;  %385 = vst [vmem:[%s2817_s29 + $0x2c8] sm:$0xff] %v384_v25  ;;  %v386_v26 = vld [vmem:[%s2812_s28 + $0x2d00] sm:$0xff]  ;;  %v388_v27 = vld [vmem:[%s2812_s28 + $0x2d08] sm:$0xff] }
  0x41   : > { %v390_v28 = vld [vmem:[%s2812_s28 + $0x2e00] sm:$0xff]  ;;  %387 = vst [vmem:[%s2817_s29 + $0x2d0] sm:$0xff] %v386_v26  ;;  %389 = vst [vmem:[%s2817_s29 + $0x2d8] sm:$0xff] %v388_v27  ;;  %v392_v29 = vld [vmem:[%s2812_s28 + $0x2e08] sm:$0xff] }
  0x42   : > { %391 = vst [vmem:[%s2817_s29 + $0x2e0] sm:$0xff] %v390_v28  ;;  %v394_v30 = vld [vmem:[%s2812_s28 + $0x2f00] sm:$0xff]  ;;  %v396_v31 = vld [vmem:[%s2812_s28 + $0x2f08] sm:$0xff]  ;;  %393 = vst [vmem:[%s2817_s29 + $0x2e8] sm:$0xff] %v392_v29 }
  0x43   : > { %395 = vst [vmem:[%s2817_s29 + $0x2f0] sm:$0xff] %v394_v30  ;;  %397 = vst [vmem:[%s2817_s29 + $0x2f8] sm:$0xff] %v396_v31  ;;  %v398_v32 = vld [vmem:[%s2812_s28 + $0x3000] sm:$0xff]  ;;  %v400_v33 = vld [vmem:[%s2812_s28 + $0x3008] sm:$0xff] }
  0x44   : > { %v402_v34 = vld [vmem:[%s2812_s28 + $0x3100] sm:$0xff]  ;;  %399 = vst [vmem:[%s2817_s29 + $0x300] sm:$0xff] %v398_v32  ;;  %401 = vst [vmem:[%s2817_s29 + $0x308] sm:$0xff] %v400_v33  ;;  %v404_v35 = vld [vmem:[%s2812_s28 + $0x3108] sm:$0xff] }
  0x45   : > { %403 = vst [vmem:[%s2817_s29 + $0x310] sm:$0xff] %v402_v34  ;;  %v406_v36 = vld [vmem:[%s2812_s28 + $0x3200] sm:$0xff]  ;;  %v408_v37 = vld [vmem:[%s2812_s28 + $0x3208] sm:$0xff]  ;;  %405 = vst [vmem:[%s2817_s29 + $0x318] sm:$0xff] %v404_v35 }
  0x46   : > { %407 = vst [vmem:[%s2817_s29 + $0x320] sm:$0xff] %v406_v36  ;;  %409 = vst [vmem:[%s2817_s29 + $0x328] sm:$0xff] %v408_v37  ;;  %v410_v38 = vld [vmem:[%s2812_s28 + $0x3300] sm:$0xff]  ;;  %v412_v39 = vld [vmem:[%s2812_s28 + $0x3308] sm:$0xff] }
  0x47   : > { %v414_v40 = vld [vmem:[%s2812_s28 + $0x3400] sm:$0xff]  ;;  %411 = vst [vmem:[%s2817_s29 + $0x330] sm:$0xff] %v410_v38  ;;  %413 = vst [vmem:[%s2817_s29 + $0x338] sm:$0xff] %v412_v39  ;;  %v416_v41 = vld [vmem:[%s2812_s28 + $0x3408] sm:$0xff] }
  0x48   : > { %415 = vst [vmem:[%s2817_s29 + $0x340] sm:$0xff] %v414_v40  ;;  %v418_v42 = vld [vmem:[%s2812_s28 + $0x3500] sm:$0xff]  ;;  %v420_v43 = vld [vmem:[%s2812_s28 + $0x3508] sm:$0xff]  ;;  %417 = vst [vmem:[%s2817_s29 + $0x348] sm:$0xff] %v416_v41 }
  0x49   : > { %419 = vst [vmem:[%s2817_s29 + $0x350] sm:$0xff] %v418_v42  ;;  %421 = vst [vmem:[%s2817_s29 + $0x358] sm:$0xff] %v420_v43  ;;  %v422_v44 = vld [vmem:[%s2812_s28 + $0x3600] sm:$0xff]  ;;  %v424_v45 = vld [vmem:[%s2812_s28 + $0x3608] sm:$0xff] }
  0x4a   : > { %v426_v46 = vld [vmem:[%s2812_s28 + $0x3700] sm:$0xff]  ;;  %423 = vst [vmem:[%s2817_s29 + $0x360] sm:$0xff] %v422_v44  ;;  %425 = vst [vmem:[%s2817_s29 + $0x368] sm:$0xff] %v424_v45  ;;  %v428_v47 = vld [vmem:[%s2812_s28 + $0x3708] sm:$0xff] }
  0x4b   : > { %427 = vst [vmem:[%s2817_s29 + $0x370] sm:$0xff] %v426_v46  ;;  %v430_v48 = vld [vmem:[%s2812_s28 + $0x3800] sm:$0xff]  ;;  %v432_v49 = vld [vmem:[%s2812_s28 + $0x3808] sm:$0xff]  ;;  %429 = vst [vmem:[%s2817_s29 + $0x378] sm:$0xff] %v428_v47 }
  0x4c   : > { %431 = vst [vmem:[%s2817_s29 + $0x380] sm:$0xff] %v430_v48  ;;  %433 = vst [vmem:[%s2817_s29 + $0x388] sm:$0xff] %v432_v49  ;;  %v434_v50 = vld [vmem:[%s2812_s28 + $0x3900] sm:$0xff]  ;;  %v436_v51 = vld [vmem:[%s2812_s28 + $0x3908] sm:$0xff] }
  0x4d   : > { %v438_v52 = vld [vmem:[%s2812_s28 + $0x3a00] sm:$0xff]  ;;  %435 = vst [vmem:[%s2817_s29 + $0x390] sm:$0xff] %v434_v50  ;;  %437 = vst [vmem:[%s2817_s29 + $0x398] sm:$0xff] %v436_v51  ;;  %v440_v53 = vld [vmem:[%s2812_s28 + $0x3a08] sm:$0xff] }
  0x4e   : > { %439 = vst [vmem:[%s2817_s29 + $0x3a0] sm:$0xff] %v438_v52  ;;  %v442_v54 = vld [vmem:[%s2812_s28 + $0x3b00] sm:$0xff]  ;;  %v444_v55 = vld [vmem:[%s2812_s28 + $0x3b08] sm:$0xff]  ;;  %441 = vst [vmem:[%s2817_s29 + $0x3a8] sm:$0xff] %v440_v53 }
  0x4f   : > { %443 = vst [vmem:[%s2817_s29 + $0x3b0] sm:$0xff] %v442_v54  ;;  %445 = vst [vmem:[%s2817_s29 + $0x3b8] sm:$0xff] %v444_v55  ;;  %v446_v56 = vld [vmem:[%s2812_s28 + $0x3c00] sm:$0xff]  ;;  %v448_v57 = vld [vmem:[%s2812_s28 + $0x3c08] sm:$0xff] }
  0x50   : > { %v450_v58 = vld [vmem:[%s2812_s28 + $0x3d00] sm:$0xff]  ;;  %447 = vst [vmem:[%s2817_s29 + $0x3c0] sm:$0xff] %v446_v56  ;;  %449 = vst [vmem:[%s2817_s29 + $0x3c8] sm:$0xff] %v448_v57  ;;  %v452_v59 = vld [vmem:[%s2812_s28 + $0x3d08] sm:$0xff] }
  0x51   : > { %451 = vst [vmem:[%s2817_s29 + $0x3d0] sm:$0xff] %v450_v58  ;;  %v454_v60 = vld [vmem:[%s2812_s28 + $0x3e00] sm:$0xff]  ;;  %v456_v61 = vld [vmem:[%s2812_s28 + $0x3e08] sm:$0xff]  ;;  %453 = vst [vmem:[%s2817_s29 + $0x3d8] sm:$0xff] %v452_v59 }
  0x52   : > { %455 = vst [vmem:[%s2817_s29 + $0x3e0] sm:$0xff] %v454_v60  ;;  %457 = vst [vmem:[%s2817_s29 + $0x3e8] sm:$0xff] %v456_v61  ;;  %v458_v62 = vld [vmem:[%s2812_s28 + $0x3f00] sm:$0xff]  ;;  %v460_v63 = vld [vmem:[%s2812_s28 + $0x3f08] sm:$0xff] }
  0x53   : > { %459 = vst [vmem:[%s2817_s29 + $0x3f0] sm:$0xff] %v458_v62  ;;  %461 = vst [vmem:[%s2817_s29 + $0x3f8] sm:$0xff] %v460_v63 }
  0x54 PF: > { %p2258_p8 = scmp.ge.s32.totalorder %s2741_s16, 1  ;;  %p466_p9 = scmp.lt.s32.totalorder %s2741_s16, 17 }
  0x56   : > { %p467_p10 = pnand %p2258_p8, %p466_p9 }
  0x57   : > { %s473_s30 = sand.u32 (!%p467_p10), 1, %s2725_s12  }
  0x58   : > { %470 = sbr.rel (%p467_p10) target bundleno = 464 (0x1d0), region = 51  ;;  %s2259_s4 = sshll.u32 (!%p467_p10), %s473_s30, 10 }
  0x59   : > { %s3087_s9 = scalar_lea.vmem (!%p467_p10), [#allocation3], %s2259_s4 }
  0x5d   : > { %v3080_v0 = vld [vmem:[%s3448_s0 + $0x4] ss:$16 sps:$4 sm:$0xff]   ;;  %v3085_v1 = vld [vmem:[%s3448_s0 + $0xc] ss:$16 sps:$4 sm:$0xff]   ;;  %v2491_v4 = vld [vmem:[%s3087_s9 + $0xe0] ss:$16 sps:$4 sm:$0xff]  }
  0x5e   : > { %v2487_v2 = vld [vmem:[%s3087_s9 + $0xe4] ss:$16 sps:$4 sm:$0xff]   ;;  %1496 = vmatprep.mubr.bf16.mxu0 %v3080_v0  ;;  %1569 = vmatprep.mubr.bf16.mxu1 %v3085_v1  ;;  %v2492_v5 = vld [vmem:[%s3087_s9 + $0x2e0] ss:$16 sps:$4 sm:$0xff]   ;;  %v2743_v10 = vmov 0  }
  0x5f   : > { %v2489_v3 = vld [vmem:[%s3087_s9 + $0x2e4] ss:$16 sps:$4 sm:$0xff]   ;;  %1464 = vmatprep.subr.bf16.mxu0 %v2487_v2  ;;  %v2497_v8 = vld [vmem:[%s3087_s9 + $0xc0] ss:$16 sps:$4 sm:$0xff]   ;;  %2485 = vset.pattern.permute.xlu0 %v2743_v10 }
  0x60   : > { %1537 = vmatprep.subr.bf16.mxu1 %v2489_v3  ;;  %v2493_v6 = vld [vmem:[%s3087_s9 + $0xc4] ss:$16 sps:$4 sm:$0xff]   ;;  %1465 = vmatpush1.bf16.msra.mxu0 %v2491_v4  ;;  %v2498_v9 = vld [vmem:[%s3087_s9 + $0x2c0] ss:$16 sps:$4 sm:$0xff]  }
  0x61   : > { %1538 = vmatpush1.bf16.msra.mxu1 %v2492_v5  ;;  %v2495_v7 = vld [vmem:[%s3087_s9 + $0x2c4] ss:$16 sps:$4 sm:$0xff]   ;;  %1466 = vmatprep.subr.bf16.mxu0 %v2493_v6  ;;  %v2503_v13 = vld [vmem:[%s3087_s9 + $0xa0] ss:$16 sps:$4 sm:$0xff]   ;;  %v2591_v5 = vld [vmem:[%s3087_s9 + $0xec] ss:$16 sps:$4 sm:$0xff]  }
  0x62   : > { %1539 = vmatprep.subr.bf16.mxu1 %v2495_v7  ;;  %v2499_v11 = vld [vmem:[%s3087_s9 + $0xa4] ss:$16 sps:$4 sm:$0xff]   ;;  %2486 = vset.pattern.permute.xlu1 %v2743_v10  ;;  %v2504_v14 = vld [vmem:[%s3087_s9 + $0x2a0] ss:$16 sps:$4 sm:$0xff]   ;;  %v2594_v6 = vld [vmem:[%s3087_s9 + $0x2ec] ss:$16 sps:$4 sm:$0xff]  }
  0x63   : > { %v2501_v12 = vld [vmem:[%s3087_s9 + $0x2a4] ss:$16 sps:$4 sm:$0xff]   ;;  %v2509_v17 = vld [vmem:[%s3087_s9 + $0x80] ss:$16 sps:$4 sm:$0xff]   ;;  %v2592_v10 = vld [vmem:[%s3087_s9 + $0x2e8] ss:$16 sps:$4 sm:$0xff]  }
  0x64   : > { %1467 = vmatpush1.bf16.msra.mxu0 %v2497_v8  ;;  %v2505_v15 = vld [vmem:[%s3087_s9 + $0x84] ss:$16 sps:$4 sm:$0xff]   ;;  %v2510_v18 = vld [vmem:[%s3087_s9 + $0x280] ss:$16 sps:$4 sm:$0xff]   ;;  %v3165_v8 = vld [vmem:[%s3448_s0 + $0x8] ss:$16 sps:$4 sm:$0xff]  }
  0x65   : > { %1540 = vmatpush1.bf16.msra.mxu1 %v2498_v9  ;;  %1468 = vmatprep.subr.bf16.mxu0 %v2499_v11  ;;  %v2507_v16 = vld [vmem:[%s3087_s9 + $0x284] ss:$16 sps:$4 sm:$0xff]   ;;  %v2515_v21 = vld [vmem:[%s3087_s9 + $0x60] ss:$16 sps:$4 sm:$0xff]   ;;  %v2589_v9 = vld [vmem:[%s3087_s9 + $0xe8] ss:$16 sps:$4 sm:$0xff]  }
  0x66   : > { %1541 = vmatprep.subr.bf16.mxu1 %v2501_v12  ;;  %v2511_v19 = vld [vmem:[%s3087_s9 + $0x64] ss:$16 sps:$4 sm:$0xff]   ;;  %v2516_v22 = vld [vmem:[%s3087_s9 + $0x260] ss:$16 sps:$4 sm:$0xff]   ;;  %v2597_v11 = vld [vmem:[%s3087_s9 + $0xcc] ss:$16 sps:$4 sm:$0xff]  }
  0x67   : > { %v2513_v20 = vld [vmem:[%s3087_s9 + $0x264] ss:$16 sps:$4 sm:$0xff]   ;;  %v2521_v25 = vld [vmem:[%s3087_s9 + $0x40] ss:$16 sps:$4 sm:$0xff]   ;;  %v2600_v12 = vld [vmem:[%s3087_s9 + $0x2cc] ss:$16 sps:$4 sm:$0xff]  }
  0x68   : > { %1469 = vmatpush1.bf16.msra.mxu0 %v2503_v13  ;;  %v2517_v23 = vld [vmem:[%s3087_s9 + $0x44] ss:$16 sps:$4 sm:$0xff]   ;;  %v2522_v26 = vld [vmem:[%s3087_s9 + $0x240] ss:$16 sps:$4 sm:$0xff]   ;;  %v2595_v13 = vld [vmem:[%s3087_s9 + $0xc8] ss:$16 sps:$4 sm:$0xff]  }
  0x69   : > { %1542 = vmatpush1.bf16.msra.mxu1 %v2504_v14  ;;  %1470 = vmatprep.subr.bf16.mxu0 %v2505_v15  ;;  %v2519_v24 = vld [vmem:[%s3087_s9 + $0x244] ss:$16 sps:$4 sm:$0xff]   ;;  %v2527_v29 = vld [vmem:[%s3087_s9 + $0x20] ss:$16 sps:$4 sm:$0xff]   ;;  %v2598_v15 = vld [vmem:[%s3087_s9 + $0x2c8] ss:$16 sps:$4 sm:$0xff]  }
  0x6a   : > { %1543 = vmatprep.subr.bf16.mxu1 %v2507_v16  ;;  %v2523_v27 = vld [vmem:[%s3087_s9 + $0x24] ss:$16 sps:$4 sm:$0xff]   ;;  %v2528_v30 = vld [vmem:[%s3087_s9 + $0x220] ss:$16 sps:$4 sm:$0xff]   ;;  %v2603_v16 = vld [vmem:[%s3087_s9 + $0xac] ss:$16 sps:$4 sm:$0xff]  }
  0x6b   : > { %v2525_v28 = vld [vmem:[%s3087_s9 + $0x224] ss:$16 sps:$4 sm:$0xff]   ;;  %v2533_v33 = vld [vmem:[%s3087_s9] ss:$16 sps:$4 sm:$0xff]  }
  0x6c   : > { %1471 = vmatpush1.bf16.msra.mxu0 %v2509_v17  ;;  %v2529_v31 = vld [vmem:[%s3087_s9 + $0x4] ss:$16 sps:$4 sm:$0xff]   ;;  %v2534_v34 = vld [vmem:[%s3087_s9 + $0x200] ss:$16 sps:$4 sm:$0xff]   ;;  %v3184_v17 = vld [vmem:[%s3448_s0 + $0x2c] ss:$16 sps:$4 sm:$0xff]  }
  0x6d   : > { %1544 = vmatpush1.bf16.msra.mxu1 %v2510_v18  ;;  %1472 = vmatprep.subr.bf16.mxu0 %v2511_v19  ;;  %v2531_v32 = vld [vmem:[%s3087_s9 + $0x204] ss:$16 sps:$4 sm:$0xff]   ;;  %v2539_v37 = vld [vmem:[%s3087_s9 + $0x1e0] ss:$16 sps:$4 sm:$0xff]   ;;  %v2606_v18 = vld [vmem:[%s3087_s9 + $0x2ac] ss:$16 sps:$4 sm:$0xff]  }
  0x6e   : > { %1545 = vmatprep.subr.bf16.mxu1 %v2513_v20  ;;  %v2535_v35 = vld [vmem:[%s3087_s9 + $0x1e4] ss:$16 sps:$4 sm:$0xff]   ;;  %v2540_v38 = vld [vmem:[%s3087_s9 + $0x3e0] ss:$16 sps:$4 sm:$0xff]   ;;  %v2601_v19 = vld [vmem:[%s3087_s9 + $0xa8] ss:$16 sps:$4 sm:$0xff]  }
  0x6f   : > { %v2537_v36 = vld [vmem:[%s3087_s9 + $0x3e4] ss:$16 sps:$4 sm:$0xff]   ;;  %v2545_v41 = vld [vmem:[%s3087_s9 + $0x1c0] ss:$16 sps:$4 sm:$0xff]  }
  0x70   : > { %1473 = vmatpush1.bf16.msra.mxu0 %v2515_v21  ;;  %v2541_v39 = vld [vmem:[%s3087_s9 + $0x1c4] ss:$16 sps:$4 sm:$0xff]   ;;  %v2546_v42 = vld [vmem:[%s3087_s9 + $0x3c0] ss:$16 sps:$4 sm:$0xff]   ;;  %v3198_v21 = vld [vmem:[%s3448_s0 + $0x28] ss:$16 sps:$4 sm:$0xff]  }
  0x71   : > { %1546 = vmatpush1.bf16.msra.mxu1 %v2516_v22  ;;  %1474 = vmatprep.subr.bf16.mxu0 %v2517_v23  ;;  %v2543_v40 = vld [vmem:[%s3087_s9 + $0x3c4] ss:$16 sps:$4 sm:$0xff]   ;;  %v2551_v45 = vld [vmem:[%s3087_s9 + $0x1a0] ss:$16 sps:$4 sm:$0xff]   ;;  %v2604_v22 = vld [vmem:[%s3087_s9 + $0x2a8] ss:$16 sps:$4 sm:$0xff]  }
  0x72   : > { %1547 = vmatprep.subr.bf16.mxu1 %v2519_v24  ;;  %v2547_v43 = vld [vmem:[%s3087_s9 + $0x1a4] ss:$16 sps:$4 sm:$0xff]   ;;  %v2552_v46 = vld [vmem:[%s3087_s9 + $0x3a0] ss:$16 sps:$4 sm:$0xff]   ;;  %v2609_v23 = vld [vmem:[%s3087_s9 + $0x8c] ss:$16 sps:$4 sm:$0xff]  }
  0x73   : > { %v2549_v44 = vld [vmem:[%s3087_s9 + $0x3a4] ss:$16 sps:$4 sm:$0xff]   ;;  %v2557_v49 = vld [vmem:[%s3087_s9 + $0x180] ss:$16 sps:$4 sm:$0xff]   ;;  %v2612_v24 = vld [vmem:[%s3087_s9 + $0x28c] ss:$16 sps:$4 sm:$0xff]  }
  0x74   : > { %1475 = vmatpush1.bf16.msra.mxu0 %v2521_v25  ;;  %v2553_v47 = vld [vmem:[%s3087_s9 + $0x184] ss:$16 sps:$4 sm:$0xff]   ;;  %v2558_v50 = vld [vmem:[%s3087_s9 + $0x380] ss:$16 sps:$4 sm:$0xff]   ;;  %v2607_v25 = vld [vmem:[%s3087_s9 + $0x88] ss:$16 sps:$4 sm:$0xff]  }
  0x75   : > { %1548 = vmatpush1.bf16.msra.mxu1 %v2522_v26  ;;  %1476 = vmatprep.subr.bf16.mxu0 %v2523_v27  ;;  %v2555_v48 = vld [vmem:[%s3087_s9 + $0x384] ss:$16 sps:$4 sm:$0xff]   ;;  %v2563_v53 = vld [vmem:[%s3087_s9 + $0x160] ss:$16 sps:$4 sm:$0xff]   ;;  %v2610_v27 = vld [vmem:[%s3087_s9 + $0x288] ss:$16 sps:$4 sm:$0xff]  }
  0x76   : > { %1549 = vmatprep.subr.bf16.mxu1 %v2525_v28  ;;  %v2559_v51 = vld [vmem:[%s3087_s9 + $0x164] ss:$16 sps:$4 sm:$0xff]   ;;  %v2564_v54 = vld [vmem:[%s3087_s9 + $0x360] ss:$16 sps:$4 sm:$0xff]   ;;  %v2615_v28 = vld [vmem:[%s3087_s9 + $0x6c] ss:$16 sps:$4 sm:$0xff]  }
  0x77   : > { %v2561_v52 = vld [vmem:[%s3087_s9 + $0x364] ss:$16 sps:$4 sm:$0xff]   ;;  %v2569_v57 = vld [vmem:[%s3087_s9 + $0x140] ss:$16 sps:$4 sm:$0xff]  }
  0x78   : > { %1477 = vmatpush1.bf16.msra.mxu0 %v2527_v29  ;;  %v2565_v55 = vld [vmem:[%s3087_s9 + $0x144] ss:$16 sps:$4 sm:$0xff]   ;;  %v2570_v58 = vld [vmem:[%s3087_s9 + $0x340] ss:$16 sps:$4 sm:$0xff]   ;;  %v3216_v29 = vld [vmem:[%s3448_s0 + $0x4c] ss:$16 sps:$4 sm:$0xff]  }
  0x79   : > { %1550 = vmatpush1.bf16.msra.mxu1 %v2528_v30  ;;  %1478 = vmatprep.subr.bf16.mxu0 %v2529_v31  ;;  %v2567_v56 = vld [vmem:[%s3087_s9 + $0x344] ss:$16 sps:$4 sm:$0xff]   ;;  %v2575_v61 = vld [vmem:[%s3087_s9 + $0x120] ss:$16 sps:$4 sm:$0xff]   ;;  %v2618_v30 = vld [vmem:[%s3087_s9 + $0x26c] ss:$16 sps:$4 sm:$0xff]  }
  0x7a   : > { %1551 = vmatprep.subr.bf16.mxu1 %v2531_v32  ;;  %v2571_v59 = vld [vmem:[%s3087_s9 + $0x124] ss:$16 sps:$4 sm:$0xff]   ;;  %v2576_v62 = vld [vmem:[%s3087_s9 + $0x320] ss:$16 sps:$4 sm:$0xff]   ;;  %v2613_v31 = vld [vmem:[%s3087_s9 + $0x68] ss:$16 sps:$4 sm:$0xff]  }
  0x7b   : > { %v2573_v60 = vld [vmem:[%s3087_s9 + $0x324] ss:$16 sps:$4 sm:$0xff]   ;;  %v2581_v3 = vld [vmem:[%s3087_s9 + $0x100] ss:$16 sps:$4 sm:$0xff]  }
  0x7c   : > { %1479 = vmatpush1.bf16.msra.mxu0 %v2533_v33  ;;  %v2577_v63 = vld [vmem:[%s3087_s9 + $0x104] ss:$16 sps:$4 sm:$0xff]   ;;  %v2582_v4 = vld [vmem:[%s3087_s9 + $0x300] ss:$16 sps:$4 sm:$0xff]   ;;  %v3230_v33 = vld [vmem:[%s3448_s0 + $0x48] ss:$16 sps:$4 sm:$0xff]  }
  0x7d   : > { %1552 = vmatpush1.bf16.msra.mxu1 %v2534_v34  ;;  %1480 = vmatprep.subr.bf16.mxu0 %v2535_v35  ;;  %v2579_v2 = vld [vmem:[%s3087_s9 + $0x304] ss:$16 sps:$4 sm:$0xff]   ;;  %v3160_v7 = vld [vmem:[%s3448_s0] ss:$16 sps:$4 sm:$0xff]   ;;  %v2616_v34 = vld [vmem:[%s3087_s9 + $0x268] ss:$16 sps:$4 sm:$0xff]  }
  0x7e   : > { %1553 = vmatprep.subr.bf16.mxu1 %v2537_v36  ;;  %v3177_v14 = vld [vmem:[%s3448_s0 + $0x24] ss:$16 sps:$4 sm:$0xff]   ;;  %v3193_v20 = vld [vmem:[%s3448_s0 + $0x20] ss:$16 sps:$4 sm:$0xff]   ;;  %v2621_v35 = vld [vmem:[%s3087_s9 + $0x4c] ss:$16 sps:$4 sm:$0xff]  }
  0x7f   : > { %v3209_v26 = vld [vmem:[%s3448_s0 + $0x44] ss:$16 sps:$4 sm:$0xff]   ;;  %v3225_v32 = vld [vmem:[%s3448_s0 + $0x40] ss:$16 sps:$4 sm:$0xff]   ;;  %v2624_v36 = vld [vmem:[%s3087_s9 + $0x24c] ss:$16 sps:$4 sm:$0xff]  }
  0x80   : > { %1481 = vmatpush2.bf16.msra.mxu0 %v2539_v37  ;;  %v2619_v37 = vld [vmem:[%s3087_s9 + $0x48] ss:$16 sps:$4 sm:$0xff]  }
  0x81   : > { %1554 = vmatpush2.bf16.msra.mxu1 %v2540_v38  ;;  %1482 = vmatprep.subr.bf16.mxu0 %v2541_v39  ;;  %v3241_v38 = vld [vmem:[%s3448_s0 + $0x64] ss:$16 sps:$4 sm:$0xff]   ;;  %v2622_v39 = vld [vmem:[%s3087_s9 + $0x248] ss:$16 sps:$4 sm:$0xff]  }
  0x82   : > { %1555 = vmatprep.subr.bf16.mxu1 %v2543_v40  ;;  %v2627_v40 = vld [vmem:[%s3087_s9 + $0x2c] ss:$16 sps:$4 sm:$0xff]  }
  0x84   : > { %1483 = vmatpush2.bf16.msra.mxu0 %v2545_v41  ;;  %v3248_v41 = vld [vmem:[%s3448_s0 + $0x6c] ss:$16 sps:$4 sm:$0xff]  }
  0x85   : > { %1556 = vmatpush2.bf16.msra.mxu1 %v2546_v42  ;;  %1484 = vmatprep.subr.bf16.mxu0 %v2547_v43  ;;  %v2630_v42 = vld [vmem:[%s3087_s9 + $0x22c] ss:$16 sps:$4 sm:$0xff]   ;;  %v2625_v43 = vld [vmem:[%s3087_s9 + $0x28] ss:$16 sps:$4 sm:$0xff]  }
  0x86   : > { %1557 = vmatprep.subr.bf16.mxu1 %v2549_v44  ;;  %v3257_v44 = vld [vmem:[%s3448_s0 + $0x60] ss:$16 sps:$4 sm:$0xff]  }
  0x88   : > { %1485 = vmatpush2.bf16.msra.mxu0 %v2551_v45  ;;  %v3262_v45 = vld [vmem:[%s3448_s0 + $0x68] ss:$16 sps:$4 sm:$0xff]  }
  0x89   : > { %1558 = vmatpush2.bf16.msra.mxu1 %v2552_v46  ;;  %1486 = vmatprep.subr.bf16.mxu0 %v2553_v47  ;;  %v2628_v46 = vld [vmem:[%s3087_s9 + $0x228] ss:$16 sps:$4 sm:$0xff]   ;;  %v2633_v47 = vld [vmem:[%s3087_s9 + $0xc] ss:$16 sps:$4 sm:$0xff]  }
  0x8a   : > { %1559 = vmatprep.subr.bf16.mxu1 %v2555_v48  ;;  %v2636_v48 = vld [vmem:[%s3087_s9 + $0x20c] ss:$16 sps:$4 sm:$0xff]  }
  0x8c   : > { %1487 = vmatpush2.bf16.msra.mxu0 %v2557_v49  ;;  %v2631_v49 = vld [vmem:[%s3087_s9 + $0x8] ss:$16 sps:$4 sm:$0xff]  }
  0x8d   : > { %1560 = vmatpush2.bf16.msra.mxu1 %v2558_v50  ;;  %1488 = vmatprep.subr.bf16.mxu0 %v2559_v51  ;;  %v2634_v50 = vld [vmem:[%s3087_s9 + $0x208] ss:$16 sps:$4 sm:$0xff]   ;;  %v2639_v51 = vld [vmem:[%s3087_s9 + $0x1ec] ss:$16 sps:$4 sm:$0xff]  }
  0x8e   : > { %1561 = vmatprep.subr.bf16.mxu1 %v2561_v52  ;;  %v2642_v52 = vld [vmem:[%s3087_s9 + $0x3ec] ss:$16 sps:$4 sm:$0xff]  }
  0x90   : > { %1489 = vmatpush2.bf16.msra.mxu0 %v2563_v53  ;;  %v1855_v53 = vld [vmem:[%s3450_s2] sm:$0xff] }
  0x91   : > { %1562 = vmatpush2.bf16.msra.mxu1 %v2564_v54  ;;  %1490 = vmatprep.subr.bf16.mxu0 %v2565_v55  ;;  %v1857_v54 = vld [vmem:[%s3450_s2 + $0x10] sm:$0xff]  ;;  %v2637_v55 = vld [vmem:[%s3087_s9 + $0x1e8] ss:$16 sps:$4 sm:$0xff]  }
  0x92   : > { %1563 = vmatprep.subr.bf16.mxu1 %v2567_v56  ;;  %1865 = vperm.xlu0 %2485, %v1855_v53   ;;  %v2640_v56 = vld [vmem:[%s3087_s9 + $0x3e8] ss:$16 sps:$4 sm:$0xff]  }
  0x93   : > { %1875 = vperm.xlu1 %2486, %v1857_v54  }
  0x94   : > { %1491 = vmatpush2.bf16.msra.mxu0 %v2569_v57  ;;  %v1856_v57 = vld [vmem:[%s3450_s2 + $0x8] sm:$0xff] }
  0x95   : > { %1564 = vmatpush2.bf16.msra.mxu1 %v2570_v58  ;;  %1492 = vmatprep.subr.bf16.mxu0 %v2571_v59  ;;  %v1858_v58 = vld [vmem:[%s3450_s2 + $0x18] sm:$0xff] }
  0x96   : > { %1565 = vmatprep.subr.bf16.mxu1 %v2573_v60  ;;  %v2649_v59 = vld [vmem:[%s3087_s9 + $0x1c8] ss:$16 sps:$4 sm:$0xff]   ;;  %1870 = vperm.xlu0 %2485, %v1856_v57  }
  0x97   : > { %1880 = vperm.xlu1 %2486, %v1858_v58   ;;  %v2652_v60 = vld [vmem:[%s3087_s9 + $0x3c8] ss:$16 sps:$4 sm:$0xff]  }
  0x98   : > { %1493 = vmatpush2.bf16.msra.mxu0 %v2575_v61  ;;  %v1860_v61 = vld [vmem:[%s3450_s2 + $0x28] sm:$0xff] }
  0x99   : > { %1566 = vmatpush2.bf16.msra.mxu1 %v2576_v62  ;;  %1494 = vmatprep.subr.bf16.mxu0 %v2577_v63  ;;  %v1859_v62 = vld [vmem:[%s3450_s2 + $0x20] sm:$0xff]  ;;  %v2657_v63 = vld [vmem:[%s3087_s9 + $0x1ac] ss:$16 sps:$4 sm:$0xff]  }
  0x9a   : > { %1567 = vmatprep.subr.bf16.mxu1 %v2579_v2  ;;  %v2660_v2 = vld [vmem:[%s3087_s9 + $0x3ac] ss:$16 sps:$4 sm:$0xff]   ;;  %1885 = vperm.xlu0 %2485, %v1859_v62  }
  0x9b   : > { %1890 = vperm.xlu1 %2486, %v1860_v61  }
  0x9c   : > { %1495 = vmatpush2.bf16.msra.mxu0 %v2581_v3  ;;  %v2655_v3 = vld [vmem:[%s3087_s9 + $0x1a8] ss:$16 sps:$4 sm:$0xff]  }
  0x9d   : > { %1568 = vmatpush2.bf16.msra.mxu1 %v2582_v4  ;;  %1610 = vmatprep.subr.bf16.mxu0 %v2591_v5  ;;  %v2658_v4 = vld [vmem:[%s3087_s9 + $0x3a8] ss:$16 sps:$4 sm:$0xff]  }
  0x9e   : > { %1683 = vmatprep.subr.bf16.mxu1 %v2594_v6  ;;  %v1862_v5 = vld [vmem:[%s3450_s2 + $0x38] sm:$0xff]  ;;  %v1861_v6 = vld [vmem:[%s3450_s2 + $0x30] sm:$0xff] }
  0x9f   : > { %1497 = vmatmul.mubr.bf16.vlgmr.msra.gmra.mxu0 %v3160_v7  ;;  %1900 = vperm.xlu1 %2486, %v1862_v5  }
  0xa0   : > { %1570 = vmatmul.mubr.bf16.vlgmr.msra.gmra.mxu1 %v3165_v8  ;;  %1611 = vmatpush1.bf16.msra.mxu0 %v2589_v9  ;;  %v2669_v9 = vld [vmem:[%s3087_s9 + $0x18c] ss:$16 sps:$4 sm:$0xff]  }
  0xa1   : > { %1684 = vmatpush1.bf16.msra.mxu1 %v2592_v10  ;;  %1612 = vmatprep.subr.bf16.mxu0 %v2597_v11  ;;  %v2672_v10 = vld [vmem:[%s3087_s9 + $0x38c] ss:$16 sps:$4 sm:$0xff]   ;;  %v2667_v11 = vld [vmem:[%s3087_s9 + $0x188] ss:$16 sps:$4 sm:$0xff]  }
  0xa2   : > { %1685 = vmatprep.subr.bf16.mxu1 %v2600_v12  ;;  %1506 = vmatprep.mubr.bf16.mxu0 %v3177_v14  ;;  %v2670_v12 = vld [vmem:[%s3087_s9 + $0x388] ss:$16 sps:$4 sm:$0xff]  }
  0xa3   : > { %1579 = vmatprep.mubr.bf16.mxu1 %v3184_v17  ;;  %1895 = vperm.xlu0 %2485, %v1861_v6  }
  0xa4   : > { %1613 = vmatpush1.bf16.msra.mxu0 %v2595_v13  ;;  %v2675_v13 = vld [vmem:[%s3087_s9 + $0x16c] ss:$16 sps:$4 sm:$0xff]  }
  0xa5   : > { %1686 = vmatpush1.bf16.msra.mxu1 %v2598_v15  ;;  %1614 = vmatprep.subr.bf16.mxu0 %v2603_v16  ;;  %v2678_v15 = vld [vmem:[%s3087_s9 + $0x36c] ss:$16 sps:$4 sm:$0xff]   ;;  %v2673_v16 = vld [vmem:[%s3087_s9 + $0x168] ss:$16 sps:$4 sm:$0xff]  }
  0xa6   : > { %1687 = vmatprep.subr.bf16.mxu1 %v2606_v18  ;;  %v2676_v18 = vld [vmem:[%s3087_s9 + $0x368] ss:$16 sps:$4 sm:$0xff]  }
  0xa7   : > { %1507 = vmatmul.mubr.bf16.gmra.mxu0 %v3193_v20 }
  0xa8   : > { %1580 = vmatmul.mubr.bf16.gmra.mxu1 %v3198_v21  ;;  %1615 = vmatpush1.bf16.msra.mxu0 %v2601_v19  ;;  %v2687_v19 = vld [vmem:[%s3087_s9 + $0x14c] ss:$16 sps:$4 sm:$0xff]  }
  0xa9   : > { %1688 = vmatpush1.bf16.msra.mxu1 %v2604_v22  ;;  %1616 = vmatprep.subr.bf16.mxu0 %v2609_v23  ;;  %v2690_v22 = vld [vmem:[%s3087_s9 + $0x34c] ss:$16 sps:$4 sm:$0xff]   ;;  %v2685_v23 = vld [vmem:[%s3087_s9 + $0x148] ss:$16 sps:$4 sm:$0xff]  }
  0xaa   : > { %1689 = vmatprep.subr.bf16.mxu1 %v2612_v24  ;;  %1516 = vmatprep.mubr.bf16.mxu0 %v3209_v26  ;;  %v2688_v24 = vld [vmem:[%s3087_s9 + $0x348] ss:$16 sps:$4 sm:$0xff]  }
  0xab   : > { %1589 = vmatprep.mubr.bf16.mxu1 %v3216_v29 }
  0xac   : > { %1617 = vmatpush1.bf16.msra.mxu0 %v2607_v25  ;;  %v2693_v25 = vld [vmem:[%s3087_s9 + $0x12c] ss:$16 sps:$4 sm:$0xff]  }
  0xad   : > { %1690 = vmatpush1.bf16.msra.mxu1 %v2610_v27  ;;  %1618 = vmatprep.subr.bf16.mxu0 %v2615_v28  ;;  %v2696_v27 = vld [vmem:[%s3087_s9 + $0x32c] ss:$16 sps:$4 sm:$0xff]   ;;  %v2691_v28 = vld [vmem:[%s3087_s9 + $0x128] ss:$16 sps:$4 sm:$0xff]  }
  0xae   : > { %1691 = vmatprep.subr.bf16.mxu1 %v2618_v30  ;;  %v2694_v30 = vld [vmem:[%s3087_s9 + $0x328] ss:$16 sps:$4 sm:$0xff]  }
  0xaf   : > { %1517 = vmatmul.mubr.bf16.gmra.mxu0 %v3225_v32 }
  0xb0   : > { %1590 = vmatmul.mubr.bf16.gmra.mxu1 %v3230_v33  ;;  %1619 = vmatpush1.bf16.msra.mxu0 %v2613_v31  ;;  %v2699_v31 = vld [vmem:[%s3087_s9 + $0x10c] ss:$16 sps:$4 sm:$0xff]  }
  0xb1   : > { %1692 = vmatpush1.bf16.msra.mxu1 %v2616_v34  ;;  %1620 = vmatprep.subr.bf16.mxu0 %v2621_v35  ;;  %v2702_v34 = vld [vmem:[%s3087_s9 + $0x30c] ss:$16 sps:$4 sm:$0xff]   ;;  %v2697_v35 = vld [vmem:[%s3087_s9 + $0x108] ss:$16 sps:$4 sm:$0xff]  }
  0xb2   : > { %1693 = vmatprep.subr.bf16.mxu1 %v2624_v36  ;;  %1526 = vmatprep.mubr.bf16.mxu0 %v3241_v38  ;;  %v2700_v36 = vld [vmem:[%s3087_s9 + $0x308] ss:$16 sps:$4 sm:$0xff]  }
  0xb3   : > { %1599 = vmatprep.mubr.bf16.mxu1 %v3248_v41 }
  0xb4   : > { %1621 = vmatpush1.bf16.msra.mxu0 %v2619_v37 }
  0xb5   : > { %1694 = vmatpush1.bf16.msra.mxu1 %v2622_v39  ;;  %1622 = vmatprep.subr.bf16.mxu0 %v2627_v40 }
  0xb6   : > { %1695 = vmatprep.subr.bf16.mxu1 %v2630_v42 }
  0xb7   : > { %1527 = vmatmul.mubr.bf16.gmra.mxu0 %v3257_v44 }
  0xb8   : > { %1600 = vmatmul.mubr.bf16.gmra.mxu1 %v3262_v45  ;;  %1623 = vmatpush1.bf16.msra.mxu0 %v2625_v43 }
  0xb9   : > { %1696 = vmatpush1.bf16.msra.mxu1 %v2628_v46  ;;  %1624 = vmatprep.subr.bf16.mxu0 %v2633_v47 }
  0xba   : > { %1697 = vmatprep.subr.bf16.mxu1 %v2636_v48  ;;  %1642 = vmatprep.mubr.bf16.mxu0 %v3080_v0  ;;  %v2651_v0 = vld [vmem:[%s3087_s9 + $0x1cc] ss:$16 sps:$4 sm:$0xff]  }
  0xbb   : > { %1715 = vmatprep.mubr.bf16.mxu1 %v3085_v1  ;;  %v2654_v1 = vld [vmem:[%s3087_s9 + $0x3cc] ss:$16 sps:$4 sm:$0xff]   ;;  %s2260_s9 = sshll.u32 %s473_s30, 7  ;;  %s2443_s30 = sshll.u32 (%p2799_p6), %s2733_s14, 4 }
  0xbc   : > { %1625 = vmatpush1.bf16.msra.mxu0 %v2631_v49  ;;  %s3355_s12 = scalar_lea.vmem [#allocation4], %s2260_s9  ;;  %s2091_s4 = scalar_lea.vmem (%p2799_p6), %s3451_s3, %s2443_s30 }
  0xbd   : > { %1698 = vmatpush1.bf16.msra.mxu1 %v2634_v50  ;;  %1626 = vmatprep.subr.bf16.mxu0 %v2639_v51 }
  0xbe   : > { %1699 = vmatprep.subr.bf16.mxu1 %v2642_v52 }
  0xc0   : > { %1627 = vmatpush2.bf16.msra.mxu0 %v2637_v55 }
  0xc1   : > { %1700 = vmatpush2.bf16.msra.mxu1 %v2640_v56  ;;  %1628 = vmatprep.subr.bf16.mxu0 %v2651_v0 }
  0xc2   : > { %1701 = vmatprep.subr.bf16.mxu1 %v2654_v1 }
  0xc4   : > { %1629 = vmatpush2.bf16.msra.mxu0 %v2649_v59 }
  0xc5   : > { %1702 = vmatpush2.bf16.msra.mxu1 %v2652_v60  ;;  %1630 = vmatprep.subr.bf16.mxu0 %v2657_v63 }
  0xc6   : > { %1703 = vmatprep.subr.bf16.mxu1 %v2660_v2 }
  0xc8   : > { %1631 = vmatpush2.bf16.msra.mxu0 %v2655_v3 }
  0xc9   : > { %1704 = vmatpush2.bf16.msra.mxu1 %v2658_v4  ;;  %1632 = vmatprep.subr.bf16.mxu0 %v2669_v9 }
  0xca   : > { %1705 = vmatprep.subr.bf16.mxu1 %v2672_v10 }
  0xcc   : > { %1633 = vmatpush2.bf16.msra.mxu0 %v2667_v11 }
  0xcd   : > { %1706 = vmatpush2.bf16.msra.mxu1 %v2670_v12  ;;  %1634 = vmatprep.subr.bf16.mxu0 %v2675_v13 }
  0xce   : > { %1707 = vmatprep.subr.bf16.mxu1 %v2678_v15 }
  0xd0   : > { %1635 = vmatpush2.bf16.msra.mxu0 %v2673_v16 }
  0xd1   : > { %1708 = vmatpush2.bf16.msra.mxu1 %v2676_v18  ;;  %1636 = vmatprep.subr.bf16.mxu0 %v2687_v19 }
  0xd2   : > { %1709 = vmatprep.subr.bf16.mxu1 %v2690_v22 }
  0xd4   : > { %1637 = vmatpush2.bf16.msra.mxu0 %v2685_v23 }
  0xd5   : > { %1710 = vmatpush2.bf16.msra.mxu1 %v2688_v24  ;;  %1638 = vmatprep.subr.bf16.mxu0 %v2693_v25 }
  0xd6   : > { %1711 = vmatprep.subr.bf16.mxu1 %v2696_v27 }
  0xd8   : > { %1639 = vmatpush2.bf16.msra.mxu0 %v2691_v28 }
  0xd9   : > { %1712 = vmatpush2.bf16.msra.mxu1 %v2694_v30  ;;  %1640 = vmatprep.subr.bf16.mxu0 %v2699_v31 }
  0xda   : > { %1713 = vmatprep.subr.bf16.mxu1 %v2702_v34 }
  0xdc   : > { %1641 = vmatpush2.bf16.msra.mxu0 %v2697_v35 }
  0xdd   : > { %1714 = vmatpush2.bf16.msra.mxu1 %v2700_v36 }
  0xdf   : > { %1643 = vmatmul.mubr.bf16.vlgmr.msra.gmra.mxu0 %v3160_v7 }
  0xe0   : > { %1716 = vmatmul.mubr.bf16.vlgmr.msra.gmra.mxu1 %v3165_v8  ;;  %1652 = vmatprep.mubr.bf16.mxu0 %v3177_v14 }
  0xe1   : > { %1725 = vmatprep.mubr.bf16.mxu1 %v3184_v17 }
  0xe7   : > { %1653 = vmatmul.mubr.bf16.gmra.mxu0 %v3193_v20 }
  0xe8   : > { %1726 = vmatmul.mubr.bf16.gmra.mxu1 %v3198_v21  ;;  %1662 = vmatprep.mubr.bf16.mxu0 %v3209_v26 }
  0xe9   : > { %1735 = vmatprep.mubr.bf16.mxu1 %v3216_v29 }
  0xef   : > { %1663 = vmatmul.mubr.bf16.gmra.mxu0 %v3225_v32 }
  0xf0   : > { %1736 = vmatmul.mubr.bf16.gmra.mxu1 %v3230_v33  ;;  %1672 = vmatprep.mubr.bf16.mxu0 %v3241_v38 }
  0xf1   : > { %1745 = vmatprep.mubr.bf16.mxu1 %v3248_v41 }
  0xf7   : > { %1673 = vmatmul.mubr.bf16.gmra.mxu0 %v3257_v44 }
  0xf8   : > { %1746 = vmatmul.mubr.bf16.gmra.mxu1 %v3262_v45 }
 0x10d   : > { %v3343_v7 = vpop.permute.xlu0 %1865 }
 0x10e   : > { %v3351_v41 = vpop.permute.xlu1 %1875 }
 0x111   : > { %v3346_v32 = vpop.permute.xlu0 %1870 }
 0x112   : > { %v3359_v58 = vpop.permute.xlu1 %1880 }
 0x115   : > { %v3364_v6 = vpop.permute.xlu0 %1885 }
 0x116   : > { %v3368_v23 = vpop.permute.xlu1 %1890 }
 0x15f   : > { %v1498_v8 = vpop.f32.mrf.mxu0 }
 0x160   : > { %v1571_v14 = vpop.f32.mrf.mxu1 }
 0x161   : > { %v1572_v17 = vadd.f32 %v1571_v14, %v1498_v8  ;;  %v1500_v20 = vpop.f32.mrf.mxu0 }
 0x162   : > { %v1573_v21 = vpop.f32.mrf.mxu1 }
 0x163   : > { %v1903_v26 = vadd.f32 %v3343_v7, %v1572_v17  ;;  %v1574_v29 = vadd.f32 %v1573_v21, %v1500_v20  ;;  %v1502_v33 = vpop.f32.mrf.mxu0  ;;  %v3374_v20 = vpop.permute.xlu0 %1895 }
 0x164   : > { %v1575_v37 = vpop.f32.mrf.mxu1 }
 0x165   : > { %v1935_v38 = vmax.f32 %v1903_v26, 0.0  ;;  %v1904_v39 = vadd.f32 %v3343_v7, %v1574_v29  ;;  %v1576_v40 = vadd.f32 %v1575_v37, %v1502_v33  ;;  %v1504_v42 = vpop.f32.mrf.mxu0 }
 0x166   : > { %v1577_v43 = vpop.f32.mrf.mxu1 }
 0x167   : > { %v1936_v44 = vmax.f32 %v1904_v39, 0.0  ;;  %v1907_v45 = vadd.f32 %v3346_v32, %v1576_v40  ;;  %v1578_v46 = vadd.f32 %v1577_v43, %v1504_v42  ;;  %v1508_v47 = vpop.f32.mrf.mxu0 }
 0x168   : > { %v1581_v48 = vpop.f32.mrf.mxu1 }
 0x169   : > { %v2427_v49 = vpack.c.bf16 %v1936_v44, %v1935_v38  ;;  %v1908_v50 = vadd.f32 %v3346_v32, %v1578_v46  ;;  %v1582_v51 = vadd.f32 %v1581_v48, %v1508_v47  ;;  %v1510_v52 = vpop.f32.mrf.mxu0  ;;  %v1939_v54 = vmax.f32 %v1907_v45, 0.0  ;;  %v3378_v44 = vpop.permute.xlu1 %1900 }
 0x16a   : > { %v1583_v53 = vpop.f32.mrf.mxu1 }
 0x16b   : > { %2063 = vst [vmem:[%s3355_s12] sm:$0xff] %v2427_v49  ;;  %v1940_v55 = vmax.f32 %v1908_v50, 0.0  ;;  %v1584_v56 = vadd.f32 %v1583_v53, %v1510_v52  ;;  %v1911_v57 = vadd.f32 %v3351_v41, %v1582_v51  ;;  %v1512_v0 = vpop.f32.mrf.mxu0 }
 0x16c   : > { %v1585_v1 = vpop.f32.mrf.mxu1 }
 0x16d   : > { %v2429_v59 = vpack.c.bf16 %v1940_v55, %v1939_v54  ;;  %v1912_v60 = vadd.f32 %v3351_v41, %v1584_v56  ;;  %v1943_v61 = vmax.f32 %v1911_v57, 0.0  ;;  %v1586_v62 = vadd.f32 %v1585_v1, %v1512_v0  ;;  %v1514_v63 = vpop.f32.mrf.mxu0 }
 0x16e   : > { %v1587_v2 = vpop.f32.mrf.mxu1 }
 0x16f   : > { %2065 = vst [vmem:[%s3355_s12 + $0x10] sm:$0xff] %v2429_v59  ;;  %v1944_v3 = vmax.f32 %v1912_v60, 0.0  ;;  %v1588_v4 = vadd.f32 %v1587_v2, %v1514_v63  ;;  %v1915_v5 = vadd.f32 %v3359_v58, %v1586_v62  ;;  %v1518_v9 = vpop.f32.mrf.mxu0 }
 0x170   : > { %v1591_v10 = vpop.f32.mrf.mxu1 }
 0x171   : > { %v2431_v11 = vpack.c.bf16 %v1944_v3, %v1943_v61  ;;  %v1916_v12 = vadd.f32 %v3359_v58, %v1588_v4  ;;  %v1947_v13 = vmax.f32 %v1915_v5, 0.0  ;;  %v1592_v15 = vadd.f32 %v1591_v10, %v1518_v9  ;;  %v1520_v16 = vpop.f32.mrf.mxu0 }
 0x172   : > { %v1593_v18 = vpop.f32.mrf.mxu1 }
 0x173   : > { %2067 = vst [vmem:[%s3355_s12 + $0x20] sm:$0xff] %v2431_v11  ;;  %v1948_v19 = vmax.f32 %v1916_v12, 0.0  ;;  %v1594_v22 = vadd.f32 %v1593_v18, %v1520_v16  ;;  %v1919_v24 = vadd.f32 %v3364_v6, %v1592_v15  ;;  %v1522_v25 = vpop.f32.mrf.mxu0 }
 0x174   : > { %v1595_v27 = vpop.f32.mrf.mxu1 }
 0x175   : > { %v2433_v28 = vpack.c.bf16 %v1948_v19, %v1947_v13  ;;  %v1596_v30 = vadd.f32 %v1595_v27, %v1522_v25  ;;  %v1920_v31 = vadd.f32 %v3364_v6, %v1594_v22  ;;  %v1951_v34 = vmax.f32 %v1919_v24, 0.0  ;;  %v1524_v35 = vpop.f32.mrf.mxu0 }
 0x176   : > { %v1597_v36 = vpop.f32.mrf.mxu1 }
 0x177   : > { %2069 = vst [vmem:[%s3355_s12 + $0x30] sm:$0xff] %v2433_v28  ;;  %v1598_v8 = vadd.f32 %v1597_v36, %v1524_v35  ;;  %v1923_v14 = vadd.f32 %v3368_v23, %v1596_v30  ;;  %v1952_v17 = vmax.f32 %v1920_v31, 0.0  ;;  %v1528_v21 = vpop.f32.mrf.mxu0 }
 0x178   : > { %v1601_v26 = vpop.f32.mrf.mxu1 }
 0x179   : > { %v1924_v29 = vadd.f32 %v3368_v23, %v1598_v8  ;;  %v1955_v33 = vmax.f32 %v1923_v14, 0.0  ;;  %v2435_v37 = vpack.c.bf16 %v1952_v17, %v1951_v34  ;;  %v1602_v38 = vadd.f32 %v1601_v26, %v1528_v21  ;;  %v1530_v39 = vpop.f32.mrf.mxu0 }
 0x17a   : > { %v1603_v40 = vpop.f32.mrf.mxu1 }
 0x17b   : > { %v1956_v42 = vmax.f32 %v1924_v29, 0.0  ;;  %2071 = vst [vmem:[%s3355_s12 + $0x40] sm:$0xff] %v2435_v37  ;;  %v1604_v43 = vadd.f32 %v1603_v40, %v1530_v39  ;;  %v1927_v45 = vadd.f32 %v3374_v20, %v1602_v38  ;;  %v1532_v46 = vpop.f32.mrf.mxu0 }
 0x17c   : > { %v1605_v47 = vpop.f32.mrf.mxu1 }
 0x17d   : > { %v2437_v48 = vpack.c.bf16 %v1956_v42, %v1955_v33  ;;  %v1606_v49 = vadd.f32 %v1605_v47, %v1532_v46  ;;  %v1928_v50 = vadd.f32 %v3374_v20, %v1604_v43  ;;  %v1959_v51 = vmax.f32 %v1927_v45, 0.0  ;;  %v1534_v52 = vpop.f32.mrf.mxu0 }
 0x17e   : > { %v1607_v53 = vpop.f32.mrf.mxu1 }
 0x17f   : > { %2073 = vst [vmem:[%s3355_s12 + $0x50] sm:$0xff] %v2437_v48  ;;  %v1608_v54 = vadd.f32 %v1607_v53, %v1534_v52  ;;  %v1931_v55 = vadd.f32 %v3378_v44, %v1606_v49  ;;  %v1960_v56 = vmax.f32 %v1928_v50, 0.0 }
 0x181   : > { %v1932_v57 = vadd.f32 %v3378_v44, %v1608_v54  ;;  %v1963_v0 = vmax.f32 %v1931_v55, 0.0  ;;  %v2439_v1 = vpack.c.bf16 %v1960_v56, %v1959_v51 }
 0x183   : > { %v1964_v59 = vmax.f32 %v1932_v57, 0.0  ;;  %2075 = vst [vmem:[%s3355_s12 + $0x60] sm:$0xff] %v2439_v1 }
 0x185   : > { %v2441_v60 = vpack.c.bf16 %v1964_v59, %v1963_v0 }
 0x187   : > { %2077 = vst [vmem:[%s3355_s12 + $0x70] sm:$0xff] %v2441_v60 }
 0x19f   : > { %v1644_v61 = vpop.f32.mrf.mxu0 }
 0x1a0   : > { %v1717_v62 = vpop.f32.mrf.mxu1 }
 0x1a1   : > { %v1718_v63 = vadd.f32 %v1717_v62, %v1644_v61  ;;  %v1646_v2 = vpop.f32.mrf.mxu0 }
 0x1a2   : > { %v1719_v3 = vpop.f32.mrf.mxu1 }
 0x1a3   : > { %v1905_v4 = vadd.f32 %v3343_v7, %v1718_v63  ;;  %v1720_v5 = vadd.f32 %v1719_v3, %v1646_v2  ;;  %v1648_v9 = vpop.f32.mrf.mxu0 }
 0x1a4   : > { %v1721_v10 = vpop.f32.mrf.mxu1 }
 0x1a5   : > { %v1906_v11 = vadd.f32 %v3343_v7, %v1720_v5  ;;  %v1722_v12 = vadd.f32 %v1721_v10, %v1648_v9  ;;  %v1650_v13 = vpop.f32.mrf.mxu0  ;;  %v1937_v16 = vmax.f32 %v1905_v4, 0.0 }
 0x1a6   : > { %v1723_v15 = vpop.f32.mrf.mxu1 }
 0x1a7   : > { %v1938_v18 = vmax.f32 %v1906_v11, 0.0  ;;  %v1909_v19 = vadd.f32 %v3346_v32, %v1722_v12  ;;  %v1724_v22 = vadd.f32 %v1723_v15, %v1650_v13  ;;  %v1654_v24 = vpop.f32.mrf.mxu0 }
 0x1a8   : > { %v1727_v25 = vpop.f32.mrf.mxu1 }
 0x1a9   : > { %v2428_v27 = vpack.c.bf16 %v1938_v18, %v1937_v16  ;;  %v1910_v28 = vadd.f32 %v3346_v32, %v1724_v22  ;;  %v1728_v30 = vadd.f32 %v1727_v25, %v1654_v24  ;;  %v1656_v31 = vpop.f32.mrf.mxu0  ;;  %v1941_v35 = vmax.f32 %v1909_v19, 0.0 }
 0x1aa   : > { %v1729_v34 = vpop.f32.mrf.mxu1 }
 0x1ab   : > { %2064 = vst [vmem:[%s3355_s12 + $0x8] sm:$0xff] %v2428_v27  ;;  %v1942_v7 = vmax.f32 %v1910_v28, 0.0  ;;  %v1913_v36 = vadd.f32 %v3351_v41, %v1728_v30  ;;  %v1730_v8 = vadd.f32 %v1729_v34, %v1656_v31  ;;  %v1658_v14 = vpop.f32.mrf.mxu0 }
 0x1ac   : > { %v1731_v17 = vpop.f32.mrf.mxu1 }
 0x1ad   : > { %v2430_v21 = vpack.c.bf16 %v1942_v7, %v1941_v35  ;;  %v1914_v26 = vadd.f32 %v3351_v41, %v1730_v8  ;;  %v1732_v29 = vadd.f32 %v1731_v17, %v1658_v14  ;;  %v1660_v33 = vpop.f32.mrf.mxu0  ;;  %v1945_v32 = vmax.f32 %v1913_v36, 0.0  ;;  %v2108_v36 = vld [vmem:[%s3355_s12 + $0x10] sm:$0xff] (%p2799_p6)  ;;  %v2112_v14 = vld [vmem:[%s3355_s12 + $0x20] sm:$0xff] (%p2799_p6) }
 0x1ae   : > { %v1733_v37 = vpop.f32.mrf.mxu1  ;;  %2109 = vst [vmem:[%s2091_s4 + $0x100] sm:$0xff] (%p2799_p6), %v2108_v36  ;;  %2113 = vst [vmem:[%s2091_s4 + $0x200] sm:$0xff] (%p2799_p6), %v2112_v14 }
 0x1af   : > { %2066 = vst [vmem:[%s3355_s12 + $0x18] sm:$0xff] %v2430_v21  ;;  %v1946_v38 = vmax.f32 %v1914_v26, 0.0  ;;  %v1917_v39 = vadd.f32 %v3359_v58, %v1732_v29  ;;  %v1734_v40 = vadd.f32 %v1733_v37, %v1660_v33  ;;  %v1664_v42 = vpop.f32.mrf.mxu0  ;;  %v2116_v21 = vld [vmem:[%s3355_s12 + $0x30] sm:$0xff] (%p2799_p6)  ;;  %v2120_v29 = vld [vmem:[%s3355_s12 + $0x40] sm:$0xff] (%p2799_p6) }
 0x1b0   : > { %v1737_v43 = vpop.f32.mrf.mxu1  ;;  %2117 = vst [vmem:[%s2091_s4 + $0x300] sm:$0xff] (%p2799_p6), %v2116_v21  ;;  %2121 = vst [vmem:[%s2091_s4 + $0x400] sm:$0xff] (%p2799_p6), %v2120_v29  ;;  %v2124_v37 = vld [vmem:[%s3355_s12 + $0x50] sm:$0xff] (%p2799_p6) }
 0x1b1   : > { %v2432_v45 = vpack.c.bf16 %v1946_v38, %v1945_v32  ;;  %v1918_v46 = vadd.f32 %v3359_v58, %v1734_v40  ;;  %v1738_v47 = vadd.f32 %v1737_v43, %v1664_v42  ;;  %v1666_v48 = vpop.f32.mrf.mxu0  ;;  %v1949_v41 = vmax.f32 %v1917_v39, 0.0  ;;  %2125 = vst [vmem:[%s2091_s4 + $0x500] sm:$0xff] (%p2799_p6), %v2124_v37  ;;  %v2128_v38 = vld [vmem:[%s3355_s12 + $0x60] sm:$0xff] (%p2799_p6)  ;;  %v2132_v40 = vld [vmem:[%s3355_s12 + $0x70] sm:$0xff] (%p2799_p6) }
 0x1b2   : > { %v1739_v49 = vpop.f32.mrf.mxu1  ;;  %2129 = vst [vmem:[%s2091_s4 + $0x600] sm:$0xff] (%p2799_p6), %v2128_v38  ;;  %2133 = vst [vmem:[%s2091_s4 + $0x700] sm:$0xff] (%p2799_p6), %v2132_v40 }
 0x1b3   : > { %2068 = vst [vmem:[%s3355_s12 + $0x28] sm:$0xff] %v2432_v45  ;;  %v1950_v50 = vmax.f32 %v1918_v46, 0.0  ;;  %v1921_v51 = vadd.f32 %v3364_v6, %v1738_v47  ;;  %v1740_v52 = vadd.f32 %v1739_v49, %v1666_v48  ;;  %v1668_v53 = vpop.f32.mrf.mxu0 }
 0x1b4   : > { %v1741_v54 = vpop.f32.mrf.mxu1 }
 0x1b5   : > { %v2434_v55 = vpack.c.bf16 %v1950_v50, %v1949_v41  ;;  %v1922_v56 = vadd.f32 %v3364_v6, %v1740_v52  ;;  %v1742_v57 = vadd.f32 %v1741_v54, %v1668_v53  ;;  %v1670_v0 = vpop.f32.mrf.mxu0  ;;  %v1953_v58 = vmax.f32 %v1921_v51, 0.0 }
 0x1b6   : > { %v1743_v1 = vpop.f32.mrf.mxu1  ;;  %v2110_v8 = vld [vmem:[%s3355_s12 + $0x18] sm:$0xff] (%p2799_p6) }
 0x1b7   : > { %2070 = vst [vmem:[%s3355_s12 + $0x38] sm:$0xff] %v2434_v55  ;;  %v1954_v59 = vmax.f32 %v1922_v56, 0.0  ;;  %v1925_v60 = vadd.f32 %v3368_v23, %v1742_v57  ;;  %v1744_v61 = vadd.f32 %v1743_v1, %v1670_v0  ;;  %v1674_v62 = vpop.f32.mrf.mxu0  ;;  %2111 = vst [vmem:[%s2091_s4 + $0x108] sm:$0xff] (%p2799_p6), %v2110_v8 }
 0x1b8   : > { %v1747_v63 = vpop.f32.mrf.mxu1 }
 0x1b9   : > { %v2436_v2 = vpack.c.bf16 %v1954_v59, %v1953_v58  ;;  %v1926_v3 = vadd.f32 %v3368_v23, %v1744_v61  ;;  %v1748_v4 = vadd.f32 %v1747_v63, %v1674_v62  ;;  %v1676_v5 = vpop.f32.mrf.mxu0  ;;  %v1957_v6 = vmax.f32 %v1925_v60, 0.0 }
 0x1ba   : > { %v1749_v9 = vpop.f32.mrf.mxu1  ;;  %v2114_v17 = vld [vmem:[%s3355_s12 + $0x28] sm:$0xff] (%p2799_p6) }
 0x1bb   : > { %2072 = vst [vmem:[%s3355_s12 + $0x48] sm:$0xff] %v2436_v2  ;;  %v1958_v10 = vmax.f32 %v1926_v3, 0.0  ;;  %v1929_v11 = vadd.f32 %v3374_v20, %v1748_v4  ;;  %v1750_v12 = vadd.f32 %v1749_v9, %v1676_v5  ;;  %v1678_v13 = vpop.f32.mrf.mxu0  ;;  %2115 = vst [vmem:[%s2091_s4 + $0x208] sm:$0xff] (%p2799_p6), %v2114_v17 }
 0x1bc   : > { %v1751_v15 = vpop.f32.mrf.mxu1 }
 0x1bd   : > { %v2438_v16 = vpack.c.bf16 %v1958_v10, %v1957_v6  ;;  %v1930_v18 = vadd.f32 %v3374_v20, %v1750_v12  ;;  %v1752_v19 = vadd.f32 %v1751_v15, %v1678_v13  ;;  %v1680_v22 = vpop.f32.mrf.mxu0  ;;  %v1961_v24 = vmax.f32 %v1929_v11, 0.0  ;;  %v2104_v20 = vld [vmem:[%s3355_s12] sm:$0xff] (%p2799_p6) }
 0x1be   : > { %v1753_v23 = vpop.f32.mrf.mxu1  ;;  %2105 = vst [vmem:[%s2091_s4] sm:$0xff] (%p2799_p6), %v2104_v20  ;;  %v2118_v26 = vld [vmem:[%s3355_s12 + $0x38] sm:$0xff] (%p2799_p6) }
 0x1bf   : > { %2074 = vst [vmem:[%s3355_s12 + $0x58] sm:$0xff] %v2438_v16  ;;  %v1962_v25 = vmax.f32 %v1930_v18, 0.0  ;;  %v1933_v27 = vadd.f32 %v3378_v44, %v1752_v19  ;;  %v1754_v28 = vadd.f32 %v1753_v23, %v1680_v22  ;;  %2119 = vst [vmem:[%s2091_s4 + $0x308] sm:$0xff] (%p2799_p6), %v2118_v26 }
 0x1c1   : > { %v2440_v30 = vpack.c.bf16 %v1962_v25, %v1961_v24  ;;  %v1934_v31 = vadd.f32 %v3378_v44, %v1754_v28  ;;  %v1965_v34 = vmax.f32 %v1933_v27, 0.0  ;;  %v2106_v44 = vld [vmem:[%s3355_s12 + $0x8] sm:$0xff] (%p2799_p6) }
 0x1c2   : > { %2107 = vst [vmem:[%s2091_s4 + $0x8] sm:$0xff] (%p2799_p6), %v2106_v44  ;;  %v2122_v33 = vld [vmem:[%s3355_s12 + $0x48] sm:$0xff] (%p2799_p6) }
 0x1c3   : > { %2076 = vst [vmem:[%s3355_s12 + $0x68] sm:$0xff] %v2440_v30  ;;  %v1966_v35 = vmax.f32 %v1934_v31, 0.0  ;;  %2085 = sbr.rel (!%p2799_p6) target bundleno = 464 (0x1d0), region = 67  ;;  %2123 = vst [vmem:[%s2091_s4 + $0x408] sm:$0xff] (%p2799_p6), %v2122_v33 }
 0x1c5   : > { %v2442_v7 = vpack.c.bf16 %v1966_v35, %v1965_v34 }
 0x1c6   : > { %v2126_v32 = vld [vmem:[%s3355_s12 + $0x58] sm:$0xff] (%p2799_p6) }
 0x1c7   : > { %2078 = vst [vmem:[%s3355_s12 + $0x78] sm:$0xff] %v2442_v7  ;;  %2127 = vst [vmem:[%s2091_s4 + $0x508] sm:$0xff] (%p2799_p6), %v2126_v32 }
 0x1ca   : > { %v2130_v39 = vld [vmem:[%s3355_s12 + $0x68] sm:$0xff] }
 0x1cb   : > { %2131 = vst [vmem:[%s2091_s4 + $0x608] sm:$0xff] %v2130_v39 }
 0x1ce   : > { %v2134_v42 = vld [vmem:[%s3355_s12 + $0x78] sm:$0xff] }
 0x1cf   : > { %2135 = vst [vmem:[%s2091_s4 + $0x708] sm:$0xff] %v2134_v42 }
 0x1d0 PF: > { %s13_s16 = sadd.s32 1, %s2741_s16   ;;  %s3453_s12 = smov %s2729_s13 }
 0x1d1   : > { %p10_p11 = scmp.ge.s32.totalorder %s13_s16, 18   ;;  %s3454_s13 = smov %s2804_s22 }
 0x1d2   : > { %s3455_s14 = smov %s2737_s15  ;;  %s3456_s15 = smov %s3458_s17 }
 0x1d3   :  { %12 = sbr.rel (!%p10_p11) target bundleno = 3 (0x3), region = 127 }

// kernel: conv_vae_forward.20
= control target key start
LH: loop header
LB: loop body
LE: loop exit
PB: predicated region body
PF: predicated region fallthrough
CT: control target
= control target key end

     0   :  { %s5480_s12 = smov 0   ;;  %s5482_s13 = smov 0   ;;  %s7406_s0 = inlined_call_operand.vmem [shape: bf16[128,1024], index: 0, kind: input, shape index: {}]   ;;  %s7407_s1 = inlined_call_operand.vmem [shape: bf16[1024,2048], index: 1, kind: input, shape index: {}]   ;;  %s7408_s2 = inlined_call_operand.vmem [shape: f32[128,1], index: 2, kind: input, shape index: {}]   ;;  %s7409_s3 = inlined_call_operand.vmem [shape: bf16[128,2048], index: 3, kind: output, shape index: {}]  }
   0x1   :  { %s5484_s14 = smov 0   ;;  %s5486_s15 = smov 0  }
   0x2   :  { %s5488_s16 = smov 0  }
   0x3 LB: > { %s28_s17 = sadd.s32 1, %s5453_s15  ;;  %s4589_s18 = sadd.s32 4294967295, %s5457_s16   ;;  %s5457_s16 = sphi %s5488_s16, %s13_s16   ;;  %s5453_s15 = sphi %s5486_s15, %s7571_s15   ;;  %s5449_s14 = sphi %s5484_s14, %s7570_s14   ;;  %s5445_s13 = sphi %s5482_s13, %s7569_s13   ;;  %s5441_s12 = sphi %s5480_s12, %s7568_s12  }
   0x4   : > { %p30_p0 = scmp.ge.s32.totalorder %s28_s17, 4  ;;  %p76_p1 = scmp.ne.s32.totalorder %s5445_s13, %s5441_s12 }
   0x5   : > { %p77_p2 = scmp.eq.s32.totalorder %s5457_s16, 0  ;;  %p134_p4 = scmp.eq.s32.totalorder %s4589_s18, 3 }
   0x6   : > { %s7573_s17 = smov (%p30_p0, %s28_s17), 0  ;;  %s69_s20 = sadd.s32 1, %s5445_s13 }
   0x7   : > { %p78_p3 = por %p77_p2, %p76_p1  ;;  %s65_s19 = ssub.s32 %s5453_s15, %s7573_s17 }
   0x8   : > { %p67_p5 = scmp.eq.s32.totalorder %s65_s19, 0  ;;  %p5515_p6 = por %p134_p4, %p76_p1 }
   0x9   : > { %p4594_p7 = scmp.ge.s32.totalorder %s5457_s16, 4 }
   0xa   : > { %s5520_s22 = scalar_select %p67_p5, %s5445_s13, %s69_s20  }
   0xb   : > { %180 = sbr.rel (%p4594_p7) target bundleno = 148 (0x94), region = 24 }
  0x10   : > { %183 = sbr.rel (!%p78_p3) target bundleno = 148 (0x94), region = 28  ;;  %s185_s23 = sand.u32 (%p78_p3), 1, %s5445_s13  }
  0x11   : > { %s4958_s24 = sshll.u32 (%p78_p3), %s5453_s15, 4  ;;  %s4595_s25 = sshll.u32 (%p78_p3), %s185_s23, 11 }
  0x12   : > { %s5528_s28 = scalar_lea.vmem (%p78_p3), %s7407_s1, %s4958_s24  ;;  %s5533_s29 = scalar_lea.vmem (%p78_p3), [#allocation3], %s4595_s25 }
  0x13   : > { %v206_v0 = vld [vmem:[%s5528_s28] sm:$0xff] (%p78_p3)  ;;  %v208_v1 = vld [vmem:[%s5528_s28 + $0x8] sm:$0xff] (%p78_p3) }
  0x14   : > { %v210_v2 = vld [vmem:[%s5528_s28 + $0x40] sm:$0xff] (%p78_p3)  ;;  %207 = vst [vmem:[%s5533_s29] sm:$0xff] (%p78_p3), %v206_v0  ;;  %209 = vst [vmem:[%s5533_s29 + $0x8] sm:$0xff] (%p78_p3), %v208_v1  ;;  %v212_v3 = vld [vmem:[%s5528_s28 + $0x48] sm:$0xff] (%p78_p3) }
  0x15   : > { %211 = vst [vmem:[%s5533_s29 + $0x10] sm:$0xff] %v210_v2  ;;  %v214_v4 = vld [vmem:[%s5528_s28 + $0x80] sm:$0xff]  ;;  %v216_v5 = vld [vmem:[%s5528_s28 + $0x88] sm:$0xff]  ;;  %213 = vst [vmem:[%s5533_s29 + $0x18] sm:$0xff] %v212_v3 }
  0x16   : > { %215 = vst [vmem:[%s5533_s29 + $0x20] sm:$0xff] %v214_v4  ;;  %217 = vst [vmem:[%s5533_s29 + $0x28] sm:$0xff] %v216_v5  ;;  %v218_v6 = vld [vmem:[%s5528_s28 + $0xc0] sm:$0xff]  ;;  %v220_v7 = vld [vmem:[%s5528_s28 + $0xc8] sm:$0xff] }
  0x17   : > { %v222_v8 = vld [vmem:[%s5528_s28 + $0x100] sm:$0xff]  ;;  %219 = vst [vmem:[%s5533_s29 + $0x30] sm:$0xff] %v218_v6  ;;  %221 = vst [vmem:[%s5533_s29 + $0x38] sm:$0xff] %v220_v7  ;;  %v224_v9 = vld [vmem:[%s5528_s28 + $0x108] sm:$0xff] }
  0x18   : > { %223 = vst [vmem:[%s5533_s29 + $0x40] sm:$0xff] %v222_v8  ;;  %v226_v10 = vld [vmem:[%s5528_s28 + $0x140] sm:$0xff]  ;;  %v228_v11 = vld [vmem:[%s5528_s28 + $0x148] sm:$0xff]  ;;  %225 = vst [vmem:[%s5533_s29 + $0x48] sm:$0xff] %v224_v9 }
  0x19   : > { %227 = vst [vmem:[%s5533_s29 + $0x50] sm:$0xff] %v226_v10  ;;  %229 = vst [vmem:[%s5533_s29 + $0x58] sm:$0xff] %v228_v11  ;;  %v230_v12 = vld [vmem:[%s5528_s28 + $0x180] sm:$0xff]  ;;  %v232_v13 = vld [vmem:[%s5528_s28 + $0x188] sm:$0xff] }
  0x1a   : > { %v234_v14 = vld [vmem:[%s5528_s28 + $0x1c0] sm:$0xff]  ;;  %231 = vst [vmem:[%s5533_s29 + $0x60] sm:$0xff] %v230_v12  ;;  %233 = vst [vmem:[%s5533_s29 + $0x68] sm:$0xff] %v232_v13  ;;  %v236_v15 = vld [vmem:[%s5528_s28 + $0x1c8] sm:$0xff] }
  0x1b   : > { %235 = vst [vmem:[%s5533_s29 + $0x70] sm:$0xff] %v234_v14  ;;  %v238_v16 = vld [vmem:[%s5528_s28 + $0x200] sm:$0xff]  ;;  %v240_v17 = vld [vmem:[%s5528_s28 + $0x208] sm:$0xff]  ;;  %237 = vst [vmem:[%s5533_s29 + $0x78] sm:$0xff] %v236_v15 }
  0x1c   : > { %239 = vst [vmem:[%s5533_s29 + $0x80] sm:$0xff] %v238_v16  ;;  %241 = vst [vmem:[%s5533_s29 + $0x88] sm:$0xff] %v240_v17  ;;  %v242_v18 = vld [vmem:[%s5528_s28 + $0x240] sm:$0xff]  ;;  %v244_v19 = vld [vmem:[%s5528_s28 + $0x248] sm:$0xff] }
  0x1d   : > { %v246_v20 = vld [vmem:[%s5528_s28 + $0x280] sm:$0xff]  ;;  %243 = vst [vmem:[%s5533_s29 + $0x90] sm:$0xff] %v242_v18  ;;  %245 = vst [vmem:[%s5533_s29 + $0x98] sm:$0xff] %v244_v19  ;;  %v248_v21 = vld [vmem:[%s5528_s28 + $0x288] sm:$0xff] }
  0x1e   : > { %247 = vst [vmem:[%s5533_s29 + $0xa0] sm:$0xff] %v246_v20  ;;  %v250_v22 = vld [vmem:[%s5528_s28 + $0x2c0] sm:$0xff]  ;;  %v252_v23 = vld [vmem:[%s5528_s28 + $0x2c8] sm:$0xff]  ;;  %249 = vst [vmem:[%s5533_s29 + $0xa8] sm:$0xff] %v248_v21 }
  0x1f   : > { %251 = vst [vmem:[%s5533_s29 + $0xb0] sm:$0xff] %v250_v22  ;;  %253 = vst [vmem:[%s5533_s29 + $0xb8] sm:$0xff] %v252_v23  ;;  %v254_v24 = vld [vmem:[%s5528_s28 + $0x300] sm:$0xff]  ;;  %v256_v25 = vld [vmem:[%s5528_s28 + $0x308] sm:$0xff] }
  0x20   : > { %v258_v26 = vld [vmem:[%s5528_s28 + $0x340] sm:$0xff]  ;;  %255 = vst [vmem:[%s5533_s29 + $0xc0] sm:$0xff] %v254_v24  ;;  %257 = vst [vmem:[%s5533_s29 + $0xc8] sm:$0xff] %v256_v25  ;;  %v260_v27 = vld [vmem:[%s5528_s28 + $0x348] sm:$0xff] }
  0x21   : > { %259 = vst [vmem:[%s5533_s29 + $0xd0] sm:$0xff] %v258_v26  ;;  %v262_v28 = vld [vmem:[%s5528_s28 + $0x380] sm:$0xff]  ;;  %v264_v29 = vld [vmem:[%s5528_s28 + $0x388] sm:$0xff]  ;;  %261 = vst [vmem:[%s5533_s29 + $0xd8] sm:$0xff] %v260_v27 }
  0x22   : > { %263 = vst [vmem:[%s5533_s29 + $0xe0] sm:$0xff] %v262_v28  ;;  %265 = vst [vmem:[%s5533_s29 + $0xe8] sm:$0xff] %v264_v29  ;;  %v266_v30 = vld [vmem:[%s5528_s28 + $0x3c0] sm:$0xff]  ;;  %v268_v31 = vld [vmem:[%s5528_s28 + $0x3c8] sm:$0xff] }
  0x23   : > { %v270_v32 = vld [vmem:[%s5528_s28 + $0x400] sm:$0xff]  ;;  %267 = vst [vmem:[%s5533_s29 + $0xf0] sm:$0xff] %v266_v30  ;;  %269 = vst [vmem:[%s5533_s29 + $0xf8] sm:$0xff] %v268_v31  ;;  %v272_v33 = vld [vmem:[%s5528_s28 + $0x408] sm:$0xff] }
  0x24   : > { %271 = vst [vmem:[%s5533_s29 + $0x100] sm:$0xff] %v270_v32  ;;  %v274_v34 = vld [vmem:[%s5528_s28 + $0x440] sm:$0xff]  ;;  %v276_v35 = vld [vmem:[%s5528_s28 + $0x448] sm:$0xff]  ;;  %273 = vst [vmem:[%s5533_s29 + $0x108] sm:$0xff] %v272_v33 }
  0x25   : > { %275 = vst [vmem:[%s5533_s29 + $0x110] sm:$0xff] %v274_v34  ;;  %277 = vst [vmem:[%s5533_s29 + $0x118] sm:$0xff] %v276_v35  ;;  %v278_v36 = vld [vmem:[%s5528_s28 + $0x480] sm:$0xff]  ;;  %v280_v37 = vld [vmem:[%s5528_s28 + $0x488] sm:$0xff] }
  0x26   : > { %v282_v38 = vld [vmem:[%s5528_s28 + $0x4c0] sm:$0xff]  ;;  %279 = vst [vmem:[%s5533_s29 + $0x120] sm:$0xff] %v278_v36  ;;  %281 = vst [vmem:[%s5533_s29 + $0x128] sm:$0xff] %v280_v37  ;;  %v284_v39 = vld [vmem:[%s5528_s28 + $0x4c8] sm:$0xff] }
  0x27   : > { %283 = vst [vmem:[%s5533_s29 + $0x130] sm:$0xff] %v282_v38  ;;  %v286_v40 = vld [vmem:[%s5528_s28 + $0x500] sm:$0xff]  ;;  %v288_v41 = vld [vmem:[%s5528_s28 + $0x508] sm:$0xff]  ;;  %285 = vst [vmem:[%s5533_s29 + $0x138] sm:$0xff] %v284_v39 }
  0x28   : > { %287 = vst [vmem:[%s5533_s29 + $0x140] sm:$0xff] %v286_v40  ;;  %289 = vst [vmem:[%s5533_s29 + $0x148] sm:$0xff] %v288_v41  ;;  %v290_v42 = vld [vmem:[%s5528_s28 + $0x540] sm:$0xff]  ;;  %v292_v43 = vld [vmem:[%s5528_s28 + $0x548] sm:$0xff] }
  0x29   : > { %v294_v44 = vld [vmem:[%s5528_s28 + $0x580] sm:$0xff]  ;;  %291 = vst [vmem:[%s5533_s29 + $0x150] sm:$0xff] %v290_v42  ;;  %293 = vst [vmem:[%s5533_s29 + $0x158] sm:$0xff] %v292_v43  ;;  %v296_v45 = vld [vmem:[%s5528_s28 + $0x588] sm:$0xff] }
  0x2a   : > { %295 = vst [vmem:[%s5533_s29 + $0x160] sm:$0xff] %v294_v44  ;;  %v298_v46 = vld [vmem:[%s5528_s28 + $0x5c0] sm:$0xff]  ;;  %v300_v47 = vld [vmem:[%s5528_s28 + $0x5c8] sm:$0xff]  ;;  %297 = vst [vmem:[%s5533_s29 + $0x168] sm:$0xff] %v296_v45 }
  0x2b   : > { %299 = vst [vmem:[%s5533_s29 + $0x170] sm:$0xff] %v298_v46  ;;  %301 = vst [vmem:[%s5533_s29 + $0x178] sm:$0xff] %v300_v47  ;;  %v302_v48 = vld [vmem:[%s5528_s28 + $0x600] sm:$0xff]  ;;  %v304_v49 = vld [vmem:[%s5528_s28 + $0x608] sm:$0xff] }
  0x2c   : > { %v306_v50 = vld [vmem:[%s5528_s28 + $0x640] sm:$0xff]  ;;  %303 = vst [vmem:[%s5533_s29 + $0x180] sm:$0xff] %v302_v48  ;;  %305 = vst [vmem:[%s5533_s29 + $0x188] sm:$0xff] %v304_v49  ;;  %v308_v51 = vld [vmem:[%s5528_s28 + $0x648] sm:$0xff] }
  0x2d   : > { %307 = vst [vmem:[%s5533_s29 + $0x190] sm:$0xff] %v306_v50  ;;  %v310_v52 = vld [vmem:[%s5528_s28 + $0x680] sm:$0xff]  ;;  %v312_v53 = vld [vmem:[%s5528_s28 + $0x688] sm:$0xff]  ;;  %309 = vst [vmem:[%s5533_s29 + $0x198] sm:$0xff] %v308_v51 }
  0x2e   : > { %311 = vst [vmem:[%s5533_s29 + $0x1a0] sm:$0xff] %v310_v52  ;;  %313 = vst [vmem:[%s5533_s29 + $0x1a8] sm:$0xff] %v312_v53  ;;  %v314_v54 = vld [vmem:[%s5528_s28 + $0x6c0] sm:$0xff]  ;;  %v316_v55 = vld [vmem:[%s5528_s28 + $0x6c8] sm:$0xff] }
  0x2f   : > { %v318_v56 = vld [vmem:[%s5528_s28 + $0x700] sm:$0xff]  ;;  %315 = vst [vmem:[%s5533_s29 + $0x1b0] sm:$0xff] %v314_v54  ;;  %317 = vst [vmem:[%s5533_s29 + $0x1b8] sm:$0xff] %v316_v55  ;;  %v320_v57 = vld [vmem:[%s5528_s28 + $0x708] sm:$0xff] }
  0x30   : > { %319 = vst [vmem:[%s5533_s29 + $0x1c0] sm:$0xff] %v318_v56  ;;  %v322_v58 = vld [vmem:[%s5528_s28 + $0x740] sm:$0xff]  ;;  %v324_v59 = vld [vmem:[%s5528_s28 + $0x748] sm:$0xff]  ;;  %321 = vst [vmem:[%s5533_s29 + $0x1c8] sm:$0xff] %v320_v57 }
  0x31   : > { %323 = vst [vmem:[%s5533_s29 + $0x1d0] sm:$0xff] %v322_v58  ;;  %325 = vst [vmem:[%s5533_s29 + $0x1d8] sm:$0xff] %v324_v59  ;;  %v326_v60 = vld [vmem:[%s5528_s28 + $0x780] sm:$0xff]  ;;  %v328_v61 = vld [vmem:[%s5528_s28 + $0x788] sm:$0xff] }
  0x32   : > { %v330_v62 = vld [vmem:[%s5528_s28 + $0x7c0] sm:$0xff]  ;;  %327 = vst [vmem:[%s5533_s29 + $0x1e0] sm:$0xff] %v326_v60  ;;  %329 = vst [vmem:[%s5533_s29 + $0x1e8] sm:$0xff] %v328_v61  ;;  %v332_v63 = vld [vmem:[%s5528_s28 + $0x7c8] sm:$0xff] }
  0x33   : > { %331 = vst [vmem:[%s5533_s29 + $0x1f0] sm:$0xff] %v330_v62  ;;  %v334_v0 = vld [vmem:[%s5528_s28 + $0x800] sm:$0xff]  ;;  %v336_v1 = vld [vmem:[%s5528_s28 + $0x808] sm:$0xff]  ;;  %333 = vst [vmem:[%s5533_s29 + $0x1f8] sm:$0xff] %v332_v63 }
  0x34   : > { %335 = vst [vmem:[%s5533_s29 + $0x200] sm:$0xff] %v334_v0  ;;  %337 = vst [vmem:[%s5533_s29 + $0x208] sm:$0xff] %v336_v1  ;;  %v338_v2 = vld [vmem:[%s5528_s28 + $0x840] sm:$0xff]  ;;  %v340_v3 = vld [vmem:[%s5528_s28 + $0x848] sm:$0xff] }
  0x35   : > { %v342_v4 = vld [vmem:[%s5528_s28 + $0x880] sm:$0xff]  ;;  %339 = vst [vmem:[%s5533_s29 + $0x210] sm:$0xff] %v338_v2  ;;  %341 = vst [vmem:[%s5533_s29 + $0x218] sm:$0xff] %v340_v3  ;;  %v344_v5 = vld [vmem:[%s5528_s28 + $0x888] sm:$0xff] }
  0x36   : > { %343 = vst [vmem:[%s5533_s29 + $0x220] sm:$0xff] %v342_v4  ;;  %v346_v6 = vld [vmem:[%s5528_s28 + $0x8c0] sm:$0xff]  ;;  %v348_v7 = vld [vmem:[%s5528_s28 + $0x8c8] sm:$0xff]  ;;  %345 = vst [vmem:[%s5533_s29 + $0x228] sm:$0xff] %v344_v5 }
  0x37   : > { %347 = vst [vmem:[%s5533_s29 + $0x230] sm:$0xff] %v346_v6  ;;  %349 = vst [vmem:[%s5533_s29 + $0x238] sm:$0xff] %v348_v7  ;;  %v350_v8 = vld [vmem:[%s5528_s28 + $0x900] sm:$0xff]  ;;  %v352_v9 = vld [vmem:[%s5528_s28 + $0x908] sm:$0xff] }
  0x38   : > { %v354_v10 = vld [vmem:[%s5528_s28 + $0x940] sm:$0xff]  ;;  %351 = vst [vmem:[%s5533_s29 + $0x240] sm:$0xff] %v350_v8  ;;  %353 = vst [vmem:[%s5533_s29 + $0x248] sm:$0xff] %v352_v9  ;;  %v356_v11 = vld [vmem:[%s5528_s28 + $0x948] sm:$0xff] }
  0x39   : > { %355 = vst [vmem:[%s5533_s29 + $0x250] sm:$0xff] %v354_v10  ;;  %v358_v12 = vld [vmem:[%s5528_s28 + $0x980] sm:$0xff]  ;;  %v360_v13 = vld [vmem:[%s5528_s28 + $0x988] sm:$0xff]  ;;  %357 = vst [vmem:[%s5533_s29 + $0x258] sm:$0xff] %v356_v11 }
  0x3a   : > { %359 = vst [vmem:[%s5533_s29 + $0x260] sm:$0xff] %v358_v12  ;;  %361 = vst [vmem:[%s5533_s29 + $0x268] sm:$0xff] %v360_v13  ;;  %v362_v14 = vld [vmem:[%s5528_s28 + $0x9c0] sm:$0xff]  ;;  %v364_v15 = vld [vmem:[%s5528_s28 + $0x9c8] sm:$0xff] }
  0x3b   : > { %v366_v16 = vld [vmem:[%s5528_s28 + $0xa00] sm:$0xff]  ;;  %363 = vst [vmem:[%s5533_s29 + $0x270] sm:$0xff] %v362_v14  ;;  %365 = vst [vmem:[%s5533_s29 + $0x278] sm:$0xff] %v364_v15  ;;  %v368_v17 = vld [vmem:[%s5528_s28 + $0xa08] sm:$0xff] }
  0x3c   : > { %367 = vst [vmem:[%s5533_s29 + $0x280] sm:$0xff] %v366_v16  ;;  %v370_v18 = vld [vmem:[%s5528_s28 + $0xa40] sm:$0xff]  ;;  %v372_v19 = vld [vmem:[%s5528_s28 + $0xa48] sm:$0xff]  ;;  %369 = vst [vmem:[%s5533_s29 + $0x288] sm:$0xff] %v368_v17 }
  0x3d   : > { %371 = vst [vmem:[%s5533_s29 + $0x290] sm:$0xff] %v370_v18  ;;  %373 = vst [vmem:[%s5533_s29 + $0x298] sm:$0xff] %v372_v19  ;;  %v374_v20 = vld [vmem:[%s5528_s28 + $0xa80] sm:$0xff]  ;;  %v376_v21 = vld [vmem:[%s5528_s28 + $0xa88] sm:$0xff] }
  0x3e   : > { %v378_v22 = vld [vmem:[%s5528_s28 + $0xac0] sm:$0xff]  ;;  %375 = vst [vmem:[%s5533_s29 + $0x2a0] sm:$0xff] %v374_v20  ;;  %377 = vst [vmem:[%s5533_s29 + $0x2a8] sm:$0xff] %v376_v21  ;;  %v380_v23 = vld [vmem:[%s5528_s28 + $0xac8] sm:$0xff] }
  0x3f   : > { %379 = vst [vmem:[%s5533_s29 + $0x2b0] sm:$0xff] %v378_v22  ;;  %v382_v24 = vld [vmem:[%s5528_s28 + $0xb00] sm:$0xff]  ;;  %v384_v25 = vld [vmem:[%s5528_s28 + $0xb08] sm:$0xff]  ;;  %381 = vst [vmem:[%s5533_s29 + $0x2b8] sm:$0xff] %v380_v23 }
  0x40   : > { %383 = vst [vmem:[%s5533_s29 + $0x2c0] sm:$0xff] %v382_v24  ;;  %385 = vst [vmem:[%s5533_s29 + $0x2c8] sm:$0xff] %v384_v25  ;;  %v386_v26 = vld [vmem:[%s5528_s28 + $0xb40] sm:$0xff]  ;;  %v388_v27 = vld [vmem:[%s5528_s28 + $0xb48] sm:$0xff] }
  0x41   : > { %v390_v28 = vld [vmem:[%s5528_s28 + $0xb80] sm:$0xff]  ;;  %387 = vst [vmem:[%s5533_s29 + $0x2d0] sm:$0xff] %v386_v26  ;;  %389 = vst [vmem:[%s5533_s29 + $0x2d8] sm:$0xff] %v388_v27  ;;  %v392_v29 = vld [vmem:[%s5528_s28 + $0xb88] sm:$0xff] }
  0x42   : > { %391 = vst [vmem:[%s5533_s29 + $0x2e0] sm:$0xff] %v390_v28  ;;  %v394_v30 = vld [vmem:[%s5528_s28 + $0xbc0] sm:$0xff]  ;;  %v396_v31 = vld [vmem:[%s5528_s28 + $0xbc8] sm:$0xff]  ;;  %393 = vst [vmem:[%s5533_s29 + $0x2e8] sm:$0xff] %v392_v29 }
  0x43   : > { %395 = vst [vmem:[%s5533_s29 + $0x2f0] sm:$0xff] %v394_v30  ;;  %397 = vst [vmem:[%s5533_s29 + $0x2f8] sm:$0xff] %v396_v31  ;;  %v398_v32 = vld [vmem:[%s5528_s28 + $0xc00] sm:$0xff]  ;;  %v400_v33 = vld [vmem:[%s5528_s28 + $0xc08] sm:$0xff] }
  0x44   : > { %v402_v34 = vld [vmem:[%s5528_s28 + $0xc40] sm:$0xff]  ;;  %399 = vst [vmem:[%s5533_s29 + $0x300] sm:$0xff] %v398_v32  ;;  %401 = vst [vmem:[%s5533_s29 + $0x308] sm:$0xff] %v400_v33  ;;  %v404_v35 = vld [vmem:[%s5528_s28 + $0xc48] sm:$0xff] }
  0x45   : > { %403 = vst [vmem:[%s5533_s29 + $0x310] sm:$0xff] %v402_v34  ;;  %v406_v36 = vld [vmem:[%s5528_s28 + $0xc80] sm:$0xff]  ;;  %v408_v37 = vld [vmem:[%s5528_s28 + $0xc88] sm:$0xff]  ;;  %405 = vst [vmem:[%s5533_s29 + $0x318] sm:$0xff] %v404_v35 }
  0x46   : > { %407 = vst [vmem:[%s5533_s29 + $0x320] sm:$0xff] %v406_v36  ;;  %409 = vst [vmem:[%s5533_s29 + $0x328] sm:$0xff] %v408_v37  ;;  %v410_v38 = vld [vmem:[%s5528_s28 + $0xcc0] sm:$0xff]  ;;  %v412_v39 = vld [vmem:[%s5528_s28 + $0xcc8] sm:$0xff] }
  0x47   : > { %v414_v40 = vld [vmem:[%s5528_s28 + $0xd00] sm:$0xff]  ;;  %411 = vst [vmem:[%s5533_s29 + $0x330] sm:$0xff] %v410_v38  ;;  %413 = vst [vmem:[%s5533_s29 + $0x338] sm:$0xff] %v412_v39  ;;  %v416_v41 = vld [vmem:[%s5528_s28 + $0xd08] sm:$0xff] }
  0x48   : > { %415 = vst [vmem:[%s5533_s29 + $0x340] sm:$0xff] %v414_v40  ;;  %v418_v42 = vld [vmem:[%s5528_s28 + $0xd40] sm:$0xff]  ;;  %v420_v43 = vld [vmem:[%s5528_s28 + $0xd48] sm:$0xff]  ;;  %417 = vst [vmem:[%s5533_s29 + $0x348] sm:$0xff] %v416_v41 }
  0x49   : > { %419 = vst [vmem:[%s5533_s29 + $0x350] sm:$0xff] %v418_v42  ;;  %421 = vst [vmem:[%s5533_s29 + $0x358] sm:$0xff] %v420_v43  ;;  %v422_v44 = vld [vmem:[%s5528_s28 + $0xd80] sm:$0xff]  ;;  %v424_v45 = vld [vmem:[%s5528_s28 + $0xd88] sm:$0xff] }
  0x4a   : > { %v426_v46 = vld [vmem:[%s5528_s28 + $0xdc0] sm:$0xff]  ;;  %423 = vst [vmem:[%s5533_s29 + $0x360] sm:$0xff] %v422_v44  ;;  %425 = vst [vmem:[%s5533_s29 + $0x368] sm:$0xff] %v424_v45  ;;  %v428_v47 = vld [vmem:[%s5528_s28 + $0xdc8] sm:$0xff] }
  0x4b   : > { %427 = vst [vmem:[%s5533_s29 + $0x370] sm:$0xff] %v426_v46  ;;  %v430_v48 = vld [vmem:[%s5528_s28 + $0xe00] sm:$0xff]  ;;  %v432_v49 = vld [vmem:[%s5528_s28 + $0xe08] sm:$0xff]  ;;  %429 = vst [vmem:[%s5533_s29 + $0x378] sm:$0xff] %v428_v47 }
  0x4c   : > { %431 = vst [vmem:[%s5533_s29 + $0x380] sm:$0xff] %v430_v48  ;;  %433 = vst [vmem:[%s5533_s29 + $0x388] sm:$0xff] %v432_v49  ;;  %v434_v50 = vld [vmem:[%s5528_s28 + $0xe40] sm:$0xff]  ;;  %v436_v51 = vld [vmem:[%s5528_s28 + $0xe48] sm:$0xff] }
  0x4d   : > { %v438_v52 = vld [vmem:[%s5528_s28 + $0xe80] sm:$0xff]  ;;  %435 = vst [vmem:[%s5533_s29 + $0x390] sm:$0xff] %v434_v50  ;;  %437 = vst [vmem:[%s5533_s29 + $0x398] sm:$0xff] %v436_v51  ;;  %v440_v53 = vld [vmem:[%s5528_s28 + $0xe88] sm:$0xff] }
  0x4e   : > { %439 = vst [vmem:[%s5533_s29 + $0x3a0] sm:$0xff] %v438_v52  ;;  %v442_v54 = vld [vmem:[%s5528_s28 + $0xec0] sm:$0xff]  ;;  %v444_v55 = vld [vmem:[%s5528_s28 + $0xec8] sm:$0xff]  ;;  %441 = vst [vmem:[%s5533_s29 + $0x3a8] sm:$0xff] %v440_v53 }
  0x4f   : > { %443 = vst [vmem:[%s5533_s29 + $0x3b0] sm:$0xff] %v442_v54  ;;  %445 = vst [vmem:[%s5533_s29 + $0x3b8] sm:$0xff] %v444_v55  ;;  %v446_v56 = vld [vmem:[%s5528_s28 + $0xf00] sm:$0xff]  ;;  %v448_v57 = vld [vmem:[%s5528_s28 + $0xf08] sm:$0xff] }
  0x50   : > { %v450_v58 = vld [vmem:[%s5528_s28 + $0xf40] sm:$0xff]  ;;  %447 = vst [vmem:[%s5533_s29 + $0x3c0] sm:$0xff] %v446_v56  ;;  %449 = vst [vmem:[%s5533_s29 + $0x3c8] sm:$0xff] %v448_v57  ;;  %v452_v59 = vld [vmem:[%s5528_s28 + $0xf48] sm:$0xff] }
  0x51   : > { %451 = vst [vmem:[%s5533_s29 + $0x3d0] sm:$0xff] %v450_v58  ;;  %v454_v60 = vld [vmem:[%s5528_s28 + $0xf80] sm:$0xff]  ;;  %v456_v61 = vld [vmem:[%s5528_s28 + $0xf88] sm:$0xff]  ;;  %453 = vst [vmem:[%s5533_s29 + $0x3d8] sm:$0xff] %v452_v59 }
  0x52   : > { %455 = vst [vmem:[%s5533_s29 + $0x3e0] sm:$0xff] %v454_v60  ;;  %457 = vst [vmem:[%s5533_s29 + $0x3e8] sm:$0xff] %v456_v61  ;;  %v458_v62 = vld [vmem:[%s5528_s28 + $0xfc0] sm:$0xff]  ;;  %v460_v63 = vld [vmem:[%s5528_s28 + $0xfc8] sm:$0xff] }
  0x53   : > { %v462_v0 = vld [vmem:[%s5528_s28 + $0x1000] sm:$0xff]  ;;  %459 = vst [vmem:[%s5533_s29 + $0x3f0] sm:$0xff] %v458_v62  ;;  %461 = vst [vmem:[%s5533_s29 + $0x3f8] sm:$0xff] %v460_v63  ;;  %v464_v1 = vld [vmem:[%s5528_s28 + $0x1008] sm:$0xff] }
  0x54   : > { %463 = vst [vmem:[%s5533_s29 + $0x400] sm:$0xff] %v462_v0  ;;  %v466_v2 = vld [vmem:[%s5528_s28 + $0x1040] sm:$0xff]  ;;  %v468_v3 = vld [vmem:[%s5528_s28 + $0x1048] sm:$0xff]  ;;  %465 = vst [vmem:[%s5533_s29 + $0x408] sm:$0xff] %v464_v1 }
  0x55   : > { %467 = vst [vmem:[%s5533_s29 + $0x410] sm:$0xff] %v466_v2  ;;  %469 = vst [vmem:[%s5533_s29 + $0x418] sm:$0xff] %v468_v3  ;;  %v470_v4 = vld [vmem:[%s5528_s28 + $0x1080] sm:$0xff]  ;;  %v472_v5 = vld [vmem:[%s5528_s28 + $0x1088] sm:$0xff] }
  0x56   : > { %v474_v6 = vld [vmem:[%s5528_s28 + $0x10c0] sm:$0xff]  ;;  %471 = vst [vmem:[%s5533_s29 + $0x420] sm:$0xff] %v470_v4  ;;  %473 = vst [vmem:[%s5533_s29 + $0x428] sm:$0xff] %v472_v5  ;;  %v476_v7 = vld [vmem:[%s5528_s28 + $0x10c8] sm:$0xff] }
  0x57   : > { %475 = vst [vmem:[%s5533_s29 + $0x430] sm:$0xff] %v474_v6  ;;  %v478_v8 = vld [vmem:[%s5528_s28 + $0x1100] sm:$0xff]  ;;  %v480_v9 = vld [vmem:[%s5528_s28 + $0x1108] sm:$0xff]  ;;  %477 = vst [vmem:[%s5533_s29 + $0x438] sm:$0xff] %v476_v7 }
  0x58   : > { %479 = vst [vmem:[%s5533_s29 + $0x440] sm:$0xff] %v478_v8  ;;  %481 = vst [vmem:[%s5533_s29 + $0x448] sm:$0xff] %v480_v9  ;;  %v482_v10 = vld [vmem:[%s5528_s28 + $0x1140] sm:$0xff]  ;;  %v484_v11 = vld [vmem:[%s5528_s28 + $0x1148] sm:$0xff] }
  0x59   : > { %v486_v12 = vld [vmem:[%s5528_s28 + $0x1180] sm:$0xff]  ;;  %483 = vst [vmem:[%s5533_s29 + $0x450] sm:$0xff] %v482_v10  ;;  %485 = vst [vmem:[%s5533_s29 + $0x458] sm:$0xff] %v484_v11  ;;  %v488_v13 = vld [vmem:[%s5528_s28 + $0x1188] sm:$0xff] }
  0x5a   : > { %487 = vst [vmem:[%s5533_s29 + $0x460] sm:$0xff] %v486_v12  ;;  %v490_v14 = vld [vmem:[%s5528_s28 + $0x11c0] sm:$0xff]  ;;  %v492_v15 = vld [vmem:[%s5528_s28 + $0x11c8] sm:$0xff]  ;;  %489 = vst [vmem:[%s5533_s29 + $0x468] sm:$0xff] %v488_v13 }
  0x5b   : > { %491 = vst [vmem:[%s5533_s29 + $0x470] sm:$0xff] %v490_v14  ;;  %493 = vst [vmem:[%s5533_s29 + $0x478] sm:$0xff] %v492_v15  ;;  %v494_v16 = vld [vmem:[%s5528_s28 + $0x1200] sm:$0xff]  ;;  %v496_v17 = vld [vmem:[%s5528_s28 + $0x1208] sm:$0xff] }
  0x5c   : > { %v498_v18 = vld [vmem:[%s5528_s28 + $0x1240] sm:$0xff]  ;;  %495 = vst [vmem:[%s5533_s29 + $0x480] sm:$0xff] %v494_v16  ;;  %497 = vst [vmem:[%s5533_s29 + $0x488] sm:$0xff] %v496_v17  ;;  %v500_v19 = vld [vmem:[%s5528_s28 + $0x1248] sm:$0xff] }
  0x5d   : > { %499 = vst [vmem:[%s5533_s29 + $0x490] sm:$0xff] %v498_v18  ;;  %v502_v20 = vld [vmem:[%s5528_s28 + $0x1280] sm:$0xff]  ;;  %v504_v21 = vld [vmem:[%s5528_s28 + $0x1288] sm:$0xff]  ;;  %501 = vst [vmem:[%s5533_s29 + $0x498] sm:$0xff] %v500_v19 }
  0x5e   : > { %503 = vst [vmem:[%s5533_s29 + $0x4a0] sm:$0xff] %v502_v20  ;;  %505 = vst [vmem:[%s5533_s29 + $0x4a8] sm:$0xff] %v504_v21  ;;  %v506_v22 = vld [vmem:[%s5528_s28 + $0x12c0] sm:$0xff]  ;;  %v508_v23 = vld [vmem:[%s5528_s28 + $0x12c8] sm:$0xff] }
  0x5f   : > { %v510_v24 = vld [vmem:[%s5528_s28 + $0x1300] sm:$0xff]  ;;  %507 = vst [vmem:[%s5533_s29 + $0x4b0] sm:$0xff] %v506_v22  ;;  %509 = vst [vmem:[%s5533_s29 + $0x4b8] sm:$0xff] %v508_v23  ;;  %v512_v25 = vld [vmem:[%s5528_s28 + $0x1308] sm:$0xff] }
  0x60   : > { %511 = vst [vmem:[%s5533_s29 + $0x4c0] sm:$0xff] %v510_v24  ;;  %v514_v26 = vld [vmem:[%s5528_s28 + $0x1340] sm:$0xff]  ;;  %v516_v27 = vld [vmem:[%s5528_s28 + $0x1348] sm:$0xff]  ;;  %513 = vst [vmem:[%s5533_s29 + $0x4c8] sm:$0xff] %v512_v25 }
  0x61   : > { %515 = vst [vmem:[%s5533_s29 + $0x4d0] sm:$0xff] %v514_v26  ;;  %517 = vst [vmem:[%s5533_s29 + $0x4d8] sm:$0xff] %v516_v27  ;;  %v518_v28 = vld [vmem:[%s5528_s28 + $0x1380] sm:$0xff]  ;;  %v520_v29 = vld [vmem:[%s5528_s28 + $0x1388] sm:$0xff] }
  0x62   : > { %v522_v30 = vld [vmem:[%s5528_s28 + $0x13c0] sm:$0xff]  ;;  %519 = vst [vmem:[%s5533_s29 + $0x4e0] sm:$0xff] %v518_v28  ;;  %521 = vst [vmem:[%s5533_s29 + $0x4e8] sm:$0xff] %v520_v29  ;;  %v524_v31 = vld [vmem:[%s5528_s28 + $0x13c8] sm:$0xff] }
  0x63   : > { %523 = vst [vmem:[%s5533_s29 + $0x4f0] sm:$0xff] %v522_v30  ;;  %v526_v32 = vld [vmem:[%s5528_s28 + $0x1400] sm:$0xff]  ;;  %v528_v33 = vld [vmem:[%s5528_s28 + $0x1408] sm:$0xff]  ;;  %525 = vst [vmem:[%s5533_s29 + $0x4f8] sm:$0xff] %v524_v31 }
  0x64   : > { %527 = vst [vmem:[%s5533_s29 + $0x500] sm:$0xff] %v526_v32  ;;  %529 = vst [vmem:[%s5533_s29 + $0x508] sm:$0xff] %v528_v33  ;;  %v530_v34 = vld [vmem:[%s5528_s28 + $0x1440] sm:$0xff]  ;;  %v532_v35 = vld [vmem:[%s5528_s28 + $0x1448] sm:$0xff] }
  0x65   : > { %v534_v36 = vld [vmem:[%s5528_s28 + $0x1480] sm:$0xff]  ;;  %531 = vst [vmem:[%s5533_s29 + $0x510] sm:$0xff] %v530_v34  ;;  %533 = vst [vmem:[%s5533_s29 + $0x518] sm:$0xff] %v532_v35  ;;  %v536_v37 = vld [vmem:[%s5528_s28 + $0x1488] sm:$0xff] }
  0x66   : > { %535 = vst [vmem:[%s5533_s29 + $0x520] sm:$0xff] %v534_v36  ;;  %v538_v38 = vld [vmem:[%s5528_s28 + $0x14c0] sm:$0xff]  ;;  %v540_v39 = vld [vmem:[%s5528_s28 + $0x14c8] sm:$0xff]  ;;  %537 = vst [vmem:[%s5533_s29 + $0x528] sm:$0xff] %v536_v37 }
  0x67   : > { %539 = vst [vmem:[%s5533_s29 + $0x530] sm:$0xff] %v538_v38  ;;  %541 = vst [vmem:[%s5533_s29 + $0x538] sm:$0xff] %v540_v39  ;;  %v542_v40 = vld [vmem:[%s5528_s28 + $0x1500] sm:$0xff]  ;;  %v544_v41 = vld [vmem:[%s5528_s28 + $0x1508] sm:$0xff] }
  0x68   : > { %v546_v42 = vld [vmem:[%s5528_s28 + $0x1540] sm:$0xff]  ;;  %543 = vst [vmem:[%s5533_s29 + $0x540] sm:$0xff] %v542_v40  ;;  %545 = vst [vmem:[%s5533_s29 + $0x548] sm:$0xff] %v544_v41  ;;  %v548_v43 = vld [vmem:[%s5528_s28 + $0x1548] sm:$0xff] }
  0x69   : > { %547 = vst [vmem:[%s5533_s29 + $0x550] sm:$0xff] %v546_v42  ;;  %v550_v44 = vld [vmem:[%s5528_s28 + $0x1580] sm:$0xff]  ;;  %v552_v45 = vld [vmem:[%s5528_s28 + $0x1588] sm:$0xff]  ;;  %549 = vst [vmem:[%s5533_s29 + $0x558] sm:$0xff] %v548_v43 }
  0x6a   : > { %551 = vst [vmem:[%s5533_s29 + $0x560] sm:$0xff] %v550_v44  ;;  %553 = vst [vmem:[%s5533_s29 + $0x568] sm:$0xff] %v552_v45  ;;  %v554_v46 = vld [vmem:[%s5528_s28 + $0x15c0] sm:$0xff]  ;;  %v556_v47 = vld [vmem:[%s5528_s28 + $0x15c8] sm:$0xff] }
  0x6b   : > { %v558_v48 = vld [vmem:[%s5528_s28 + $0x1600] sm:$0xff]  ;;  %555 = vst [vmem:[%s5533_s29 + $0x570] sm:$0xff] %v554_v46  ;;  %557 = vst [vmem:[%s5533_s29 + $0x578] sm:$0xff] %v556_v47  ;;  %v560_v49 = vld [vmem:[%s5528_s28 + $0x1608] sm:$0xff] }
  0x6c   : > { %559 = vst [vmem:[%s5533_s29 + $0x580] sm:$0xff] %v558_v48  ;;  %v562_v50 = vld [vmem:[%s5528_s28 + $0x1640] sm:$0xff]  ;;  %v564_v51 = vld [vmem:[%s5528_s28 + $0x1648] sm:$0xff]  ;;  %561 = vst [vmem:[%s5533_s29 + $0x588] sm:$0xff] %v560_v49 }
  0x6d   : > { %563 = vst [vmem:[%s5533_s29 + $0x590] sm:$0xff] %v562_v50  ;;  %565 = vst [vmem:[%s5533_s29 + $0x598] sm:$0xff] %v564_v51  ;;  %v566_v52 = vld [vmem:[%s5528_s28 + $0x1680] sm:$0xff]  ;;  %v568_v53 = vld [vmem:[%s5528_s28 + $0x1688] sm:$0xff] }
  0x6e   : > { %v570_v54 = vld [vmem:[%s5528_s28 + $0x16c0] sm:$0xff]  ;;  %567 = vst [vmem:[%s5533_s29 + $0x5a0] sm:$0xff] %v566_v52  ;;  %569 = vst [vmem:[%s5533_s29 + $0x5a8] sm:$0xff] %v568_v53  ;;  %v572_v55 = vld [vmem:[%s5528_s28 + $0x16c8] sm:$0xff] }
  0x6f   : > { %571 = vst [vmem:[%s5533_s29 + $0x5b0] sm:$0xff] %v570_v54  ;;  %v574_v56 = vld [vmem:[%s5528_s28 + $0x1700] sm:$0xff]  ;;  %v576_v57 = vld [vmem:[%s5528_s28 + $0x1708] sm:$0xff]  ;;  %573 = vst [vmem:[%s5533_s29 + $0x5b8] sm:$0xff] %v572_v55 }
  0x70   : > { %575 = vst [vmem:[%s5533_s29 + $0x5c0] sm:$0xff] %v574_v56  ;;  %577 = vst [vmem:[%s5533_s29 + $0x5c8] sm:$0xff] %v576_v57  ;;  %v578_v58 = vld [vmem:[%s5528_s28 + $0x1740] sm:$0xff]  ;;  %v580_v59 = vld [vmem:[%s5528_s28 + $0x1748] sm:$0xff] }
  0x71   : > { %v582_v60 = vld [vmem:[%s5528_s28 + $0x1780] sm:$0xff]  ;;  %579 = vst [vmem:[%s5533_s29 + $0x5d0] sm:$0xff] %v578_v58  ;;  %581 = vst [vmem:[%s5533_s29 + $0x5d8] sm:$0xff] %v580_v59  ;;  %v584_v61 = vld [vmem:[%s5528_s28 + $0x1788] sm:$0xff] }
  0x72   : > { %583 = vst [vmem:[%s5533_s29 + $0x5e0] sm:$0xff] %v582_v60  ;;  %v586_v62 = vld [vmem:[%s5528_s28 + $0x17c0] sm:$0xff]  ;;  %v588_v63 = vld [vmem:[%s5528_s28 + $0x17c8] sm:$0xff]  ;;  %585 = vst [vmem:[%s5533_s29 + $0x5e8] sm:$0xff] %v584_v61 }
  0x73   : > { %587 = vst [vmem:[%s5533_s29 + $0x5f0] sm:$0xff] %v586_v62  ;;  %589 = vst [vmem:[%s5533_s29 + $0x5f8] sm:$0xff] %v588_v63  ;;  %v590_v0 = vld [vmem:[%s5528_s28 + $0x1800] sm:$0xff]  ;;  %v592_v1 = vld [vmem:[%s5528_s28 + $0x1808] sm:$0xff] }
  0x74   : > { %v594_v2 = vld [vmem:[%s5528_s28 + $0x1840] sm:$0xff]  ;;  %591 = vst [vmem:[%s5533_s29 + $0x600] sm:$0xff] %v590_v0  ;;  %593 = vst [vmem:[%s5533_s29 + $0x608] sm:$0xff] %v592_v1  ;;  %v596_v3 = vld [vmem:[%s5528_s28 + $0x1848] sm:$0xff] }
  0x75   : > { %595 = vst [vmem:[%s5533_s29 + $0x610] sm:$0xff] %v594_v2  ;;  %v598_v4 = vld [vmem:[%s5528_s28 + $0x1880] sm:$0xff]  ;;  %v600_v5 = vld [vmem:[%s5528_s28 + $0x1888] sm:$0xff]  ;;  %597 = vst [vmem:[%s5533_s29 + $0x618] sm:$0xff] %v596_v3 }
  0x76   : > { %599 = vst [vmem:[%s5533_s29 + $0x620] sm:$0xff] %v598_v4  ;;  %601 = vst [vmem:[%s5533_s29 + $0x628] sm:$0xff] %v600_v5  ;;  %v602_v6 = vld [vmem:[%s5528_s28 + $0x18c0] sm:$0xff]  ;;  %v604_v7 = vld [vmem:[%s5528_s28 + $0x18c8] sm:$0xff] }
  0x77   : > { %v606_v8 = vld [vmem:[%s5528_s28 + $0x1900] sm:$0xff]  ;;  %603 = vst [vmem:[%s5533_s29 + $0x630] sm:$0xff] %v602_v6  ;;  %605 = vst [vmem:[%s5533_s29 + $0x638] sm:$0xff] %v604_v7  ;;  %v608_v9 = vld [vmem:[%s5528_s28 + $0x1908] sm:$0xff] }
  0x78   : > { %607 = vst [vmem:[%s5533_s29 + $0x640] sm:$0xff] %v606_v8  ;;  %v610_v10 = vld [vmem:[%s5528_s28 + $0x1940] sm:$0xff]  ;;  %v612_v11 = vld [vmem:[%s5528_s28 + $0x1948] sm:$0xff]  ;;  %609 = vst [vmem:[%s5533_s29 + $0x648] sm:$0xff] %v608_v9 }
  0x79   : > { %611 = vst [vmem:[%s5533_s29 + $0x650] sm:$0xff] %v610_v10  ;;  %613 = vst [vmem:[%s5533_s29 + $0x658] sm:$0xff] %v612_v11  ;;  %v614_v12 = vld [vmem:[%s5528_s28 + $0x1980] sm:$0xff]  ;;  %v616_v13 = vld [vmem:[%s5528_s28 + $0x1988] sm:$0xff] }
  0x7a   : > { %v618_v14 = vld [vmem:[%s5528_s28 + $0x19c0] sm:$0xff]  ;;  %615 = vst [vmem:[%s5533_s29 + $0x660] sm:$0xff] %v614_v12  ;;  %617 = vst [vmem:[%s5533_s29 + $0x668] sm:$0xff] %v616_v13  ;;  %v620_v15 = vld [vmem:[%s5528_s28 + $0x19c8] sm:$0xff] }
  0x7b   : > { %619 = vst [vmem:[%s5533_s29 + $0x670] sm:$0xff] %v618_v14  ;;  %v622_v16 = vld [vmem:[%s5528_s28 + $0x1a00] sm:$0xff]  ;;  %v624_v17 = vld [vmem:[%s5528_s28 + $0x1a08] sm:$0xff]  ;;  %621 = vst [vmem:[%s5533_s29 + $0x678] sm:$0xff] %v620_v15 }
  0x7c   : > { %623 = vst [vmem:[%s5533_s29 + $0x680] sm:$0xff] %v622_v16  ;;  %625 = vst [vmem:[%s5533_s29 + $0x688] sm:$0xff] %v624_v17  ;;  %v626_v18 = vld [vmem:[%s5528_s28 + $0x1a40] sm:$0xff]  ;;  %v628_v19 = vld [vmem:[%s5528_s28 + $0x1a48] sm:$0xff] }
  0x7d   : > { %v630_v20 = vld [vmem:[%s5528_s28 + $0x1a80] sm:$0xff]  ;;  %627 = vst [vmem:[%s5533_s29 + $0x690] sm:$0xff] %v626_v18  ;;  %629 = vst [vmem:[%s5533_s29 + $0x698] sm:$0xff] %v628_v19  ;;  %v632_v21 = vld [vmem:[%s5528_s28 + $0x1a88] sm:$0xff] }
  0x7e   : > { %631 = vst [vmem:[%s5533_s29 + $0x6a0] sm:$0xff] %v630_v20  ;;  %v634_v22 = vld [vmem:[%s5528_s28 + $0x1ac0] sm:$0xff]  ;;  %v636_v23 = vld [vmem:[%s5528_s28 + $0x1ac8] sm:$0xff]  ;;  %633 = vst [vmem:[%s5533_s29 + $0x6a8] sm:$0xff] %v632_v21 }
  0x7f   : > { %635 = vst [vmem:[%s5533_s29 + $0x6b0] sm:$0xff] %v634_v22  ;;  %637 = vst [vmem:[%s5533_s29 + $0x6b8] sm:$0xff] %v636_v23  ;;  %v638_v24 = vld [vmem:[%s5528_s28 + $0x1b00] sm:$0xff]  ;;  %v640_v25 = vld [vmem:[%s5528_s28 + $0x1b08] sm:$0xff] }
  0x80   : > { %v642_v26 = vld [vmem:[%s5528_s28 + $0x1b40] sm:$0xff]  ;;  %639 = vst [vmem:[%s5533_s29 + $0x6c0] sm:$0xff] %v638_v24  ;;  %641 = vst [vmem:[%s5533_s29 + $0x6c8] sm:$0xff] %v640_v25  ;;  %v644_v27 = vld [vmem:[%s5528_s28 + $0x1b48] sm:$0xff] }
  0x81   : > { %643 = vst [vmem:[%s5533_s29 + $0x6d0] sm:$0xff] %v642_v26  ;;  %v646_v28 = vld [vmem:[%s5528_s28 + $0x1b80] sm:$0xff]  ;;  %v648_v29 = vld [vmem:[%s5528_s28 + $0x1b88] sm:$0xff]  ;;  %645 = vst [vmem:[%s5533_s29 + $0x6d8] sm:$0xff] %v644_v27 }
  0x82   : > { %647 = vst [vmem:[%s5533_s29 + $0x6e0] sm:$0xff] %v646_v28  ;;  %649 = vst [vmem:[%s5533_s29 + $0x6e8] sm:$0xff] %v648_v29  ;;  %v650_v30 = vld [vmem:[%s5528_s28 + $0x1bc0] sm:$0xff]  ;;  %v652_v31 = vld [vmem:[%s5528_s28 + $0x1bc8] sm:$0xff] }
  0x83   : > { %v654_v32 = vld [vmem:[%s5528_s28 + $0x1c00] sm:$0xff]  ;;  %651 = vst [vmem:[%s5533_s29 + $0x6f0] sm:$0xff] %v650_v30  ;;  %653 = vst [vmem:[%s5533_s29 + $0x6f8] sm:$0xff] %v652_v31  ;;  %v656_v33 = vld [vmem:[%s5528_s28 + $0x1c08] sm:$0xff] }
  0x84   : > { %655 = vst [vmem:[%s5533_s29 + $0x700] sm:$0xff] %v654_v32  ;;  %v658_v34 = vld [vmem:[%s5528_s28 + $0x1c40] sm:$0xff]  ;;  %v660_v35 = vld [vmem:[%s5528_s28 + $0x1c48] sm:$0xff]  ;;  %657 = vst [vmem:[%s5533_s29 + $0x708] sm:$0xff] %v656_v33 }
  0x85   : > { %659 = vst [vmem:[%s5533_s29 + $0x710] sm:$0xff] %v658_v34  ;;  %661 = vst [vmem:[%s5533_s29 + $0x718] sm:$0xff] %v660_v35  ;;  %v662_v36 = vld [vmem:[%s5528_s28 + $0x1c80] sm:$0xff]  ;;  %v664_v37 = vld [vmem:[%s5528_s28 + $0x1c88] sm:$0xff] }
  0x86   : > { %v666_v38 = vld [vmem:[%s5528_s28 + $0x1cc0] sm:$0xff]  ;;  %663 = vst [vmem:[%s5533_s29 + $0x720] sm:$0xff] %v662_v36  ;;  %665 = vst [vmem:[%s5533_s29 + $0x728] sm:$0xff] %v664_v37  ;;  %v668_v39 = vld [vmem:[%s5528_s28 + $0x1cc8] sm:$0xff] }
  0x87   : > { %667 = vst [vmem:[%s5533_s29 + $0x730] sm:$0xff] %v666_v38  ;;  %v670_v40 = vld [vmem:[%s5528_s28 + $0x1d00] sm:$0xff]  ;;  %v672_v41 = vld [vmem:[%s5528_s28 + $0x1d08] sm:$0xff]  ;;  %669 = vst [vmem:[%s5533_s29 + $0x738] sm:$0xff] %v668_v39 }
  0x88   : > { %671 = vst [vmem:[%s5533_s29 + $0x740] sm:$0xff] %v670_v40  ;;  %673 = vst [vmem:[%s5533_s29 + $0x748] sm:$0xff] %v672_v41  ;;  %v674_v42 = vld [vmem:[%s5528_s28 + $0x1d40] sm:$0xff]  ;;  %v676_v43 = vld [vmem:[%s5528_s28 + $0x1d48] sm:$0xff] }
  0x89   : > { %v678_v44 = vld [vmem:[%s5528_s28 + $0x1d80] sm:$0xff]  ;;  %675 = vst [vmem:[%s5533_s29 + $0x750] sm:$0xff] %v674_v42  ;;  %677 = vst [vmem:[%s5533_s29 + $0x758] sm:$0xff] %v676_v43  ;;  %v680_v45 = vld [vmem:[%s5528_s28 + $0x1d88] sm:$0xff] }
  0x8a   : > { %679 = vst [vmem:[%s5533_s29 + $0x760] sm:$0xff] %v678_v44  ;;  %v682_v46 = vld [vmem:[%s5528_s28 + $0x1dc0] sm:$0xff]  ;;  %v684_v47 = vld [vmem:[%s5528_s28 + $0x1dc8] sm:$0xff]  ;;  %681 = vst [vmem:[%s5533_s29 + $0x768] sm:$0xff] %v680_v45 }
  0x8b   : > { %683 = vst [vmem:[%s5533_s29 + $0x770] sm:$0xff] %v682_v46  ;;  %685 = vst [vmem:[%s5533_s29 + $0x778] sm:$0xff] %v684_v47  ;;  %v686_v48 = vld [vmem:[%s5528_s28 + $0x1e00] sm:$0xff]  ;;  %v688_v49 = vld [vmem:[%s5528_s28 + $0x1e08] sm:$0xff] }
  0x8c   : > { %v690_v50 = vld [vmem:[%s5528_s28 + $0x1e40] sm:$0xff]  ;;  %687 = vst [vmem:[%s5533_s29 + $0x780] sm:$0xff] %v686_v48  ;;  %689 = vst [vmem:[%s5533_s29 + $0x788] sm:$0xff] %v688_v49  ;;  %v692_v51 = vld [vmem:[%s5528_s28 + $0x1e48] sm:$0xff] }
  0x8d   : > { %691 = vst [vmem:[%s5533_s29 + $0x790] sm:$0xff] %v690_v50  ;;  %v694_v52 = vld [vmem:[%s5528_s28 + $0x1e80] sm:$0xff]  ;;  %v696_v53 = vld [vmem:[%s5528_s28 + $0x1e88] sm:$0xff]  ;;  %693 = vst [vmem:[%s5533_s29 + $0x798] sm:$0xff] %v692_v51 }
  0x8e   : > { %695 = vst [vmem:[%s5533_s29 + $0x7a0] sm:$0xff] %v694_v52  ;;  %697 = vst [vmem:[%s5533_s29 + $0x7a8] sm:$0xff] %v696_v53  ;;  %v698_v54 = vld [vmem:[%s5528_s28 + $0x1ec0] sm:$0xff]  ;;  %v700_v55 = vld [vmem:[%s5528_s28 + $0x1ec8] sm:$0xff] }
  0x8f   : > { %v702_v56 = vld [vmem:[%s5528_s28 + $0x1f00] sm:$0xff]  ;;  %699 = vst [vmem:[%s5533_s29 + $0x7b0] sm:$0xff] %v698_v54  ;;  %701 = vst [vmem:[%s5533_s29 + $0x7b8] sm:$0xff] %v700_v55  ;;  %v704_v57 = vld [vmem:[%s5528_s28 + $0x1f08] sm:$0xff] }
  0x90   : > { %703 = vst [vmem:[%s5533_s29 + $0x7c0] sm:$0xff] %v702_v56  ;;  %v706_v58 = vld [vmem:[%s5528_s28 + $0x1f40] sm:$0xff]  ;;  %v708_v59 = vld [vmem:[%s5528_s28 + $0x1f48] sm:$0xff]  ;;  %705 = vst [vmem:[%s5533_s29 + $0x7c8] sm:$0xff] %v704_v57 }
  0x91   : > { %707 = vst [vmem:[%s5533_s29 + $0x7d0] sm:$0xff] %v706_v58  ;;  %709 = vst [vmem:[%s5533_s29 + $0x7d8] sm:$0xff] %v708_v59  ;;  %v710_v60 = vld [vmem:[%s5528_s28 + $0x1f80] sm:$0xff]  ;;  %v712_v61 = vld [vmem:[%s5528_s28 + $0x1f88] sm:$0xff] }
  0x92   : > { %v714_v62 = vld [vmem:[%s5528_s28 + $0x1fc0] sm:$0xff]  ;;  %711 = vst [vmem:[%s5533_s29 + $0x7e0] sm:$0xff] %v710_v60  ;;  %713 = vst [vmem:[%s5533_s29 + $0x7e8] sm:$0xff] %v712_v61  ;;  %v716_v63 = vld [vmem:[%s5528_s28 + $0x1fc8] sm:$0xff] }
  0x93   : > { %715 = vst [vmem:[%s5533_s29 + $0x7f0] sm:$0xff] %v714_v62  ;;  %717 = vst [vmem:[%s5533_s29 + $0x7f8] sm:$0xff] %v716_v63 }
  0x94 PF: > { %p4598_p8 = scmp.ge.s32.totalorder %s5457_s16, 1  ;;  %p722_p9 = scmp.lt.s32.totalorder %s5457_s16, 5 }
  0x96   : > { %p723_p10 = pnand %p4598_p8, %p722_p9 }
  0x98   : > { %726 = sbr.rel (%p723_p10) target bundleno = 692 (0x2b4), region = 51 }
  0x9d   : > { %s729_s30 = sand.u32 1, %s5441_s12   ;;  %v920_v0 = vld [vmem:[%s7406_s0] sm:$0xff]  ;;  %v921_v2 = vld [vmem:[%s7406_s0 + $0x8] sm:$0xff] }
  0x9e   : > { %v924_v1 = vld [vmem:[%s7406_s0 + $0x20] sm:$0xff]  ;;  %s4599_s10 = sshll.u32 %s729_s30, 11  ;;  %v925_v5 = vld [vmem:[%s7406_s0 + $0x28] sm:$0xff] }
  0x9f   : > { %v6058_v3 = vcombine.low %v920_v0, %v924_v1  ;;  %v6060_v4 = vcombine.high %v920_v0, %v924_v1  ;;  %v6065_v6 = vcombine.low %v921_v2, %v925_v5  ;;  %v6067_v7 = vcombine.high %v921_v2, %v925_v5  ;;  %s6069_s19 = scalar_lea.vmem [#allocation3], %s4599_s10 }
  0xa0   : > { %v5035_v8 = vld [vmem:[%s6069_s19 + $0xe4] ss:$16 sps:$4 sm:$0xff]   ;;  %v5039_v10 = vld [vmem:[%s6069_s19 + $0xe0] ss:$16 sps:$4 sm:$0xff]  }
  0xa1   : > { %2872 = vmatprep.mubr.bf16.mxu0 %v6060_v4  ;;  %v5037_v9 = vld [vmem:[%s6069_s19 + $0x2e4] ss:$16 sps:$4 sm:$0xff]   ;;  %2985 = vmatprep.mubr.bf16.mxu1 %v6067_v7  ;;  %v5040_v11 = vld [vmem:[%s6069_s19 + $0x2e0] ss:$16 sps:$4 sm:$0xff]  }
  0xa2   : > { %2840 = vmatprep.subr.bf16.mxu0 %v5035_v8  ;;  %2953 = vmatprep.subr.bf16.mxu1 %v5037_v9  ;;  %v5041_v12 = vld [vmem:[%s6069_s19 + $0xc4] ss:$16 sps:$4 sm:$0xff]   ;;  %v5045_v14 = vld [vmem:[%s6069_s19 + $0xc0] ss:$16 sps:$4 sm:$0xff]  }
  0xa3   : > { %2841 = vmatpush1.bf16.msra.mxu0 %v5039_v10  ;;  %2954 = vmatpush1.bf16.msra.mxu1 %v5040_v11  ;;  %v5043_v13 = vld [vmem:[%s6069_s19 + $0x2c4] ss:$16 sps:$4 sm:$0xff]   ;;  %v5046_v15 = vld [vmem:[%s6069_s19 + $0x2c0] ss:$16 sps:$4 sm:$0xff]  }
  0xa4   : > { %2842 = vmatprep.subr.bf16.mxu0 %v5041_v12  ;;  %2955 = vmatprep.subr.bf16.mxu1 %v5043_v13  ;;  %v5047_v16 = vld [vmem:[%s6069_s19 + $0xa4] ss:$16 sps:$4 sm:$0xff]   ;;  %v5051_v18 = vld [vmem:[%s6069_s19 + $0xa0] ss:$16 sps:$4 sm:$0xff]  }
  0xa5   : > { %v5049_v17 = vld [vmem:[%s6069_s19 + $0x2a4] ss:$16 sps:$4 sm:$0xff]   ;;  %v5052_v19 = vld [vmem:[%s6069_s19 + $0x2a0] ss:$16 sps:$4 sm:$0xff]  }
  0xa6   : > { %v5053_v20 = vld [vmem:[%s6069_s19 + $0x84] ss:$16 sps:$4 sm:$0xff]   ;;  %v5057_v22 = vld [vmem:[%s6069_s19 + $0x80] ss:$16 sps:$4 sm:$0xff]  }
  0xa7   : > { %2843 = vmatpush1.bf16.msra.mxu0 %v5045_v14  ;;  %2956 = vmatpush1.bf16.msra.mxu1 %v5046_v15  ;;  %v5055_v21 = vld [vmem:[%s6069_s19 + $0x284] ss:$16 sps:$4 sm:$0xff]   ;;  %v5058_v23 = vld [vmem:[%s6069_s19 + $0x280] ss:$16 sps:$4 sm:$0xff]  }
  0xa8   : > { %2844 = vmatprep.subr.bf16.mxu0 %v5047_v16  ;;  %2957 = vmatprep.subr.bf16.mxu1 %v5049_v17  ;;  %v5059_v24 = vld [vmem:[%s6069_s19 + $0x64] ss:$16 sps:$4 sm:$0xff]   ;;  %v5063_v26 = vld [vmem:[%s6069_s19 + $0x60] ss:$16 sps:$4 sm:$0xff]   ;;  %v929_v16 = vld [vmem:[%s7406_s0 + $0x48] sm:$0xff] }
  0xa9   : > { %v5061_v25 = vld [vmem:[%s6069_s19 + $0x264] ss:$16 sps:$4 sm:$0xff]   ;;  %v5064_v27 = vld [vmem:[%s6069_s19 + $0x260] ss:$16 sps:$4 sm:$0xff]  }
  0xaa   : > { %v5065_v28 = vld [vmem:[%s6069_s19 + $0x44] ss:$16 sps:$4 sm:$0xff]   ;;  %v5069_v30 = vld [vmem:[%s6069_s19 + $0x40] ss:$16 sps:$4 sm:$0xff]  }
  0xab   : > { %2845 = vmatpush1.bf16.msra.mxu0 %v5051_v18  ;;  %2958 = vmatpush1.bf16.msra.mxu1 %v5052_v19  ;;  %v5067_v29 = vld [vmem:[%s6069_s19 + $0x244] ss:$16 sps:$4 sm:$0xff]   ;;  %v5070_v31 = vld [vmem:[%s6069_s19 + $0x240] ss:$16 sps:$4 sm:$0xff]   ;;  %v933_v18 = vld [vmem:[%s7406_s0 + $0x68] sm:$0xff] }
  0xac   : > { %2846 = vmatprep.subr.bf16.mxu0 %v5053_v20  ;;  %2959 = vmatprep.subr.bf16.mxu1 %v5055_v21  ;;  %v5071_v32 = vld [vmem:[%s6069_s19 + $0x24] ss:$16 sps:$4 sm:$0xff]   ;;  %v5075_v34 = vld [vmem:[%s6069_s19 + $0x20] ss:$16 sps:$4 sm:$0xff]  }
  0xad   : > { %v5073_v33 = vld [vmem:[%s6069_s19 + $0x224] ss:$16 sps:$4 sm:$0xff]   ;;  %v5076_v35 = vld [vmem:[%s6069_s19 + $0x220] ss:$16 sps:$4 sm:$0xff]  }
  0xae   : > { %v5077_v36 = vld [vmem:[%s6069_s19 + $0x4] ss:$16 sps:$4 sm:$0xff]   ;;  %v5081_v38 = vld [vmem:[%s6069_s19] ss:$16 sps:$4 sm:$0xff]  }
  0xaf   : > { %2847 = vmatpush1.bf16.msra.mxu0 %v5057_v22  ;;  %2960 = vmatpush1.bf16.msra.mxu1 %v5058_v23  ;;  %v5079_v37 = vld [vmem:[%s6069_s19 + $0x204] ss:$16 sps:$4 sm:$0xff]   ;;  %v5082_v39 = vld [vmem:[%s6069_s19 + $0x200] ss:$16 sps:$4 sm:$0xff]   ;;  %v6157_v23 = vcombine.high %v929_v16, %v933_v18 }
  0xb0   : > { %2848 = vmatprep.subr.bf16.mxu0 %v5059_v24  ;;  %2961 = vmatprep.subr.bf16.mxu1 %v5061_v25  ;;  %v5083_v40 = vld [vmem:[%s6069_s19 + $0x1e4] ss:$16 sps:$4 sm:$0xff]   ;;  %v5087_v42 = vld [vmem:[%s6069_s19 + $0x1e0] ss:$16 sps:$4 sm:$0xff]  }
  0xb1   : > { %v5085_v41 = vld [vmem:[%s6069_s19 + $0x3e4] ss:$16 sps:$4 sm:$0xff]   ;;  %v5088_v43 = vld [vmem:[%s6069_s19 + $0x3e0] ss:$16 sps:$4 sm:$0xff]  }
  0xb2   : > { %v5089_v44 = vld [vmem:[%s6069_s19 + $0x1c4] ss:$16 sps:$4 sm:$0xff]   ;;  %v5093_v46 = vld [vmem:[%s6069_s19 + $0x1c0] ss:$16 sps:$4 sm:$0xff]  }
  0xb3   : > { %2849 = vmatpush1.bf16.msra.mxu0 %v5063_v26  ;;  %2962 = vmatpush1.bf16.msra.mxu1 %v5064_v27  ;;  %v5091_v45 = vld [vmem:[%s6069_s19 + $0x3c4] ss:$16 sps:$4 sm:$0xff]   ;;  %v5094_v47 = vld [vmem:[%s6069_s19 + $0x3c0] ss:$16 sps:$4 sm:$0xff]  }
  0xb4   : > { %2850 = vmatprep.subr.bf16.mxu0 %v5065_v28  ;;  %2963 = vmatprep.subr.bf16.mxu1 %v5067_v29  ;;  %v5095_v48 = vld [vmem:[%s6069_s19 + $0x1a4] ss:$16 sps:$4 sm:$0xff]   ;;  %v5099_v50 = vld [vmem:[%s6069_s19 + $0x1a0] ss:$16 sps:$4 sm:$0xff]  }
  0xb5   : > { %v5097_v49 = vld [vmem:[%s6069_s19 + $0x3a4] ss:$16 sps:$4 sm:$0xff]   ;;  %v5100_v51 = vld [vmem:[%s6069_s19 + $0x3a0] ss:$16 sps:$4 sm:$0xff]  }
  0xb6   : > { %v5101_v52 = vld [vmem:[%s6069_s19 + $0x184] ss:$16 sps:$4 sm:$0xff]   ;;  %v5105_v54 = vld [vmem:[%s6069_s19 + $0x180] ss:$16 sps:$4 sm:$0xff]  }
  0xb7   : > { %2851 = vmatpush1.bf16.msra.mxu0 %v5069_v30  ;;  %2964 = vmatpush1.bf16.msra.mxu1 %v5070_v31  ;;  %v5103_v53 = vld [vmem:[%s6069_s19 + $0x384] ss:$16 sps:$4 sm:$0xff]   ;;  %v5106_v55 = vld [vmem:[%s6069_s19 + $0x380] ss:$16 sps:$4 sm:$0xff]   ;;  %v6175_v31 = vcombine.low %v929_v16, %v933_v18 }
  0xb8   : > { %2852 = vmatprep.subr.bf16.mxu0 %v5071_v32  ;;  %2965 = vmatprep.subr.bf16.mxu1 %v5073_v33  ;;  %v5107_v56 = vld [vmem:[%s6069_s19 + $0x164] ss:$16 sps:$4 sm:$0xff]   ;;  %v5111_v58 = vld [vmem:[%s6069_s19 + $0x160] ss:$16 sps:$4 sm:$0xff]   ;;  %v937_v32 = vld [vmem:[%s7406_s0 + $0x88] sm:$0xff] }
  0xb9   : > { %v5109_v57 = vld [vmem:[%s6069_s19 + $0x364] ss:$16 sps:$4 sm:$0xff]   ;;  %v5112_v59 = vld [vmem:[%s6069_s19 + $0x360] ss:$16 sps:$4 sm:$0xff]   ;;  %v941_v33 = vld [vmem:[%s7406_s0 + $0xa8] sm:$0xff] }
  0xba   : > { %v5113_v60 = vld [vmem:[%s6069_s19 + $0x144] ss:$16 sps:$4 sm:$0xff]   ;;  %v5117_v62 = vld [vmem:[%s6069_s19 + $0x140] ss:$16 sps:$4 sm:$0xff]  }
  0xbb   : > { %2853 = vmatpush1.bf16.msra.mxu0 %v5075_v34  ;;  %2966 = vmatpush1.bf16.msra.mxu1 %v5076_v35  ;;  %v5115_v61 = vld [vmem:[%s6069_s19 + $0x344] ss:$16 sps:$4 sm:$0xff]   ;;  %v5118_v63 = vld [vmem:[%s6069_s19 + $0x340] ss:$16 sps:$4 sm:$0xff]  }
  0xbc   : > { %2854 = vmatprep.subr.bf16.mxu0 %v5077_v36  ;;  %2967 = vmatprep.subr.bf16.mxu1 %v5079_v37  ;;  %v5119_v0 = vld [vmem:[%s6069_s19 + $0x124] ss:$16 sps:$4 sm:$0xff]   ;;  %v5123_v2 = vld [vmem:[%s6069_s19 + $0x120] ss:$16 sps:$4 sm:$0xff]  }
  0xbd   : > { %v5121_v1 = vld [vmem:[%s6069_s19 + $0x324] ss:$16 sps:$4 sm:$0xff]   ;;  %v5124_v5 = vld [vmem:[%s6069_s19 + $0x320] ss:$16 sps:$4 sm:$0xff]  }
  0xbe   : > { %v5125_v8 = vld [vmem:[%s6069_s19 + $0x104] ss:$16 sps:$4 sm:$0xff]   ;;  %v5129_v10 = vld [vmem:[%s6069_s19 + $0x100] ss:$16 sps:$4 sm:$0xff]  }
  0xbf   : > { %2855 = vmatpush1.bf16.msra.mxu0 %v5081_v38  ;;  %2968 = vmatpush1.bf16.msra.mxu1 %v5082_v39  ;;  %v5127_v9 = vld [vmem:[%s6069_s19 + $0x304] ss:$16 sps:$4 sm:$0xff]   ;;  %v5130_v11 = vld [vmem:[%s6069_s19 + $0x300] ss:$16 sps:$4 sm:$0xff]   ;;  %v6189_v39 = vcombine.high %v937_v32, %v941_v33 }
  0xc0   : > { %2856 = vmatprep.subr.bf16.mxu0 %v5083_v40  ;;  %2969 = vmatprep.subr.bf16.mxu1 %v5085_v41  ;;  %v5133_v12 = vld [vmem:[%s6069_s19 + $0x4e4] ss:$16 sps:$4 sm:$0xff]   ;;  %v5131_v17 = vld [vmem:[%s6069_s19 + $0x4e0] ss:$16 sps:$4 sm:$0xff]   ;;  %v5459_v40 = vmov 0  }
  0xc1   : > { %v5136_v13 = vld [vmem:[%s6069_s19 + $0x6e4] ss:$16 sps:$4 sm:$0xff]   ;;  %v5134_v19 = vld [vmem:[%s6069_s19 + $0x6e0] ss:$16 sps:$4 sm:$0xff]   ;;  %5033 = vset.pattern.permute.xlu0 %v5459_v40  ;;  %5034 = vset.pattern.permute.xlu1 %v5459_v40 }
  0xc2   : > { %v928_v14 = vld [vmem:[%s7406_s0 + $0x40] sm:$0xff] }
  0xc3   : > { %2857 = vmatpush2.bf16.msra.mxu0 %v5087_v42  ;;  %2970 = vmatpush2.bf16.msra.mxu1 %v5088_v43  ;;  %v932_v15 = vld [vmem:[%s7406_s0 + $0x60] sm:$0xff] }
  0xc4   : > { %2858 = vmatprep.subr.bf16.mxu0 %v5089_v44  ;;  %2971 = vmatprep.subr.bf16.mxu1 %v5091_v45  ;;  %v5139_v20 = vld [vmem:[%s6069_s19 + $0x4c4] ss:$16 sps:$4 sm:$0xff]   ;;  %v6155_v22 = vcombine.high %v928_v14, %v932_v15  ;;  %v5137_v24 = vld [vmem:[%s6069_s19 + $0x4c0] ss:$16 sps:$4 sm:$0xff]   ;;  %v6173_v30 = vcombine.low %v928_v14, %v932_v15 }
  0xc5   : > { %v5142_v21 = vld [vmem:[%s6069_s19 + $0x6c4] ss:$16 sps:$4 sm:$0xff]   ;;  %v5140_v25 = vld [vmem:[%s6069_s19 + $0x6c0] ss:$16 sps:$4 sm:$0xff]  }
  0xc6   : > { %v5145_v26 = vld [vmem:[%s6069_s19 + $0x4a4] ss:$16 sps:$4 sm:$0xff]   ;;  %v5143_v34 = vld [vmem:[%s6069_s19 + $0x4a0] ss:$16 sps:$4 sm:$0xff]  }
  0xc7   : > { %2859 = vmatpush2.bf16.msra.mxu0 %v5093_v46  ;;  %2972 = vmatpush2.bf16.msra.mxu1 %v5094_v47  ;;  %v5148_v27 = vld [vmem:[%s6069_s19 + $0x6a4] ss:$16 sps:$4 sm:$0xff]   ;;  %v5146_v35 = vld [vmem:[%s6069_s19 + $0x6a0] ss:$16 sps:$4 sm:$0xff]   ;;  %v6204_v47 = vcombine.low %v937_v32, %v941_v33 }
  0xc8   : > { %2860 = vmatprep.subr.bf16.mxu0 %v5095_v48  ;;  %2973 = vmatprep.subr.bf16.mxu1 %v5097_v49  ;;  %v936_v28 = vld [vmem:[%s7406_s0 + $0x80] sm:$0xff]  ;;  %v945_v49 = vld [vmem:[%s7406_s0 + $0xc8] sm:$0xff] }
  0xc9   : > { %v940_v29 = vld [vmem:[%s7406_s0 + $0xa0] sm:$0xff] }
  0xca   : > { %v5151_v36 = vld [vmem:[%s6069_s19 + $0x484] ss:$16 sps:$4 sm:$0xff]   ;;  %v6187_v38 = vcombine.high %v936_v28, %v940_v29  ;;  %v5149_v41 = vld [vmem:[%s6069_s19 + $0x480] ss:$16 sps:$4 sm:$0xff]   ;;  %v6202_v46 = vcombine.low %v936_v28, %v940_v29 }
  0xcb   : > { %2861 = vmatpush2.bf16.msra.mxu0 %v5099_v50  ;;  %2974 = vmatpush2.bf16.msra.mxu1 %v5100_v51  ;;  %v5154_v37 = vld [vmem:[%s6069_s19 + $0x684] ss:$16 sps:$4 sm:$0xff]   ;;  %v5152_v42 = vld [vmem:[%s6069_s19 + $0x680] ss:$16 sps:$4 sm:$0xff]   ;;  %v949_v50 = vld [vmem:[%s7406_s0 + $0xe8] sm:$0xff] }
  0xcc   : > { %2862 = vmatprep.subr.bf16.mxu0 %v5101_v52  ;;  %2975 = vmatprep.subr.bf16.mxu1 %v5103_v53  ;;  %v5157_v43 = vld [vmem:[%s6069_s19 + $0x464] ss:$16 sps:$4 sm:$0xff]   ;;  %v5155_v51 = vld [vmem:[%s6069_s19 + $0x460] ss:$16 sps:$4 sm:$0xff]  }
  0xcd   : > { %v5160_v44 = vld [vmem:[%s6069_s19 + $0x664] ss:$16 sps:$4 sm:$0xff]   ;;  %v5158_v52 = vld [vmem:[%s6069_s19 + $0x660] ss:$16 sps:$4 sm:$0xff]  }
  0xce   : > { %v944_v45 = vld [vmem:[%s7406_s0 + $0xc0] sm:$0xff] }
  0xcf   : > { %2863 = vmatpush2.bf16.msra.mxu0 %v5105_v54  ;;  %2976 = vmatpush2.bf16.msra.mxu1 %v5106_v55  ;;  %v948_v48 = vld [vmem:[%s7406_s0 + $0xe0] sm:$0xff] }
  0xd0   : > { %2864 = vmatprep.subr.bf16.mxu0 %v5107_v56  ;;  %2977 = vmatprep.subr.bf16.mxu1 %v5109_v57  ;;  %v5163_v53 = vld [vmem:[%s6069_s19 + $0x444] ss:$16 sps:$4 sm:$0xff]   ;;  %v6219_v55 = vcombine.high %v944_v45, %v948_v48  ;;  %v6221_v56 = vcombine.high %v945_v49, %v949_v50  ;;  %v5161_v57 = vld [vmem:[%s6069_s19 + $0x440] ss:$16 sps:$4 sm:$0xff]  }
  0xd1   : > { %v5166_v54 = vld [vmem:[%s6069_s19 + $0x644] ss:$16 sps:$4 sm:$0xff]   ;;  %v5176_v14 = vld [vmem:[%s6069_s19 + $0x600] ss:$16 sps:$4 sm:$0xff]  }
  0xd2   : > { %v5181_v15 = vld [vmem:[%s6069_s19 + $0x5e4] ss:$16 sps:$4 sm:$0xff]   ;;  %v5179_v18 = vld [vmem:[%s6069_s19 + $0x5e0] ss:$16 sps:$4 sm:$0xff]  }
  0xd3   : > { %2865 = vmatpush2.bf16.msra.mxu0 %v5111_v58  ;;  %2978 = vmatpush2.bf16.msra.mxu1 %v5112_v59  ;;  %v5164_v58 = vld [vmem:[%s6069_s19 + $0x640] ss:$16 sps:$4 sm:$0xff]   ;;  %v5169_v59 = vld [vmem:[%s6069_s19 + $0x424] ss:$16 sps:$4 sm:$0xff]  }
  0xd4   : > { %2866 = vmatprep.subr.bf16.mxu0 %v5113_v60  ;;  %2979 = vmatprep.subr.bf16.mxu1 %v5115_v61  ;;  %v5172_v60 = vld [vmem:[%s6069_s19 + $0x624] ss:$16 sps:$4 sm:$0xff]   ;;  %v5167_v61 = vld [vmem:[%s6069_s19 + $0x420] ss:$16 sps:$4 sm:$0xff]  }
  0xd5   : > { %v5184_v16 = vld [vmem:[%s6069_s19 + $0x7e4] ss:$16 sps:$4 sm:$0xff]   ;;  %v5185_v33 = vld [vmem:[%s6069_s19 + $0x5c0] ss:$16 sps:$4 sm:$0xff]  }
  0xd6   : > { %v5190_v28 = vld [vmem:[%s6069_s19 + $0x7c4] ss:$16 sps:$4 sm:$0xff]   ;;  %v5191_v40 = vld [vmem:[%s6069_s19 + $0x5a0] ss:$16 sps:$4 sm:$0xff]  }
  0xd7   : > { %2867 = vmatpush2.bf16.msra.mxu0 %v5117_v62  ;;  %2980 = vmatpush2.bf16.msra.mxu1 %v5118_v63  ;;  %v952_v62 = vld [vmem:[%s7406_s0 + $0x100] sm:$0xff] }
  0xd8   : > { %2868 = vmatprep.subr.bf16.mxu0 %v5119_v0  ;;  %2981 = vmatprep.subr.bf16.mxu1 %v5121_v1  ;;  %v956_v63 = vld [vmem:[%s7406_s0 + $0x120] sm:$0xff]  ;;  %v6238_v0 = vcombine.low %v944_v45, %v948_v48  ;;  %v6240_v1 = vcombine.low %v945_v49, %v949_v50  ;;  %v973_v45 = vld [vmem:[%s7406_s0 + $0x1a8] sm:$0xff] }
  0xd9   : > { %v5194_v48 = vld [vmem:[%s6069_s19 + $0x7a0] ss:$16 sps:$4 sm:$0xff]   ;;  %v5199_v49 = vld [vmem:[%s6069_s19 + $0x584] ss:$16 sps:$4 sm:$0xff]  }
  0xda   : > { %v5202_v50 = vld [vmem:[%s6069_s19 + $0x784] ss:$16 sps:$4 sm:$0xff]  }
  0xdb   : > { %2869 = vmatpush2.bf16.msra.mxu0 %v5123_v2  ;;  %2982 = vmatpush2.bf16.msra.mxu1 %v5124_v5  ;;  %v953_v2 = vld [vmem:[%s7406_s0 + $0x108] sm:$0xff] }
  0xdc   : > { %2870 = vmatprep.subr.bf16.mxu0 %v5125_v8  ;;  %2983 = vmatprep.subr.bf16.mxu1 %v5127_v9  ;;  %v957_v5 = vld [vmem:[%s7406_s0 + $0x128] sm:$0xff]  ;;  %v5170_v8 = vld [vmem:[%s6069_s19 + $0x620] ss:$16 sps:$4 sm:$0xff]   ;;  %v5175_v9 = vld [vmem:[%s6069_s19 + $0x404] ss:$16 sps:$4 sm:$0xff]  }
  0xdf   : > { %2871 = vmatpush2.bf16.msra.mxu0 %v5129_v10  ;;  %2984 = vmatpush2.bf16.msra.mxu1 %v5130_v11  ;;  %v5178_v10 = vld [vmem:[%s6069_s19 + $0x604] ss:$16 sps:$4 sm:$0xff]   ;;  %v6251_v11 = vcombine.high %v952_v62, %v956_v63 }
  0xe0   : > { %3066 = vmatprep.subr.bf16.mxu0 %v5133_v12  ;;  %3179 = vmatprep.subr.bf16.mxu1 %v5136_v13  ;;  %v6253_v12 = vcombine.high %v953_v2, %v957_v5  ;;  %v5173_v13 = vld [vmem:[%s6069_s19 + $0x400] ss:$16 sps:$4 sm:$0xff]  }
  0xe2   : > { %2873 = vmatmul.mubr.bf16.vlgmr.msra.gmra.mxu0 %v6058_v3  ;;  %2986 = vmatmul.mubr.bf16.vlgmr.msra.gmra.mxu1 %v6065_v6 }
  0xe3   : > { %3067 = vmatpush1.bf16.msra.mxu0 %v5131_v17  ;;  %3180 = vmatpush1.bf16.msra.mxu1 %v5134_v19  ;;  %v960_v17 = vld [vmem:[%s7406_s0 + $0x140] sm:$0xff] }
  0xe4   : > { %3068 = vmatprep.subr.bf16.mxu0 %v5139_v20  ;;  %3181 = vmatprep.subr.bf16.mxu1 %v5142_v21  ;;  %v964_v19 = vld [vmem:[%s7406_s0 + $0x160] sm:$0xff]  ;;  %v6270_v20 = vcombine.low %v952_v62, %v956_v63  ;;  %v6272_v21 = vcombine.low %v953_v2, %v957_v5  ;;  %v977_v63 = vld [vmem:[%s7406_s0 + $0x1c8] sm:$0xff] }
  0xe5   : > { %2882 = vmatprep.mubr.bf16.mxu0 %v6155_v22  ;;  %2995 = vmatprep.mubr.bf16.mxu1 %v6157_v23  ;;  %v6283_v29 = vcombine.high %v960_v17, %v964_v19  ;;  %v981_v2 = vld [vmem:[%s7406_s0 + $0x1e8] sm:$0xff]  ;;  %v5203_v5 = vld [vmem:[%s6069_s19 + $0x560] ss:$16 sps:$4 sm:$0xff]  }
  0xe7   : > { %3069 = vmatpush1.bf16.msra.mxu0 %v5137_v24  ;;  %3182 = vmatpush1.bf16.msra.mxu1 %v5140_v25  ;;  %v961_v24 = vld [vmem:[%s7406_s0 + $0x148] sm:$0xff] }
  0xe8   : > { %3070 = vmatprep.subr.bf16.mxu0 %v5145_v26  ;;  %3183 = vmatprep.subr.bf16.mxu1 %v5148_v27  ;;  %v965_v25 = vld [vmem:[%s7406_s0 + $0x168] sm:$0xff]  ;;  %v5182_v26 = vld [vmem:[%s6069_s19 + $0x7e0] ss:$16 sps:$4 sm:$0xff]   ;;  %v5187_v27 = vld [vmem:[%s6069_s19 + $0x5c4] ss:$16 sps:$4 sm:$0xff]  }
  0xe9   : > { %v6285_v32 = vcombine.high %v961_v24, %v965_v25 }
  0xea   : > { %2883 = vmatmul.mubr.bf16.gmra.mxu0 %v6173_v30  ;;  %2996 = vmatmul.mubr.bf16.gmra.mxu1 %v6175_v31 }
  0xeb   : > { %3071 = vmatpush1.bf16.msra.mxu0 %v5143_v34  ;;  %3184 = vmatpush1.bf16.msra.mxu1 %v5146_v35  ;;  %v5188_v34 = vld [vmem:[%s6069_s19 + $0x7c0] ss:$16 sps:$4 sm:$0xff]   ;;  %v5193_v35 = vld [vmem:[%s6069_s19 + $0x5a4] ss:$16 sps:$4 sm:$0xff]  }
  0xec   : > { %3072 = vmatprep.subr.bf16.mxu0 %v5151_v36  ;;  %3185 = vmatprep.subr.bf16.mxu1 %v5154_v37  ;;  %v5196_v36 = vld [vmem:[%s6069_s19 + $0x7a4] ss:$16 sps:$4 sm:$0xff]  }
  0xed   : > { %2892 = vmatprep.mubr.bf16.mxu0 %v6187_v38  ;;  %3005 = vmatprep.mubr.bf16.mxu1 %v6189_v39  ;;  %v968_v37 = vld [vmem:[%s7406_s0 + $0x180] sm:$0xff] }
  0xef   : > { %3073 = vmatpush1.bf16.msra.mxu0 %v5149_v41  ;;  %3186 = vmatpush1.bf16.msra.mxu1 %v5152_v42  ;;  %v972_v41 = vld [vmem:[%s7406_s0 + $0x1a0] sm:$0xff]  ;;  %v6302_v42 = vcombine.low %v960_v17, %v964_v19  ;;  %v922_v19 = vld [vmem:[%s7406_s0 + $0x10] sm:$0xff] }
  0xf0   : > { %3074 = vmatprep.subr.bf16.mxu0 %v5157_v43  ;;  %3187 = vmatprep.subr.bf16.mxu1 %v5160_v44  ;;  %v6304_v43 = vcombine.low %v961_v24, %v965_v25  ;;  %v969_v44 = vld [vmem:[%s7406_s0 + $0x188] sm:$0xff]  ;;  %v5217_v17 = vld [vmem:[%s6069_s19 + $0x524] ss:$16 sps:$4 sm:$0xff]   ;;  %v6364_v25 = vcombine.low %v977_v63, %v981_v2 }
  0xf1   : > { %v6335_v62 = vcombine.low %v969_v44, %v973_v45 }
  0xf2   : > { %2893 = vmatmul.mubr.bf16.gmra.mxu0 %v6202_v46  ;;  %3006 = vmatmul.mubr.bf16.gmra.mxu1 %v6204_v47 }
  0xf3   : > { %3075 = vmatpush1.bf16.msra.mxu0 %v5155_v51  ;;  %3188 = vmatpush1.bf16.msra.mxu1 %v5158_v52  ;;  %v6315_v51 = vcombine.high %v968_v37, %v972_v41  ;;  %v6317_v52 = vcombine.high %v969_v44, %v973_v45  ;;  %v5224_v44 = vld [vmem:[%s6069_s19 + $0x700] ss:$16 sps:$4 sm:$0xff]   ;;  %v5229_v45 = vld [vmem:[%s6069_s19 + $0xec] ss:$16 sps:$4 sm:$0xff]  }
  0xf4   : > { %3076 = vmatprep.subr.bf16.mxu0 %v5163_v53  ;;  %3189 = vmatprep.subr.bf16.mxu1 %v5166_v54  ;;  %v5197_v53 = vld [vmem:[%s6069_s19 + $0x580] ss:$16 sps:$4 sm:$0xff]  }
  0xf5   : > { %2902 = vmatprep.mubr.bf16.mxu0 %v6219_v55  ;;  %3015 = vmatprep.mubr.bf16.mxu1 %v6221_v56  ;;  %v5200_v54 = vld [vmem:[%s6069_s19 + $0x780] ss:$16 sps:$4 sm:$0xff]  }
  0xf7   : > { %3077 = vmatpush1.bf16.msra.mxu0 %v5161_v57  ;;  %3190 = vmatpush1.bf16.msra.mxu1 %v5164_v58  ;;  %v5205_v57 = vld [vmem:[%s6069_s19 + $0x564] ss:$16 sps:$4 sm:$0xff]  }
  0xf8   : > { %3078 = vmatprep.subr.bf16.mxu0 %v5169_v59  ;;  %3191 = vmatprep.subr.bf16.mxu1 %v5172_v60  ;;  %v5208_v58 = vld [vmem:[%s6069_s19 + $0x764] ss:$16 sps:$4 sm:$0xff]  }
  0xf9   : > { %v976_v59 = vld [vmem:[%s7406_s0 + $0x1c0] sm:$0xff] }
  0xfa   : > { %2903 = vmatmul.mubr.bf16.gmra.mxu0 %v6238_v0  ;;  %3016 = vmatmul.mubr.bf16.gmra.mxu1 %v6240_v1  ;;  %v980_v60 = vld [vmem:[%s7406_s0 + $0x1e0] sm:$0xff] }
  0xfb   : > { %3079 = vmatpush1.bf16.msra.mxu0 %v5167_v61  ;;  %3192 = vmatpush1.bf16.msra.mxu1 %v5170_v8  ;;  %v6333_v61 = vcombine.low %v968_v37, %v972_v41  ;;  %v5206_v8 = vld [vmem:[%s6069_s19 + $0x760] ss:$16 sps:$4 sm:$0xff]   ;;  %v6362_v24 = vcombine.low %v976_v59, %v980_v60 }
  0xfc   : > { %3080 = vmatprep.subr.bf16.mxu0 %v5175_v9  ;;  %3193 = vmatprep.subr.bf16.mxu1 %v5178_v10  ;;  %v5211_v9 = vld [vmem:[%s6069_s19 + $0x544] ss:$16 sps:$4 sm:$0xff]   ;;  %v5221_v41 = vld [vmem:[%s6069_s19 + $0x500] ss:$16 sps:$4 sm:$0xff]  }
  0xfd   : > { %2912 = vmatprep.mubr.bf16.mxu0 %v6251_v11  ;;  %3025 = vmatprep.mubr.bf16.mxu1 %v6253_v12  ;;  %v5214_v10 = vld [vmem:[%s6069_s19 + $0x744] ss:$16 sps:$4 sm:$0xff]  }
  0xff   : > { %3081 = vmatpush1.bf16.msra.mxu0 %v5173_v13  ;;  %3194 = vmatpush1.bf16.msra.mxu1 %v5176_v14  ;;  %v6347_v13 = vcombine.high %v976_v59, %v980_v60  ;;  %v6349_v14 = vcombine.high %v977_v63, %v981_v2  ;;  %v935_v59 = vld [vmem:[%s7406_s0 + $0x78] sm:$0xff] }
 0x100   : > { %3082 = vmatprep.subr.bf16.mxu0 %v5181_v15  ;;  %3195 = vmatprep.subr.bf16.mxu1 %v5184_v16  ;;  %v5209_v15 = vld [vmem:[%s6069_s19 + $0x540] ss:$16 sps:$4 sm:$0xff]   ;;  %v5230_v60 = vld [vmem:[%s6069_s19 + $0x2e8] ss:$16 sps:$4 sm:$0xff]   ;;  %v5235_v63 = vld [vmem:[%s6069_s19 + $0xcc] ss:$16 sps:$4 sm:$0xff]  }
 0x101   : > { %v5212_v16 = vld [vmem:[%s6069_s19 + $0x740] ss:$16 sps:$4 sm:$0xff]   ;;  %v5238_v2 = vld [vmem:[%s6069_s19 + $0x2cc] ss:$16 sps:$4 sm:$0xff]  }
 0x102   : > { %2913 = vmatmul.mubr.bf16.gmra.mxu0 %v6270_v20  ;;  %3026 = vmatmul.mubr.bf16.gmra.mxu1 %v6272_v21 }
 0x103   : > { %3083 = vmatpush2.bf16.msra.mxu0 %v5179_v18  ;;  %3196 = vmatpush2.bf16.msra.mxu1 %v5182_v26  ;;  %v5220_v18 = vld [vmem:[%s6069_s19 + $0x724] ss:$16 sps:$4 sm:$0xff]  }
 0x104   : > { %3084 = vmatprep.subr.bf16.mxu0 %v5187_v27  ;;  %3197 = vmatprep.subr.bf16.mxu1 %v5190_v28  ;;  %v926_v26 = vld [vmem:[%s7406_s0 + $0x30] sm:$0xff]  ;;  %v923_v27 = vld [vmem:[%s7406_s0 + $0x18] sm:$0xff] }
 0x105   : > { %2922 = vmatprep.mubr.bf16.mxu0 %v6283_v29  ;;  %3035 = vmatprep.mubr.bf16.mxu1 %v6285_v32  ;;  %v927_v28 = vld [vmem:[%s7406_s0 + $0x38] sm:$0xff]  ;;  %v6379_v37 = vcombine.high %v922_v19, %v926_v26 }
 0x107   : > { %3085 = vmatpush2.bf16.msra.mxu0 %v5185_v33  ;;  %3198 = vmatpush2.bf16.msra.mxu1 %v5188_v34  ;;  %v5215_v33 = vld [vmem:[%s6069_s19 + $0x520] ss:$16 sps:$4 sm:$0xff]  }
 0x108   : > { %3086 = vmatprep.subr.bf16.mxu0 %v5193_v35  ;;  %3199 = vmatprep.subr.bf16.mxu1 %v5196_v36  ;;  %v5218_v34 = vld [vmem:[%s6069_s19 + $0x720] ss:$16 sps:$4 sm:$0xff]   ;;  %v5223_v35 = vld [vmem:[%s6069_s19 + $0x504] ss:$16 sps:$4 sm:$0xff]  }
 0x109   : > { %v5226_v36 = vld [vmem:[%s6069_s19 + $0x704] ss:$16 sps:$4 sm:$0xff]  }
 0x10a   : > { %2923 = vmatmul.mubr.bf16.gmra.mxu0 %v6302_v42  ;;  %3036 = vmatmul.mubr.bf16.gmra.mxu1 %v6304_v43 }
 0x10b   : > { %3087 = vmatpush2.bf16.msra.mxu0 %v5191_v40  ;;  %3200 = vmatpush2.bf16.msra.mxu1 %v5194_v48  ;;  %v6381_v40 = vcombine.high %v923_v27, %v927_v28  ;;  %v5232_v48 = vld [vmem:[%s6069_s19 + $0x2ec] ss:$16 sps:$4 sm:$0xff]  }
 0x10c   : > { %3088 = vmatprep.subr.bf16.mxu0 %v5199_v49  ;;  %3201 = vmatprep.subr.bf16.mxu1 %v5202_v50  ;;  %v5227_v49 = vld [vmem:[%s6069_s19 + $0xe8] ss:$16 sps:$4 sm:$0xff]   ;;  %v930_v50 = vld [vmem:[%s7406_s0 + $0x50] sm:$0xff] }
 0x10d   : > { %2932 = vmatprep.mubr.bf16.mxu0 %v6315_v51  ;;  %3045 = vmatprep.mubr.bf16.mxu1 %v6317_v52 }
 0x10f   : > { %3089 = vmatpush2.bf16.msra.mxu0 %v5197_v53  ;;  %3202 = vmatpush2.bf16.msra.mxu1 %v5200_v54  ;;  %v934_v53 = vld [vmem:[%s7406_s0 + $0x70] sm:$0xff]  ;;  %v6398_v54 = vcombine.low %v922_v19, %v926_v26 }
 0x110   : > { %3090 = vmatprep.subr.bf16.mxu0 %v5205_v57  ;;  %3203 = vmatprep.subr.bf16.mxu1 %v5208_v58  ;;  %v6400_v57 = vcombine.low %v923_v27, %v927_v28  ;;  %v931_v58 = vld [vmem:[%s7406_s0 + $0x58] sm:$0xff]  ;;  %v942_v19 = vld [vmem:[%s7406_s0 + $0xb0] sm:$0xff]  ;;  %v6430_v26 = vcombine.low %v930_v50, %v934_v53 }
 0x111   : > { %v6432_v27 = vcombine.low %v931_v58, %v935_v59  ;;  %v939_v28 = vld [vmem:[%s7406_s0 + $0x98] sm:$0xff] }
 0x112   : > { %2933 = vmatmul.mubr.bf16.gmra.mxu0 %v6333_v61  ;;  %3046 = vmatmul.mubr.bf16.gmra.mxu1 %v6335_v62 }
 0x113   : > { %3091 = vmatpush2.bf16.msra.mxu0 %v5203_v5  ;;  %3204 = vmatpush2.bf16.msra.mxu1 %v5206_v8  ;;  %v6411_v5 = vcombine.high %v930_v50, %v934_v53  ;;  %v6413_v8 = vcombine.high %v931_v58, %v935_v59  ;;  %v5256_v50 = vld [vmem:[%s6069_s19 + $0x26c] ss:$16 sps:$4 sm:$0xff]   ;;  %v946_v53 = vld [vmem:[%s7406_s0 + $0xd0] sm:$0xff]  ;;  %v5251_v58 = vld [vmem:[%s6069_s19 + $0x68] ss:$16 sps:$4 sm:$0xff]  }
 0x114   : > { %3092 = vmatprep.subr.bf16.mxu0 %v5211_v9  ;;  %3205 = vmatprep.subr.bf16.mxu1 %v5214_v10  ;;  %v5233_v9 = vld [vmem:[%s6069_s19 + $0xc8] ss:$16 sps:$4 sm:$0xff]   ;;  %v950_v59 = vld [vmem:[%s7406_s0 + $0xf0] sm:$0xff] }
 0x115   : > { %2942 = vmatprep.mubr.bf16.mxu0 %v6347_v13  ;;  %3055 = vmatprep.mubr.bf16.mxu1 %v6349_v14  ;;  %v5236_v10 = vld [vmem:[%s6069_s19 + $0x2c8] ss:$16 sps:$4 sm:$0xff]  }
 0x117   : > { %3093 = vmatpush2.bf16.msra.mxu0 %v5209_v15  ;;  %3206 = vmatpush2.bf16.msra.mxu1 %v5212_v16  ;;  %v5241_v15 = vld [vmem:[%s6069_s19 + $0xac] ss:$16 sps:$4 sm:$0xff]  }
 0x118   : > { %3094 = vmatprep.subr.bf16.mxu0 %v5217_v17  ;;  %3207 = vmatprep.subr.bf16.mxu1 %v5220_v18  ;;  %v5244_v16 = vld [vmem:[%s6069_s19 + $0x2ac] ss:$16 sps:$4 sm:$0xff]   ;;  %v938_v17 = vld [vmem:[%s7406_s0 + $0x90] sm:$0xff]  ;;  %v5239_v18 = vld [vmem:[%s6069_s19 + $0xa8] ss:$16 sps:$4 sm:$0xff]  }
 0x11a   : > { %2943 = vmatmul.mubr.bf16.gmra.mxu0 %v6362_v24  ;;  %3056 = vmatmul.mubr.bf16.gmra.mxu1 %v6364_v25 }
 0x11b   : > { %3095 = vmatpush2.bf16.msra.mxu0 %v5215_v33  ;;  %3208 = vmatpush2.bf16.msra.mxu1 %v5218_v34  ;;  %v943_v33 = vld [vmem:[%s7406_s0 + $0xb8] sm:$0xff] }
 0x11c   : > { %3096 = vmatprep.subr.bf16.mxu0 %v5223_v35  ;;  %3209 = vmatprep.subr.bf16.mxu1 %v5226_v36  ;;  %v5242_v34 = vld [vmem:[%s6069_s19 + $0x2a8] ss:$16 sps:$4 sm:$0xff]   ;;  %v5247_v35 = vld [vmem:[%s6069_s19 + $0x8c] ss:$16 sps:$4 sm:$0xff]  }
 0x11d   : > { %3098 = vmatprep.mubr.bf16.mxu0 %v6379_v37  ;;  %3211 = vmatprep.mubr.bf16.mxu1 %v6381_v40  ;;  %v5250_v36 = vld [vmem:[%s6069_s19 + $0x28c] ss:$16 sps:$4 sm:$0xff]  }
 0x11f   : > { %3097 = vmatpush2.bf16.msra.mxu0 %v5221_v41  ;;  %3210 = vmatpush2.bf16.msra.mxu1 %v5224_v44  ;;  %v6443_v41 = vcombine.high %v938_v17, %v942_v19  ;;  %v6445_v44 = vcombine.high %v939_v28, %v943_v33 }
 0x120   : > { %3292 = vmatprep.subr.bf16.mxu0 %v5229_v45  ;;  %3405 = vmatprep.subr.bf16.mxu1 %v5232_v48  ;;  %v5245_v45 = vld [vmem:[%s6069_s19 + $0x88] ss:$16 sps:$4 sm:$0xff]  }
 0x121   : > { %v5248_v48 = vld [vmem:[%s6069_s19 + $0x288] ss:$16 sps:$4 sm:$0xff]  }
 0x122   : > { %3099 = vmatmul.mubr.bf16.vlgmr.msra.gmra.mxu0 %v6398_v54  ;;  %3212 = vmatmul.mubr.bf16.vlgmr.msra.gmra.mxu1 %v6400_v57 }
 0x123   : > { %3293 = vmatpush1.bf16.msra.mxu0 %v5227_v49  ;;  %3406 = vmatpush1.bf16.msra.mxu1 %v5230_v60  ;;  %v5253_v49 = vld [vmem:[%s6069_s19 + $0x6c] ss:$16 sps:$4 sm:$0xff]   ;;  %v6462_v60 = vcombine.low %v938_v17, %v942_v19  ;;  %v6475_v17 = vcombine.high %v946_v53, %v950_v59  ;;  %v5257_v19 = vld [vmem:[%s6069_s19 + $0x48] ss:$16 sps:$4 sm:$0xff]  }
 0x124   : > { %3294 = vmatprep.subr.bf16.mxu0 %v5235_v63  ;;  %3407 = vmatprep.subr.bf16.mxu1 %v5238_v2  ;;  %v6464_v63 = vcombine.low %v939_v28, %v943_v33  ;;  %v947_v2 = vld [vmem:[%s7406_s0 + $0xd8] sm:$0xff] }
 0x125   : > { %3108 = vmatprep.mubr.bf16.mxu0 %v6411_v5  ;;  %3221 = vmatprep.mubr.bf16.mxu1 %v6413_v8  ;;  %7442 = vst [vmem:[#allocation5_spill] sm:$0xff] %v6475_v17  ;;  %v5260_v28 = vld [vmem:[%s6069_s19 + $0x248] ss:$16 sps:$4 sm:$0xff]   ;;  %v5265_v33 = vld [vmem:[%s6069_s19 + $0x2c] ss:$16 sps:$4 sm:$0xff]  }
 0x127   : > { %3295 = vmatpush1.bf16.msra.mxu0 %v5233_v9  ;;  %3408 = vmatpush1.bf16.msra.mxu1 %v5236_v10  ;;  %v951_v9 = vld [vmem:[%s7406_s0 + $0xf8] sm:$0xff] }
 0x128   : > { %3296 = vmatprep.subr.bf16.mxu0 %v5241_v15  ;;  %3409 = vmatprep.subr.bf16.mxu1 %v5244_v16  ;;  %v5254_v10 = vld [vmem:[%s6069_s19 + $0x268] ss:$16 sps:$4 sm:$0xff]   ;;  %v5259_v15 = vld [vmem:[%s6069_s19 + $0x4c] ss:$16 sps:$4 sm:$0xff]  }
 0x129   : > { %v5262_v16 = vld [vmem:[%s6069_s19 + $0x24c] ss:$16 sps:$4 sm:$0xff]  }
 0x12a   : > { %3109 = vmatmul.mubr.bf16.gmra.mxu0 %v6430_v26  ;;  %3222 = vmatmul.mubr.bf16.gmra.mxu1 %v6432_v27 }
 0x12b   : > { %3297 = vmatpush1.bf16.msra.mxu0 %v5239_v18  ;;  %3410 = vmatpush1.bf16.msra.mxu1 %v5242_v34  ;;  %v6477_v18 = vcombine.high %v947_v2, %v951_v9  ;;  %v5268_v34 = vld [vmem:[%s6069_s19 + $0x22c] ss:$16 sps:$4 sm:$0xff]  }
 0x12c   : > { %3298 = vmatprep.subr.bf16.mxu0 %v5247_v35  ;;  %3411 = vmatprep.subr.bf16.mxu1 %v5250_v36  ;;  %v954_v35 = vld [vmem:[%s7406_s0 + $0x110] sm:$0xff]  ;;  %v5263_v36 = vld [vmem:[%s6069_s19 + $0x28] ss:$16 sps:$4 sm:$0xff]  }
 0x12d   : > { %3118 = vmatprep.mubr.bf16.mxu0 %v6443_v41  ;;  %3231 = vmatprep.mubr.bf16.mxu1 %v6445_v44  ;;  %7443 = vst [vmem:[#allocation6_spill] sm:$0xff] %v6477_v18 }
 0x12f   : > { %3299 = vmatpush1.bf16.msra.mxu0 %v5245_v45  ;;  %3412 = vmatpush1.bf16.msra.mxu1 %v5248_v48  ;;  %v958_v45 = vld [vmem:[%s7406_s0 + $0x130] sm:$0xff]  ;;  %v6494_v48 = vcombine.low %v946_v53, %v950_v59  ;;  %v5274_v53 = vld [vmem:[%s6069_s19 + $0x20c] ss:$16 sps:$4 sm:$0xff]   ;;  %v5269_v59 = vld [vmem:[%s6069_s19 + $0x8] ss:$16 sps:$4 sm:$0xff]  }
 0x130   : > { %3300 = vmatprep.subr.bf16.mxu0 %v5253_v49  ;;  %3413 = vmatprep.subr.bf16.mxu1 %v5256_v50  ;;  %v6496_v49 = vcombine.low %v947_v2, %v951_v9  ;;  %v955_v50 = vld [vmem:[%s7406_s0 + $0x118] sm:$0xff]  ;;  %v6508_v2 = vcombine.high %v954_v35, %v958_v45 }
 0x131   : > { %7444 = vst [vmem:[#allocation7_spill] sm:$0xff] %v6494_v48 }
 0x132   : > { %3119 = vmatmul.mubr.bf16.gmra.mxu0 %v6462_v60  ;;  %3232 = vmatmul.mubr.bf16.gmra.mxu1 %v6464_v63  ;;  %7445 = vst [vmem:[#allocation8_spill] sm:$0xff] %v6496_v49  ;;  %7446 = vst [vmem:[#allocation9_spill] sm:$0xff] %v6508_v2 }
 0x133   : > { %3301 = vmatpush1.bf16.msra.mxu0 %v5251_v58  ;;  %3414 = vmatpush1.bf16.msra.mxu1 %v5254_v10  ;;  %v959_v58 = vld [vmem:[%s7406_s0 + $0x138] sm:$0xff] }
 0x134   : > { %3302 = vmatprep.subr.bf16.mxu0 %v5259_v15  ;;  %3415 = vmatprep.subr.bf16.mxu1 %v5262_v16  ;;  %v5266_v10 = vld [vmem:[%s6069_s19 + $0x228] ss:$16 sps:$4 sm:$0xff]   ;;  %v5271_v15 = vld [vmem:[%s6069_s19 + $0xc] ss:$16 sps:$4 sm:$0xff]   ;;  %v6510_v9 = vcombine.high %v955_v50, %v959_v58 }
 0x135   : > { %3128 = vmatprep.mubr.bf16.mxu0 %v6475_v17  ;;  %3241 = vmatprep.mubr.bf16.mxu1 %v6477_v18  ;;  %v5272_v16 = vld [vmem:[%s6069_s19 + $0x208] ss:$16 sps:$4 sm:$0xff]   ;;  %v5277_v18 = vld [vmem:[%s6069_s19 + $0x1ec] ss:$16 sps:$4 sm:$0xff]  }
 0x136   : > { %7447 = vst [vmem:[#allocation10_spill] sm:$0xff] %v6510_v9 }
 0x137   : > { %3303 = vmatpush1.bf16.msra.mxu0 %v5257_v19  ;;  %3416 = vmatpush1.bf16.msra.mxu1 %v5260_v28  ;;  %v3939_v19 = vld [vmem:[%s7408_s2] sm:$0xff]  ;;  %v5280_v28 = vld [vmem:[%s6069_s19 + $0x3ec] ss:$16 sps:$4 sm:$0xff]  }
 0x138   : > { %3304 = vmatprep.subr.bf16.mxu0 %v5265_v33  ;;  %3417 = vmatprep.subr.bf16.mxu1 %v5268_v34  ;;  %v962_v33 = vld [vmem:[%s7406_s0 + $0x150] sm:$0xff]  ;;  %v5275_v34 = vld [vmem:[%s6069_s19 + $0x1e8] ss:$16 sps:$4 sm:$0xff]  }
 0x139   : > { %3957 = vperm.xlu0 %5033, %v3939_v19   ;;  %v3942_v19 = vld [vmem:[%s7408_s2 + $0x18] sm:$0xff] }
 0x13a   : > { %3129 = vmatmul.mubr.bf16.gmra.mxu0 %v6494_v48  ;;  %3242 = vmatmul.mubr.bf16.gmra.mxu1 %v6496_v49  ;;  %v3941_v49 = vld [vmem:[%s7408_s2 + $0x10] sm:$0xff] }
 0x13b   : > { %3305 = vmatpush1.bf16.msra.mxu0 %v5263_v36  ;;  %3418 = vmatpush1.bf16.msra.mxu1 %v5266_v10  ;;  %v966_v36 = vld [vmem:[%s7406_s0 + $0x170] sm:$0xff]  ;;  %v963_v10 = vld [vmem:[%s7406_s0 + $0x158] sm:$0xff] }
 0x13c   : > { %3306 = vmatprep.subr.bf16.mxu0 %v5271_v15  ;;  %3419 = vmatprep.subr.bf16.mxu1 %v5274_v53  ;;  %v6532_v15 = vcombine.low %v954_v35, %v958_v45  ;;  %v6534_v53 = vcombine.low %v955_v50, %v959_v58  ;;  %v5283_v35 = vld [vmem:[%s6069_s19 + $0x1cc] ss:$16 sps:$4 sm:$0xff]   ;;  %v5281_v50 = vld [vmem:[%s6069_s19 + $0x1c8] ss:$16 sps:$4 sm:$0xff]   ;;  %v6546_v58 = vcombine.high %v962_v33, %v966_v36 }
 0x13d   : > { %3138 = vmatprep.mubr.bf16.mxu0 %v6508_v2  ;;  %3251 = vmatprep.mubr.bf16.mxu1 %v6510_v9  ;;  %v967_v2 = vld [vmem:[%s7406_s0 + $0x178] sm:$0xff] }
 0x13e   : > { %7448 = vst [vmem:[#allocation11_spill] sm:$0xff] %v6532_v15  ;;  %7449 = vst [vmem:[#allocation12_spill] sm:$0xff] %v6534_v53  ;;  %v5278_v9 = vld [vmem:[%s6069_s19 + $0x3e8] ss:$16 sps:$4 sm:$0xff]   ;;  %v5286_v45 = vld [vmem:[%s6069_s19 + $0x3cc] ss:$16 sps:$4 sm:$0xff]   ;;  %v6548_v48 = vcombine.high %v963_v10, %v967_v2  ;;  %3967 = vperm.xlu1 %5034, %v3941_v49  }
 0x13f   : > { %3307 = vmatpush1.bf16.msra.mxu0 %v5269_v59  ;;  %3420 = vmatpush1.bf16.msra.mxu1 %v5272_v16  ;;  %7450 = vst [vmem:[#allocation13_spill] sm:$0xff] %v6546_v58  ;;  %v5284_v59 = vld [vmem:[%s6069_s19 + $0x3c8] ss:$16 sps:$4 sm:$0xff]   ;;  %v5289_v16 = vld [vmem:[%s6069_s19 + $0x1ac] ss:$16 sps:$4 sm:$0xff]  }
 0x140   : > { %3308 = vmatprep.subr.bf16.mxu0 %v5277_v18  ;;  %3421 = vmatprep.subr.bf16.mxu1 %v5280_v28  ;;  %7451 = vst [vmem:[#allocation14_spill] sm:$0xff] %v6548_v48  ;;  %v3940_v18 = vld [vmem:[%s7408_s2 + $0x8] sm:$0xff] }
 0x141   : > { %v5292_v49 = vld [vmem:[%s6069_s19 + $0x3ac] ss:$16 sps:$4 sm:$0xff]   ;;  %v5287_v28 = vld [vmem:[%s6069_s19 + $0x1a8] ss:$16 sps:$4 sm:$0xff]   ;;  %3962 = vperm.xlu0 %5033, %v3940_v18  }
 0x142   : > { %3139 = vmatmul.mubr.bf16.gmra.mxu0 %v6532_v15  ;;  %3252 = vmatmul.mubr.bf16.gmra.mxu1 %v6534_v53  ;;  %v5290_v53 = vld [vmem:[%s6069_s19 + $0x3a8] ss:$16 sps:$4 sm:$0xff]   ;;  %v5301_v18 = vld [vmem:[%s6069_s19 + $0x16c] ss:$16 sps:$4 sm:$0xff]  }
 0x143   : > { %3309 = vmatpush2.bf16.msra.mxu0 %v5275_v34  ;;  %3422 = vmatpush2.bf16.msra.mxu1 %v5278_v9  ;;  %v970_v9 = vld [vmem:[%s7406_s0 + $0x190] sm:$0xff] }
 0x144   : > { %3310 = vmatprep.subr.bf16.mxu0 %v5283_v35  ;;  %3423 = vmatprep.subr.bf16.mxu1 %v5286_v45  ;;  %v974_v34 = vld [vmem:[%s7406_s0 + $0x1b0] sm:$0xff]  ;;  %v6570_v35 = vcombine.low %v962_v33, %v966_v36  ;;  %v6572_v45 = vcombine.low %v963_v10, %v967_v2  ;;  %v5295_v33 = vld [vmem:[%s6069_s19 + $0x18c] ss:$16 sps:$4 sm:$0xff]   ;;  %v5293_v36 = vld [vmem:[%s6069_s19 + $0x188] ss:$16 sps:$4 sm:$0xff]  }
 0x145   : > { %3148 = vmatprep.mubr.bf16.mxu0 %v6546_v58  ;;  %3261 = vmatprep.mubr.bf16.mxu1 %v6548_v48  ;;  %v971_v48 = vld [vmem:[%s7406_s0 + $0x198] sm:$0xff]  ;;  %v6585_v15 = vcombine.high %v970_v9, %v974_v34 }
 0x146   : > { %7452 = vst [vmem:[#allocation15_spill] sm:$0xff] %v6572_v45  ;;  %v975_v58 = vld [vmem:[%s7406_s0 + $0x1b8] sm:$0xff]  ;;  %3972 = vperm.xlu1 %5034, %v3942_v19   ;;  %v978_v19 = vld [vmem:[%s7406_s0 + $0x1d0] sm:$0xff] }
 0x147   : > { %3311 = vmatpush2.bf16.msra.mxu0 %v5281_v50  ;;  %3424 = vmatpush2.bf16.msra.mxu1 %v5284_v59  ;;  %v5298_v2 = vld [vmem:[%s6069_s19 + $0x38c] ss:$16 sps:$4 sm:$0xff]   ;;  %v5296_v10 = vld [vmem:[%s6069_s19 + $0x388] ss:$16 sps:$4 sm:$0xff]   ;;  %7453 = vst [vmem:[#allocation16_spill] sm:$0xff] %v6585_v15  ;;  %v6587_v17 = vcombine.high %v971_v48, %v975_v58  ;;  %v3943_v50 = vld [vmem:[%s7408_s2 + $0x20] sm:$0xff] }
 0x148   : > { %3312 = vmatprep.subr.bf16.mxu0 %v5289_v16  ;;  %3425 = vmatprep.subr.bf16.mxu1 %v5292_v49  ;;  %v3944_v59 = vld [vmem:[%s7408_s2 + $0x28] sm:$0xff]  ;;  %v982_v49 = vld [vmem:[%s7406_s0 + $0x1f0] sm:$0xff] }
 0x149   : > { %7454 = vst [vmem:[#allocation17_spill] sm:$0xff] %v6587_v17  ;;  %v5304_v16 = vld [vmem:[%s6069_s19 + $0x36c] ss:$16 sps:$4 sm:$0xff]   ;;  %3977 = vperm.xlu0 %5033, %v3943_v50   ;;  %v5308_v50 = vld [vmem:[%s6069_s19 + $0x348] ss:$16 sps:$4 sm:$0xff]  }
 0x14a   : > { %3149 = vmatmul.mubr.bf16.gmra.mxu0 %v6570_v35  ;;  %3262 = vmatmul.mubr.bf16.gmra.mxu1 %v6572_v45  ;;  %v5307_v45 = vld [vmem:[%s6069_s19 + $0x14c] ss:$16 sps:$4 sm:$0xff]  }
 0x14b   : > { %3313 = vmatpush2.bf16.msra.mxu0 %v5287_v28  ;;  %3426 = vmatpush2.bf16.msra.mxu1 %v5290_v53  ;;  %v5299_v53 = vld [vmem:[%s6069_s19 + $0x168] ss:$16 sps:$4 sm:$0xff]   ;;  %v6608_v28 = vcombine.low %v970_v9, %v974_v34  ;;  %v6622_v9 = vcombine.high %v978_v19, %v982_v49 }
 0x14c   : > { %3314 = vmatprep.subr.bf16.mxu0 %v5295_v33  ;;  %3427 = vmatprep.subr.bf16.mxu1 %v5298_v2  ;;  %v6610_v33 = vcombine.low %v971_v48, %v975_v58  ;;  %v979_v2 = vld [vmem:[%s7406_s0 + $0x1d8] sm:$0xff] }
 0x14d   : > { %3158 = vmatprep.mubr.bf16.mxu0 %v6585_v15  ;;  %3271 = vmatprep.mubr.bf16.mxu1 %v6587_v17  ;;  %v983_v15 = vld [vmem:[%s7406_s0 + $0x1f8] sm:$0xff]  ;;  %7456 = vst [vmem:[#allocation19_spill] sm:$0xff] %v6622_v9 }
 0x14e   : > { %7455 = vst [vmem:[#allocation18_spill] sm:$0xff] %v6610_v33  ;;  %3982 = vperm.xlu1 %5034, %v3944_v59   ;;  %v5302_v17 = vld [vmem:[%s6069_s19 + $0x368] ss:$16 sps:$4 sm:$0xff]   ;;  %v5310_v48 = vld [vmem:[%s6069_s19 + $0x34c] ss:$16 sps:$4 sm:$0xff]   ;;  %v6624_v34 = vcombine.high %v979_v2, %v983_v15 }
 0x14f   : > { %3315 = vmatpush2.bf16.msra.mxu0 %v5293_v36  ;;  %3428 = vmatpush2.bf16.msra.mxu1 %v5296_v10  ;;  %v5305_v58 = vld [vmem:[%s6069_s19 + $0x148] ss:$16 sps:$4 sm:$0xff]   ;;  %v3945_v36 = vld [vmem:[%s7408_s2 + $0x30] sm:$0xff]  ;;  %v5316_v59 = vld [vmem:[%s6069_s19 + $0x32c] ss:$16 sps:$4 sm:$0xff]  }
 0x150   : > { %3316 = vmatprep.subr.bf16.mxu0 %v5301_v18  ;;  %3429 = vmatprep.subr.bf16.mxu1 %v5304_v16  ;;  %v3946_v10 = vld [vmem:[%s7408_s2 + $0x38] sm:$0xff]  ;;  %v6639_v16 = vcombine.low %v978_v19, %v982_v49  ;;  %v3947_v49 = vld [vmem:[%s7408_s2 + $0x40] sm:$0xff] }
 0x151   : > { %v5313_v18 = vld [vmem:[%s6069_s19 + $0x12c] ss:$16 sps:$4 sm:$0xff]   ;;  %3987 = vperm.xlu0 %5033, %v3945_v36   ;;  %v5320_v19 = vld [vmem:[%s6069_s19 + $0x308] ss:$16 sps:$4 sm:$0xff]  }
 0x152   : > { %3159 = vmatmul.mubr.bf16.gmra.mxu0 %v6608_v28  ;;  %3272 = vmatmul.mubr.bf16.gmra.mxu1 %v6610_v33  ;;  %v5317_v33 = vld [vmem:[%s6069_s19 + $0x108] ss:$16 sps:$4 sm:$0xff]  }
 0x153   : > { %3317 = vmatpush2.bf16.msra.mxu0 %v5299_v53  ;;  %3430 = vmatpush2.bf16.msra.mxu1 %v5302_v17  ;;  %v6641_v17 = vcombine.low %v979_v2, %v983_v15  ;;  %v5314_v53 = vld [vmem:[%s6069_s19 + $0x328] ss:$16 sps:$4 sm:$0xff]   ;;  %v5325_v15 = vld [vmem:[%s6069_s19 + $0x4ec] ss:$16 sps:$4 sm:$0xff]  }
 0x154   : > { %3318 = vmatprep.subr.bf16.mxu0 %v5307_v45  ;;  %3431 = vmatprep.subr.bf16.mxu1 %v5310_v48  ;;  %v5311_v45 = vld [vmem:[%s6069_s19 + $0x128] ss:$16 sps:$4 sm:$0xff]   ;;  %v5319_v48 = vld [vmem:[%s6069_s19 + $0x10c] ss:$16 sps:$4 sm:$0xff]  }
 0x155   : > { %3168 = vmatprep.mubr.bf16.mxu0 %v6622_v9  ;;  %3281 = vmatprep.mubr.bf16.mxu1 %v6624_v34  ;;  %v5322_v9 = vld [vmem:[%s6069_s19 + $0x30c] ss:$16 sps:$4 sm:$0xff]   ;;  %v5326_v36 = vld [vmem:[%s6069_s19 + $0x6e8] ss:$16 sps:$4 sm:$0xff]  }
 0x156   : > { %3992 = vperm.xlu1 %5034, %v3946_v10   ;;  %v3948_v2 = vld [vmem:[%s7408_s2 + $0x48] sm:$0xff]  ;;  %3997 = vperm.xlu0 %5033, %v3947_v49  }
 0x157   : > { %3319 = vmatpush2.bf16.msra.mxu0 %v5305_v58  ;;  %3432 = vmatpush2.bf16.msra.mxu1 %v5308_v50  ;;  %v5328_v58 = vld [vmem:[%s6069_s19 + $0x6ec] ss:$16 sps:$4 sm:$0xff]   ;;  %v5323_v50 = vld [vmem:[%s6069_s19 + $0x4e8] ss:$16 sps:$4 sm:$0xff]  }
 0x158   : > { %3320 = vmatprep.subr.bf16.mxu0 %v5313_v18  ;;  %3433 = vmatprep.subr.bf16.mxu1 %v5316_v59  ;;  %v5331_v10 = vld [vmem:[%s6069_s19 + $0x4cc] ss:$16 sps:$4 sm:$0xff]   ;;  %v5335_v59 = vld [vmem:[%s6069_s19 + $0x4a8] ss:$16 sps:$4 sm:$0xff]  }
 0x159   : > { %v5334_v18 = vld [vmem:[%s6069_s19 + $0x6cc] ss:$16 sps:$4 sm:$0xff]   ;;  %v5347_v49 = vld [vmem:[%s6069_s19 + $0x468] ss:$16 sps:$4 sm:$0xff]  }
 0x15a   : > { %3169 = vmatmul.mubr.bf16.gmra.mxu0 %v6639_v16  ;;  %3282 = vmatmul.mubr.bf16.gmra.mxu1 %v6641_v17 }
 0x15b   : > { %3321 = vmatpush2.bf16.msra.mxu0 %v5311_v45  ;;  %3434 = vmatpush2.bf16.msra.mxu1 %v5314_v53  ;;  %v5338_v45 = vld [vmem:[%s6069_s19 + $0x6a8] ss:$16 sps:$4 sm:$0xff]   ;;  %v5343_v53 = vld [vmem:[%s6069_s19 + $0x48c] ss:$16 sps:$4 sm:$0xff]  }
 0x15c   : > { %3322 = vmatprep.subr.bf16.mxu0 %v5319_v48  ;;  %3435 = vmatprep.subr.bf16.mxu1 %v5322_v9  ;;  %v3950_v9 = vld [vmem:[%s7408_s2 + $0x58] sm:$0xff] }
 0x15d   : > { %3324 = vmatprep.mubr.bf16.mxu0 %v6060_v4  ;;  %3437 = vmatprep.mubr.bf16.mxu1 %v6067_v7  ;;  %v5329_v4 = vld [vmem:[%s6069_s19 + $0x4c8] ss:$16 sps:$4 sm:$0xff]   ;;  %v5346_v48 = vld [vmem:[%s6069_s19 + $0x68c] ss:$16 sps:$4 sm:$0xff]  }
 0x15e   : > { %4002 = vperm.xlu1 %5034, %v3948_v2   ;;  %v5332_v7 = vld [vmem:[%s6069_s19 + $0x6c8] ss:$16 sps:$4 sm:$0xff]  }
 0x15f   : > { %3323 = vmatpush2.bf16.msra.mxu0 %v5317_v33  ;;  %3436 = vmatpush2.bf16.msra.mxu1 %v5320_v19  ;;  %v3949_v33 = vld [vmem:[%s7408_s2 + $0x50] sm:$0xff]  ;;  %v3951_v19 = vld [vmem:[%s7408_s2 + $0x60] sm:$0xff]  ;;  %v5350_v2 = vld [vmem:[%s6069_s19 + $0x668] ss:$16 sps:$4 sm:$0xff]  }
 0x160   : > { %3518 = vmatprep.subr.bf16.mxu0 %v5325_v15  ;;  %3631 = vmatprep.subr.bf16.mxu1 %v5328_v58  ;;  %v3952_v15 = vld [vmem:[%s7408_s2 + $0x68] sm:$0xff] }
 0x161   : > { %4007 = vperm.xlu0 %5033, %v3949_v33   ;;  %v5355_v58 = vld [vmem:[%s6069_s19 + $0x44c] ss:$16 sps:$4 sm:$0xff]  }
 0x162   : > { %3325 = vmatmul.mubr.bf16.vlgmr.msra.gmra.mxu0 %v6058_v3  ;;  %3438 = vmatmul.mubr.bf16.vlgmr.msra.gmra.mxu1 %v6065_v6  ;;  %v5337_v3 = vld [vmem:[%s6069_s19 + $0x4ac] ss:$16 sps:$4 sm:$0xff]  }
 0x163   : > { %3519 = vmatpush1.bf16.msra.mxu0 %v5323_v50  ;;  %3632 = vmatpush1.bf16.msra.mxu1 %v5326_v36  ;;  %v5340_v6 = vld [vmem:[%s6069_s19 + $0x6ac] ss:$16 sps:$4 sm:$0xff]   ;;  %v3953_v36 = vld [vmem:[%s7408_s2 + $0x70] sm:$0xff] }
 0x164   : > { %3520 = vmatprep.subr.bf16.mxu0 %v5331_v10  ;;  %3633 = vmatprep.subr.bf16.mxu1 %v5334_v18  ;;  %v5358_v50 = vld [vmem:[%s6069_s19 + $0x64c] ss:$16 sps:$4 sm:$0xff]   ;;  %v5359_v18 = vld [vmem:[%s6069_s19 + $0x428] ss:$16 sps:$4 sm:$0xff]  }
 0x165   : > { %3334 = vmatprep.mubr.bf16.mxu0 %v6155_v22  ;;  %3447 = vmatprep.mubr.bf16.mxu1 %v6157_v23  ;;  %v5341_v22 = vld [vmem:[%s6069_s19 + $0x488] ss:$16 sps:$4 sm:$0xff]   ;;  %v5370_v33 = vld [vmem:[%s6069_s19 + $0x60c] ss:$16 sps:$4 sm:$0xff]  }
 0x166   : > { %4012 = vperm.xlu1 %5034, %v3950_v9   ;;  %v5344_v23 = vld [vmem:[%s6069_s19 + $0x688] ss:$16 sps:$4 sm:$0xff]   ;;  %4017 = vperm.xlu0 %5033, %v3951_v19   ;;  %v5373_v9 = vld [vmem:[%s6069_s19 + $0x5ec] ss:$16 sps:$4 sm:$0xff]  }
 0x167   : > { %3521 = vmatpush1.bf16.msra.mxu0 %v5329_v4  ;;  %3634 = vmatpush1.bf16.msra.mxu1 %v5332_v7  ;;  %v3954_v10 = vld [vmem:[%s7408_s2 + $0x78] sm:$0xff] }
 0x168   : > { %3522 = vmatprep.subr.bf16.mxu0 %v5337_v3  ;;  %3635 = vmatprep.subr.bf16.mxu1 %v5340_v6  ;;  %v5362_v4 = vld [vmem:[%s6069_s19 + $0x628] ss:$16 sps:$4 sm:$0xff]   ;;  %v5367_v7 = vld [vmem:[%s6069_s19 + $0x40c] ss:$16 sps:$4 sm:$0xff]  }
 0x169   : > { %v5376_v3 = vld [vmem:[%s6069_s19 + $0x7ec] ss:$16 sps:$4 sm:$0xff]  }
 0x16a   : > { %3335 = vmatmul.mubr.bf16.gmra.mxu0 %v6173_v30  ;;  %3448 = vmatmul.mubr.bf16.gmra.mxu1 %v6175_v31  ;;  %v5349_v30 = vld [vmem:[%s6069_s19 + $0x46c] ss:$16 sps:$4 sm:$0xff]  }
 0x16b   : > { %3523 = vmatpush1.bf16.msra.mxu0 %v5335_v59  ;;  %3636 = vmatpush1.bf16.msra.mxu1 %v5338_v45  ;;  %v5352_v31 = vld [vmem:[%s6069_s19 + $0x66c] ss:$16 sps:$4 sm:$0xff]  }
 0x16c   : > { %3524 = vmatprep.subr.bf16.mxu0 %v5343_v53  ;;  %3637 = vmatprep.subr.bf16.mxu1 %v5346_v48  ;;  %v5379_v6 = vld [vmem:[%s6069_s19 + $0x5cc] ss:$16 sps:$4 sm:$0xff]  }
 0x16d   : > { %3344 = vmatprep.mubr.bf16.mxu0 %v6187_v38  ;;  %3457 = vmatprep.mubr.bf16.mxu1 %v6189_v39  ;;  %v5353_v38 = vld [vmem:[%s6069_s19 + $0x448] ss:$16 sps:$4 sm:$0xff]   ;;  %v5382_v59 = vld [vmem:[%s6069_s19 + $0x7cc] ss:$16 sps:$4 sm:$0xff]  }
 0x16e   : > { %4022 = vperm.xlu1 %5034, %v3952_v15   ;;  %v5356_v39 = vld [vmem:[%s6069_s19 + $0x648] ss:$16 sps:$4 sm:$0xff]   ;;  %4027 = vperm.xlu0 %5033, %v3953_v36   ;;  %v5385_v45 = vld [vmem:[%s6069_s19 + $0x5ac] ss:$16 sps:$4 sm:$0xff]  }
 0x16f   : > { %3525 = vmatpush1.bf16.msra.mxu0 %v5341_v22  ;;  %3638 = vmatpush1.bf16.msra.mxu1 %v5344_v23  ;;  %v5388_v53 = vld [vmem:[%s6069_s19 + $0x7ac] ss:$16 sps:$4 sm:$0xff]  }
 0x170   : > { %3526 = vmatprep.subr.bf16.mxu0 %v5349_v30  ;;  %3639 = vmatprep.subr.bf16.mxu1 %v5352_v31  ;;  %v5391_v48 = vld [vmem:[%s6069_s19 + $0x58c] ss:$16 sps:$4 sm:$0xff]  }
 0x171   : > { %v5394_v22 = vld [vmem:[%s6069_s19 + $0x78c] ss:$16 sps:$4 sm:$0xff]  }
 0x172   : > { %3345 = vmatmul.mubr.bf16.gmra.mxu0 %v6202_v46  ;;  %3458 = vmatmul.mubr.bf16.gmra.mxu1 %v6204_v47  ;;  %v5361_v46 = vld [vmem:[%s6069_s19 + $0x42c] ss:$16 sps:$4 sm:$0xff]  }
 0x173   : > { %3527 = vmatpush1.bf16.msra.mxu0 %v5347_v49  ;;  %3640 = vmatpush1.bf16.msra.mxu1 %v5350_v2  ;;  %v5364_v47 = vld [vmem:[%s6069_s19 + $0x62c] ss:$16 sps:$4 sm:$0xff]  }
 0x174   : > { %3528 = vmatprep.subr.bf16.mxu0 %v5355_v58  ;;  %3641 = vmatprep.subr.bf16.mxu1 %v5358_v50  ;;  %v5397_v23 = vld [vmem:[%s6069_s19 + $0x56c] ss:$16 sps:$4 sm:$0xff]   ;;  %v5413_v50 = vld [vmem:[%s6069_s19 + $0x508] ss:$16 sps:$4 sm:$0xff]  }
 0x175   : > { %3354 = vmatprep.mubr.bf16.mxu0 %v6219_v55  ;;  %3467 = vmatprep.mubr.bf16.mxu1 %v6221_v56  ;;  %v5365_v55 = vld [vmem:[%s6069_s19 + $0x408] ss:$16 sps:$4 sm:$0xff]   ;;  %v5400_v19 = vld [vmem:[%s6069_s19 + $0x76c] ss:$16 sps:$4 sm:$0xff]  }
 0x176   : > { %4032 = vperm.xlu1 %5034, %v3954_v10   ;;  %v5368_v56 = vld [vmem:[%s6069_s19 + $0x608] ss:$16 sps:$4 sm:$0xff]   ;;  %v5403_v15 = vld [vmem:[%s6069_s19 + $0x54c] ss:$16 sps:$4 sm:$0xff]  }
 0x177   : > { %3529 = vmatpush1.bf16.msra.mxu0 %v5353_v38  ;;  %3642 = vmatpush1.bf16.msra.mxu1 %v5356_v39  ;;  %v5406_v30 = vld [vmem:[%s6069_s19 + $0x74c] ss:$16 sps:$4 sm:$0xff]   ;;  %v5416_v38 = vld [vmem:[%s6069_s19 + $0x708] ss:$16 sps:$4 sm:$0xff]  }
 0x178   : > { %3530 = vmatprep.subr.bf16.mxu0 %v5361_v46  ;;  %3643 = vmatprep.subr.bf16.mxu1 %v5364_v47  ;;  %v5409_v31 = vld [vmem:[%s6069_s19 + $0x52c] ss:$16 sps:$4 sm:$0xff]  }
 0x179   : > { %v5412_v49 = vld [vmem:[%s6069_s19 + $0x72c] ss:$16 sps:$4 sm:$0xff]  }
 0x17a   : > { %3355 = vmatmul.mubr.bf16.gmra.mxu0 %v6238_v0  ;;  %3468 = vmatmul.mubr.bf16.gmra.mxu1 %v6240_v1  ;;  %v5371_v0 = vld [vmem:[%s6069_s19 + $0x5e8] ss:$16 sps:$4 sm:$0xff]   ;;  %v5415_v2 = vld [vmem:[%s6069_s19 + $0x50c] ss:$16 sps:$4 sm:$0xff]  }
 0x17b   : > { %3531 = vmatpush1.bf16.msra.mxu0 %v5359_v18  ;;  %3644 = vmatpush1.bf16.msra.mxu1 %v5362_v4  ;;  %v5374_v1 = vld [vmem:[%s6069_s19 + $0x7e8] ss:$16 sps:$4 sm:$0xff]   ;;  %v5418_v58 = vld [vmem:[%s6069_s19 + $0x70c] ss:$16 sps:$4 sm:$0xff]  }
 0x17c   : > { %3532 = vmatprep.subr.bf16.mxu0 %v5367_v7  ;;  %3645 = vmatprep.subr.bf16.mxu1 %v5370_v33 }
 0x17d   : > { %3364 = vmatprep.mubr.bf16.mxu0 %v6251_v11  ;;  %3477 = vmatprep.mubr.bf16.mxu1 %v6253_v12  ;;  %v5377_v11 = vld [vmem:[%s6069_s19 + $0x5c8] ss:$16 sps:$4 sm:$0xff]  }
 0x17e   : > { %v5380_v12 = vld [vmem:[%s6069_s19 + $0x7c8] ss:$16 sps:$4 sm:$0xff]  }
 0x17f   : > { %3533 = vmatpush1.bf16.msra.mxu0 %v5365_v55  ;;  %3646 = vmatpush1.bf16.msra.mxu1 %v5368_v56 }
 0x180   : > { %3534 = vmatprep.subr.bf16.mxu0 %v5373_v9  ;;  %3647 = vmatprep.subr.bf16.mxu1 %v5376_v3 }
 0x182   : > { %3365 = vmatmul.mubr.bf16.gmra.mxu0 %v6270_v20  ;;  %3478 = vmatmul.mubr.bf16.gmra.mxu1 %v6272_v21  ;;  %v5383_v20 = vld [vmem:[%s6069_s19 + $0x5a8] ss:$16 sps:$4 sm:$0xff]  }
 0x183   : > { %3535 = vmatpush2.bf16.msra.mxu0 %v5371_v0  ;;  %3648 = vmatpush2.bf16.msra.mxu1 %v5374_v1  ;;  %v5386_v21 = vld [vmem:[%s6069_s19 + $0x7a8] ss:$16 sps:$4 sm:$0xff]   ;;  %v7461_v1 = vld [vmem:[#allocation9_spill] sm:$0xff] }
 0x184   : > { %3536 = vmatprep.subr.bf16.mxu0 %v5379_v6  ;;  %3649 = vmatprep.subr.bf16.mxu1 %v5382_v59  ;;  %v7460_v0 = vld [vmem:[#allocation8_spill] sm:$0xff]  ;;  %v7462_v6 = vld [vmem:[#allocation10_spill] sm:$0xff] }
 0x185   : > { %3374 = vmatprep.mubr.bf16.mxu0 %v6283_v29  ;;  %3487 = vmatprep.mubr.bf16.mxu1 %v6285_v32  ;;  %v5389_v29 = vld [vmem:[%s6069_s19 + $0x588] ss:$16 sps:$4 sm:$0xff]  }
 0x186   : > { %v5392_v32 = vld [vmem:[%s6069_s19 + $0x788] ss:$16 sps:$4 sm:$0xff]  }
 0x187   : > { %3537 = vmatpush2.bf16.msra.mxu0 %v5377_v11  ;;  %3650 = vmatpush2.bf16.msra.mxu1 %v5380_v12 }
 0x188   : > { %3538 = vmatprep.subr.bf16.mxu0 %v5385_v45  ;;  %3651 = vmatprep.subr.bf16.mxu1 %v5388_v53 }
 0x18a   : > { %3375 = vmatmul.mubr.bf16.gmra.mxu0 %v6302_v42  ;;  %3488 = vmatmul.mubr.bf16.gmra.mxu1 %v6304_v43  ;;  %v5395_v42 = vld [vmem:[%s6069_s19 + $0x568] ss:$16 sps:$4 sm:$0xff]  }
 0x18b   : > { %3539 = vmatpush2.bf16.msra.mxu0 %v5383_v20  ;;  %3652 = vmatpush2.bf16.msra.mxu1 %v5386_v21  ;;  %v5398_v43 = vld [vmem:[%s6069_s19 + $0x768] ss:$16 sps:$4 sm:$0xff]  }
 0x18c   : > { %3540 = vmatprep.subr.bf16.mxu0 %v5391_v48  ;;  %3653 = vmatprep.subr.bf16.mxu1 %v5394_v22  ;;  %v7463_v22 = vld [vmem:[#allocation11_spill] sm:$0xff] }
 0x18d   : > { %3384 = vmatprep.mubr.bf16.mxu0 %v6315_v51  ;;  %3497 = vmatprep.mubr.bf16.mxu1 %v6317_v52  ;;  %v5401_v51 = vld [vmem:[%s6069_s19 + $0x548] ss:$16 sps:$4 sm:$0xff]  }
 0x18e   : > { %v5404_v52 = vld [vmem:[%s6069_s19 + $0x748] ss:$16 sps:$4 sm:$0xff]  }
 0x18f   : > { %3541 = vmatpush2.bf16.msra.mxu0 %v5389_v29  ;;  %3654 = vmatpush2.bf16.msra.mxu1 %v5392_v32  ;;  %v7464_v29 = vld [vmem:[#allocation12_spill] sm:$0xff]  ;;  %v7465_v32 = vld [vmem:[#allocation13_spill] sm:$0xff] }
 0x190   : > { %3542 = vmatprep.subr.bf16.mxu0 %v5397_v23  ;;  %3655 = vmatprep.subr.bf16.mxu1 %v5400_v19  ;;  %v7466_v23 = vld [vmem:[#allocation14_spill] sm:$0xff] }
 0x192   : > { %3385 = vmatmul.mubr.bf16.gmra.mxu0 %v6333_v61  ;;  %3498 = vmatmul.mubr.bf16.gmra.mxu1 %v6335_v62  ;;  %v5407_v61 = vld [vmem:[%s6069_s19 + $0x528] ss:$16 sps:$4 sm:$0xff]  }
 0x193   : > { %3543 = vmatpush2.bf16.msra.mxu0 %v5395_v42  ;;  %3656 = vmatpush2.bf16.msra.mxu1 %v5398_v43  ;;  %v5410_v62 = vld [vmem:[%s6069_s19 + $0x728] ss:$16 sps:$4 sm:$0xff]   ;;  %s4600_s19 = sshll.u32 %s729_s30, 8  ;;  %s4991_s30 = sshll.u32 (%p5515_p6), %s5449_s14, 4 }
 0x194   : > { %3544 = vmatprep.subr.bf16.mxu0 %v5403_v15  ;;  %3657 = vmatprep.subr.bf16.mxu1 %v5406_v30  ;;  %s6959_s12 = scalar_lea.vmem [#allocation4], %s4600_s19  ;;  %s7328_s23 = scalar_lea.vmem (%p5515_p6), %s7409_s3, %s4991_s30 }
 0x195   : > { %3394 = vmatprep.mubr.bf16.mxu0 %v6347_v13  ;;  %3507 = vmatprep.mubr.bf16.mxu1 %v6349_v14 }
 0x197   : > { %3545 = vmatpush2.bf16.msra.mxu0 %v5401_v51  ;;  %3658 = vmatpush2.bf16.msra.mxu1 %v5404_v52 }
 0x198   : > { %3546 = vmatprep.subr.bf16.mxu0 %v5409_v31  ;;  %3659 = vmatprep.subr.bf16.mxu1 %v5412_v49  ;;  %v7467_v49 = vld [vmem:[#allocation15_spill] sm:$0xff] }
 0x19a   : > { %3395 = vmatmul.mubr.bf16.gmra.mxu0 %v6362_v24  ;;  %3508 = vmatmul.mubr.bf16.gmra.mxu1 %v6364_v25 }
 0x19b   : > { %3547 = vmatpush2.bf16.msra.mxu0 %v5407_v61  ;;  %3660 = vmatpush2.bf16.msra.mxu1 %v5410_v62  ;;  %v7468_v61 = vld [vmem:[#allocation16_spill] sm:$0xff]  ;;  %v7469_v62 = vld [vmem:[#allocation17_spill] sm:$0xff] }
 0x19c   : > { %3548 = vmatprep.subr.bf16.mxu0 %v5415_v2  ;;  %3661 = vmatprep.subr.bf16.mxu1 %v5418_v58 }
 0x19d   : > { %3550 = vmatprep.mubr.bf16.mxu0 %v6379_v37  ;;  %3663 = vmatprep.mubr.bf16.mxu1 %v6381_v40 }
 0x19f   : > { %3549 = vmatpush2.bf16.msra.mxu0 %v5413_v50  ;;  %3662 = vmatpush2.bf16.msra.mxu1 %v5416_v38 }
 0x1a2   : > { %v6773_v13 = vpop.f32.mrf.mxu0  ;;  %v6775_v14 = vpop.f32.mrf.mxu1  ;;  %3551 = vmatmul.mubr.bf16.vlgmr.msra.gmra.mxu0 %v6398_v54  ;;  %3664 = vmatmul.mubr.bf16.vlgmr.msra.gmra.mxu1 %v6400_v57 }
 0x1a3   : > { %3560 = vmatprep.mubr.bf16.mxu0 %v6411_v5  ;;  %3673 = vmatprep.mubr.bf16.mxu1 %v6413_v8 }
 0x1a4   : > { %v6781_v24 = vpop.f32.mrf.mxu0  ;;  %v6783_v25 = vpop.f32.mrf.mxu1 }
 0x1a6   : > { %v6785_v37 = vpop.f32.mrf.mxu0  ;;  %v6787_v40 = vpop.f32.mrf.mxu1 }
 0x1a8   : > { %v6789_v39 = vpop.f32.mrf.mxu0  ;;  %v6791_v36 = vpop.f32.mrf.mxu1 }
 0x1aa   : > { %v6793_v10 = vpop.f32.mrf.mxu0  ;;  %v6795_v54 = vpop.f32.mrf.mxu1  ;;  %3561 = vmatmul.mubr.bf16.gmra.mxu0 %v6430_v26  ;;  %3674 = vmatmul.mubr.bf16.gmra.mxu1 %v6432_v27  ;;  %v7457_v27 = vld [vmem:[#allocation5_spill] sm:$0xff] }
 0x1ab   : > { %3570 = vmatprep.mubr.bf16.mxu0 %v6443_v41  ;;  %3683 = vmatprep.mubr.bf16.mxu1 %v6445_v44  ;;  %v7458_v41 = vld [vmem:[#allocation6_spill] sm:$0xff] }
 0x1ac   : > { %v6801_v57 = vpop.f32.mrf.mxu0  ;;  %v6803_v5 = vpop.f32.mrf.mxu1 }
 0x1ae   : > { %v6805_v8 = vpop.f32.mrf.mxu0  ;;  %v6807_v46 = vpop.f32.mrf.mxu1 }
 0x1b0   : > { %v6809_v47 = vpop.f32.mrf.mxu0  ;;  %v6811_v18 = vpop.f32.mrf.mxu1 }
 0x1b2   : > { %v6813_v4 = vpop.f32.mrf.mxu0  ;;  %v6815_v26 = vpop.f32.mrf.mxu1  ;;  %3571 = vmatmul.mubr.bf16.gmra.mxu0 %v6462_v60  ;;  %3684 = vmatmul.mubr.bf16.gmra.mxu1 %v6464_v63  ;;  %v7459_v63 = vld [vmem:[#allocation7_spill] sm:$0xff] }
 0x1b3   : > { %3580 = vmatprep.mubr.bf16.mxu0 %v7457_v27  ;;  %3693 = vmatprep.mubr.bf16.mxu1 %v7458_v41 }
 0x1b4   : > { %v6821_v44 = vpop.f32.mrf.mxu0  ;;  %v6823_v7 = vpop.f32.mrf.mxu1 }
 0x1b6   : > { %v6825_v33 = vpop.f32.mrf.mxu0  ;;  %v6827_v55 = vpop.f32.mrf.mxu1 }
 0x1b8   : > { %v6829_v56 = vpop.f32.mrf.mxu0  ;;  %v6831_v9 = vpop.f32.mrf.mxu1 }
 0x1ba   : > { %v6833_v3 = vpop.f32.mrf.mxu0  ;;  %v6835_v60 = vpop.f32.mrf.mxu1  ;;  %3581 = vmatmul.mubr.bf16.gmra.mxu0 %v7459_v63  ;;  %3694 = vmatmul.mubr.bf16.gmra.mxu1 %v7460_v0  ;;  %v7472_v0 = vld [vmem:[#allocation18_spill] sm:$0xff] }
 0x1bb   : > { %3590 = vmatprep.mubr.bf16.mxu0 %v7461_v1  ;;  %3703 = vmatprep.mubr.bf16.mxu1 %v7462_v6  ;;  %v7473_v1 = vld [vmem:[#allocation19_spill] sm:$0xff] }
 0x1bc   : > { %v6841_v59 = vpop.f32.mrf.mxu0  ;;  %v6843_v11 = vpop.f32.mrf.mxu1 }
 0x1be   : > { %v6845_v12 = vpop.f32.mrf.mxu0  ;;  %v6847_v45 = vpop.f32.mrf.mxu1 }
 0x1c0   : > { %v6849_v53 = vpop.f32.mrf.mxu0  ;;  %v6851_v20 = vpop.f32.mrf.mxu1 }
 0x1c2   : > { %v6853_v21 = vpop.f32.mrf.mxu0  ;;  %v6855_v48 = vpop.f32.mrf.mxu1  ;;  %3591 = vmatmul.mubr.bf16.gmra.mxu0 %v7463_v22  ;;  %3704 = vmatmul.mubr.bf16.gmra.mxu1 %v7464_v29 }
 0x1c3   : > { %3600 = vmatprep.mubr.bf16.mxu0 %v7465_v32  ;;  %3713 = vmatprep.mubr.bf16.mxu1 %v7466_v23 }
 0x1c4   : > { %v6861_v19 = vpop.f32.mrf.mxu0  ;;  %v6863_v42 = vpop.f32.mrf.mxu1 }
 0x1c6   : > { %v6865_v43 = vpop.f32.mrf.mxu0  ;;  %v6867_v15 = vpop.f32.mrf.mxu1 }
 0x1c8   : > { %v6869_v30 = vpop.f32.mrf.mxu0  ;;  %v6871_v51 = vpop.f32.mrf.mxu1 }
 0x1ca   : > { %v6873_v52 = vpop.f32.mrf.mxu0  ;;  %v6875_v31 = vpop.f32.mrf.mxu1  ;;  %3601 = vmatmul.mubr.bf16.gmra.mxu0 %v6570_v35  ;;  %3714 = vmatmul.mubr.bf16.gmra.mxu1 %v7467_v49 }
 0x1cb   : > { %3610 = vmatprep.mubr.bf16.mxu0 %v7468_v61  ;;  %3723 = vmatprep.mubr.bf16.mxu1 %v7469_v62 }
 0x1cc   : > { %v6881_v2 = vpop.f32.mrf.mxu0  ;;  %v6883_v58 = vpop.f32.mrf.mxu1 }
 0x1ce   : > { %v6885_v50 = vpop.f32.mrf.mxu0  ;;  %v6887_v38 = vpop.f32.mrf.mxu1 }
 0x1d0   : > { %v6889_v27 = vpop.f32.mrf.mxu0  ;;  %v6891_v41 = vpop.f32.mrf.mxu1 }
 0x1d2   : > { %v6893_v63 = vpop.f32.mrf.mxu0  ;;  %v6895_v35 = vpop.f32.mrf.mxu1  ;;  %3611 = vmatmul.mubr.bf16.gmra.mxu0 %v6608_v28  ;;  %3724 = vmatmul.mubr.bf16.gmra.mxu1 %v7472_v0 }
 0x1d3   : > { %7470 = vst [vmem:[#allocation5_spill] sm:$0xff] %v6893_v63  ;;  %7471 = vst [vmem:[#allocation6_spill] sm:$0xff] %v6895_v35  ;;  %3620 = vmatprep.mubr.bf16.mxu0 %v7473_v1  ;;  %3733 = vmatprep.mubr.bf16.mxu1 %v6624_v34 }
 0x1d4   : > { %v6901_v6 = vpop.f32.mrf.mxu0  ;;  %v6903_v22 = vpop.f32.mrf.mxu1 }
 0x1d5   : > { %7474 = vst [vmem:[#allocation7_spill] sm:$0xff] %v6901_v6  ;;  %7475 = vst [vmem:[#allocation8_spill] sm:$0xff] %v6903_v22 }
 0x1d6   : > { %v6905_v29 = vpop.f32.mrf.mxu0  ;;  %v6907_v32 = vpop.f32.mrf.mxu1 }
 0x1d7   : > { %7476 = vst [vmem:[#allocation9_spill] sm:$0xff] %v6905_v29  ;;  %7477 = vst [vmem:[#allocation10_spill] sm:$0xff] %v6907_v32 }
 0x1d8   : > { %v6909_v23 = vpop.f32.mrf.mxu0  ;;  %v6911_v49 = vpop.f32.mrf.mxu1 }
 0x1d9   : > { %7478 = vst [vmem:[#allocation11_spill] sm:$0xff] %v6909_v23  ;;  %7479 = vst [vmem:[#allocation12_spill] sm:$0xff] %v6911_v49 }
 0x1da   : > { %v6913_v61 = vpop.f32.mrf.mxu0  ;;  %v6915_v28 = vpop.f32.mrf.mxu1  ;;  %3621 = vmatmul.mubr.bf16.gmra.mxu0 %v6639_v16  ;;  %3734 = vmatmul.mubr.bf16.gmra.mxu1 %v6641_v17  ;;  %v2990_v17 = vadd.f32 %v6783_v25, %v6781_v24 }
 0x1db   : > { %7480 = vst [vmem:[#allocation13_spill] sm:$0xff] %v6913_v61  ;;  %7481 = vst [vmem:[#allocation14_spill] sm:$0xff] %v6915_v28  ;;  %v2988_v61 = vadd.f32 %v6775_v14, %v6773_v13  ;;  %v6933_v28 = vpop.permute.xlu0 %3957  ;;  %v2994_v13 = vadd.f32 %v6791_v36, %v6789_v39 }
 0x1dc   : > { %v6919_v34 = vpop.f32.mrf.mxu0  ;;  %v6921_v62 = vpop.f32.mrf.mxu1 }
 0x1dd   : > { %7482 = vst [vmem:[#allocation15_spill] sm:$0xff] %v6919_v34  ;;  %7483 = vst [vmem:[#allocation16_spill] sm:$0xff] %v6921_v62 }
 0x1de   : > { %v6923_v0 = vpop.f32.mrf.mxu0  ;;  %v6925_v1 = vpop.f32.mrf.mxu1 }
 0x1df   : > { %7484 = vst [vmem:[#allocation17_spill] sm:$0xff] %v6923_v0  ;;  %7485 = vst [vmem:[#allocation18_spill] sm:$0xff] %v6925_v1  ;;  %v2992_v1 = vadd.f32 %v6787_v40, %v6785_v37  ;;  %v6942_v63 = vpop.permute.xlu0 %3962 }
 0x1e0   : > { %v6927_v32 = vpop.f32.mrf.mxu0  ;;  %v6929_v23 = vpop.f32.mrf.mxu1 }
 0x1e1   : > { %7486 = vst [vmem:[#allocation19_spill] sm:$0xff] %v6927_v32  ;;  %7487 = vst [vmem:[#allocation20_spill] sm:$0xff] %v6929_v23 }
 0x1e2   : > { %v3100_v16 = vpop.f32.mrf.mxu0  ;;  %v3213_v49 = vpop.f32.mrf.mxu1 }
 0x1e3   : > { %v3101_v34 = vadd.f32 %v3100_v16, %v2988_v61  ;;  %v2998_v61 = vadd.f32 %v6795_v54, %v6793_v10  ;;  %v3002_v16 = vadd.f32 %v6807_v46, %v6805_v8 }
 0x1e4   : > { %v3102_v62 = vpop.f32.mrf.mxu0  ;;  %v3215_v0 = vpop.f32.mrf.mxu1 }
 0x1e5   : > { %v3214_v32 = vadd.f32 %v3213_v49, %v3101_v34  ;;  %v3103_v29 = vadd.f32 %v3102_v62, %v2990_v17  ;;  %v6949_v34 = vpop.permute.xlu1 %3967 }
 0x1e6   : > { %v3104_v23 = vpop.f32.mrf.mxu0  ;;  %v3217_v22 = vpop.f32.mrf.mxu1 }
 0x1e7   : > { %v3216_v14 = vadd.f32 %v3215_v0, %v3103_v29  ;;  %v4035_v6 = vadd.f32 %v6933_v28, %v3214_v32  ;;  %v3105_v35 = vadd.f32 %v3104_v23, %v2992_v1  ;;  %v3000_v1 = vadd.f32 %v6803_v5, %v6801_v57 }
 0x1e8   : > { %v3106_v24 = vpop.f32.mrf.mxu0  ;;  %v3219_v25 = vpop.f32.mrf.mxu1 }
 0x1e9   : > { %v4036_v37 = vadd.f32 %v6933_v28, %v3216_v14  ;;  %v3218_v40 = vadd.f32 %v3217_v22, %v3105_v35  ;;  %v3107_v49 = vadd.f32 %v3106_v24, %v2994_v13  ;;  %v4099_v39 = vmax.f32 %v4035_v6, 0.0 }
 0x1ea   : > { %v3110_v36 = vpop.f32.mrf.mxu0  ;;  %v3223_v29 = vpop.f32.mrf.mxu1  ;;  %v3004_v24 = vadd.f32 %v6811_v18, %v6809_v47 }
 0x1eb   : > { %v4100_v32 = vmax.f32 %v4036_v37, 0.0  ;;  %v3220_v23 = vadd.f32 %v3219_v25, %v3107_v49  ;;  %v4039_v62 = vadd.f32 %v6942_v63, %v3218_v40  ;;  %v3111_v0 = vadd.f32 %v3110_v36, %v2998_v61  ;;  %v6962_v61 = vpop.permute.xlu1 %3972 }
 0x1ec   : > { %v3112_v10 = vpop.f32.mrf.mxu0  ;;  %v3225_v54 = vpop.f32.mrf.mxu1  ;;  %v3008_v49 = vadd.f32 %v6815_v26, %v6813_v4 }
 0x1ed   : > { %v4959_v35 = vpack.c.bf16 %v4100_v32, %v4099_v39  ;;  %v4040_v22 = vadd.f32 %v6942_v63, %v3220_v23  ;;  %v3224_v17 = vadd.f32 %v3223_v29, %v3111_v0  ;;  %v3113_v6 = vadd.f32 %v3112_v10, %v3000_v1  ;;  %v6972_v10 = vpop.permute.xlu0 %3977 }
 0x1ee   : > { %v3114_v13 = vpop.f32.mrf.mxu0  ;;  %v3227_v14 = vpop.f32.mrf.mxu1  ;;  %v4103_v57 = vmax.f32 %v4039_v62, 0.0  ;;  %v3010_v23 = vadd.f32 %v6823_v7, %v6821_v44 }
 0x1ef   : > { %4355 = vst [vmem:[%s6959_s12] sm:$0xff] %v4959_v35  ;;  %v4104_v5 = vmax.f32 %v4040_v22, 0.0  ;;  %v3115_v25 = vadd.f32 %v3114_v13, %v3002_v16  ;;  %v3226_v8 = vadd.f32 %v3225_v54, %v3113_v6  ;;  %v4043_v46 = vadd.f32 %v6949_v34, %v3224_v17 }
 0x1f0   : > { %v3116_v37 = vpop.f32.mrf.mxu0  ;;  %v3229_v40 = vpop.f32.mrf.mxu1  ;;  %v3012_v35 = vadd.f32 %v6827_v55, %v6825_v33  ;;  %v3018_v55 = vadd.f32 %v6835_v60, %v6833_v3 }
 0x1f1   : > { %v4961_v39 = vpack.c.bf16 %v4104_v5, %v4103_v57  ;;  %v3228_v47 = vadd.f32 %v3227_v14, %v3115_v25  ;;  %v3117_v18 = vadd.f32 %v3116_v37, %v3004_v24  ;;  %v4044_v36 = vadd.f32 %v6949_v34, %v3226_v8 }
 0x1f2   : > { %v3120_v29 = vpop.f32.mrf.mxu0  ;;  %v3233_v32 = vpop.f32.mrf.mxu1  ;;  %v4107_v54 = vmax.f32 %v4043_v46, 0.0  ;;  %v3014_v8 = vadd.f32 %v6831_v9, %v6829_v56 }
 0x1f3   : > { %4357 = vst [vmem:[%s6959_s12 + $0x10] sm:$0xff] %v4961_v39  ;;  %v3230_v62 = vadd.f32 %v3229_v40, %v3117_v18  ;;  %v4047_v0 = vadd.f32 %v6962_v61, %v3228_v47  ;;  %v3121_v1 = vadd.f32 %v3120_v29, %v3008_v49  ;;  %v4108_v16 = vmax.f32 %v4044_v36, 0.0  ;;  %v6984_v39 = vpop.permute.xlu1 %3982 }
 0x1f4   : > { %v3122_v4 = vpop.f32.mrf.mxu0  ;;  %v3235_v26 = vpop.f32.mrf.mxu1  ;;  %v3020_v29 = vadd.f32 %v6843_v11, %v6841_v59 }
 0x1f5   : > { %v4048_v22 = vadd.f32 %v6962_v61, %v3230_v62  ;;  %v3234_v17 = vadd.f32 %v3233_v32, %v3121_v1  ;;  %v3123_v6 = vadd.f32 %v3122_v4, %v3010_v23  ;;  %v4963_v44 = vpack.c.bf16 %v4108_v16, %v4107_v54  ;;  %v6989_v23 = vpop.permute.xlu0 %3987 }
 0x1f6   : > { %v4111_v7 = vmax.f32 %v4047_v0, 0.0  ;;  %v3124_v13 = vpop.f32.mrf.mxu0  ;;  %v3237_v14 = vpop.f32.mrf.mxu1  ;;  %v3022_v1 = vadd.f32 %v6847_v45, %v6845_v12 }
 0x1f7   : > { %v4112_v24 = vmax.f32 %v4048_v22, 0.0  ;;  %v3236_v57 = vadd.f32 %v3235_v26, %v3123_v6  ;;  %v4051_v5 = vadd.f32 %v6972_v10, %v3234_v17  ;;  %v3125_v25 = vadd.f32 %v3124_v13, %v3012_v35  ;;  %4359 = vst [vmem:[%s6959_s12 + $0x20] sm:$0xff] %v4963_v44  ;;  %v6999_v44 = vpop.permute.xlu1 %3992 }
 0x1f8   : > { %v3126_v46 = vpop.f32.mrf.mxu0  ;;  %v3239_v33 = vpop.f32.mrf.mxu1  ;;  %v3024_v35 = vadd.f32 %v6851_v20, %v6849_v53 }
 0x1f9   : > { %v4965_v37 = vpack.c.bf16 %v4112_v24, %v4111_v7  ;;  %v4052_v40 = vadd.f32 %v6972_v10, %v3236_v57  ;;  %v3238_v49 = vadd.f32 %v3237_v14, %v3125_v25  ;;  %v3127_v47 = vadd.f32 %v3126_v46, %v3014_v8 }
 0x1fa   : > { %v3130_v18 = vpop.f32.mrf.mxu0  ;;  %v3243_v36 = vpop.f32.mrf.mxu1  ;;  %v4115_v56 = vmax.f32 %v4051_v5, 0.0  ;;  %v3028_v14 = vadd.f32 %v6855_v48, %v6853_v21  ;;  %v3032_v48 = vadd.f32 %v6867_v15, %v6865_v43 }
 0x1fb   : > { %4361 = vst [vmem:[%s6959_s12 + $0x30] sm:$0xff] %v4965_v37  ;;  %v4116_v9 = vmax.f32 %v4052_v40, 0.0  ;;  %v3131_v32 = vadd.f32 %v3130_v18, %v3018_v55  ;;  %v3240_v3 = vadd.f32 %v3239_v33, %v3127_v47  ;;  %v4055_v60 = vadd.f32 %v6984_v39, %v3238_v49 }
 0x1fc   : > { %v3132_v62 = vpop.f32.mrf.mxu0  ;;  %v3245_v0 = vpop.f32.mrf.mxu1  ;;  %v3030_v40 = vadd.f32 %v6863_v42, %v6861_v19 }
 0x1fd   : > { %v4967_v54 = vpack.c.bf16 %v4116_v9, %v4115_v56  ;;  %v3244_v16 = vadd.f32 %v3243_v36, %v3131_v32  ;;  %v3133_v4 = vadd.f32 %v3132_v62, %v3020_v29  ;;  %v4056_v59 = vadd.f32 %v6984_v39, %v3240_v3  ;;  %v7011_v29 = vpop.permute.xlu0 %3997  ;;  %v7016_v62 = vpop.permute.xlu1 %4002 }
 0x1fe   : > { %v3134_v11 = vpop.f32.mrf.mxu0  ;;  %v3247_v26 = vpop.f32.mrf.mxu1  ;;  %v4119_v7 = vmax.f32 %v4055_v60, 0.0  ;;  %7488 = vst [vmem:[#allocation21_spill] sm:$0xff] %v7011_v29  ;;  %v3034_v3 = vadd.f32 %v6871_v51, %v6869_v30  ;;  %7489 = vst [vmem:[#allocation22_spill] sm:$0xff] %v7016_v62 }
 0x1ff   : > { %4363 = vst [vmem:[%s6959_s12 + $0x40] sm:$0xff] %v4967_v54  ;;  %v3246_v22 = vadd.f32 %v3245_v0, %v3133_v4  ;;  %v4059_v17 = vadd.f32 %v6989_v23, %v3244_v16  ;;  %v3135_v6 = vadd.f32 %v3134_v11, %v3022_v1  ;;  %v4120_v13 = vmax.f32 %v4056_v59, 0.0 }
 0x200   : > { %v3136_v12 = vpop.f32.mrf.mxu0  ;;  %v3249_v45 = vpop.f32.mrf.mxu1  ;;  %v3038_v54 = vadd.f32 %v6875_v31, %v6873_v52 }
 0x201   : > { %v4060_v24 = vadd.f32 %v6989_v23, %v3246_v22  ;;  %v3248_v57 = vadd.f32 %v3247_v26, %v3135_v6  ;;  %v3137_v5 = vadd.f32 %v3136_v12, %v3024_v35  ;;  %v4969_v53 = vpack.c.bf16 %v4120_v13, %v4119_v7  ;;  %v7026_v6 = vpop.permute.xlu0 %4007 }
 0x202   : > { %v4123_v20 = vmax.f32 %v4059_v17, 0.0  ;;  %v3140_v25 = vpop.f32.mrf.mxu0  ;;  %v3253_v8 = vpop.f32.mrf.mxu1  ;;  %v3040_v26 = vadd.f32 %v6883_v58, %v6881_v2  ;;  %7490 = vst [vmem:[#allocation23_spill] sm:$0xff] %v7026_v6  ;;  %v3042_v12 = vadd.f32 %v6887_v38, %v6885_v50  ;;  %v7491_v38 = vld [vmem:[#allocation5_spill] sm:$0xff] }
 0x203   : > { %v4124_v46 = vmax.f32 %v4060_v24, 0.0  ;;  %v3250_v33 = vadd.f32 %v3249_v45, %v3137_v5  ;;  %v4063_v55 = vadd.f32 %v6999_v44, %v3248_v57  ;;  %v3141_v37 = vadd.f32 %v3140_v25, %v3028_v14  ;;  %4365 = vst [vmem:[%s6959_s12 + $0x50] sm:$0xff] %v4969_v53 }
 0x204   : > { %v3142_v49 = vpop.f32.mrf.mxu0  ;;  %v3255_v21 = vpop.f32.mrf.mxu1 }
 0x205   : > { %v4971_v47 = vpack.c.bf16 %v4124_v46, %v4123_v20  ;;  %v4064_v18 = vadd.f32 %v6999_v44, %v3250_v33  ;;  %v3254_v36 = vadd.f32 %v3253_v8, %v3141_v37  ;;  %v3143_v56 = vadd.f32 %v3142_v49, %v3030_v40 }
 0x206   : > { %v3144_v9 = vpop.f32.mrf.mxu0  ;;  %v3257_v32 = vpop.f32.mrf.mxu1  ;;  %v4127_v19 = vmax.f32 %v4063_v55, 0.0  ;;  %v3044_v46 = vadd.f32 %v6891_v41, %v6889_v27  ;;  %v7492_v55 = vld [vmem:[#allocation6_spill] sm:$0xff] }
 0x207   : > { %4367 = vst [vmem:[%s6959_s12 + $0x60] sm:$0xff] %v4971_v47  ;;  %v4128_v42 = vmax.f32 %v4064_v18, 0.0  ;;  %v3145_v60 = vadd.f32 %v3144_v9, %v3032_v48  ;;  %v3256_v43 = vadd.f32 %v3255_v21, %v3143_v56  ;;  %v4067_v15 = vadd.f32 %v7011_v29, %v3254_v36  ;;  %v7038_v48 = vpop.permute.xlu1 %4012  ;;  %v7494_v56 = vld [vmem:[#allocation7_spill] sm:$0xff]  ;;  %v7495_v9 = vld [vmem:[#allocation8_spill] sm:$0xff] }
 0x208   : > { %v3146_v0 = vpop.f32.mrf.mxu0  ;;  %v3259_v1 = vpop.f32.mrf.mxu1  ;;  %v3048_v37 = vadd.f32 %v7492_v55, %v7491_v38  ;;  %7493 = vst [vmem:[#allocation5_spill] sm:$0xff] %v7038_v48 }
 0x209   : > { %v4973_v16 = vpack.c.bf16 %v4128_v42, %v4127_v19  ;;  %v3258_v4 = vadd.f32 %v3257_v32, %v3145_v60  ;;  %v3147_v59 = vadd.f32 %v3146_v0, %v3034_v3  ;;  %v4068_v30 = vadd.f32 %v7011_v29, %v3256_v43  ;;  %v7043_v19 = vpop.permute.xlu0 %4017  ;;  %v7497_v0 = vld [vmem:[#allocation9_spill] sm:$0xff] }
 0x20a   : > { %v3150_v51 = vpop.f32.mrf.mxu0  ;;  %v3263_v11 = vpop.f32.mrf.mxu1  ;;  %v4131_v7 = vmax.f32 %v4067_v15, 0.0  ;;  %v3050_v32 = vadd.f32 %v7495_v9, %v7494_v56  ;;  %7496 = vst [vmem:[#allocation6_spill] sm:$0xff] %v7043_v19 }
 0x20b   : > { %4369 = vst [vmem:[%s6959_s12 + $0x70] sm:$0xff] %v4973_v16  ;;  %v3260_v35 = vadd.f32 %v3259_v1, %v3147_v59  ;;  %v4071_v22 = vadd.f32 %v7016_v62, %v3258_v4  ;;  %v3151_v17 = vadd.f32 %v3150_v51, %v3038_v54  ;;  %v4132_v13 = vmax.f32 %v4068_v30, 0.0  ;;  %v7498_v1 = vld [vmem:[#allocation10_spill] sm:$0xff] }
 0x20c   : > { %v3152_v52 = vpop.f32.mrf.mxu0  ;;  %v3265_v31 = vpop.f32.mrf.mxu1  ;;  %v3052_v54 = vadd.f32 %v7498_v1, %v7497_v0 }
 0x20d   : > { %v4072_v45 = vadd.f32 %v7016_v62, %v3260_v35  ;;  %v3264_v14 = vadd.f32 %v3263_v11, %v3151_v17  ;;  %v3153_v24 = vadd.f32 %v3152_v52, %v3040_v26  ;;  %v4975_v2 = vpack.c.bf16 %v4132_v13, %v4131_v7  ;;  %v7499_v26 = vld [vmem:[#allocation11_spill] sm:$0xff]  ;;  %v7500_v35 = vld [vmem:[#allocation12_spill] sm:$0xff]  ;;  %v7053_v52 = vpop.permute.xlu1 %4022 }
 0x20e   : > { %v4135_v58 = vmax.f32 %v4071_v22, 0.0  ;;  %v3154_v57 = vpop.f32.mrf.mxu0  ;;  %v3267_v5 = vpop.f32.mrf.mxu1  ;;  %v3054_v22 = vadd.f32 %v7500_v35, %v7499_v26  ;;  %7501 = vst [vmem:[#allocation7_spill] sm:$0xff] %v7053_v52 }
 0x20f   : > { %v4136_v53 = vmax.f32 %v4072_v45, 0.0  ;;  %v3266_v20 = vadd.f32 %v3265_v31, %v3153_v24  ;;  %v4075_v25 = vadd.f32 %v7026_v6, %v3264_v14  ;;  %v3155_v8 = vadd.f32 %v3154_v57, %v3042_v12  ;;  %4371 = vst [vmem:[%s6959_s12 + $0x80] sm:$0xff] %v4975_v2  ;;  %v7502_v24 = vld [vmem:[#allocation13_spill] sm:$0xff]  ;;  %v7503_v2 = vld [vmem:[#allocation14_spill] sm:$0xff] }
 0x210   : > { %v3156_v33 = vpop.f32.mrf.mxu0  ;;  %v3269_v50 = vpop.f32.mrf.mxu1 }
 0x211   : > { %v4977_v40 = vpack.c.bf16 %v4136_v53, %v4135_v58  ;;  %v4076_v49 = vadd.f32 %v7026_v6, %v3266_v20  ;;  %v3268_v21 = vadd.f32 %v3267_v5, %v3155_v8  ;;  %v3157_v47 = vadd.f32 %v3156_v33, %v3044_v46 }
 0x212   : > { %v3160_v18 = vpop.f32.mrf.mxu0  ;;  %v3273_v36 = vpop.f32.mrf.mxu1  ;;  %v4139_v27 = vmax.f32 %v4075_v25, 0.0  ;;  %v3058_v58 = vadd.f32 %v7503_v2, %v7502_v24 }
 0x213   : > { %4373 = vst [vmem:[%s6959_s12 + $0x90] sm:$0xff] %v4977_v40  ;;  %v4140_v41 = vmax.f32 %v4076_v49, 0.0  ;;  %v3161_v3 = vadd.f32 %v3160_v18, %v3048_v37  ;;  %v3270_v42 = vadd.f32 %v3269_v50, %v3157_v47  ;;  %v4079_v60 = vadd.f32 %v7038_v48, %v3268_v21  ;;  %v7504_v37 = vld [vmem:[#allocation15_spill] sm:$0xff]  ;;  %v7505_v40 = vld [vmem:[#allocation16_spill] sm:$0xff]  ;;  %v7506_v18 = vld [vmem:[#allocation17_spill] sm:$0xff] }
 0x214   : > { %v3162_v43 = vpop.f32.mrf.mxu0  ;;  %v3275_v15 = vpop.f32.mrf.mxu1  ;;  %v3060_v49 = vadd.f32 %v7505_v40, %v7504_v37 }
 0x215   : > { %v4979_v16 = vpack.c.bf16 %v4140_v41, %v4139_v27  ;;  %v3274_v4 = vadd.f32 %v3273_v36, %v3161_v3  ;;  %v3163_v59 = vadd.f32 %v3162_v43, %v3050_v32  ;;  %v4080_v30 = vadd.f32 %v7038_v48, %v3270_v42  ;;  %v7507_v36 = vld [vmem:[#allocation18_spill] sm:$0xff]  ;;  %v7065_v41 = vpop.permute.xlu0 %4027  ;;  %v7509_v43 = vld [vmem:[#allocation19_spill] sm:$0xff] }
 0x216   : > { %v3164_v51 = vpop.f32.mrf.mxu0  ;;  %v3277_v11 = vpop.f32.mrf.mxu1  ;;  %v4143_v31 = vmax.f32 %v4079_v60, 0.0  ;;  %v3062_v56 = vadd.f32 %v7507_v36, %v7506_v18  ;;  %7508 = vst [vmem:[#allocation8_spill] sm:$0xff] %v7065_v41 }
 0x217   : > { %4375 = vst [vmem:[%s6959_s12 + $0xa0] sm:$0xff] %v4979_v16  ;;  %v3276_v17 = vadd.f32 %v3275_v15, %v3163_v59  ;;  %v4083_v7 = vadd.f32 %v7043_v19, %v3274_v4  ;;  %v3165_v13 = vadd.f32 %v3164_v51, %v3052_v54  ;;  %v4144_v12 = vmax.f32 %v4080_v30, 0.0  ;;  %v7510_v15 = vld [vmem:[#allocation20_spill] sm:$0xff]  ;;  %v7070_v4 = vpop.permute.xlu1 %4032 }
 0x218   : > { %v3166_v45 = vpop.f32.mrf.mxu0  ;;  %v3279_v14 = vpop.f32.mrf.mxu1  ;;  %v3064_v0 = vadd.f32 %v7510_v15, %v7509_v43  ;;  %7511 = vst [vmem:[#allocation9_spill] sm:$0xff] %v7070_v4 }
 0x219   : > { %v4084_v57 = vadd.f32 %v7043_v19, %v3276_v17  ;;  %v3278_v5 = vadd.f32 %v3277_v11, %v3165_v13  ;;  %v3167_v53 = vadd.f32 %v3166_v45, %v3054_v22  ;;  %v4981_v20 = vpack.c.bf16 %v4144_v12, %v4143_v31 }
 0x21a   : > { %v4147_v25 = vmax.f32 %v4083_v7, 0.0  ;;  %v3170_v8 = vpop.f32.mrf.mxu0  ;;  %v3283_v46 = vpop.f32.mrf.mxu1 }
 0x21b   : > { %v4148_v33 = vmax.f32 %v4084_v57, 0.0  ;;  %v3280_v50 = vadd.f32 %v3279_v14, %v3167_v53  ;;  %v4087_v38 = vadd.f32 %v7053_v52, %v3278_v5  ;;  %v3171_v55 = vadd.f32 %v3170_v8, %v3058_v58  ;;  %4377 = vst [vmem:[%s6959_s12 + $0xb0] sm:$0xff] %v4981_v20 }
 0x21c   : > { %v3172_v21 = vpop.f32.mrf.mxu0  ;;  %v3285_v47 = vpop.f32.mrf.mxu1 }
 0x21d   : > { %v4983_v9 = vpack.c.bf16 %v4148_v33, %v4147_v25  ;;  %v4088_v32 = vadd.f32 %v7053_v52, %v3280_v50  ;;  %v3284_v27 = vadd.f32 %v3283_v46, %v3171_v55  ;;  %v3173_v3 = vadd.f32 %v3172_v21, %v3060_v49 }
 0x21e   : > { %v3174_v42 = vpop.f32.mrf.mxu0  ;;  %v3287_v60 = vpop.f32.mrf.mxu1  ;;  %v4151_v1 = vmax.f32 %v4087_v38, 0.0 }
 0x21f   : > { %4379 = vst [vmem:[%s6959_s12 + $0xc0] sm:$0xff] %v4983_v9  ;;  %v4152_v54 = vmax.f32 %v4088_v32, 0.0  ;;  %v3175_v16 = vadd.f32 %v3174_v42, %v3062_v56  ;;  %v3286_v59 = vadd.f32 %v3285_v47, %v3173_v3  ;;  %v4091_v30 = vadd.f32 %v7065_v41, %v3284_v27 }
 0x220   : > { %v3176_v51 = vpop.f32.mrf.mxu0  ;;  %v3289_v11 = vpop.f32.mrf.mxu1 }
 0x221   : > { %v4985_v26 = vpack.c.bf16 %v4152_v54, %v4151_v1  ;;  %v3288_v35 = vadd.f32 %v3287_v60, %v3175_v16  ;;  %v3177_v22 = vadd.f32 %v3176_v51, %v3064_v0  ;;  %v4092_v17 = vadd.f32 %v7065_v41, %v3286_v59 }
 0x222   : > { %v7074_v7 = vpop.f32.mrf.mxu0  ;;  %v7076_v13 = vpop.f32.mrf.mxu1  ;;  %v4155_v45 = vmax.f32 %v4091_v30, 0.0 }
 0x223   : > { %4381 = vst [vmem:[%s6959_s12 + $0xd0] sm:$0xff] %v4985_v26  ;;  %v3290_v31 = vadd.f32 %v3289_v11, %v3177_v22  ;;  %v4095_v12 = vadd.f32 %v7070_v4, %v3288_v35  ;;  %v4156_v14 = vmax.f32 %v4092_v17, 0.0 }
 0x224   : > { %v7080_v24 = vpop.f32.mrf.mxu0  ;;  %v7082_v2 = vpop.f32.mrf.mxu1 }
 0x225   : > { %v4096_v58 = vadd.f32 %v7070_v4, %v3290_v31  ;;  %v4987_v57 = vpack.c.bf16 %v4156_v14, %v4155_v45  ;;  %v4159_v20 = vmax.f32 %v4095_v12, 0.0 }
 0x226   : > { %v7085_v5 = vpop.f32.mrf.mxu0  ;;  %v7087_v53 = vpop.f32.mrf.mxu1 }
 0x227   : > { %v4160_v25 = vmax.f32 %v4096_v58, 0.0  ;;  %4383 = vst [vmem:[%s6959_s12 + $0xe0] sm:$0xff] %v4987_v57 }
 0x228   : > { %v7090_v8 = vpop.f32.mrf.mxu0  ;;  %v7092_v46 = vpop.f32.mrf.mxu1 }
 0x229   : > { %v4989_v33 = vpack.c.bf16 %v4160_v25, %v4159_v20 }
 0x22a   : > { %v7094_v50 = vpop.f32.mrf.mxu0  ;;  %v7096_v38 = vpop.f32.mrf.mxu1 }
 0x22b   : > { %4385 = vst [vmem:[%s6959_s12 + $0xf0] sm:$0xff] %v4989_v33 }
 0x22c   : > { %v7099_v55 = vpop.f32.mrf.mxu0  ;;  %v7101_v37 = vpop.f32.mrf.mxu1 }
 0x22e   : > { %v7103_v40 = vpop.f32.mrf.mxu0  ;;  %v7105_v49 = vpop.f32.mrf.mxu1 }
 0x230   : > { %v7107_v21 = vpop.f32.mrf.mxu0  ;;  %v7109_v47 = vpop.f32.mrf.mxu1 }
 0x232   : > { %v7111_v18 = vpop.f32.mrf.mxu0  ;;  %v7113_v36 = vpop.f32.mrf.mxu1 }
 0x234   : > { %v7115_v56 = vpop.f32.mrf.mxu0  ;;  %v7117_v9 = vpop.f32.mrf.mxu1 }
 0x236   : > { %v7119_v32 = vpop.f32.mrf.mxu0  ;;  %v7121_v27 = vpop.f32.mrf.mxu1 }
 0x238   : > { %v7123_v3 = vpop.f32.mrf.mxu0  ;;  %v7125_v42 = vpop.f32.mrf.mxu1 }
 0x23a   : > { %v7127_v60 = vpop.f32.mrf.mxu0  ;;  %v7129_v43 = vpop.f32.mrf.mxu1 }
 0x23c   : > { %v7131_v15 = vpop.f32.mrf.mxu0  ;;  %v7133_v0 = vpop.f32.mrf.mxu1 }
 0x23e   : > { %v7135_v1 = vpop.f32.mrf.mxu0  ;;  %v7137_v54 = vpop.f32.mrf.mxu1 }
 0x240   : > { %v7139_v16 = vpop.f32.mrf.mxu0  ;;  %v7141_v59 = vpop.f32.mrf.mxu1 }
 0x242   : > { %v7143_v30 = vpop.f32.mrf.mxu0  ;;  %v7145_v51 = vpop.f32.mrf.mxu1 }
 0x244   : > { %v7147_v11 = vpop.f32.mrf.mxu0  ;;  %v7149_v26 = vpop.f32.mrf.mxu1 }
 0x246   : > { %v7151_v35 = vpop.f32.mrf.mxu0  ;;  %v7153_v22 = vpop.f32.mrf.mxu1 }
 0x248   : > { %v7155_v17 = vpop.f32.mrf.mxu0  ;;  %v7157_v31 = vpop.f32.mrf.mxu1 }
 0x24a   : > { %v7159_v12 = vpop.f32.mrf.mxu0  ;;  %v7161_v45 = vpop.f32.mrf.mxu1 }
 0x24b   : > { %7512 = vst [vmem:[#allocation10_spill] sm:$0xff] %v7159_v12  ;;  %7513 = vst [vmem:[#allocation11_spill] sm:$0xff] %v7161_v45 }
 0x24c   : > { %v7163_v14 = vpop.f32.mrf.mxu0  ;;  %v7165_v58 = vpop.f32.mrf.mxu1 }
 0x24d   : > { %7514 = vst [vmem:[#allocation12_spill] sm:$0xff] %v7163_v14  ;;  %7515 = vst [vmem:[#allocation13_spill] sm:$0xff] %v7165_v58 }
 0x24e   : > { %v7167_v57 = vpop.f32.mrf.mxu0  ;;  %v7169_v20 = vpop.f32.mrf.mxu1 }
 0x24f   : > { %7516 = vst [vmem:[#allocation14_spill] sm:$0xff] %v7167_v57  ;;  %7517 = vst [vmem:[#allocation15_spill] sm:$0xff] %v7169_v20 }
 0x250   : > { %v7171_v25 = vpop.f32.mrf.mxu0  ;;  %v7173_v33 = vpop.f32.mrf.mxu1 }
 0x251   : > { %7518 = vst [vmem:[#allocation16_spill] sm:$0xff] %v7171_v25  ;;  %7519 = vst [vmem:[#allocation17_spill] sm:$0xff] %v7173_v33 }
 0x252   : > { %v7175_v4 = vpop.f32.mrf.mxu0  ;;  %v7177_v41 = vpop.f32.mrf.mxu1 }
 0x253   : > { %7520 = vst [vmem:[#allocation18_spill] sm:$0xff] %v7175_v4  ;;  %7521 = vst [vmem:[#allocation19_spill] sm:$0xff] %v7177_v41 }
 0x254   : > { %v7179_v52 = vpop.f32.mrf.mxu0  ;;  %v7181_v19 = vpop.f32.mrf.mxu1 }
 0x255   : > { %7522 = vst [vmem:[#allocation20_spill] sm:$0xff] %v7179_v52  ;;  %7523 = vst [vmem:[#allocation24_spill] sm:$0xff] %v7181_v19 }
 0x256   : > { %v7183_v48 = vpop.f32.mrf.mxu0  ;;  %v7185_v6 = vpop.f32.mrf.mxu1 }
 0x257   : > { %7524 = vst [vmem:[#allocation25_spill] sm:$0xff] %v7183_v48  ;;  %7525 = vst [vmem:[#allocation26_spill] sm:$0xff] %v7185_v6 }
 0x258   : > { %v7187_v62 = vpop.f32.mrf.mxu0  ;;  %v7189_v57 = vpop.f32.mrf.mxu1 }
 0x259   : > { %7526 = vst [vmem:[#allocation27_spill] sm:$0xff] %v7187_v62  ;;  %7527 = vst [vmem:[#allocation28_spill] sm:$0xff] %v7189_v57  ;;  %v3440_v62 = vadd.f32 %v7076_v13, %v7074_v7 }
 0x25a   : > { %v7191_v20 = vpop.f32.mrf.mxu0  ;;  %v7193_v25 = vpop.f32.mrf.mxu1 }
 0x25b   : > { %7528 = vst [vmem:[#allocation29_spill] sm:$0xff] %v7191_v20  ;;  %7529 = vst [vmem:[#allocation30_spill] sm:$0xff] %v7193_v25  ;;  %v3442_v25 = vadd.f32 %v7082_v2, %v7080_v24 }
 0x25c   : > { %v7195_v33 = vpop.f32.mrf.mxu0  ;;  %v7197_v4 = vpop.f32.mrf.mxu1 }
 0x25d   : > { %7530 = vst [vmem:[#allocation31_spill] sm:$0xff] %v7195_v33  ;;  %7531 = vst [vmem:[#allocation32_spill] sm:$0xff] %v7197_v4 }
 0x25e   : > { %v7199_v41 = vpop.f32.mrf.mxu0  ;;  %v7201_v52 = vpop.f32.mrf.mxu1 }
 0x25f   : > { %7532 = vst [vmem:[#allocation33_spill] sm:$0xff] %v7199_v41  ;;  %7533 = vst [vmem:[#allocation34_spill] sm:$0xff] %v7201_v52  ;;  %v3444_v41 = vadd.f32 %v7087_v53, %v7085_v5 }
 0x260   : > { %v7203_v19 = vpop.f32.mrf.mxu0  ;;  %v7205_v48 = vpop.f32.mrf.mxu1 }
 0x261   : > { %7534 = vst [vmem:[#allocation35_spill] sm:$0xff] %v7203_v19  ;;  %7535 = vst [vmem:[#allocation36_spill] sm:$0xff] %v7205_v48  ;;  %v3446_v48 = vadd.f32 %v7092_v46, %v7090_v8 }
 0x262   : > { %v3552_v57 = vpop.f32.mrf.mxu0  ;;  %v3665_v6 = vpop.f32.mrf.mxu1 }
 0x263   : > { %v3553_v20 = vadd.f32 %v3552_v57, %v3440_v62  ;;  %v3450_v62 = vadd.f32 %v7096_v38, %v7094_v50  ;;  %v3454_v50 = vadd.f32 %v7105_v49, %v7103_v40 }
 0x264   : > { %v3554_v33 = vpop.f32.mrf.mxu0  ;;  %v3667_v58 = vpop.f32.mrf.mxu1 }
 0x265   : > { %v3666_v4 = vadd.f32 %v3665_v6, %v3553_v20  ;;  %v3555_v52 = vadd.f32 %v3554_v33, %v3442_v25 }
 0x266   : > { %v3556_v14 = vpop.f32.mrf.mxu0  ;;  %v3669_v19 = vpop.f32.mrf.mxu1 }
 0x267   : > { %v4037_v7 = vadd.f32 %v6933_v28, %v3666_v4  ;;  %v3668_v13 = vadd.f32 %v3667_v58, %v3555_v52  ;;  %v3557_v45 = vadd.f32 %v3556_v14, %v3444_v41  ;;  %v3452_v52 = vadd.f32 %v7101_v37, %v7099_v55 }
 0x268   : > { %v3558_v12 = vpop.f32.mrf.mxu0  ;;  %v3671_v29 = vpop.f32.mrf.mxu1  ;;  %v3456_v58 = vadd.f32 %v7109_v47, %v7107_v21  ;;  %v3462_v47 = vadd.f32 %v7117_v9, %v7115_v56 }
 0x269   : > { %v4038_v24 = vadd.f32 %v6933_v28, %v3668_v13  ;;  %v3670_v2 = vadd.f32 %v3669_v19, %v3557_v45  ;;  %v3559_v5 = vadd.f32 %v3558_v12, %v3446_v48  ;;  %v4101_v6 = vmax.f32 %v4037_v7, 0.0 }
 0x26a   : > { %v3562_v53 = vpop.f32.mrf.mxu0  ;;  %v3675_v57 = vpop.f32.mrf.mxu1 }
 0x26b   : > { %v4102_v20 = vmax.f32 %v4038_v24, 0.0  ;;  %v4041_v8 = vadd.f32 %v6942_v63, %v3670_v2  ;;  %v3672_v46 = vadd.f32 %v3671_v29, %v3559_v5  ;;  %v3563_v4 = vadd.f32 %v3562_v53, %v3450_v62 }
 0x26c   : > { %v3564_v41 = vpop.f32.mrf.mxu0  ;;  %v3677_v14 = vpop.f32.mrf.mxu1 }
 0x26d   : > { %v4960_v28 = vpack.c.bf16 %v4102_v20, %v4101_v6  ;;  %v4042_v48 = vadd.f32 %v6942_v63, %v3672_v46  ;;  %v3676_v19 = vadd.f32 %v3675_v57, %v3563_v4  ;;  %v3565_v38 = vadd.f32 %v3564_v41, %v3452_v52 }
 0x26e   : > { %v3566_v12 = vpop.f32.mrf.mxu0  ;;  %v3679_v45 = vpop.f32.mrf.mxu1  ;;  %v4105_v29 = vmax.f32 %v4041_v8, 0.0  ;;  %v3460_v63 = vadd.f32 %v7113_v36, %v7111_v18  ;;  %v3464_v36 = vadd.f32 %v7121_v27, %v7119_v32 }
 0x26f   : > { %4356 = vst [vmem:[%s6959_s12 + $0x8] sm:$0xff] %v4960_v28  ;;  %v4106_v25 = vmax.f32 %v4042_v48, 0.0  ;;  %v3567_v55 = vadd.f32 %v3566_v12, %v3454_v50  ;;  %v4045_v37 = vadd.f32 %v6949_v34, %v3676_v19  ;;  %v3678_v33 = vadd.f32 %v3677_v14, %v3565_v38 }
 0x270   : > { %v3568_v7 = vpop.f32.mrf.mxu0  ;;  %v3681_v40 = vpop.f32.mrf.mxu1  ;;  %v3466_v19 = vadd.f32 %v7125_v42, %v7123_v3 }
 0x271   : > { %v4962_v49 = vpack.c.bf16 %v4106_v25, %v4105_v29  ;;  %v3680_v13 = vadd.f32 %v3679_v45, %v3567_v55  ;;  %v3569_v62 = vadd.f32 %v3568_v7, %v3456_v58  ;;  %v4046_v24 = vadd.f32 %v6949_v34, %v3678_v33 }
 0x272   : > { %v3572_v2 = vpop.f32.mrf.mxu0  ;;  %v3685_v21 = vpop.f32.mrf.mxu1  ;;  %v4109_v57 = vmax.f32 %v4045_v37, 0.0  ;;  %v3472_v55 = vadd.f32 %v7133_v0, %v7131_v15  ;;  %v3476_v0 = vadd.f32 %v7141_v59, %v7139_v16 }
 0x273   : > { %4358 = vst [vmem:[%s6959_s12 + $0x18] sm:$0xff] %v4962_v49  ;;  %v4049_v5 = vadd.f32 %v6962_v61, %v3680_v13  ;;  %v3682_v6 = vadd.f32 %v3681_v40, %v3569_v62  ;;  %v3573_v53 = vadd.f32 %v3572_v2, %v3460_v63  ;;  %v4110_v20 = vmax.f32 %v4046_v24, 0.0 }
 0x274   : > { %v3574_v8 = vpop.f32.mrf.mxu0  ;;  %v3687_v18 = vpop.f32.mrf.mxu1 }
 0x275   : > { %v4050_v34 = vadd.f32 %v6962_v61, %v3682_v6  ;;  %v3686_v46 = vadd.f32 %v3685_v21, %v3573_v53  ;;  %v3575_v4 = vadd.f32 %v3574_v8, %v3462_v47  ;;  %v4964_v52 = vpack.c.bf16 %v4110_v20, %v4109_v57 }
 0x276   : > { %v4113_v41 = vmax.f32 %v4049_v5, 0.0  ;;  %v3576_v56 = vpop.f32.mrf.mxu0  ;;  %v3689_v9 = vpop.f32.mrf.mxu1  ;;  %v3470_v61 = vadd.f32 %v7129_v43, %v7127_v60 }
 0x277   : > { %v4114_v14 = vmax.f32 %v4050_v34, 0.0  ;;  %v4053_v50 = vadd.f32 %v6972_v10, %v3686_v46  ;;  %v3688_v28 = vadd.f32 %v3687_v18, %v3575_v4  ;;  %v3577_v48 = vadd.f32 %v3576_v56, %v3464_v36  ;;  %4360 = vst [vmem:[%s6959_s12 + $0x28] sm:$0xff] %v4964_v52 }
 0x278   : > { %v3578_v38 = vpop.f32.mrf.mxu0  ;;  %v3691_v32 = vpop.f32.mrf.mxu1  ;;  %v3482_v4 = vadd.f32 %v7149_v26, %v7147_v11 }
 0x279   : > { %v4966_v27 = vpack.c.bf16 %v4114_v14, %v4113_v41  ;;  %v4054_v12 = vadd.f32 %v6972_v10, %v3688_v28  ;;  %v3690_v45 = vadd.f32 %v3689_v9, %v3577_v48  ;;  %v3579_v58 = vadd.f32 %v3578_v38, %v3466_v19  ;;  %v7536_v19 = vld [vmem:[#allocation21_spill] sm:$0xff] }
 0x27a   : > { %v3582_v29 = vpop.f32.mrf.mxu0  ;;  %v3695_v25 = vpop.f32.mrf.mxu1  ;;  %v4117_v37 = vmax.f32 %v4053_v50, 0.0  ;;  %v3474_v10 = vadd.f32 %v7137_v54, %v7135_v1  ;;  %v3480_v54 = vadd.f32 %v7145_v51, %v7143_v30  ;;  %v3486_v28 = vadd.f32 %v7157_v31, %v7155_v17  ;;  %v7539_v31 = vld [vmem:[#allocation12_spill] sm:$0xff] }
 0x27b   : > { %4362 = vst [vmem:[%s6959_s12 + $0x38] sm:$0xff] %v4966_v27  ;;  %v4118_v3 = vmax.f32 %v4054_v12, 0.0  ;;  %v3583_v42 = vadd.f32 %v3582_v29, %v3470_v61  ;;  %v4057_v33 = vadd.f32 %v6984_v39, %v3690_v45  ;;  %v3692_v7 = vadd.f32 %v3691_v32, %v3579_v58  ;;  %v7538_v27 = vld [vmem:[#allocation11_spill] sm:$0xff] }
 0x27c   : > { %v3584_v40 = vpop.f32.mrf.mxu0  ;;  %v3697_v60 = vpop.f32.mrf.mxu1 }
 0x27d   : > { %v4968_v43 = vpack.c.bf16 %v4118_v3, %v4117_v37  ;;  %v3696_v63 = vadd.f32 %v3695_v25, %v3583_v42  ;;  %v3585_v49 = vadd.f32 %v3584_v40, %v3472_v55  ;;  %v4058_v13 = vadd.f32 %v6984_v39, %v3692_v7  ;;  %v7540_v55 = vld [vmem:[#allocation13_spill] sm:$0xff]  ;;  %v7541_v3 = vld [vmem:[#allocation22_spill] sm:$0xff] }
 0x27e   : > { %v3586_v62 = vpop.f32.mrf.mxu0  ;;  %v3699_v15 = vpop.f32.mrf.mxu1  ;;  %v4121_v47 = vmax.f32 %v4057_v33, 0.0  ;;  %v3492_v37 = vadd.f32 %v7540_v55, %v7539_v31 }
 0x27f   : > { %4364 = vst [vmem:[%s6959_s12 + $0x48] sm:$0xff] %v4968_v43  ;;  %v4061_v24 = vadd.f32 %v6989_v23, %v3696_v63  ;;  %v3698_v2 = vadd.f32 %v3697_v60, %v3585_v49  ;;  %v3587_v21 = vadd.f32 %v3586_v62, %v3474_v10  ;;  %v4122_v5 = vmax.f32 %v4058_v13, 0.0  ;;  %v7542_v63 = vld [vmem:[#allocation14_spill] sm:$0xff]  ;;  %v7543_v49 = vld [vmem:[#allocation15_spill] sm:$0xff] }
 0x280   : > { %v3588_v6 = vpop.f32.mrf.mxu0  ;;  %v3701_v1 = vpop.f32.mrf.mxu1  ;;  %v3494_v13 = vadd.f32 %v7543_v49, %v7542_v63 }
 0x281   : > { %v4062_v39 = vadd.f32 %v6989_v23, %v3698_v2  ;;  %v3700_v53 = vadd.f32 %v3699_v15, %v3587_v21  ;;  %v3589_v57 = vadd.f32 %v3588_v6, %v3476_v0  ;;  %v4970_v20 = vpack.c.bf16 %v4122_v5, %v4121_v47  ;;  %v7544_v6 = vld [vmem:[#allocation23_spill] sm:$0xff] }
 0x282   : > { %v4125_v8 = vmax.f32 %v4061_v24, 0.0  ;;  %v3592_v16 = vpop.f32.mrf.mxu0  ;;  %v3705_v59 = vpop.f32.mrf.mxu1  ;;  %v3484_v23 = vadd.f32 %v7153_v22, %v7151_v35  ;;  %v7537_v22 = vld [vmem:[#allocation10_spill] sm:$0xff] }
 0x283   : > { %v4126_v18 = vmax.f32 %v4062_v39, 0.0  ;;  %v4065_v36 = vadd.f32 %v6999_v44, %v3700_v53  ;;  %v3702_v34 = vadd.f32 %v3701_v1, %v3589_v57  ;;  %v3593_v46 = vadd.f32 %v3592_v16, %v3480_v54  ;;  %4366 = vst [vmem:[%s6959_s12 + $0x58] sm:$0xff] %v4970_v20  ;;  %v7545_v53 = vld [vmem:[#allocation16_spill] sm:$0xff]  ;;  %v7546_v57 = vld [vmem:[#allocation17_spill] sm:$0xff] }
 0x284   : > { %v3594_v52 = vpop.f32.mrf.mxu0  ;;  %v3707_v30 = vpop.f32.mrf.mxu1  ;;  %v3496_v20 = vadd.f32 %v7546_v57, %v7545_v53  ;;  %v7562_v57 = vld [vmem:[#allocation33_spill] sm:$0xff] }
 0x285   : > { %v4972_v51 = vpack.c.bf16 %v4126_v18, %v4125_v8  ;;  %v4066_v41 = vadd.f32 %v6999_v44, %v3702_v34  ;;  %v3706_v56 = vadd.f32 %v3705_v59, %v3593_v46  ;;  %v3595_v9 = vadd.f32 %v3594_v52, %v3482_v4  ;;  %v7547_v59 = vld [vmem:[#allocation18_spill] sm:$0xff]  ;;  %v7548_v18 = vld [vmem:[#allocation19_spill] sm:$0xff] }
 0x286   : > { %v3596_v14 = vpop.f32.mrf.mxu0  ;;  %v3709_v50 = vpop.f32.mrf.mxu1  ;;  %v4129_v48 = vmax.f32 %v4065_v36, 0.0  ;;  %v3490_v44 = vadd.f32 %v7538_v27, %v7537_v22  ;;  %v3500_v36 = vadd.f32 %v7548_v18, %v7547_v59 }
 0x287   : > { %4368 = vst [vmem:[%s6959_s12 + $0x68] sm:$0xff] %v4972_v51  ;;  %v4130_v11 = vmax.f32 %v4066_v41, 0.0  ;;  %v3597_v26 = vadd.f32 %v3596_v14, %v3484_v23  ;;  %v4069_v38 = vadd.f32 %v7536_v19, %v3706_v56  ;;  %v3708_v32 = vadd.f32 %v3707_v30, %v3595_v9  ;;  %v7549_v51 = vld [vmem:[#allocation20_spill] sm:$0xff] }
 0x288   : > { %v3598_v61 = vpop.f32.mrf.mxu0  ;;  %v3711_v35 = vpop.f32.mrf.mxu1  ;;  %v7550_v41 = vld [vmem:[#allocation24_spill] sm:$0xff] }
 0x289   : > { %v4974_v12 = vpack.c.bf16 %v4130_v11, %v4129_v48  ;;  %v3710_v45 = vadd.f32 %v3709_v50, %v3597_v26  ;;  %v3599_v58 = vadd.f32 %v3598_v61, %v3486_v28  ;;  %v4070_v29 = vadd.f32 %v7536_v19, %v3708_v32  ;;  %v7551_v28 = vld [vmem:[#allocation5_spill] sm:$0xff]  ;;  %v7553_v32 = vld [vmem:[#allocation26_spill] sm:$0xff] }
 0x28a   : > { %v3602_v25 = vpop.f32.mrf.mxu0  ;;  %v3715_v17 = vpop.f32.mrf.mxu1  ;;  %v4133_v40 = vmax.f32 %v4069_v38, 0.0  ;;  %v3502_v56 = vadd.f32 %v7550_v41, %v7549_v51  ;;  %v7552_v38 = vld [vmem:[#allocation25_spill] sm:$0xff] }
 0x28b   : > { %4370 = vst [vmem:[%s6959_s12 + $0x78] sm:$0xff] %v4974_v12  ;;  %v4073_v42 = vadd.f32 %v7541_v3, %v3710_v45  ;;  %v3712_v33 = vadd.f32 %v3711_v35, %v3599_v58  ;;  %v3603_v7 = vadd.f32 %v3602_v25, %v3490_v44  ;;  %v4134_v60 = vmax.f32 %v4070_v29, 0.0  ;;  %v7554_v58 = vld [vmem:[#allocation27_spill] sm:$0xff]  ;;  %v7555_v29 = vld [vmem:[#allocation28_spill] sm:$0xff] }
 0x28c   : > { %v3604_v10 = vpop.f32.mrf.mxu0  ;;  %v3717_v43 = vpop.f32.mrf.mxu1  ;;  %v3504_v61 = vadd.f32 %v7553_v32, %v7552_v38  ;;  %v3506_v25 = vadd.f32 %v7555_v29, %v7554_v58  ;;  %v7567_v38 = vld [vmem:[#allocation9_spill] sm:$0xff] }
 0x28d   : > { %v4074_v62 = vadd.f32 %v7541_v3, %v3712_v33  ;;  %v3716_v15 = vadd.f32 %v3715_v17, %v3603_v7  ;;  %v3605_v0 = vadd.f32 %v3604_v10, %v3492_v37  ;;  %v4976_v24 = vpack.c.bf16 %v4134_v60, %v4133_v40  ;;  %v7556_v17 = vld [vmem:[#allocation6_spill] sm:$0xff]  ;;  %v7557_v40 = vld [vmem:[#allocation29_spill] sm:$0xff] }
 0x28e   : > { %v4137_v2 = vmax.f32 %v4073_v42, 0.0  ;;  %v3606_v21 = vpop.f32.mrf.mxu0  ;;  %v3719_v47 = vpop.f32.mrf.mxu1  ;;  %v7558_v60 = vld [vmem:[#allocation30_spill] sm:$0xff]  ;;  %v4412_v29 = vld [vmem:[%s6959_s12] sm:$0xff] (%p5515_p6) }
 0x28f   : > { %v4138_v5 = vmax.f32 %v4074_v62, 0.0  ;;  %v4077_v1 = vadd.f32 %v7544_v6, %v3716_v15  ;;  %v3718_v54 = vadd.f32 %v3717_v43, %v3605_v0  ;;  %v3607_v39 = vadd.f32 %v3606_v21, %v3494_v13  ;;  %4372 = vst [vmem:[%s6959_s12 + $0x88] sm:$0xff] %v4976_v24  ;;  %4413 = vst [vmem:[%s7328_s23] sm:$0xff] (%p5515_p6), %v4412_v29 }
 0x290   : > { %v3608_v8 = vpop.f32.mrf.mxu0  ;;  %v3721_v16 = vpop.f32.mrf.mxu1  ;;  %v3510_v10 = vadd.f32 %v7558_v60, %v7557_v40  ;;  %v4432_v40 = vld [vmem:[%s6959_s12 + $0x50] sm:$0xff] (%p5515_p6)  ;;  %v4434_v60 = vld [vmem:[%s6959_s12 + $0x58] sm:$0xff] (%p5515_p6) }
 0x291   : > { %v4978_v34 = vpack.c.bf16 %v4138_v5, %v4137_v2  ;;  %v4078_v46 = vadd.f32 %v7544_v6, %v3718_v54  ;;  %v3720_v4 = vadd.f32 %v3719_v47, %v3607_v39  ;;  %v3609_v52 = vadd.f32 %v3608_v8, %v3496_v20  ;;  %v7559_v2 = vld [vmem:[#allocation7_spill] sm:$0xff]  ;;  %v7563_v20 = vld [vmem:[#allocation34_spill] sm:$0xff]  ;;  %4433 = vst [vmem:[%s7328_s23 + $0x140] sm:$0xff] (%p5515_p6), %v4432_v40 }
 0x292   : > { %v3612_v30 = vpop.f32.mrf.mxu0  ;;  %v3725_v23 = vpop.f32.mrf.mxu1  ;;  %v4141_v9 = vmax.f32 %v4077_v1, 0.0  ;;  %v7560_v6 = vld [vmem:[#allocation31_spill] sm:$0xff]  ;;  %v7561_v1 = vld [vmem:[#allocation32_spill] sm:$0xff]  ;;  %v3514_v8 = vadd.f32 %v7563_v20, %v7562_v57  ;;  %4435 = vst [vmem:[%s7328_s23 + $0x148] sm:$0xff] (%p5515_p6), %v4434_v60 }
 0x293   : > { %4374 = vst [vmem:[%s6959_s12 + $0x98] sm:$0xff] %v4978_v34  ;;  %v4142_v14 = vmax.f32 %v4078_v46, 0.0  ;;  %v3613_v50 = vadd.f32 %v3612_v30, %v3500_v36  ;;  %v4081_v48 = vadd.f32 %v7551_v28, %v3720_v4  ;;  %v3722_v11 = vadd.f32 %v3721_v16, %v3609_v52  ;;  %v7564_v4 = vld [vmem:[#allocation35_spill] sm:$0xff]  ;;  %v7565_v52 = vld [vmem:[#allocation36_spill] sm:$0xff] }
 0x294   : > { %v3614_v26 = vpop.f32.mrf.mxu0  ;;  %v3727_v19 = vpop.f32.mrf.mxu1  ;;  %v3512_v54 = vadd.f32 %v7561_v1, %v7560_v6  ;;  %v3516_v30 = vadd.f32 %v7565_v52, %v7564_v4  ;;  %v4464_v1 = vld [vmem:[%s6959_s12 + $0xd0] sm:$0xff] (%p5515_p6) }
 0x295   : > { %v4980_v35 = vpack.c.bf16 %v4142_v14, %v4141_v9  ;;  %v3726_v22 = vadd.f32 %v3725_v23, %v3613_v50  ;;  %v3615_v27 = vadd.f32 %v3614_v26, %v3502_v56  ;;  %v4082_v44 = vadd.f32 %v7551_v28, %v3722_v11  ;;  %v7566_v56 = vld [vmem:[#allocation8_spill] sm:$0xff]  ;;  %4465 = vst [vmem:[%s7328_s23 + $0x340] sm:$0xff] (%p5515_p6), %v4464_v1  ;;  %v4472_v57 = vld [vmem:[%s6959_s12 + $0xf0] sm:$0xff] (%p5515_p6) }
 0x296   : > { %v3616_v12 = vpop.f32.mrf.mxu0  ;;  %v3729_v45 = vpop.f32.mrf.mxu1  ;;  %v4145_v3 = vmax.f32 %v4081_v48, 0.0  ;;  %4473 = vst [vmem:[%s7328_s23 + $0x3c0] sm:$0xff] (%p5515_p6), %v4472_v57 }
 0x297   : > { %4376 = vst [vmem:[%s6959_s12 + $0xa8] sm:$0xff] %v4980_v35  ;;  %v4085_v31 = vadd.f32 %v7556_v17, %v3726_v22  ;;  %v3728_v55 = vadd.f32 %v3727_v19, %v3615_v27  ;;  %v3617_v37 = vadd.f32 %v3616_v12, %v3504_v61  ;;  %v4146_v42 = vmax.f32 %v4082_v44, 0.0 }
 0x298   : > { %v3618_v33 = vpop.f32.mrf.mxu0  ;;  %v3731_v7 = vpop.f32.mrf.mxu1 }
 0x299   : > { %v4086_v43 = vadd.f32 %v7556_v17, %v3728_v55  ;;  %v3730_v63 = vadd.f32 %v3729_v45, %v3617_v37  ;;  %v3619_v49 = vadd.f32 %v3618_v33, %v3506_v25  ;;  %v4982_v13 = vpack.c.bf16 %v4146_v42, %v4145_v3  ;;  %v4414_v25 = vld [vmem:[%s6959_s12 + $0x8] sm:$0xff] (%p5515_p6)  ;;  %v4416_v17 = vld [vmem:[%s6959_s12 + $0x10] sm:$0xff] (%p5515_p6)  ;;  %v4420_v55 = vld [vmem:[%s6959_s12 + $0x20] sm:$0xff] (%p5515_p6) }
 0x29a   : > { %v4149_v62 = vmax.f32 %v4085_v31, 0.0  ;;  %v3622_v15 = vpop.f32.mrf.mxu0  ;;  %v3735_v0 = vpop.f32.mrf.mxu1  ;;  %v4418_v31 = vld [vmem:[%s6959_s12 + $0x18] sm:$0xff] (%p5515_p6)  ;;  %v4422_v37 = vld [vmem:[%s6959_s12 + $0x28] sm:$0xff] (%p5515_p6)  ;;  %4415 = vst [vmem:[%s7328_s23 + $0x8] sm:$0xff] (%p5515_p6), %v4414_v25  ;;  %4417 = vst [vmem:[%s7328_s23 + $0x40] sm:$0xff] (%p5515_p6), %v4416_v17 }
 0x29b   : > { %v4150_v24 = vmax.f32 %v4086_v43, 0.0  ;;  %v4089_v21 = vadd.f32 %v7559_v2, %v3730_v63  ;;  %v3732_v47 = vadd.f32 %v3731_v7, %v3619_v49  ;;  %v3623_v5 = vadd.f32 %v3622_v15, %v3510_v10  ;;  %4378 = vst [vmem:[%s6959_s12 + $0xb8] sm:$0xff] %v4982_v13  ;;  %4419 = vst [vmem:[%s7328_s23 + $0x48] sm:$0xff] (%p5515_p6), %v4418_v31  ;;  %v4424_v3 = vld [vmem:[%s6959_s12 + $0x30] sm:$0xff] (%p5515_p6)  ;;  %v4426_v42 = vld [vmem:[%s6959_s12 + $0x38] sm:$0xff] (%p5515_p6) }
 0x29c   : > { %v3624_v39 = vpop.f32.mrf.mxu0  ;;  %v3737_v53 = vpop.f32.mrf.mxu1  ;;  %4421 = vst [vmem:[%s7328_s23 + $0x80] sm:$0xff] (%p5515_p6), %v4420_v55  ;;  %4423 = vst [vmem:[%s7328_s23 + $0x88] sm:$0xff] (%p5515_p6), %v4422_v37  ;;  %v4428_v33 = vld [vmem:[%s6959_s12 + $0x40] sm:$0xff] (%p5515_p6)  ;;  %v4430_v7 = vld [vmem:[%s6959_s12 + $0x48] sm:$0xff] (%p5515_p6) }
 0x29d   : > { %v4984_v16 = vpack.c.bf16 %v4150_v24, %v4149_v62  ;;  %v4090_v59 = vadd.f32 %v7559_v2, %v3732_v47  ;;  %v3736_v18 = vadd.f32 %v3735_v0, %v3623_v5  ;;  %v3625_v36 = vadd.f32 %v3624_v39, %v3512_v54  ;;  %4425 = vst [vmem:[%s7328_s23 + $0xc0] sm:$0xff] (%p5515_p6), %v4424_v3  ;;  %v4436_v10 = vld [vmem:[%s6959_s12 + $0x60] sm:$0xff] (%p5515_p6)  ;;  %v4438_v43 = vld [vmem:[%s6959_s12 + $0x68] sm:$0xff] (%p5515_p6)  ;;  %v4440_v63 = vld [vmem:[%s6959_s12 + $0x70] sm:$0xff] (%p5515_p6) }
 0x29e   : > { %v3626_v34 = vpop.f32.mrf.mxu0  ;;  %v3739_v46 = vpop.f32.mrf.mxu1  ;;  %v4153_v23 = vmax.f32 %v4089_v21, 0.0  ;;  %4427 = vst [vmem:[%s7328_s23 + $0xc8] sm:$0xff] (%p5515_p6), %v4426_v42  ;;  %4429 = vst [vmem:[%s7328_s23 + $0x100] sm:$0xff] (%p5515_p6), %v4428_v33  ;;  %v4442_v49 = vld [vmem:[%s6959_s12 + $0x78] sm:$0xff] (%p5515_p6)  ;;  %v4444_v13 = vld [vmem:[%s6959_s12 + $0x80] sm:$0xff] (%p5515_p6) }
 0x29f   : > { %4380 = vst [vmem:[%s6959_s12 + $0xc8] sm:$0xff] %v4984_v16  ;;  %v4154_v51 = vmax.f32 %v4090_v59, 0.0  ;;  %v3627_v41 = vadd.f32 %v3626_v34, %v3514_v8  ;;  %v4093_v9 = vadd.f32 %v7566_v56, %v3736_v18  ;;  %v3738_v14 = vadd.f32 %v3737_v53, %v3625_v36  ;;  %4431 = vst [vmem:[%s7328_s23 + $0x108] sm:$0xff] (%p5515_p6), %v4430_v7  ;;  %v4446_v62 = vld [vmem:[%s6959_s12 + $0x88] sm:$0xff] (%p5515_p6)  ;;  %v4448_v15 = vld [vmem:[%s6959_s12 + $0x90] sm:$0xff] (%p5515_p6) }
 0x2a0   : > { %v3628_v50 = vpop.f32.mrf.mxu0  ;;  %v3741_v19 = vpop.f32.mrf.mxu1  ;;  %4437 = vst [vmem:[%s7328_s23 + $0x180] sm:$0xff] (%p5515_p6), %v4436_v10  ;;  %4439 = vst [vmem:[%s7328_s23 + $0x188] sm:$0xff] (%p5515_p6), %v4438_v43  ;;  %v4450_v0 = vld [vmem:[%s6959_s12 + $0x98] sm:$0xff] (%p5515_p6)  ;;  %v4452_v24 = vld [vmem:[%s6959_s12 + $0xa0] sm:$0xff] (%p5515_p6) }
 0x2a1   : > { %v4986_v28 = vpack.c.bf16 %v4154_v51, %v4153_v23  ;;  %v3740_v48 = vadd.f32 %v3739_v46, %v3627_v41  ;;  %v3629_v11 = vadd.f32 %v3628_v50, %v3516_v30  ;;  %v4094_v26 = vadd.f32 %v7566_v56, %v3738_v14  ;;  %4441 = vst [vmem:[%s7328_s23 + $0x1c0] sm:$0xff] (%p5515_p6), %v4440_v63  ;;  %v4454_v2 = vld [vmem:[%s6959_s12 + $0xa8] sm:$0xff] (%p5515_p6)  ;;  %v4456_v21 = vld [vmem:[%s6959_s12 + $0xb0] sm:$0xff] (%p5515_p6)  ;;  %v4460_v5 = vld [vmem:[%s6959_s12 + $0xc0] sm:$0xff] (%p5515_p6) }
 0x2a2   : > { %v4157_v35 = vmax.f32 %v4093_v9, 0.0  ;;  %4443 = vst [vmem:[%s7328_s23 + $0x1c8] sm:$0xff] (%p5515_p6), %v4442_v49  ;;  %4445 = vst [vmem:[%s7328_s23 + $0x200] sm:$0xff] (%p5515_p6), %v4444_v13  ;;  %v4458_v47 = vld [vmem:[%s6959_s12 + $0xb8] sm:$0xff] (%p5515_p6)  ;;  %v4468_v39 = vld [vmem:[%s6959_s12 + $0xe0] sm:$0xff] (%p5515_p6) }
 0x2a3   : > { %4382 = vst [vmem:[%s6959_s12 + $0xd8] sm:$0xff] %v4986_v28  ;;  %v4097_v32 = vadd.f32 %v7567_v38, %v3740_v48  ;;  %v3742_v61 = vadd.f32 %v3741_v19, %v3629_v11  ;;  %v4158_v22 = vmax.f32 %v4094_v26, 0.0  ;;  %4447 = vst [vmem:[%s7328_s23 + $0x208] sm:$0xff] (%p5515_p6), %v4446_v62 }
 0x2a4   : > { %4449 = vst [vmem:[%s7328_s23 + $0x240] sm:$0xff] (%p5515_p6), %v4448_v15  ;;  %4451 = vst [vmem:[%s7328_s23 + $0x248] sm:$0xff] (%p5515_p6), %v4450_v0 }
 0x2a5   : > { %v4098_v27 = vadd.f32 %v7567_v38, %v3742_v61  ;;  %v4988_v44 = vpack.c.bf16 %v4158_v22, %v4157_v35  ;;  %v4161_v12 = vmax.f32 %v4097_v32, 0.0  ;;  %4453 = vst [vmem:[%s7328_s23 + $0x280] sm:$0xff] (%p5515_p6), %v4452_v24  ;;  %4455 = vst [vmem:[%s7328_s23 + $0x288] sm:$0xff] (%p5515_p6), %v4454_v2 }
 0x2a6   : > { %4457 = vst [vmem:[%s7328_s23 + $0x2c0] sm:$0xff] (%p5515_p6), %v4456_v21  ;;  %4459 = vst [vmem:[%s7328_s23 + $0x2c8] sm:$0xff] (%p5515_p6), %v4458_v47  ;;  %v4462_v6 = vld [vmem:[%s6959_s12 + $0xc8] sm:$0xff] (%p5515_p6) }
 0x2a7   : > { %v4162_v45 = vmax.f32 %v4098_v27, 0.0  ;;  %4384 = vst [vmem:[%s6959_s12 + $0xe8] sm:$0xff] %v4988_v44  ;;  %4393 = sbr.rel (!%p5515_p6) target bundleno = 692 (0x2b4), region = 67  ;;  %4461 = vst [vmem:[%s7328_s23 + $0x300] sm:$0xff] (%p5515_p6), %v4460_v5 }
 0x2a8   : > { %4463 = vst [vmem:[%s7328_s23 + $0x308] sm:$0xff] (%p5515_p6), %v4462_v6  ;;  %4469 = vst [vmem:[%s7328_s23 + $0x380] sm:$0xff] (%p5515_p6), %v4468_v39 }
 0x2a9   : > { %v4990_v58 = vpack.c.bf16 %v4162_v45, %v4161_v12 }
 0x2aa   : > { %v4466_v54 = vld [vmem:[%s6959_s12 + $0xd8] sm:$0xff] (%p5515_p6) }
 0x2ab   : > { %4386 = vst [vmem:[%s6959_s12 + $0xf8] sm:$0xff] %v4990_v58  ;;  %4467 = vst [vmem:[%s7328_s23 + $0x348] sm:$0xff] (%p5515_p6), %v4466_v54 }
 0x2ae   : > { %v4470_v53 = vld [vmem:[%s6959_s12 + $0xe8] sm:$0xff] }
 0x2af   : > { %4471 = vst [vmem:[%s7328_s23 + $0x388] sm:$0xff] %v4470_v53 }
 0x2b2   : > { %v4474_v20 = vld [vmem:[%s6959_s12 + $0xf8] sm:$0xff] }
 0x2b3   : > { %4475 = vst [vmem:[%s7328_s23 + $0x3c8] sm:$0xff] %v4474_v20 }
 0x2b4 PF: > { %s13_s16 = sadd.s32 1, %s5457_s16   ;;  %s7568_s12 = smov %s5445_s13 }
 0x2b5   : > { %p10_p11 = scmp.ge.s32.totalorder %s13_s16, 6   ;;  %s7569_s13 = smov %s5520_s22 }
 0x2b6   : > { %s7570_s14 = smov %s5453_s15  ;;  %s7571_s15 = smov %s7573_s17 }
 0x2b7   :  { %12 = sbr.rel (!%p10_p11) target bundleno = 3 (0x3), region = 127 }

// kernel: conv_vae_forward.21
= control target key start
LH: loop header
LB: loop body
LE: loop exit
PB: predicated region body
PF: predicated region fallthrough
CT: control target
= control target key end

     0   :  { %s2688_s0 = inlined_call_operand.vmem [shape: bf16[16,131072], index: 0, kind: input, shape index: {}]   ;;  %s2689_s1 = inlined_call_operand.vmem [shape: bf16[131072,256], index: 1, kind: input, shape index: {}]   ;;  %s2690_s2 = inlined_call_operand.vmem [shape: f32[1,256], index: 2, kind: input, shape index: {}]   ;;  %s2691_s3 = inlined_call_operand.vmem [shape: f32[16,256], index: 3, kind: output, shape index: {}]  }
   0x1   :  { %2693 = sst [smem:[#allocation7_spill]] %s2688_s0 }
   0x2   :  { %2694 = sst [smem:[#allocation8_spill]] %s2689_s1 }
   0x3   :  { %s2173_s12 = smov 0   ;;  %s2175_s13 = smov 0  }
   0x4   :  { %s2177_s14 = smov 0   ;;  %s2179_s15 = smov 0  }
   0x5   :  { %s2181_s16 = smov 0   ;;  %s2183_s17 = smov 0  }
   0x6   :  { %s2185_s18 = smov 0   ;;  %s2187_s19 = smov 0  }
   0x7   :  { %s2189_s20 = smov 0   ;;  %s2191_s21 = smov 0  }
   0x8   :  { %s2193_s22 = smov 0  }
   0x9 LB: > { %s1727_s23 = sadd.s32 4294967295, %s2150_s22   ;;  %s25_s24 = sadd.s32 1, %s2142_s20  ;;  %s2150_s22 = sphi %s2193_s22, %s13_s22   ;;  %s2146_s21 = sphi %s2191_s21, %s2711_s21   ;;  %s2142_s20 = sphi %s2189_s20, %s2710_s20   ;;  %s2138_s19 = sphi %s2187_s19, %s2709_s19   ;;  %s2134_s18 = sphi %s2185_s18, %s2708_s18   ;;  %s2130_s17 = sphi %s2183_s17, %s2707_s17   ;;  %s2126_s16 = sphi %s2181_s16, %s2706_s16   ;;  %s2122_s15 = sphi %s2179_s15, %s2705_s15   ;;  %s2118_s14 = sphi %s2177_s14, %s2704_s14   ;;  %s2114_s13 = sphi %s2175_s13, %s2703_s13   ;;  %s2110_s12 = sphi %s2173_s12, %s2702_s12  }
   0xa   : > { %p26_p0 = scmp.ge.s32.totalorder %s25_s24, 128  ;;  %s28_s25 = sadd.s32 1, %s2146_s21 }
   0xb   : > { %s41_s26 = sadd.s32 1, %s2130_s17  ;;  %p48_p1 = scmp.ne.s32.totalorder %s2130_s17, %s2126_s16 }
   0xc   : > { %s2713_s24 = smov (%p26_p0, %s25_s24), 0  ;;  %s2715_s25 = smov (!%p26_p0, %s28_s25), %s2146_s21 }
   0xd   : > { %s37_s27 = ssub.s32 %s2142_s20, %s2713_s24  ;;  %p49_p2 = scmp.eq.s32.totalorder %s2150_s22, 0 }
   0xe   : > { %p30_p3 = scmp.ge.s32.totalorder %s2715_s25, 2  ;;  %p39_p4 = scmp.eq.s32.totalorder %s37_s27, 0 }
   0xf   : > { %p2240_p5 = por %p49_p2, %p48_p1  ;;  %s69_s29 = sadd.s32 1, %s2122_s15 }
  0x10   : > { %s2717_s25 = smov (%p30_p3, %s2715_s25), 0  ;;  %p76_p6 = scmp.ne.s32.totalorder %s2122_s15, %s2118_s14 }
  0x11   : > { %2696 = sst [smem:[#allocation6_spill]] %s2717_s25  ;;  %s65_s4 = ssub.s32 %s2146_s21, %s2717_s25 }
  0x12   : > { %s2248_s30 = scalar_select %p39_p4, %s2130_s17, %s41_s26  }
  0x13   : > { %s66_s5 = sor.u32 %s65_s4, %s37_s27  ;;  %p121_p7 = scmp.eq.s32.totalorder %s65_s4, 0 }
  0x14   : > { %p67_p8 = scmp.eq.s32.totalorder %s66_s5, 0  ;;  %p2254_p9 = por %p76_p6, %p49_p2 }
  0x15   : > { %s123_s7 = sadd.s32 1, %s2114_s13  ;;  %p133_p10 = scmp.ne.s32.totalorder %s2114_s13, %s2110_s12 }
  0x16   : > { %s2262_s8 = scalar_select %p67_p8, %s2122_s15, %s69_s29  }
  0x17   : > { %s2265_s9 = scalar_select %p121_p7, %s2114_s13, %s123_s7  }
  0x18   : > { %p134_p11 = scmp.eq.s32.totalorder %s1727_s23, 255  ;;  %p1730_p13 = scmp.ge.s32.totalorder %s2150_s22, 256 }
  0x1a   : > { %p2267_p12 = por %p134_p11, %p133_p10  ;;  %156 = sbr.rel (%p1730_p13) target bundleno = 140 (0x8c), region = 16 }
  0x1f   : > { %159 = sbr.rel (!%p2240_p5) target bundleno = 45 (0x2d), region = 20  ;;  %s161_s11 = sand.u32 (%p2240_p5), 1, %s2130_s17  }
  0x20   : > { %s1821_s26 = sshll.u32 (%p2240_p5), %s2142_s20, 5  ;;  %s1731_s27 = sshll.u32 (%p2240_p5), %s161_s11, 6 }
  0x21   : > { %s2699_s0 = sld [smem:[#allocation7_spill]] (%p2240_p5)  ;;  %s163_s23 = scalar_lea.vmem (%p2240_p5), [#allocation3], %s1731_s27 }
  0x27   : > { %s169_s5 = scalar_lea.vmem %s2699_s0, %s1821_s26 }
  0x28   : > { %v182_v0 = vld [vmem:[%s169_s5] sm:$0xff]  ;;  %v184_v1 = vld [vmem:[%s169_s5 + $0x8] sm:$0xff]  ;;  %v186_v2 = vld [vmem:[%s169_s5 + $0x10] sm:$0xff] }
  0x29   : > { %183 = vst [vmem:[%s163_s23] sm:$0xff] %v182_v0  ;;  %185 = vst [vmem:[%s163_s23 + $0x8] sm:$0xff] %v184_v1  ;;  %v188_v3 = vld [vmem:[%s169_s5 + $0x18] sm:$0xff]  ;;  %v190_v4 = vld [vmem:[%s169_s5 + $0x1000] sm:$0xff] }
  0x2a   : > { %187 = vst [vmem:[%s163_s23 + $0x10] sm:$0xff] %v186_v2  ;;  %v192_v5 = vld [vmem:[%s169_s5 + $0x1008] sm:$0xff]  ;;  %189 = vst [vmem:[%s163_s23 + $0x18] sm:$0xff] %v188_v3  ;;  %v194_v6 = vld [vmem:[%s169_s5 + $0x1010] sm:$0xff] }
  0x2b   : > { %191 = vst [vmem:[%s163_s23 + $0x20] sm:$0xff] %v190_v4  ;;  %193 = vst [vmem:[%s163_s23 + $0x28] sm:$0xff] %v192_v5  ;;  %v196_v7 = vld [vmem:[%s169_s5 + $0x1018] sm:$0xff] }
  0x2c   : > { %195 = vst [vmem:[%s163_s23 + $0x30] sm:$0xff] %v194_v6  ;;  %197 = vst [vmem:[%s163_s23 + $0x38] sm:$0xff] %v196_v7 }
  0x2d PF: > { %203 = sbr.rel (!%p2254_p9) target bundleno = 140 (0x8c), region = 43  ;;  %s205_s28 = sand.u32 (%p2254_p9), 1, %s2122_s15  }
  0x2e   : > { %s1822_s7 = sshll.u32 (%p2254_p9), %s2142_s20, 8  ;;  %s1734_s11 = sshll.u32 (%p2254_p9), %s205_s28, 9 }
  0x2f   : > { %s210_s26 = sadd.s32 (%p2254_p9), %s2146_s21, %s1822_s7  ;;  %s2700_s1 = sld [smem:[#allocation8_spill]] (%p2254_p9) }
  0x30   : > { %s1737_s27 = sshll.u32 (%p2254_p9), %s210_s26, 2  ;;  %s2292_s6 = scalar_lea.vmem (%p2254_p9), [#allocation4], %s1734_s11 }
  0x35   : > { %s2287_s0 = scalar_lea.vmem %s2700_s1, %s1737_s27 }
  0x36   : > { %v229_v8 = vld [vmem:[%s2287_s0] sm:$0xf]  ;;  %v231_v9 = vld [vmem:[%s2287_s0 + $0x8] sm:$0xf]  ;;  %v233_v10 = vld [vmem:[%s2287_s0 + $0x10] sm:$0xf] }
  0x37   : > { %230 = vst [vmem:[%s2292_s6] sm:$0xf] %v229_v8  ;;  %232 = vst [vmem:[%s2292_s6 + $0x4] sm:$0xf] %v231_v9  ;;  %v235_v11 = vld [vmem:[%s2287_s0 + $0x18] sm:$0xf] }
  0x38   : > { %234 = vst [vmem:[%s2292_s6 + $0x8] sm:$0xf] %v233_v10  ;;  %v237_v12 = vld [vmem:[%s2287_s0 + $0x20] sm:$0xf]  ;;  %v239_v13 = vld [vmem:[%s2287_s0 + $0x28] sm:$0xf] }
  0x39   : > { %236 = vst [vmem:[%s2292_s6 + $0xc] sm:$0xf] %v235_v11  ;;  %238 = vst [vmem:[%s2292_s6 + $0x10] sm:$0xf] %v237_v12  ;;  %v241_v14 = vld [vmem:[%s2287_s0 + $0x30] sm:$0xf] }
  0x3a   : > { %240 = vst [vmem:[%s2292_s6 + $0x14] sm:$0xf] %v239_v13  ;;  %v243_v15 = vld [vmem:[%s2287_s0 + $0x38] sm:$0xf]  ;;  %v245_v16 = vld [vmem:[%s2287_s0 + $0x40] sm:$0xf] }
  0x3b   : > { %242 = vst [vmem:[%s2292_s6 + $0x18] sm:$0xf] %v241_v14  ;;  %244 = vst [vmem:[%s2292_s6 + $0x1c] sm:$0xf] %v243_v15  ;;  %v247_v17 = vld [vmem:[%s2287_s0 + $0x48] sm:$0xf] }
  0x3c   : > { %246 = vst [vmem:[%s2292_s6 + $0x20] sm:$0xf] %v245_v16  ;;  %v249_v18 = vld [vmem:[%s2287_s0 + $0x50] sm:$0xf]  ;;  %v251_v19 = vld [vmem:[%s2287_s0 + $0x58] sm:$0xf] }
  0x3d   : > { %248 = vst [vmem:[%s2292_s6 + $0x24] sm:$0xf] %v247_v17  ;;  %250 = vst [vmem:[%s2292_s6 + $0x28] sm:$0xf] %v249_v18  ;;  %v253_v20 = vld [vmem:[%s2287_s0 + $0x60] sm:$0xf] }
  0x3e   : > { %252 = vst [vmem:[%s2292_s6 + $0x2c] sm:$0xf] %v251_v19  ;;  %v255_v21 = vld [vmem:[%s2287_s0 + $0x68] sm:$0xf]  ;;  %v257_v22 = vld [vmem:[%s2287_s0 + $0x70] sm:$0xf] }
  0x3f   : > { %254 = vst [vmem:[%s2292_s6 + $0x30] sm:$0xf] %v253_v20  ;;  %256 = vst [vmem:[%s2292_s6 + $0x34] sm:$0xf] %v255_v21  ;;  %v259_v23 = vld [vmem:[%s2287_s0 + $0x78] sm:$0xf] }
  0x40   : > { %258 = vst [vmem:[%s2292_s6 + $0x38] sm:$0xf] %v257_v22  ;;  %v261_v24 = vld [vmem:[%s2287_s0 + $0x80] sm:$0xf]  ;;  %v263_v25 = vld [vmem:[%s2287_s0 + $0x88] sm:$0xf] }
  0x41   : > { %260 = vst [vmem:[%s2292_s6 + $0x3c] sm:$0xf] %v259_v23  ;;  %262 = vst [vmem:[%s2292_s6 + $0x40] sm:$0xf] %v261_v24  ;;  %v265_v26 = vld [vmem:[%s2287_s0 + $0x90] sm:$0xf] }
  0x42   : > { %264 = vst [vmem:[%s2292_s6 + $0x44] sm:$0xf] %v263_v25  ;;  %v267_v27 = vld [vmem:[%s2287_s0 + $0x98] sm:$0xf]  ;;  %v269_v28 = vld [vmem:[%s2287_s0 + $0xa0] sm:$0xf] }
  0x43   : > { %266 = vst [vmem:[%s2292_s6 + $0x48] sm:$0xf] %v265_v26  ;;  %268 = vst [vmem:[%s2292_s6 + $0x4c] sm:$0xf] %v267_v27  ;;  %v271_v29 = vld [vmem:[%s2287_s0 + $0xa8] sm:$0xf] }
  0x44   : > { %270 = vst [vmem:[%s2292_s6 + $0x50] sm:$0xf] %v269_v28  ;;  %v273_v30 = vld [vmem:[%s2287_s0 + $0xb0] sm:$0xf]  ;;  %v275_v31 = vld [vmem:[%s2287_s0 + $0xb8] sm:$0xf] }
  0x45   : > { %272 = vst [vmem:[%s2292_s6 + $0x54] sm:$0xf] %v271_v29  ;;  %274 = vst [vmem:[%s2292_s6 + $0x58] sm:$0xf] %v273_v30  ;;  %v277_v32 = vld [vmem:[%s2287_s0 + $0xc0] sm:$0xf] }
  0x46   : > { %276 = vst [vmem:[%s2292_s6 + $0x5c] sm:$0xf] %v275_v31  ;;  %v279_v33 = vld [vmem:[%s2287_s0 + $0xc8] sm:$0xf]  ;;  %v281_v34 = vld [vmem:[%s2287_s0 + $0xd0] sm:$0xf] }
  0x47   : > { %278 = vst [vmem:[%s2292_s6 + $0x60] sm:$0xf] %v277_v32  ;;  %280 = vst [vmem:[%s2292_s6 + $0x64] sm:$0xf] %v279_v33  ;;  %v283_v35 = vld [vmem:[%s2287_s0 + $0xd8] sm:$0xf] }
  0x48   : > { %282 = vst [vmem:[%s2292_s6 + $0x68] sm:$0xf] %v281_v34  ;;  %v285_v36 = vld [vmem:[%s2287_s0 + $0xe0] sm:$0xf]  ;;  %v287_v37 = vld [vmem:[%s2287_s0 + $0xe8] sm:$0xf] }
  0x49   : > { %284 = vst [vmem:[%s2292_s6 + $0x6c] sm:$0xf] %v283_v35  ;;  %286 = vst [vmem:[%s2292_s6 + $0x70] sm:$0xf] %v285_v36  ;;  %v289_v38 = vld [vmem:[%s2287_s0 + $0xf0] sm:$0xf] }
  0x4a   : > { %288 = vst [vmem:[%s2292_s6 + $0x74] sm:$0xf] %v287_v37  ;;  %v291_v39 = vld [vmem:[%s2287_s0 + $0xf8] sm:$0xf]  ;;  %v293_v40 = vld [vmem:[%s2287_s0 + $0x100] sm:$0xf] }
  0x4b   : > { %290 = vst [vmem:[%s2292_s6 + $0x78] sm:$0xf] %v289_v38  ;;  %292 = vst [vmem:[%s2292_s6 + $0x7c] sm:$0xf] %v291_v39  ;;  %v295_v41 = vld [vmem:[%s2287_s0 + $0x108] sm:$0xf] }
  0x4c   : > { %294 = vst [vmem:[%s2292_s6 + $0x80] sm:$0xf] %v293_v40  ;;  %v297_v42 = vld [vmem:[%s2287_s0 + $0x110] sm:$0xf]  ;;  %v299_v43 = vld [vmem:[%s2287_s0 + $0x118] sm:$0xf] }
  0x4d   : > { %296 = vst [vmem:[%s2292_s6 + $0x84] sm:$0xf] %v295_v41  ;;  %298 = vst [vmem:[%s2292_s6 + $0x88] sm:$0xf] %v297_v42  ;;  %v301_v44 = vld [vmem:[%s2287_s0 + $0x120] sm:$0xf] }
  0x4e   : > { %300 = vst [vmem:[%s2292_s6 + $0x8c] sm:$0xf] %v299_v43  ;;  %v303_v45 = vld [vmem:[%s2287_s0 + $0x128] sm:$0xf]  ;;  %v305_v46 = vld [vmem:[%s2287_s0 + $0x130] sm:$0xf] }
  0x4f   : > { %302 = vst [vmem:[%s2292_s6 + $0x90] sm:$0xf] %v301_v44  ;;  %304 = vst [vmem:[%s2292_s6 + $0x94] sm:$0xf] %v303_v45  ;;  %v307_v47 = vld [vmem:[%s2287_s0 + $0x138] sm:$0xf] }
  0x50   : > { %306 = vst [vmem:[%s2292_s6 + $0x98] sm:$0xf] %v305_v46  ;;  %v309_v48 = vld [vmem:[%s2287_s0 + $0x140] sm:$0xf]  ;;  %v311_v49 = vld [vmem:[%s2287_s0 + $0x148] sm:$0xf] }
  0x51   : > { %308 = vst [vmem:[%s2292_s6 + $0x9c] sm:$0xf] %v307_v47  ;;  %310 = vst [vmem:[%s2292_s6 + $0xa0] sm:$0xf] %v309_v48  ;;  %v313_v50 = vld [vmem:[%s2287_s0 + $0x150] sm:$0xf] }
  0x52   : > { %312 = vst [vmem:[%s2292_s6 + $0xa4] sm:$0xf] %v311_v49  ;;  %v315_v51 = vld [vmem:[%s2287_s0 + $0x158] sm:$0xf]  ;;  %v317_v52 = vld [vmem:[%s2287_s0 + $0x160] sm:$0xf] }
  0x53   : > { %314 = vst [vmem:[%s2292_s6 + $0xa8] sm:$0xf] %v313_v50  ;;  %316 = vst [vmem:[%s2292_s6 + $0xac] sm:$0xf] %v315_v51  ;;  %v319_v53 = vld [vmem:[%s2287_s0 + $0x168] sm:$0xf] }
  0x54   : > { %318 = vst [vmem:[%s2292_s6 + $0xb0] sm:$0xf] %v317_v52  ;;  %v321_v54 = vld [vmem:[%s2287_s0 + $0x170] sm:$0xf]  ;;  %v323_v55 = vld [vmem:[%s2287_s0 + $0x178] sm:$0xf] }
  0x55   : > { %320 = vst [vmem:[%s2292_s6 + $0xb4] sm:$0xf] %v319_v53  ;;  %322 = vst [vmem:[%s2292_s6 + $0xb8] sm:$0xf] %v321_v54  ;;  %v325_v56 = vld [vmem:[%s2287_s0 + $0x180] sm:$0xf] }
  0x56   : > { %324 = vst [vmem:[%s2292_s6 + $0xbc] sm:$0xf] %v323_v55  ;;  %v327_v57 = vld [vmem:[%s2287_s0 + $0x188] sm:$0xf]  ;;  %v329_v58 = vld [vmem:[%s2287_s0 + $0x190] sm:$0xf] }
  0x57   : > { %326 = vst [vmem:[%s2292_s6 + $0xc0] sm:$0xf] %v325_v56  ;;  %328 = vst [vmem:[%s2292_s6 + $0xc4] sm:$0xf] %v327_v57  ;;  %v331_v59 = vld [vmem:[%s2287_s0 + $0x198] sm:$0xf] }
  0x58   : > { %330 = vst [vmem:[%s2292_s6 + $0xc8] sm:$0xf] %v329_v58  ;;  %v333_v60 = vld [vmem:[%s2287_s0 + $0x1a0] sm:$0xf]  ;;  %v335_v61 = vld [vmem:[%s2287_s0 + $0x1a8] sm:$0xf] }
  0x59   : > { %332 = vst [vmem:[%s2292_s6 + $0xcc] sm:$0xf] %v331_v59  ;;  %334 = vst [vmem:[%s2292_s6 + $0xd0] sm:$0xf] %v333_v60  ;;  %v337_v62 = vld [vmem:[%s2287_s0 + $0x1b0] sm:$0xf] }
  0x5a   : > { %336 = vst [vmem:[%s2292_s6 + $0xd4] sm:$0xf] %v335_v61  ;;  %v339_v63 = vld [vmem:[%s2287_s0 + $0x1b8] sm:$0xf]  ;;  %v341_v0 = vld [vmem:[%s2287_s0 + $0x1c0] sm:$0xf] }
  0x5b   : > { %338 = vst [vmem:[%s2292_s6 + $0xd8] sm:$0xf] %v337_v62  ;;  %340 = vst [vmem:[%s2292_s6 + $0xdc] sm:$0xf] %v339_v63  ;;  %v343_v1 = vld [vmem:[%s2287_s0 + $0x1c8] sm:$0xf] }
  0x5c   : > { %342 = vst [vmem:[%s2292_s6 + $0xe0] sm:$0xf] %v341_v0  ;;  %v345_v2 = vld [vmem:[%s2287_s0 + $0x1d0] sm:$0xf]  ;;  %v347_v3 = vld [vmem:[%s2287_s0 + $0x1d8] sm:$0xf] }
  0x5d   : > { %344 = vst [vmem:[%s2292_s6 + $0xe4] sm:$0xf] %v343_v1  ;;  %346 = vst [vmem:[%s2292_s6 + $0xe8] sm:$0xf] %v345_v2  ;;  %v349_v4 = vld [vmem:[%s2287_s0 + $0x1e0] sm:$0xf] }
  0x5e   : > { %348 = vst [vmem:[%s2292_s6 + $0xec] sm:$0xf] %v347_v3  ;;  %v351_v5 = vld [vmem:[%s2287_s0 + $0x1e8] sm:$0xf]  ;;  %v353_v6 = vld [vmem:[%s2287_s0 + $0x1f0] sm:$0xf] }
  0x5f   : > { %350 = vst [vmem:[%s2292_s6 + $0xf0] sm:$0xf] %v349_v4  ;;  %352 = vst [vmem:[%s2292_s6 + $0xf4] sm:$0xf] %v351_v5  ;;  %v355_v7 = vld [vmem:[%s2287_s0 + $0x1f8] sm:$0xf] }
  0x60   : > { %354 = vst [vmem:[%s2292_s6 + $0xf8] sm:$0xf] %v353_v6  ;;  %v357_v8 = vld [vmem:[%s2287_s0 + $0x200] sm:$0xf]  ;;  %v359_v9 = vld [vmem:[%s2287_s0 + $0x208] sm:$0xf] }
  0x61   : > { %356 = vst [vmem:[%s2292_s6 + $0xfc] sm:$0xf] %v355_v7  ;;  %358 = vst [vmem:[%s2292_s6 + $0x100] sm:$0xf] %v357_v8  ;;  %v361_v10 = vld [vmem:[%s2287_s0 + $0x210] sm:$0xf] }
  0x62   : > { %360 = vst [vmem:[%s2292_s6 + $0x104] sm:$0xf] %v359_v9  ;;  %v363_v11 = vld [vmem:[%s2287_s0 + $0x218] sm:$0xf]  ;;  %v365_v12 = vld [vmem:[%s2287_s0 + $0x220] sm:$0xf] }
  0x63   : > { %362 = vst [vmem:[%s2292_s6 + $0x108] sm:$0xf] %v361_v10  ;;  %364 = vst [vmem:[%s2292_s6 + $0x10c] sm:$0xf] %v363_v11  ;;  %v367_v13 = vld [vmem:[%s2287_s0 + $0x228] sm:$0xf] }
  0x64   : > { %366 = vst [vmem:[%s2292_s6 + $0x110] sm:$0xf] %v365_v12  ;;  %v369_v14 = vld [vmem:[%s2287_s0 + $0x230] sm:$0xf]  ;;  %v371_v15 = vld [vmem:[%s2287_s0 + $0x238] sm:$0xf] }
  0x65   : > { %368 = vst [vmem:[%s2292_s6 + $0x114] sm:$0xf] %v367_v13  ;;  %370 = vst [vmem:[%s2292_s6 + $0x118] sm:$0xf] %v369_v14  ;;  %v373_v16 = vld [vmem:[%s2287_s0 + $0x240] sm:$0xf] }
  0x66   : > { %372 = vst [vmem:[%s2292_s6 + $0x11c] sm:$0xf] %v371_v15  ;;  %v375_v17 = vld [vmem:[%s2287_s0 + $0x248] sm:$0xf]  ;;  %v377_v18 = vld [vmem:[%s2287_s0 + $0x250] sm:$0xf] }
  0x67   : > { %374 = vst [vmem:[%s2292_s6 + $0x120] sm:$0xf] %v373_v16  ;;  %376 = vst [vmem:[%s2292_s6 + $0x124] sm:$0xf] %v375_v17  ;;  %v379_v19 = vld [vmem:[%s2287_s0 + $0x258] sm:$0xf] }
  0x68   : > { %378 = vst [vmem:[%s2292_s6 + $0x128] sm:$0xf] %v377_v18  ;;  %v381_v20 = vld [vmem:[%s2287_s0 + $0x260] sm:$0xf]  ;;  %v383_v21 = vld [vmem:[%s2287_s0 + $0x268] sm:$0xf] }
  0x69   : > { %380 = vst [vmem:[%s2292_s6 + $0x12c] sm:$0xf] %v379_v19  ;;  %382 = vst [vmem:[%s2292_s6 + $0x130] sm:$0xf] %v381_v20  ;;  %v385_v22 = vld [vmem:[%s2287_s0 + $0x270] sm:$0xf] }
  0x6a   : > { %384 = vst [vmem:[%s2292_s6 + $0x134] sm:$0xf] %v383_v21  ;;  %v387_v23 = vld [vmem:[%s2287_s0 + $0x278] sm:$0xf]  ;;  %v389_v24 = vld [vmem:[%s2287_s0 + $0x280] sm:$0xf] }
  0x6b   : > { %386 = vst [vmem:[%s2292_s6 + $0x138] sm:$0xf] %v385_v22  ;;  %388 = vst [vmem:[%s2292_s6 + $0x13c] sm:$0xf] %v387_v23  ;;  %v391_v25 = vld [vmem:[%s2287_s0 + $0x288] sm:$0xf] }
  0x6c   : > { %390 = vst [vmem:[%s2292_s6 + $0x140] sm:$0xf] %v389_v24  ;;  %v393_v26 = vld [vmem:[%s2287_s0 + $0x290] sm:$0xf]  ;;  %v395_v27 = vld [vmem:[%s2287_s0 + $0x298] sm:$0xf] }
  0x6d   : > { %392 = vst [vmem:[%s2292_s6 + $0x144] sm:$0xf] %v391_v25  ;;  %394 = vst [vmem:[%s2292_s6 + $0x148] sm:$0xf] %v393_v26  ;;  %v397_v28 = vld [vmem:[%s2287_s0 + $0x2a0] sm:$0xf] }
  0x6e   : > { %396 = vst [vmem:[%s2292_s6 + $0x14c] sm:$0xf] %v395_v27  ;;  %v399_v29 = vld [vmem:[%s2287_s0 + $0x2a8] sm:$0xf]  ;;  %v401_v30 = vld [vmem:[%s2287_s0 + $0x2b0] sm:$0xf] }
  0x6f   : > { %398 = vst [vmem:[%s2292_s6 + $0x150] sm:$0xf] %v397_v28  ;;  %400 = vst [vmem:[%s2292_s6 + $0x154] sm:$0xf] %v399_v29  ;;  %v403_v31 = vld [vmem:[%s2287_s0 + $0x2b8] sm:$0xf] }
  0x70   : > { %402 = vst [vmem:[%s2292_s6 + $0x158] sm:$0xf] %v401_v30  ;;  %v405_v32 = vld [vmem:[%s2287_s0 + $0x2c0] sm:$0xf]  ;;  %v407_v33 = vld [vmem:[%s2287_s0 + $0x2c8] sm:$0xf] }
  0x71   : > { %404 = vst [vmem:[%s2292_s6 + $0x15c] sm:$0xf] %v403_v31  ;;  %406 = vst [vmem:[%s2292_s6 + $0x160] sm:$0xf] %v405_v32  ;;  %v409_v34 = vld [vmem:[%s2287_s0 + $0x2d0] sm:$0xf] }
  0x72   : > { %408 = vst [vmem:[%s2292_s6 + $0x164] sm:$0xf] %v407_v33  ;;  %v411_v35 = vld [vmem:[%s2287_s0 + $0x2d8] sm:$0xf]  ;;  %v413_v36 = vld [vmem:[%s2287_s0 + $0x2e0] sm:$0xf] }
  0x73   : > { %410 = vst [vmem:[%s2292_s6 + $0x168] sm:$0xf] %v409_v34  ;;  %412 = vst [vmem:[%s2292_s6 + $0x16c] sm:$0xf] %v411_v35  ;;  %v415_v37 = vld [vmem:[%s2287_s0 + $0x2e8] sm:$0xf] }
  0x74   : > { %414 = vst [vmem:[%s2292_s6 + $0x170] sm:$0xf] %v413_v36  ;;  %v417_v38 = vld [vmem:[%s2287_s0 + $0x2f0] sm:$0xf]  ;;  %v419_v39 = vld [vmem:[%s2287_s0 + $0x2f8] sm:$0xf] }
  0x75   : > { %416 = vst [vmem:[%s2292_s6 + $0x174] sm:$0xf] %v415_v37  ;;  %418 = vst [vmem:[%s2292_s6 + $0x178] sm:$0xf] %v417_v38  ;;  %v421_v40 = vld [vmem:[%s2287_s0 + $0x300] sm:$0xf] }
  0x76   : > { %420 = vst [vmem:[%s2292_s6 + $0x17c] sm:$0xf] %v419_v39  ;;  %v423_v41 = vld [vmem:[%s2287_s0 + $0x308] sm:$0xf]  ;;  %v425_v42 = vld [vmem:[%s2287_s0 + $0x310] sm:$0xf] }
  0x77   : > { %422 = vst [vmem:[%s2292_s6 + $0x180] sm:$0xf] %v421_v40  ;;  %424 = vst [vmem:[%s2292_s6 + $0x184] sm:$0xf] %v423_v41  ;;  %v427_v43 = vld [vmem:[%s2287_s0 + $0x318] sm:$0xf] }
  0x78   : > { %426 = vst [vmem:[%s2292_s6 + $0x188] sm:$0xf] %v425_v42  ;;  %v429_v44 = vld [vmem:[%s2287_s0 + $0x320] sm:$0xf]  ;;  %v431_v45 = vld [vmem:[%s2287_s0 + $0x328] sm:$0xf] }
  0x79   : > { %428 = vst [vmem:[%s2292_s6 + $0x18c] sm:$0xf] %v427_v43  ;;  %430 = vst [vmem:[%s2292_s6 + $0x190] sm:$0xf] %v429_v44  ;;  %v433_v46 = vld [vmem:[%s2287_s0 + $0x330] sm:$0xf] }
  0x7a   : > { %432 = vst [vmem:[%s2292_s6 + $0x194] sm:$0xf] %v431_v45  ;;  %v435_v47 = vld [vmem:[%s2287_s0 + $0x338] sm:$0xf]  ;;  %v437_v48 = vld [vmem:[%s2287_s0 + $0x340] sm:$0xf] }
  0x7b   : > { %434 = vst [vmem:[%s2292_s6 + $0x198] sm:$0xf] %v433_v46  ;;  %436 = vst [vmem:[%s2292_s6 + $0x19c] sm:$0xf] %v435_v47  ;;  %v439_v49 = vld [vmem:[%s2287_s0 + $0x348] sm:$0xf] }
  0x7c   : > { %438 = vst [vmem:[%s2292_s6 + $0x1a0] sm:$0xf] %v437_v48  ;;  %v441_v50 = vld [vmem:[%s2287_s0 + $0x350] sm:$0xf]  ;;  %v443_v51 = vld [vmem:[%s2287_s0 + $0x358] sm:$0xf] }
  0x7d   : > { %440 = vst [vmem:[%s2292_s6 + $0x1a4] sm:$0xf] %v439_v49  ;;  %442 = vst [vmem:[%s2292_s6 + $0x1a8] sm:$0xf] %v441_v50  ;;  %v445_v52 = vld [vmem:[%s2287_s0 + $0x360] sm:$0xf] }
  0x7e   : > { %444 = vst [vmem:[%s2292_s6 + $0x1ac] sm:$0xf] %v443_v51  ;;  %v447_v53 = vld [vmem:[%s2287_s0 + $0x368] sm:$0xf]  ;;  %v449_v54 = vld [vmem:[%s2287_s0 + $0x370] sm:$0xf] }
  0x7f   : > { %446 = vst [vmem:[%s2292_s6 + $0x1b0] sm:$0xf] %v445_v52  ;;  %448 = vst [vmem:[%s2292_s6 + $0x1b4] sm:$0xf] %v447_v53  ;;  %v451_v55 = vld [vmem:[%s2287_s0 + $0x378] sm:$0xf] }
  0x80   : > { %450 = vst [vmem:[%s2292_s6 + $0x1b8] sm:$0xf] %v449_v54  ;;  %v453_v56 = vld [vmem:[%s2287_s0 + $0x380] sm:$0xf]  ;;  %v455_v57 = vld [vmem:[%s2287_s0 + $0x388] sm:$0xf] }
  0x81   : > { %452 = vst [vmem:[%s2292_s6 + $0x1bc] sm:$0xf] %v451_v55  ;;  %454 = vst [vmem:[%s2292_s6 + $0x1c0] sm:$0xf] %v453_v56  ;;  %v457_v58 = vld [vmem:[%s2287_s0 + $0x390] sm:$0xf] }
  0x82   : > { %456 = vst [vmem:[%s2292_s6 + $0x1c4] sm:$0xf] %v455_v57  ;;  %v459_v59 = vld [vmem:[%s2287_s0 + $0x398] sm:$0xf]  ;;  %v461_v60 = vld [vmem:[%s2287_s0 + $0x3a0] sm:$0xf] }
  0x83   : > { %458 = vst [vmem:[%s2292_s6 + $0x1c8] sm:$0xf] %v457_v58  ;;  %460 = vst [vmem:[%s2292_s6 + $0x1cc] sm:$0xf] %v459_v59  ;;  %v463_v61 = vld [vmem:[%s2287_s0 + $0x3a8] sm:$0xf] }
  0x84   : > { %462 = vst [vmem:[%s2292_s6 + $0x1d0] sm:$0xf] %v461_v60  ;;  %v465_v62 = vld [vmem:[%s2287_s0 + $0x3b0] sm:$0xf]  ;;  %v467_v63 = vld [vmem:[%s2287_s0 + $0x3b8] sm:$0xf] }
  0x85   : > { %464 = vst [vmem:[%s2292_s6 + $0x1d4] sm:$0xf] %v463_v61  ;;  %466 = vst [vmem:[%s2292_s6 + $0x1d8] sm:$0xf] %v465_v62  ;;  %v469_v0 = vld [vmem:[%s2287_s0 + $0x3c0] sm:$0xf] }
  0x86   : > { %468 = vst [vmem:[%s2292_s6 + $0x1dc] sm:$0xf] %v467_v63  ;;  %v471_v1 = vld [vmem:[%s2287_s0 + $0x3c8] sm:$0xf]  ;;  %v473_v2 = vld [vmem:[%s2287_s0 + $0x3d0] sm:$0xf] }
  0x87   : > { %470 = vst [vmem:[%s2292_s6 + $0x1e0] sm:$0xf] %v469_v0  ;;  %472 = vst [vmem:[%s2292_s6 + $0x1e4] sm:$0xf] %v471_v1  ;;  %v475_v3 = vld [vmem:[%s2287_s0 + $0x3d8] sm:$0xf] }
  0x88   : > { %474 = vst [vmem:[%s2292_s6 + $0x1e8] sm:$0xf] %v473_v2  ;;  %v477_v4 = vld [vmem:[%s2287_s0 + $0x3e0] sm:$0xf]  ;;  %v479_v5 = vld [vmem:[%s2287_s0 + $0x3e8] sm:$0xf] }
  0x89   : > { %476 = vst [vmem:[%s2292_s6 + $0x1ec] sm:$0xf] %v475_v3  ;;  %478 = vst [vmem:[%s2292_s6 + $0x1f0] sm:$0xf] %v477_v4  ;;  %v481_v6 = vld [vmem:[%s2287_s0 + $0x3f0] sm:$0xf] }
  0x8a   : > { %480 = vst [vmem:[%s2292_s6 + $0x1f4] sm:$0xf] %v479_v5  ;;  %v483_v7 = vld [vmem:[%s2287_s0 + $0x3f8] sm:$0xf]  ;;  %482 = vst [vmem:[%s2292_s6 + $0x1f8] sm:$0xf] %v481_v6 }
  0x8b   : > { %484 = vst [vmem:[%s2292_s6 + $0x1fc] sm:$0xf] %v483_v7 }
  0x8c PF: > { %p1738_p0 = scmp.ge.s32.totalorder %s2150_s22, 1  ;;  %p769_p1 = scmp.lt.s32.totalorder %s2150_s22, 257 }
  0x8e   : > { %p770_p2 = pnand %p1738_p0, %p769_p1 }
  0x8f   : > { %s776_s5 = sand.u32 (!%p770_p2), 1, %s2126_s16   ;;  %s783_s23 = sand.u32 (!%p770_p2), 1, %s2118_s14  }
  0x90   : > { %773 = sbr.rel (%p770_p2) target bundleno = 449 (0x1c1), region = 88  ;;  %s1739_s28 = sshll.u32 (!%p770_p2), %s776_s5, 6 }
  0x91   : > { %s1740_s7 = sshll.u32 (!%p770_p2), %s783_s23, 9  ;;  %s809_s0 = sand.u32 (!%p770_p2), 1, %s2110_s12  }
  0x92   : > { %p815_p3 = scmp.lt.s32.totalorder (!%p770_p2), %s2138_s19, 1  ;;  %s1741_s11 = sshll.u32 (!%p770_p2), %s809_s0, 4 }
  0x93   : > { %s2560_s6 = scalar_lea.vmem (!%p770_p2), [#allocation3], %s1739_s28  ;;  %s2562_s1 = scalar_lea.vmem (!%p770_p2), [#allocation4], %s1740_s7 }
  0x94   : > { %s2564_s25 = scalar_lea.vmem (!%p770_p2), [#allocation5], %s1741_s11  ;;  %p1742_p4 = scmp.ne.s32.totalorder (!%p770_p2), %s2134_s18, 0 }
  0x95   : > { %s2554_s26 = scalar_select %p815_p3, %s2138_s19, 1 }
  0x96   : > { %823 = sbr.rel (%p1742_p4) target bundleno = 157 (0x9d), region = 100 }
  0x97   : > { %s817_s4 = scalar_lea.vmem %s2690_s2, %s2554_s26 }
  0x9b   : > { %v2152_v8 = vmov 0.0  }
  0x9c   : > { %824 = vst [vmem:[#allocation2] sm:$0xff] %v2152_v8  ;;  %825 = vst [vmem:[#allocation2 + $0x8] sm:$0xff] %v2152_v8 }
  0x9d PF: > { %v2000_v9 = vld [vmem:[%s2562_s1 + $0x78] sm:$0xff]   ;;  %v2004_v13 = vld [vmem:[%s2562_s1 + $0x70] sm:$0xff]   ;;  %v2008_v17 = vld [vmem:[%s2562_s1 + $0x68] sm:$0xff]   ;;  %p1815_p5 = scmp.ne.s32.totalorder %s2134_s18, 127 }
  0x9e   : > { %v2001_v10 = vld [vmem:[%s2562_s1 + $0xf8] sm:$0xff]   ;;  %1823 = vmatprep.subr.bf16.mxu0 %v2000_v9  ;;  %v2005_v14 = vld [vmem:[%s2562_s1 + $0xf0] sm:$0xff]   ;;  %v2009_v18 = vld [vmem:[%s2562_s1 + $0xe8] sm:$0xff]  }
  0x9f   : > { %v2002_v11 = vld [vmem:[%s2562_s1 + $0x38] sm:$0xff]   ;;  %1845 = vmatprep.subr.bf16.mxu1 %v2001_v10  ;;  %v2006_v15 = vld [vmem:[%s2562_s1 + $0x30] sm:$0xff]   ;;  %v2010_v19 = vld [vmem:[%s2562_s1 + $0x28] sm:$0xff]  }
  0xa0   : > { %v2003_v12 = vld [vmem:[%s2562_s1 + $0xb8] sm:$0xff]   ;;  %1824 = vmatpush3.bf16.msra.mxu0 %v2002_v11  ;;  %v2007_v16 = vld [vmem:[%s2562_s1 + $0xb0] sm:$0xff]   ;;  %v2011_v20 = vld [vmem:[%s2562_s1 + $0xa8] sm:$0xff]  }
  0xa1   : > { %1846 = vmatpush3.bf16.msra.mxu1 %v2003_v12  ;;  %1825 = vmatprep.subr.bf16.mxu0 %v2004_v13  ;;  %v2012_v21 = vld [vmem:[%s2562_s1 + $0x60] sm:$0xff]   ;;  %v2016_v25 = vld [vmem:[%s2562_s1 + $0x58] sm:$0xff]   ;;  %v2020_v29 = vld [vmem:[%s2562_s1 + $0x50] sm:$0xff]  }
  0xa2   : > { %1847 = vmatprep.subr.bf16.mxu1 %v2005_v14  ;;  %v2013_v22 = vld [vmem:[%s2562_s1 + $0xe0] sm:$0xff]   ;;  %v2017_v26 = vld [vmem:[%s2562_s1 + $0xd8] sm:$0xff]   ;;  %v2021_v30 = vld [vmem:[%s2562_s1 + $0xd0] sm:$0xff]  }
  0xa3   : > { %v2014_v23 = vld [vmem:[%s2562_s1 + $0x20] sm:$0xff]   ;;  %v2018_v27 = vld [vmem:[%s2562_s1 + $0x18] sm:$0xff]   ;;  %v2022_v31 = vld [vmem:[%s2562_s1 + $0x10] sm:$0xff]  }
  0xa4   : > { %1826 = vmatpush3.bf16.msra.mxu0 %v2006_v15  ;;  %v2015_v24 = vld [vmem:[%s2562_s1 + $0xa0] sm:$0xff]   ;;  %v2019_v28 = vld [vmem:[%s2562_s1 + $0x98] sm:$0xff]   ;;  %v2023_v32 = vld [vmem:[%s2562_s1 + $0x90] sm:$0xff]  }
  0xa5   : > { %1848 = vmatpush3.bf16.msra.mxu1 %v2007_v16  ;;  %1827 = vmatprep.subr.bf16.mxu0 %v2008_v17  ;;  %v2024_v33 = vld [vmem:[%s2562_s1 + $0x48] sm:$0xff]   ;;  %v2028_v37 = vld [vmem:[%s2562_s1 + $0x40] sm:$0xff]   ;;  %v2032_v49 = vld [vmem:[%s2562_s1 + $0x178] sm:$0xff]  }
  0xa6   : > { %1849 = vmatprep.subr.bf16.mxu1 %v2009_v18  ;;  %v2025_v34 = vld [vmem:[%s2562_s1 + $0xc8] sm:$0xff]   ;;  %v2029_v38 = vld [vmem:[%s2562_s1 + $0xc0] sm:$0xff]   ;;  %v2033_v50 = vld [vmem:[%s2562_s1 + $0x1f8] sm:$0xff]  }
  0xa7   : > { %v2026_v35 = vld [vmem:[%s2562_s1 + $0x8] sm:$0xff]   ;;  %v2030_v39 = vld [vmem:[%s2562_s1] sm:$0xff]   ;;  %v2034_v51 = vld [vmem:[%s2562_s1 + $0x138] sm:$0xff]  }
  0xa8   : > { %1828 = vmatpush3.bf16.msra.mxu0 %v2010_v19  ;;  %v2027_v36 = vld [vmem:[%s2562_s1 + $0x88] sm:$0xff]   ;;  %v2031_v40 = vld [vmem:[%s2562_s1 + $0x80] sm:$0xff]   ;;  %v2035_v52 = vld [vmem:[%s2562_s1 + $0x1b8] sm:$0xff]  }
  0xa9   : > { %1850 = vmatpush3.bf16.msra.mxu1 %v2011_v20  ;;  %1829 = vmatprep.subr.bf16.mxu0 %v2012_v21  ;;  %v828_v41 = vld [vmem:[%s2560_s6] sm:$0xff]  ;;  %v829_v43 = vld [vmem:[%s2560_s6 + $0x8] sm:$0xff]  ;;  %v2036_v53 = vld [vmem:[%s2562_s1 + $0x170] sm:$0xff]  }
  0xaa   : > { %1851 = vmatprep.subr.bf16.mxu1 %v2013_v22  ;;  %v832_v42 = vld [vmem:[%s2560_s6 + $0x20] sm:$0xff]  ;;  %v833_v46 = vld [vmem:[%s2560_s6 + $0x28] sm:$0xff]  ;;  %v2037_v54 = vld [vmem:[%s2562_s1 + $0x1f0] sm:$0xff]  }
  0xab   : > { %v1743_v44 = vcombine.low %v828_v41, %v832_v42  ;;  %v1744_v45 = vcombine.high %v828_v41, %v832_v42  ;;  %v1745_v47 = vcombine.low %v829_v43, %v833_v46  ;;  %v1746_v48 = vcombine.high %v829_v43, %v833_v46  ;;  %v2038_v55 = vld [vmem:[%s2562_s1 + $0x130] sm:$0xff]   ;;  %v2040_v57 = vld [vmem:[%s2562_s1 + $0x168] sm:$0xff]   ;;  %v2044_v61 = vld [vmem:[%s2562_s1 + $0x160] sm:$0xff]  }
  0xac   : > { %1830 = vmatpush3.bf16.msra.mxu0 %v2014_v23  ;;  %v2039_v56 = vld [vmem:[%s2562_s1 + $0x1b0] sm:$0xff]   ;;  %v2041_v58 = vld [vmem:[%s2562_s1 + $0x1e8] sm:$0xff]   ;;  %v2045_v62 = vld [vmem:[%s2562_s1 + $0x1e0] sm:$0xff]  }
  0xad   : > { %1852 = vmatpush3.bf16.msra.mxu1 %v2015_v24  ;;  %1831 = vmatprep.subr.bf16.mxu0 %v2016_v25  ;;  %v2042_v59 = vld [vmem:[%s2562_s1 + $0x128] sm:$0xff]   ;;  %v2046_v63 = vld [vmem:[%s2562_s1 + $0x120] sm:$0xff]   ;;  %v2048_v1 = vld [vmem:[%s2562_s1 + $0x158] sm:$0xff]  }
  0xae   : > { %1853 = vmatprep.subr.bf16.mxu1 %v2017_v26  ;;  %1420 = vmatprep.mubr.bf16.mxu0 %v1744_v45  ;;  %v2043_v60 = vld [vmem:[%s2562_s1 + $0x1a8] sm:$0xff]   ;;  %v2047_v0 = vld [vmem:[%s2562_s1 + $0x1a0] sm:$0xff]   ;;  %v2049_v2 = vld [vmem:[%s2562_s1 + $0x1d8] sm:$0xff]  }
  0xaf   : > { %1461 = vmatprep.mubr.bf16.mxu1 %v1746_v48  ;;  %v2050_v3 = vld [vmem:[%s2562_s1 + $0x118] sm:$0xff]   ;;  %v2052_v5 = vld [vmem:[%s2562_s1 + $0x150] sm:$0xff]   ;;  %v2056_v9 = vld [vmem:[%s2562_s1 + $0x148] sm:$0xff]  }
  0xb0   : > { %1832 = vmatpush3.bf16.msra.mxu0 %v2018_v27  ;;  %v2051_v4 = vld [vmem:[%s2562_s1 + $0x198] sm:$0xff]   ;;  %v2053_v6 = vld [vmem:[%s2562_s1 + $0x1d0] sm:$0xff]   ;;  %v2057_v10 = vld [vmem:[%s2562_s1 + $0x1c8] sm:$0xff]  }
  0xb1   : > { %1854 = vmatpush3.bf16.msra.mxu1 %v2019_v28  ;;  %1833 = vmatprep.subr.bf16.mxu0 %v2020_v29  ;;  %v2054_v7 = vld [vmem:[%s2562_s1 + $0x110] sm:$0xff]   ;;  %v2058_v11 = vld [vmem:[%s2562_s1 + $0x108] sm:$0xff]   ;;  %v2060_v13 = vld [vmem:[%s2562_s1 + $0x140] sm:$0xff]  }
  0xb2   : > { %1855 = vmatprep.subr.bf16.mxu1 %v2021_v30  ;;  %v2055_v8 = vld [vmem:[%s2562_s1 + $0x190] sm:$0xff]   ;;  %v2059_v12 = vld [vmem:[%s2562_s1 + $0x188] sm:$0xff]   ;;  %v2061_v14 = vld [vmem:[%s2562_s1 + $0x1c0] sm:$0xff]  }
  0xb3   : > { %v2062_v15 = vld [vmem:[%s2562_s1 + $0x100] sm:$0xff]   ;;  %v830_v17 = vld [vmem:[%s2560_s6 + $0x10] sm:$0xff]  ;;  %v831_v21 = vld [vmem:[%s2560_s6 + $0x18] sm:$0xff] }
  0xb4   : > { %1834 = vmatpush3.bf16.msra.mxu0 %v2022_v31  ;;  %v2063_v16 = vld [vmem:[%s2562_s1 + $0x180] sm:$0xff]   ;;  %v834_v18 = vld [vmem:[%s2560_s6 + $0x30] sm:$0xff]  ;;  %v835_v22 = vld [vmem:[%s2560_s6 + $0x38] sm:$0xff] }
  0xb5   : > { %1856 = vmatpush3.bf16.msra.mxu1 %v2023_v32  ;;  %1835 = vmatprep.subr.bf16.mxu0 %v2024_v33  ;;  %v1747_v19 = vcombine.low %v830_v17, %v834_v18  ;;  %v1748_v20 = vcombine.high %v830_v17, %v834_v18  ;;  %v1749_v23 = vcombine.low %v831_v21, %v835_v22 }
  0xb6   : > { %1857 = vmatprep.subr.bf16.mxu1 %v2025_v34  ;;  %v1750_v24 = vcombine.high %v831_v21, %v835_v22 }
  0xb8   : > { %1836 = vmatpush3.bf16.msra.mxu0 %v2026_v35 }
  0xb9   : > { %1858 = vmatpush3.bf16.msra.mxu1 %v2027_v36  ;;  %1837 = vmatprep.subr.bf16.mxu0 %v2028_v37 }
  0xba   : > { %1859 = vmatprep.subr.bf16.mxu1 %v2029_v38 }
  0xbc   : > { %1838 = vmatpush3.bf16.msra.mxu0 %v2030_v39 }
  0xbd   : > { %1860 = vmatpush3.bf16.msra.mxu1 %v2031_v40  ;;  %1867 = vmatprep.subr.bf16.mxu0 %v2032_v49 }
  0xbe   : > { %1889 = vmatprep.subr.bf16.mxu1 %v2033_v50 }
  0xbf   : > { %1421 = vmatmul.mubr.bf16.vlgmr.msra.gmra.mxu0 %v1743_v44 }
  0xc0   : > { %1462 = vmatmul.mubr.bf16.vlgmr.msra.gmra.mxu1 %v1745_v47  ;;  %1868 = vmatpush3.bf16.msra.mxu0 %v2034_v51  ;;  %v826_v47 = vld [vmem:[#allocation2] sm:$0xff] }
  0xc1   : > { %1890 = vmatpush3.bf16.msra.mxu1 %v2035_v52  ;;  %1869 = vmatprep.subr.bf16.mxu0 %v2036_v53 }
  0xc2   : > { %1891 = vmatprep.subr.bf16.mxu1 %v2037_v54  ;;  %1502 = vmatprep.mubr.bf16.mxu0 %v1748_v20 }
  0xc3   : > { %1543 = vmatprep.mubr.bf16.mxu1 %v1750_v24 }
  0xc4   : > { %1870 = vmatpush3.bf16.msra.mxu0 %v2038_v55 }
  0xc5   : > { %1892 = vmatpush3.bf16.msra.mxu1 %v2039_v56  ;;  %1871 = vmatprep.subr.bf16.mxu0 %v2040_v57  ;;  %v827_v56 = vld [vmem:[#allocation2 + $0x8] sm:$0xff] }
  0xc6   : > { %1893 = vmatprep.subr.bf16.mxu1 %v2041_v58 }
  0xc8   : > { %1872 = vmatpush3.bf16.msra.mxu0 %v2042_v59 }
  0xc9   : > { %1894 = vmatpush3.bf16.msra.mxu1 %v2043_v60  ;;  %1873 = vmatprep.subr.bf16.mxu0 %v2044_v61 }
  0xca   : > { %1895 = vmatprep.subr.bf16.mxu1 %v2045_v62 }
  0xcc   : > { %1874 = vmatpush3.bf16.msra.mxu0 %v2046_v63 }
  0xcd   : > { %1896 = vmatpush3.bf16.msra.mxu1 %v2047_v0  ;;  %1875 = vmatprep.subr.bf16.mxu0 %v2048_v1 }
  0xce   : > { %1897 = vmatprep.subr.bf16.mxu1 %v2049_v2 }
  0xd0   : > { %1876 = vmatpush3.bf16.msra.mxu0 %v2050_v3 }
  0xd1   : > { %1898 = vmatpush3.bf16.msra.mxu1 %v2051_v4  ;;  %1877 = vmatprep.subr.bf16.mxu0 %v2052_v5 }
  0xd2   : > { %1899 = vmatprep.subr.bf16.mxu1 %v2053_v6 }
  0xd4   : > { %1878 = vmatpush3.bf16.msra.mxu0 %v2054_v7 }
  0xd5   : > { %1900 = vmatpush3.bf16.msra.mxu1 %v2055_v8  ;;  %1879 = vmatprep.subr.bf16.mxu0 %v2056_v9 }
  0xd6   : > { %1901 = vmatprep.subr.bf16.mxu1 %v2057_v10 }
  0xd8   : > { %1880 = vmatpush3.bf16.msra.mxu0 %v2058_v11 }
  0xd9   : > { %1902 = vmatpush3.bf16.msra.mxu1 %v2059_v12  ;;  %1881 = vmatprep.subr.bf16.mxu0 %v2060_v13 }
  0xda   : > { %1903 = vmatprep.subr.bf16.mxu1 %v2061_v14 }
  0xdc   : > { %1882 = vmatpush3.bf16.msra.mxu0 %v2062_v15 }
  0xdd   : > { %1904 = vmatpush3.bf16.msra.mxu1 %v2063_v16 }
  0xdf   : > { %1503 = vmatmul.mubr.bf16.vlgmr.msra.gmra.mxu0 %v1747_v19 }
  0xe0   : > { %1544 = vmatmul.mubr.bf16.vlgmr.msra.gmra.mxu1 %v1749_v23 }
 0x17f   : > { %v1839_v25 = vpop.f32.mrf.mxu0 }
 0x180   : > { %v1861_v26 = vpop.f32.mrf.mxu1 }
 0x181   : > { %v1840_v27 = vpop.f32.mrf.mxu0 }
 0x182   : > { %v1862_v28 = vpop.f32.mrf.mxu1  ;;  %v1841_v32 = vadd.f32 %v1840_v27, %v1839_v25 }
 0x183   : > { %v1842_v29 = vpop.f32.mrf.mxu0  ;;  %v1863_v33 = vadd.f32 %v1862_v28, %v1861_v26 }
 0x184   : > { %v1864_v30 = vpop.f32.mrf.mxu1 }
 0x185   : > { %v1843_v31 = vpop.f32.mrf.mxu0  ;;  %v1464_v38 = vadd.f32 %v1863_v33, %v1841_v32 }
 0x186   : > { %v1865_v34 = vpop.f32.mrf.mxu1  ;;  %v1844_v39 = vadd.f32 %v1843_v31, %v1842_v29 }
 0x187   : > { %v1866_v40 = vadd.f32 %v1865_v34, %v1864_v30 }
 0x189   : > { %v1467_v49 = vadd.f32 %v1866_v40, %v1844_v39 }
 0x19f   : > { %v1883_v35 = vpop.f32.mrf.mxu0 }
 0x1a0   : > { %v1905_v36 = vpop.f32.mrf.mxu1 }
 0x1a1   : > { %v1884_v37 = vpop.f32.mrf.mxu0 }
 0x1a2   : > { %v1885_v41 = vadd.f32 %v1884_v37, %v1883_v35  ;;  %v1906_v42 = vpop.f32.mrf.mxu1 }
 0x1a3   : > { %v1886_v43 = vpop.f32.mrf.mxu0  ;;  %v1907_v45 = vadd.f32 %v1906_v42, %v1905_v36 }
 0x1a4   : > { %v1505_v44 = vadd.f32 %v1885_v41, %v1464_v38  ;;  %v1908_v46 = vpop.f32.mrf.mxu1 }
 0x1a5   : > { %v1887_v48 = vpop.f32.mrf.mxu0 }
 0x1a6   : > { %v1546_v50 = vadd.f32 %v1907_v45, %v1505_v44  ;;  %v1888_v51 = vadd.f32 %v1887_v48, %v1886_v43  ;;  %v1909_v52 = vpop.f32.mrf.mxu1 }
 0x1a7   : > { %v1910_v55 = vadd.f32 %v1909_v52, %v1908_v46 }
 0x1a8   : > { %v1552_v53 = vadd.f32 %v1546_v50, %v826_v47  ;;  %v1508_v54 = vadd.f32 %v1888_v51, %v1467_v49 }
 0x1aa   : > { %1554 = vst [vmem:[#allocation2] sm:$0xff] %v1552_v53  ;;  %v1549_v57 = vadd.f32 %v1910_v55, %v1508_v54  ;;  %1559 = sbr.rel (%p1815_p5) target bundleno = 441 (0x1b9), region = 104 }
 0x1ac   : > { %v1553_v58 = vadd.f32 %v1549_v57, %v827_v56 }
 0x1ae   : > { %1555 = vst [vmem:[#allocation2 + $0x8] sm:$0xff] %v1553_v58 }
 0x1af   : > { %v1816_v60 = vld [vmem:[%s817_s4] ss:$0 sm:$0xff] }
 0x1b1   : > { %v1560_v59 = vld [vmem:[#allocation2] sm:$0xff] }
 0x1b2   : > { %v1569_v62 = vadd.f32 %v1816_v60, %v1560_v59 }
 0x1b4   : > { %1571 = vst [vmem:[%s2564_s25] sm:$0xff] %v1569_v62 }
 0x1b5   : > { %v1561_v61 = vld [vmem:[#allocation2 + $0x8] sm:$0xff] }
 0x1b6   : > { %v1570_v63 = vadd.f32 %v1816_v60, %v1561_v61 }
 0x1b8   : > { %1572 = vst [vmem:[%s2564_s25 + $0x8] sm:$0xff] %v1570_v63 }
 0x1b9 PF: > { %1579 = sbr.rel (!%p2267_p12) target bundleno = 449 (0x1c1), region = 108  ;;  %s1818_s14 = sshll.u32 (%p2267_p12), %s2138_s19, 3 }
 0x1ba   : > { %s1584_s5 = scalar_lea.vmem (%p2267_p12), %s2691_s3, %s1818_s14 }
 0x1bb   : > { %v1615_v0 = vld [vmem:[%s2564_s25] sm:$0xff] (%p2267_p12) }
 0x1bc   : > { %1616 = vst [vmem:[%s1584_s5] sm:$0xff] (%p2267_p12), %v1615_v0 }
 0x1bf   : > { %v1617_v1 = vld [vmem:[%s2564_s25 + $0x8] sm:$0xff] }
 0x1c0   : > { %1618 = vst [vmem:[%s1584_s5 + $0x10] sm:$0xff] %v1617_v1 }
 0x1c1 PF: > { %s13_s22 = sadd.s32 1, %s2150_s22   ;;  %s2701_s25 = sld [smem:[#allocation6_spill]] }
 0x1c2   : > { %p10_p6 = scmp.ge.s32.totalorder %s13_s22, 258   ;;  %s2702_s12 = smov %s2114_s13 }
 0x1c3   : > { %s2703_s13 = smov %s2265_s9  ;;  %s2704_s14 = smov %s2122_s15 }
 0x1c4   : > { %s2705_s15 = smov %s2262_s8  ;;  %s2706_s16 = smov %s2130_s17 }
 0x1c5   : > { %s2707_s17 = smov %s2248_s30  ;;  %s2708_s18 = smov %s2142_s20 }
 0x1c6   : > { %s2709_s19 = smov %s2146_s21  ;;  %s2710_s20 = smov %s2713_s24 }
 0x1c7   : > { %s2711_s21 = smov %s2701_s25  ;;  %12 = sbr.rel (!%p10_p6) target bundleno = 9 (0x9), region = 188 }

// kernel: conv_vae_forward.22
= control target key start
LH: loop header
LB: loop body
LE: loop exit
PB: predicated region body
PF: predicated region fallthrough
CT: control target
= control target key end

     0   :  { %s61_s1 = inlined_call_operand.vmem [shape: f32[2,128], index: 1, kind: input, shape index: {}]   ;;  %s62_s2 = inlined_call_operand.vmem [shape: f32[2,128], index: 2, kind: input, shape index: {}]   ;;  %s63_s0 = inlined_call_operand.vmem [shape: f32[2,128], index: 0, kind: input, shape index: {}]   ;;  %s64_s3 = inlined_call_operand.vmem [shape: f32[2,128], index: 3, kind: output, shape index: {}]  }
   0x1   :  { %v14_v0 = vld [vmem:[%s61_s1] sm:$0x3] }
   0x2   :  { %v15_v1 = vmul.f32 0.5, %v14_v0  ;;  %v19_v3 = vld [vmem:[%s62_s2] sm:$0x3] }
   0x3   :  { %v18_v5 = vld [vmem:[%s63_s0] sm:$0x3] }
   0x4   :  { %v16_v2 = vmul.f32 1.442695, %v15_v1 }
   0x6   :  { %27 = vpow2.f32 %v16_v2 }
  0x13   :  { %v28_v4 = vpop.eup %27 }
  0x14   :  { %v20_v6 = vmul.f32 %v28_v4, %v19_v3 }
  0x16   :  { %v21_v7 = vadd.f32 %v20_v6, %v18_v5 }
  0x18   :  { %22 = vst [vmem:[%s64_s3] sm:$0x3] %v21_v7 }

// kernel: conv_vae_forward.23
= control target key start
LH: loop header
LB: loop body
LE: loop exit
PB: predicated region body
PF: predicated region fallthrough
CT: control target
= control target key end

     0   :  { %8 = vsyncpa [#allocation4], 0  ;;  %s1223_s0 = inlined_call_operand.vmem [shape: bf16[16,128], index: 0, kind: input, shape index: {}]   ;;  %s1224_s1 = inlined_call_operand.hbm [shape: bf16[128,131072], index: 1, kind: input, shape index: {}]   ;;  %s1225_s2 = inlined_call_operand.vmem [shape: f32[1,131072], index: 2, kind: input, shape index: {}]   ;;  %s1226_s3 = inlined_call_operand.vmem [shape: bf16[16,131072], index: 3, kind: output, shape index: {}]  }
   0x1   :  { %10 = vsyncpa [#allocation4 + $0x1], 0  ;;  %s1074_s12 = smov 0   ;;  %s1076_s13 = smov 0  }
   0x2   :  { %s1078_s14 = smov 0   ;;  %s1080_s15 = smov 0  }
   0x3   :  { %s1082_s16 = smov 0   ;;  %s1084_s17 = smov 0  }
   0x4 LB: > { %s801_s18 = sadd.s32 4294967295, %s1047_s17   ;;  %s31_s19 = sadd.s32 1, %s1043_s16  ;;  %s1047_s17 = sphi %s1084_s17, %s16_s17   ;;  %s1043_s16 = sphi %s1082_s16, %s1235_s16   ;;  %s1039_s15 = sphi %s1080_s15, %s1234_s15   ;;  %s1035_s14 = sphi %s1078_s14, %s1233_s14   ;;  %s1031_s13 = sphi %s1076_s13, %s1232_s13   ;;  %s1027_s12 = sphi %s1074_s12, %s1231_s12  }
   0x5   : > { %p33_p0 = scmp.ge.s32.totalorder %s31_s19, 256  ;;  %s72_s20 = sadd.s32 1, %s1035_s14 }
   0x6   : > { %p79_p1 = scmp.ne.s32.totalorder %s1035_s14, %s1031_s13  ;;  %p80_p2 = scmp.eq.s32.totalorder %s1047_s17, 0 }
   0x7   : > { %s1237_s19 = smov (%p33_p0, %s31_s19), 0  ;;  %p85_p4 = scmp.ne.s32.totalorder %s1031_s13, %s1027_s12 }
   0x8   : > { %p1110_p3 = por %p80_p2, %p79_p1  ;;  %s68_s22 = ssub.s32 %s1043_s16, %s1237_s19 }
   0x9   : > { %p86_p5 = scmp.eq.s32.totalorder %s801_s18, 0  ;;  %p70_p6 = scmp.eq.s32.totalorder %s68_s22, 0 }
   0xa   : > { %p137_p7 = scmp.eq.s32.totalorder %s801_s18, 255  ;;  %p867_p10 = scmp.lt.s32.totalorder %s1047_s17, 256 }
   0xb   : > { %p1117_p8 = por %p86_p5, %p85_p4  ;;  %s175_s26 = sand.u32 1, %s1035_s14  }
   0xc   : > { %s1122_s24 = scalar_select %p70_p6, %s1035_s14, %s72_s20  }
   0xd   : > { %p1124_p9 = por %p137_p7, %p79_p1  ;;  %s855_s27 = sshll.u32 %s1043_s16, 8 }
   0xe   : > { %s806_s28 = sshll.u32 %s175_s26, 8  ;;  %s188_s4 = scalar_lea.hbm %s1224_s1, %s855_s27 }
   0xf   : > { %s179_s5 = scalar_lea.vmem [#allocation3], %s806_s28  ;;  %p1136_p11 = pnand %p867_p10, %p1110_p3 }
  0x10   : > { %s189_s6 = sshll.u32 %s179_s5, 4  ;;  %p809_p12 = scmp.ge.s32.totalorder %s1047_s17, 1  ;;  %s190_s6 = int_to_ptr.vmem [resolvable:$true] %s189_s6 }
  0x11   : > { %s176_s8 = scalar_lea.sflag [#allocation4], %s175_s26  ;;  %p971_p13 = pneg %p1136_p11 }
  0x12   : > { %s982_s9 = scalar_lea.vmem %s190_s6, 4096  ;;  %s1049_s10 = smov [#allocation3]  }
  0x13   : > { %p983_p0 = scmp.ne.s32.totalorder %s190_s6, %s982_s9  ;;  %s987_s11 = sshll.u32 %s1049_s10, 4  ;;  %s988_s11 = int_to_ptr.vmem [resolvable:$false] %s987_s11 }
  0x14   : > { %s989_s12 = scalar_lea.vmem %s988_s11, 8192  ;;  %p990_p4 = scmp.lt.s32.totalorder %s190_s6, %s988_s11 }
  0x15   : > { %p985_p1 = pnand %p983_p0, %p971_p13  ;;  %p991_p5 = scmp.lt.s32.totalorder %s989_s12, %s982_s9 }
  0x17   : > { %p986_p2 = pneg %p985_p1  ;;  %p992_p3 = por %p991_p5, %p990_p4 }
  0x19   : > { %p993_p6 = pnand %p992_p3, %p986_p2 }
  0x1b   : > { %996 = shalt.err (!%p993_p6)
}
  0x1c   : > { %s1050_s18 = smov 65536   ;;  %s1051_s20 = smov 256  }
  0x1d   : > { %s1052_s21 = smov 16   ;;  %p205_p7 = scmp.lt.s32.totalorder %s1047_s17, 257 }
  0x1e   : > { %866 = dma.hbm_to_vmem [thread:$0]  (!%p1136_p11), %s188_s4, 4096, %s190_s6, %s176_s8, %s1050_s18, %s1051_s20, %s1052_s21  }
  0x1f   : > { %p206_p10 = pnand %p809_p12, %p205_p7 }
  0x20   : > { %s1149_s22 = sand.u32 (!%p206_p10), 1, %s1031_s13  }
  0x21   : > { %209 = sbr.rel (%p206_p10) target bundleno = 285 (0x11d), region = 32  ;;  %s810_s26 = sshll.u32 (!%p206_p10), %s1149_s22, 8 }
  0x22   : > { %s212_s27 = scalar_lea.sflag (!%p206_p10), [#allocation4], %s1149_s22  ;;  %s1153_s28 = scalar_lea.vmem (!%p206_p10), [#allocation3], %s810_s26 }
  0x26   : > { %1022 = dma.done.wait (%p1117_p8), %s212_s27, 4096  }
  0x27   : > { %1024 = vsyncadd (%p1117_p8), %s212_s27, 4294963200  ;;  %v1053_v0 = vmov 0   ;;  %v920_v1 = vld [vmem:[%s1153_s28 + $0xe4] ss:$16 sps:$4 sm:$0xff]   ;;  %v922_v2 = vld [vmem:[%s1153_s28 + $0xec] ss:$16 sps:$4 sm:$0xff]   ;;  %v603_v34 = vlaneseq }
  0x28   : > { %520 = vmatprep.mubr.bf16.mxu0 %v1053_v0  ;;  %563 = vmatprep.mubr.bf16.mxu1 %v1053_v0  ;;  %v924_v3 = vld [vmem:[%s1153_s28 + $0xe0] ss:$16 sps:$4 sm:$0xff]   ;;  %v925_v4 = vld [vmem:[%s1153_s28 + $0xe8] ss:$16 sps:$4 sm:$0xff]   ;;  %v926_v5 = vld [vmem:[%s1153_s28 + $0xc4] ss:$16 sps:$4 sm:$0xff]  }
  0x29   : > { %488 = vmatprep.subr.bf16.mxu0 %v920_v1  ;;  %531 = vmatprep.subr.bf16.mxu1 %v922_v2  ;;  %v928_v6 = vld [vmem:[%s1153_s28 + $0xcc] ss:$16 sps:$4 sm:$0xff]   ;;  %v930_v7 = vld [vmem:[%s1153_s28 + $0xc0] ss:$16 sps:$4 sm:$0xff]   ;;  %v931_v8 = vld [vmem:[%s1153_s28 + $0xc8] ss:$16 sps:$4 sm:$0xff]  }
  0x2a   : > { %489 = vmatpush1.bf16.msra.mxu0 %v924_v3  ;;  %532 = vmatpush1.bf16.msra.mxu1 %v925_v4  ;;  %v932_v9 = vld [vmem:[%s1153_s28 + $0xa4] ss:$16 sps:$4 sm:$0xff]   ;;  %v934_v10 = vld [vmem:[%s1153_s28 + $0xac] ss:$16 sps:$4 sm:$0xff]   ;;  %v936_v11 = vld [vmem:[%s1153_s28 + $0xa0] ss:$16 sps:$4 sm:$0xff]  }
  0x2b   : > { %490 = vmatprep.subr.bf16.mxu0 %v926_v5  ;;  %533 = vmatprep.subr.bf16.mxu1 %v928_v6  ;;  %v937_v12 = vld [vmem:[%s1153_s28 + $0xa8] ss:$16 sps:$4 sm:$0xff]   ;;  %v938_v13 = vld [vmem:[%s1153_s28 + $0x84] ss:$16 sps:$4 sm:$0xff]   ;;  %v940_v14 = vld [vmem:[%s1153_s28 + $0x8c] ss:$16 sps:$4 sm:$0xff]  }
  0x2c   : > { %v942_v15 = vld [vmem:[%s1153_s28 + $0x80] ss:$16 sps:$4 sm:$0xff]   ;;  %v943_v16 = vld [vmem:[%s1153_s28 + $0x88] ss:$16 sps:$4 sm:$0xff]   ;;  %v944_v17 = vld [vmem:[%s1153_s28 + $0x64] ss:$16 sps:$4 sm:$0xff]  }
  0x2d   : > { %v946_v18 = vld [vmem:[%s1153_s28 + $0x6c] ss:$16 sps:$4 sm:$0xff]   ;;  %v948_v19 = vld [vmem:[%s1153_s28 + $0x60] ss:$16 sps:$4 sm:$0xff]   ;;  %v949_v20 = vld [vmem:[%s1153_s28 + $0x68] ss:$16 sps:$4 sm:$0xff]  }
  0x2e   : > { %491 = vmatpush1.bf16.msra.mxu0 %v930_v7  ;;  %534 = vmatpush1.bf16.msra.mxu1 %v931_v8  ;;  %v950_v21 = vld [vmem:[%s1153_s28 + $0x44] ss:$16 sps:$4 sm:$0xff]   ;;  %v952_v22 = vld [vmem:[%s1153_s28 + $0x4c] ss:$16 sps:$4 sm:$0xff]   ;;  %v954_v23 = vld [vmem:[%s1153_s28 + $0x40] ss:$16 sps:$4 sm:$0xff]  }
  0x2f   : > { %492 = vmatprep.subr.bf16.mxu0 %v932_v9  ;;  %535 = vmatprep.subr.bf16.mxu1 %v934_v10  ;;  %v955_v24 = vld [vmem:[%s1153_s28 + $0x48] ss:$16 sps:$4 sm:$0xff]   ;;  %v956_v25 = vld [vmem:[%s1153_s28 + $0x24] ss:$16 sps:$4 sm:$0xff]   ;;  %v958_v26 = vld [vmem:[%s1153_s28 + $0x2c] ss:$16 sps:$4 sm:$0xff]  }
  0x30   : > { %v960_v27 = vld [vmem:[%s1153_s28 + $0x20] ss:$16 sps:$4 sm:$0xff]   ;;  %v961_v28 = vld [vmem:[%s1153_s28 + $0x28] ss:$16 sps:$4 sm:$0xff]   ;;  %v962_v29 = vld [vmem:[%s1153_s28 + $0x4] ss:$16 sps:$4 sm:$0xff]  }
  0x31   : > { %v964_v30 = vld [vmem:[%s1153_s28 + $0xc] ss:$16 sps:$4 sm:$0xff]   ;;  %v966_v31 = vld [vmem:[%s1153_s28] ss:$16 sps:$4 sm:$0xff]   ;;  %v967_v32 = vld [vmem:[%s1153_s28 + $0x8] ss:$16 sps:$4 sm:$0xff]  }
  0x32   : > { %493 = vmatpush1.bf16.msra.mxu0 %v936_v11  ;;  %536 = vmatpush1.bf16.msra.mxu1 %v937_v12  ;;  %v968_v33 = vld [vmem:[%s1223_s0] sm:$0xff]   ;;  %s812_s30 = sshll.u32 %s1039_s15, 2  ;;  %v604_v35 = vshrl.u32 %v603_v34, 7  ;;  %s811_s7 = sshll.u32 %s1149_s22, 5 }
  0x33   : > { %494 = vmatprep.subr.bf16.mxu0 %v938_v13  ;;  %537 = vmatprep.subr.bf16.mxu1 %v940_v14  ;;  %p261_p8 = scmp.lt.s32.totalorder %s812_s30, 1023  ;;  %s248_s8 = scalar_lea.vmem [#allocation5], %s811_s7 }
  0x34   : > { %v605_v36 = vsub.s32 0, %v604_v35  ;;  %v613_v37 = vsub.s32 2, %v604_v35  ;;  %v609_v38 = vsub.s32 1, %v604_v35  ;;  %v617_v39 = vsub.s32 3, %v604_v35  ;;  %s860_s9 = sshll.u32 (%p1124_p9), %s1039_s15, 4 }
  0x35   : > { %s1239_s30 = smov (!%p261_p8, %s812_s30), 1023  ;;  %s671_s12 = scalar_lea.vmem (%p1124_p9), %s1226_s3, %s860_s9 }
  0x36   : > { %495 = vmatpush1.bf16.msra.mxu0 %v942_v15  ;;  %538 = vmatpush1.bf16.msra.mxu1 %v943_v16  ;;  %s263_s6 = scalar_lea.vmem %s1225_s2, %s1239_s30 }
  0x37   : > { %496 = vmatprep.subr.bf16.mxu0 %v944_v17  ;;  %539 = vmatprep.subr.bf16.mxu1 %v946_v18  ;;  %v601_v40 = vld [vmem:[%s263_s6] sm:$0xf] }
  0x38   : > { %v606_v41 = vrot.slane %v601_v40, %v605_v36  ;;  %v614_v42 = vrot.slane %v601_v40, %v613_v37  ;;  %v610_v43 = vrot.slane %v601_v40, %v609_v38  ;;  %v618_v44 = vrot.slane %v601_v40, %v617_v39 }
  0x3a   : > { %497 = vmatpush1.bf16.msra.mxu0 %v948_v19  ;;  %540 = vmatpush1.bf16.msra.mxu1 %v949_v20 }
  0x3b   : > { %498 = vmatprep.subr.bf16.mxu0 %v950_v21  ;;  %541 = vmatprep.subr.bf16.mxu1 %v952_v22 }
  0x3e   : > { %499 = vmatpush1.bf16.msra.mxu0 %v954_v23  ;;  %542 = vmatpush1.bf16.msra.mxu1 %v955_v24 }
  0x3f   : > { %500 = vmatprep.subr.bf16.mxu0 %v956_v25  ;;  %543 = vmatprep.subr.bf16.mxu1 %v958_v26 }
  0x42   : > { %501 = vmatpush1.bf16.msra.mxu0 %v960_v27  ;;  %544 = vmatpush1.bf16.msra.mxu1 %v961_v28 }
  0x43   : > { %502 = vmatprep.subr.bf16.mxu0 %v962_v29  ;;  %545 = vmatprep.subr.bf16.mxu1 %v964_v30 }
  0x46   : > { %503 = vmatpush1.bf16.msra.mxu0 %v966_v31  ;;  %546 = vmatpush1.bf16.msra.mxu1 %v967_v32 }
  0x49   : > { %521 = vmatmul.mubr.bf16.vlgmr.msra.gmra.mxu0 %v968_v33  ;;  %564 = vmatmul.mubr.bf16.vlgmr.msra.gmra.mxu1 %v968_v33 }
 0x109   : > { %v522_v45 = vpop.f32.mrf.mxu0  ;;  %v565_v46 = vpop.f32.mrf.mxu1 }
 0x10a   : > { %v623_v49 = vadd.f32 %v606_v41, %v522_v45  ;;  %v625_v50 = vadd.f32 %v614_v42, %v565_v46 }
 0x10b   : > { %v524_v47 = vpop.f32.mrf.mxu0  ;;  %v567_v48 = vpop.f32.mrf.mxu1 }
 0x10c   : > { %v624_v51 = vadd.f32 %v610_v43, %v524_v47  ;;  %v626_v52 = vadd.f32 %v618_v44, %v567_v48 }
 0x10d   : > { %v526_v53 = vpop.f32.mrf.mxu0  ;;  %v569_v54 = vpop.f32.mrf.mxu1 }
 0x10e   : > { %v856_v55 = vpack.c.bf16 %v624_v51, %v623_v49  ;;  %v857_v56 = vpack.c.bf16 %v626_v52, %v625_v50  ;;  %v627_v59 = vadd.f32 %v606_v41, %v526_v53  ;;  %v629_v60 = vadd.f32 %v614_v42, %v569_v54 }
 0x10f   : > { %v528_v57 = vpop.f32.mrf.mxu0  ;;  %v571_v58 = vpop.f32.mrf.mxu1 }
 0x110   : > { %655 = vst [vmem:[%s248_s8] sm:$0xff] %v856_v55  ;;  %656 = vst [vmem:[%s248_s8 + $0x8] sm:$0xff] %v857_v56  ;;  %v628_v61 = vadd.f32 %v610_v43, %v528_v57  ;;  %v630_v62 = vadd.f32 %v618_v44, %v571_v58  ;;  %665 = sbr.rel (!%p1124_p9) target bundleno = 285 (0x11d), region = 48 }
 0x112   : > { %v858_v63 = vpack.c.bf16 %v628_v61, %v627_v59  ;;  %v859_v0 = vpack.c.bf16 %v630_v62, %v629_v60 }
 0x114   : > { %657 = vst [vmem:[%s248_s8 + $0x10] sm:$0xff] %v858_v63  ;;  %658 = vst [vmem:[%s248_s8 + $0x18] sm:$0xff] %v859_v0 }
 0x117   : > { %v684_v1 = vld [vmem:[%s248_s8] sm:$0xff]  ;;  %v686_v2 = vld [vmem:[%s248_s8 + $0x8] sm:$0xff] }
 0x118   : > { %685 = vst [vmem:[%s671_s12] sm:$0xff] %v684_v1  ;;  %687 = vst [vmem:[%s671_s12 + $0x8] sm:$0xff] %v686_v2 }
 0x11b   : > { %v688_v3 = vld [vmem:[%s248_s8 + $0x10] sm:$0xff]  ;;  %v690_v4 = vld [vmem:[%s248_s8 + $0x18] sm:$0xff] }
 0x11c   : > { %689 = vst [vmem:[%s671_s12 + $0x1000] sm:$0xff] %v688_v3  ;;  %691 = vst [vmem:[%s671_s12 + $0x1008] sm:$0xff] %v690_v4 }
 0x11d PF: > { %s16_s17 = sadd.s32 1, %s1047_s17   ;;  %s1231_s12 = smov %s1031_s13 }
 0x11e   : > { %p13_p11 = scmp.ge.s32.totalorder %s16_s17, 258   ;;  %s1232_s13 = smov %s1035_s14 }
 0x11f   : > { %s1233_s14 = smov %s1122_s24  ;;  %s1234_s15 = smov %s1043_s16 }
 0x120   : > { %s1235_s16 = smov %s1237_s19  ;;  %15 = sbr.rel (!%p13_p11) target bundleno = 4 (0x4), region = 109 }
 0x125   :  { %707 = vsyncpa [#allocation4], 1 }
 0x126   :  { %709 = vsyncpa [#allocation4 + $0x1], 1 }

// kernel: conv_vae_forward.26
= control target key start
LH: loop header
LB: loop body
LE: loop exit
PB: predicated region body
PF: predicated region fallthrough
CT: control target
= control target key end

     0   :  { %s2764_s12 = smov 0   ;;  %s2766_s13 = smov 0   ;;  %s3448_s0 = inlined_call_operand.vmem [shape: bf16[64,512], index: 0, kind: input, shape index: {}]   ;;  %s3449_s1 = inlined_call_operand.vmem [shape: bf16[512,2048], index: 1, kind: input, shape index: {}]   ;;  %s3450_s2 = inlined_call_operand.vmem [shape: f32[64,1], index: 2, kind: input, shape index: {}]   ;;  %s3451_s3 = inlined_call_operand.vmem [shape: bf16[64,2048], index: 3, kind: output, shape index: {}]  }
   0x1   :  { %s2768_s14 = smov 0   ;;  %s2770_s15 = smov 0  }
   0x2   :  { %s2772_s16 = smov 0  }
   0x3 LB: > { %s28_s17 = sadd.s32 1, %s2737_s15  ;;  %s2249_s18 = sadd.s32 4294967295, %s2741_s16   ;;  %s2741_s16 = sphi %s2772_s16, %s13_s16   ;;  %s2737_s15 = sphi %s2770_s15, %s3456_s15   ;;  %s2733_s14 = sphi %s2768_s14, %s3455_s14   ;;  %s2729_s13 = sphi %s2766_s13, %s3454_s13   ;;  %s2725_s12 = sphi %s2764_s12, %s3453_s12  }
   0x4   : > { %p30_p0 = scmp.ge.s32.totalorder %s28_s17, 4  ;;  %p76_p1 = scmp.ne.s32.totalorder %s2729_s13, %s2725_s12 }
   0x5   : > { %p77_p2 = scmp.eq.s32.totalorder %s2741_s16, 0  ;;  %p134_p4 = scmp.eq.s32.totalorder %s2249_s18, 3 }
   0x6   : > { %s3458_s17 = smov (%p30_p0, %s28_s17), 0  ;;  %s69_s20 = sadd.s32 1, %s2729_s13 }
   0x7   : > { %p78_p3 = por %p77_p2, %p76_p1  ;;  %s65_s19 = ssub.s32 %s2737_s15, %s3458_s17 }
   0x8   : > { %p67_p5 = scmp.eq.s32.totalorder %s65_s19, 0  ;;  %p2799_p6 = por %p134_p4, %p76_p1 }
   0x9   : > { %p2254_p7 = scmp.ge.s32.totalorder %s2741_s16, 4 }
   0xa   : > { %s2804_s22 = scalar_select %p67_p5, %s2729_s13, %s69_s20  }
   0xb   : > { %180 = sbr.rel (%p2254_p7) target bundleno = 84 (0x54), region = 24 }
  0x10   : > { %183 = sbr.rel (!%p78_p3) target bundleno = 84 (0x54), region = 28  ;;  %s185_s23 = sand.u32 (%p78_p3), 1, %s2729_s13  }
  0x11   : > { %s2426_s24 = sshll.u32 (%p78_p3), %s2737_s15, 4  ;;  %s2255_s25 = sshll.u32 (%p78_p3), %s185_s23, 10 }
  0x12   : > { %s2812_s28 = scalar_lea.vmem (%p78_p3), %s3449_s1, %s2426_s24  ;;  %s2817_s29 = scalar_lea.vmem (%p78_p3), [#allocation3], %s2255_s25 }
  0x13   : > { %v206_v0 = vld [vmem:[%s2812_s28] sm:$0xff] (%p78_p3)  ;;  %v208_v1 = vld [vmem:[%s2812_s28 + $0x8] sm:$0xff] (%p78_p3) }
  0x14   : > { %v210_v2 = vld [vmem:[%s2812_s28 + $0x40] sm:$0xff] (%p78_p3)  ;;  %207 = vst [vmem:[%s2817_s29] sm:$0xff] (%p78_p3), %v206_v0  ;;  %209 = vst [vmem:[%s2817_s29 + $0x8] sm:$0xff] (%p78_p3), %v208_v1  ;;  %v212_v3 = vld [vmem:[%s2812_s28 + $0x48] sm:$0xff] (%p78_p3) }
  0x15   : > { %211 = vst [vmem:[%s2817_s29 + $0x10] sm:$0xff] %v210_v2  ;;  %v214_v4 = vld [vmem:[%s2812_s28 + $0x80] sm:$0xff]  ;;  %v216_v5 = vld [vmem:[%s2812_s28 + $0x88] sm:$0xff]  ;;  %213 = vst [vmem:[%s2817_s29 + $0x18] sm:$0xff] %v212_v3 }
  0x16   : > { %215 = vst [vmem:[%s2817_s29 + $0x20] sm:$0xff] %v214_v4  ;;  %217 = vst [vmem:[%s2817_s29 + $0x28] sm:$0xff] %v216_v5  ;;  %v218_v6 = vld [vmem:[%s2812_s28 + $0xc0] sm:$0xff]  ;;  %v220_v7 = vld [vmem:[%s2812_s28 + $0xc8] sm:$0xff] }
  0x17   : > { %v222_v8 = vld [vmem:[%s2812_s28 + $0x100] sm:$0xff]  ;;  %219 = vst [vmem:[%s2817_s29 + $0x30] sm:$0xff] %v218_v6  ;;  %221 = vst [vmem:[%s2817_s29 + $0x38] sm:$0xff] %v220_v7  ;;  %v224_v9 = vld [vmem:[%s2812_s28 + $0x108] sm:$0xff] }
  0x18   : > { %223 = vst [vmem:[%s2817_s29 + $0x40] sm:$0xff] %v222_v8  ;;  %v226_v10 = vld [vmem:[%s2812_s28 + $0x140] sm:$0xff]  ;;  %v228_v11 = vld [vmem:[%s2812_s28 + $0x148] sm:$0xff]  ;;  %225 = vst [vmem:[%s2817_s29 + $0x48] sm:$0xff] %v224_v9 }
  0x19   : > { %227 = vst [vmem:[%s2817_s29 + $0x50] sm:$0xff] %v226_v10  ;;  %229 = vst [vmem:[%s2817_s29 + $0x58] sm:$0xff] %v228_v11  ;;  %v230_v12 = vld [vmem:[%s2812_s28 + $0x180] sm:$0xff]  ;;  %v232_v13 = vld [vmem:[%s2812_s28 + $0x188] sm:$0xff] }
  0x1a   : > { %v234_v14 = vld [vmem:[%s2812_s28 + $0x1c0] sm:$0xff]  ;;  %231 = vst [vmem:[%s2817_s29 + $0x60] sm:$0xff] %v230_v12  ;;  %233 = vst [vmem:[%s2817_s29 + $0x68] sm:$0xff] %v232_v13  ;;  %v236_v15 = vld [vmem:[%s2812_s28 + $0x1c8] sm:$0xff] }
  0x1b   : > { %235 = vst [vmem:[%s2817_s29 + $0x70] sm:$0xff] %v234_v14  ;;  %v238_v16 = vld [vmem:[%s2812_s28 + $0x200] sm:$0xff]  ;;  %v240_v17 = vld [vmem:[%s2812_s28 + $0x208] sm:$0xff]  ;;  %237 = vst [vmem:[%s2817_s29 + $0x78] sm:$0xff] %v236_v15 }
  0x1c   : > { %239 = vst [vmem:[%s2817_s29 + $0x80] sm:$0xff] %v238_v16  ;;  %241 = vst [vmem:[%s2817_s29 + $0x88] sm:$0xff] %v240_v17  ;;  %v242_v18 = vld [vmem:[%s2812_s28 + $0x240] sm:$0xff]  ;;  %v244_v19 = vld [vmem:[%s2812_s28 + $0x248] sm:$0xff] }
  0x1d   : > { %v246_v20 = vld [vmem:[%s2812_s28 + $0x280] sm:$0xff]  ;;  %243 = vst [vmem:[%s2817_s29 + $0x90] sm:$0xff] %v242_v18  ;;  %245 = vst [vmem:[%s2817_s29 + $0x98] sm:$0xff] %v244_v19  ;;  %v248_v21 = vld [vmem:[%s2812_s28 + $0x288] sm:$0xff] }
  0x1e   : > { %247 = vst [vmem:[%s2817_s29 + $0xa0] sm:$0xff] %v246_v20  ;;  %v250_v22 = vld [vmem:[%s2812_s28 + $0x2c0] sm:$0xff]  ;;  %v252_v23 = vld [vmem:[%s2812_s28 + $0x2c8] sm:$0xff]  ;;  %249 = vst [vmem:[%s2817_s29 + $0xa8] sm:$0xff] %v248_v21 }
  0x1f   : > { %251 = vst [vmem:[%s2817_s29 + $0xb0] sm:$0xff] %v250_v22  ;;  %253 = vst [vmem:[%s2817_s29 + $0xb8] sm:$0xff] %v252_v23  ;;  %v254_v24 = vld [vmem:[%s2812_s28 + $0x300] sm:$0xff]  ;;  %v256_v25 = vld [vmem:[%s2812_s28 + $0x308] sm:$0xff] }
  0x20   : > { %v258_v26 = vld [vmem:[%s2812_s28 + $0x340] sm:$0xff]  ;;  %255 = vst [vmem:[%s2817_s29 + $0xc0] sm:$0xff] %v254_v24  ;;  %257 = vst [vmem:[%s2817_s29 + $0xc8] sm:$0xff] %v256_v25  ;;  %v260_v27 = vld [vmem:[%s2812_s28 + $0x348] sm:$0xff] }
  0x21   : > { %259 = vst [vmem:[%s2817_s29 + $0xd0] sm:$0xff] %v258_v26  ;;  %v262_v28 = vld [vmem:[%s2812_s28 + $0x380] sm:$0xff]  ;;  %v264_v29 = vld [vmem:[%s2812_s28 + $0x388] sm:$0xff]  ;;  %261 = vst [vmem:[%s2817_s29 + $0xd8] sm:$0xff] %v260_v27 }
  0x22   : > { %263 = vst [vmem:[%s2817_s29 + $0xe0] sm:$0xff] %v262_v28  ;;  %265 = vst [vmem:[%s2817_s29 + $0xe8] sm:$0xff] %v264_v29  ;;  %v266_v30 = vld [vmem:[%s2812_s28 + $0x3c0] sm:$0xff]  ;;  %v268_v31 = vld [vmem:[%s2812_s28 + $0x3c8] sm:$0xff] }
  0x23   : > { %v270_v32 = vld [vmem:[%s2812_s28 + $0x400] sm:$0xff]  ;;  %267 = vst [vmem:[%s2817_s29 + $0xf0] sm:$0xff] %v266_v30  ;;  %269 = vst [vmem:[%s2817_s29 + $0xf8] sm:$0xff] %v268_v31  ;;  %v272_v33 = vld [vmem:[%s2812_s28 + $0x408] sm:$0xff] }
  0x24   : > { %271 = vst [vmem:[%s2817_s29 + $0x100] sm:$0xff] %v270_v32  ;;  %v274_v34 = vld [vmem:[%s2812_s28 + $0x440] sm:$0xff]  ;;  %v276_v35 = vld [vmem:[%s2812_s28 + $0x448] sm:$0xff]  ;;  %273 = vst [vmem:[%s2817_s29 + $0x108] sm:$0xff] %v272_v33 }
  0x25   : > { %275 = vst [vmem:[%s2817_s29 + $0x110] sm:$0xff] %v274_v34  ;;  %277 = vst [vmem:[%s2817_s29 + $0x118] sm:$0xff] %v276_v35  ;;  %v278_v36 = vld [vmem:[%s2812_s28 + $0x480] sm:$0xff]  ;;  %v280_v37 = vld [vmem:[%s2812_s28 + $0x488] sm:$0xff] }
  0x26   : > { %v282_v38 = vld [vmem:[%s2812_s28 + $0x4c0] sm:$0xff]  ;;  %279 = vst [vmem:[%s2817_s29 + $0x120] sm:$0xff] %v278_v36  ;;  %281 = vst [vmem:[%s2817_s29 + $0x128] sm:$0xff] %v280_v37  ;;  %v284_v39 = vld [vmem:[%s2812_s28 + $0x4c8] sm:$0xff] }
  0x27   : > { %283 = vst [vmem:[%s2817_s29 + $0x130] sm:$0xff] %v282_v38  ;;  %v286_v40 = vld [vmem:[%s2812_s28 + $0x500] sm:$0xff]  ;;  %v288_v41 = vld [vmem:[%s2812_s28 + $0x508] sm:$0xff]  ;;  %285 = vst [vmem:[%s2817_s29 + $0x138] sm:$0xff] %v284_v39 }
  0x28   : > { %287 = vst [vmem:[%s2817_s29 + $0x140] sm:$0xff] %v286_v40  ;;  %289 = vst [vmem:[%s2817_s29 + $0x148] sm:$0xff] %v288_v41  ;;  %v290_v42 = vld [vmem:[%s2812_s28 + $0x540] sm:$0xff]  ;;  %v292_v43 = vld [vmem:[%s2812_s28 + $0x548] sm:$0xff] }
  0x29   : > { %v294_v44 = vld [vmem:[%s2812_s28 + $0x580] sm:$0xff]  ;;  %291 = vst [vmem:[%s2817_s29 + $0x150] sm:$0xff] %v290_v42  ;;  %293 = vst [vmem:[%s2817_s29 + $0x158] sm:$0xff] %v292_v43  ;;  %v296_v45 = vld [vmem:[%s2812_s28 + $0x588] sm:$0xff] }
  0x2a   : > { %295 = vst [vmem:[%s2817_s29 + $0x160] sm:$0xff] %v294_v44  ;;  %v298_v46 = vld [vmem:[%s2812_s28 + $0x5c0] sm:$0xff]  ;;  %v300_v47 = vld [vmem:[%s2812_s28 + $0x5c8] sm:$0xff]  ;;  %297 = vst [vmem:[%s2817_s29 + $0x168] sm:$0xff] %v296_v45 }
  0x2b   : > { %299 = vst [vmem:[%s2817_s29 + $0x170] sm:$0xff] %v298_v46  ;;  %301 = vst [vmem:[%s2817_s29 + $0x178] sm:$0xff] %v300_v47  ;;  %v302_v48 = vld [vmem:[%s2812_s28 + $0x600] sm:$0xff]  ;;  %v304_v49 = vld [vmem:[%s2812_s28 + $0x608] sm:$0xff] }
  0x2c   : > { %v306_v50 = vld [vmem:[%s2812_s28 + $0x640] sm:$0xff]  ;;  %303 = vst [vmem:[%s2817_s29 + $0x180] sm:$0xff] %v302_v48  ;;  %305 = vst [vmem:[%s2817_s29 + $0x188] sm:$0xff] %v304_v49  ;;  %v308_v51 = vld [vmem:[%s2812_s28 + $0x648] sm:$0xff] }
  0x2d   : > { %307 = vst [vmem:[%s2817_s29 + $0x190] sm:$0xff] %v306_v50  ;;  %v310_v52 = vld [vmem:[%s2812_s28 + $0x680] sm:$0xff]  ;;  %v312_v53 = vld [vmem:[%s2812_s28 + $0x688] sm:$0xff]  ;;  %309 = vst [vmem:[%s2817_s29 + $0x198] sm:$0xff] %v308_v51 }
  0x2e   : > { %311 = vst [vmem:[%s2817_s29 + $0x1a0] sm:$0xff] %v310_v52  ;;  %313 = vst [vmem:[%s2817_s29 + $0x1a8] sm:$0xff] %v312_v53  ;;  %v314_v54 = vld [vmem:[%s2812_s28 + $0x6c0] sm:$0xff]  ;;  %v316_v55 = vld [vmem:[%s2812_s28 + $0x6c8] sm:$0xff] }
  0x2f   : > { %v318_v56 = vld [vmem:[%s2812_s28 + $0x700] sm:$0xff]  ;;  %315 = vst [vmem:[%s2817_s29 + $0x1b0] sm:$0xff] %v314_v54  ;;  %317 = vst [vmem:[%s2817_s29 + $0x1b8] sm:$0xff] %v316_v55  ;;  %v320_v57 = vld [vmem:[%s2812_s28 + $0x708] sm:$0xff] }
  0x30   : > { %319 = vst [vmem:[%s2817_s29 + $0x1c0] sm:$0xff] %v318_v56  ;;  %v322_v58 = vld [vmem:[%s2812_s28 + $0x740] sm:$0xff]  ;;  %v324_v59 = vld [vmem:[%s2812_s28 + $0x748] sm:$0xff]  ;;  %321 = vst [vmem:[%s2817_s29 + $0x1c8] sm:$0xff] %v320_v57 }
  0x31   : > { %323 = vst [vmem:[%s2817_s29 + $0x1d0] sm:$0xff] %v322_v58  ;;  %325 = vst [vmem:[%s2817_s29 + $0x1d8] sm:$0xff] %v324_v59  ;;  %v326_v60 = vld [vmem:[%s2812_s28 + $0x780] sm:$0xff]  ;;  %v328_v61 = vld [vmem:[%s2812_s28 + $0x788] sm:$0xff] }
  0x32   : > { %v330_v62 = vld [vmem:[%s2812_s28 + $0x7c0] sm:$0xff]  ;;  %327 = vst [vmem:[%s2817_s29 + $0x1e0] sm:$0xff] %v326_v60  ;;  %329 = vst [vmem:[%s2817_s29 + $0x1e8] sm:$0xff] %v328_v61  ;;  %v332_v63 = vld [vmem:[%s2812_s28 + $0x7c8] sm:$0xff] }
  0x33   : > { %331 = vst [vmem:[%s2817_s29 + $0x1f0] sm:$0xff] %v330_v62  ;;  %v334_v0 = vld [vmem:[%s2812_s28 + $0x800] sm:$0xff]  ;;  %v336_v1 = vld [vmem:[%s2812_s28 + $0x808] sm:$0xff]  ;;  %333 = vst [vmem:[%s2817_s29 + $0x1f8] sm:$0xff] %v332_v63 }
  0x34   : > { %335 = vst [vmem:[%s2817_s29 + $0x200] sm:$0xff] %v334_v0  ;;  %337 = vst [vmem:[%s2817_s29 + $0x208] sm:$0xff] %v336_v1  ;;  %v338_v2 = vld [vmem:[%s2812_s28 + $0x840] sm:$0xff]  ;;  %v340_v3 = vld [vmem:[%s2812_s28 + $0x848] sm:$0xff] }
  0x35   : > { %v342_v4 = vld [vmem:[%s2812_s28 + $0x880] sm:$0xff]  ;;  %339 = vst [vmem:[%s2817_s29 + $0x210] sm:$0xff] %v338_v2  ;;  %341 = vst [vmem:[%s2817_s29 + $0x218] sm:$0xff] %v340_v3  ;;  %v344_v5 = vld [vmem:[%s2812_s28 + $0x888] sm:$0xff] }
  0x36   : > { %343 = vst [vmem:[%s2817_s29 + $0x220] sm:$0xff] %v342_v4  ;;  %v346_v6 = vld [vmem:[%s2812_s28 + $0x8c0] sm:$0xff]  ;;  %v348_v7 = vld [vmem:[%s2812_s28 + $0x8c8] sm:$0xff]  ;;  %345 = vst [vmem:[%s2817_s29 + $0x228] sm:$0xff] %v344_v5 }
  0x37   : > { %347 = vst [vmem:[%s2817_s29 + $0x230] sm:$0xff] %v346_v6  ;;  %349 = vst [vmem:[%s2817_s29 + $0x238] sm:$0xff] %v348_v7  ;;  %v350_v8 = vld [vmem:[%s2812_s28 + $0x900] sm:$0xff]  ;;  %v352_v9 = vld [vmem:[%s2812_s28 + $0x908] sm:$0xff] }
  0x38   : > { %v354_v10 = vld [vmem:[%s2812_s28 + $0x940] sm:$0xff]  ;;  %351 = vst [vmem:[%s2817_s29 + $0x240] sm:$0xff] %v350_v8  ;;  %353 = vst [vmem:[%s2817_s29 + $0x248] sm:$0xff] %v352_v9  ;;  %v356_v11 = vld [vmem:[%s2812_s28 + $0x948] sm:$0xff] }
  0x39   : > { %355 = vst [vmem:[%s2817_s29 + $0x250] sm:$0xff] %v354_v10  ;;  %v358_v12 = vld [vmem:[%s2812_s28 + $0x980] sm:$0xff]  ;;  %v360_v13 = vld [vmem:[%s2812_s28 + $0x988] sm:$0xff]  ;;  %357 = vst [vmem:[%s2817_s29 + $0x258] sm:$0xff] %v356_v11 }
  0x3a   : > { %359 = vst [vmem:[%s2817_s29 + $0x260] sm:$0xff] %v358_v12  ;;  %361 = vst [vmem:[%s2817_s29 + $0x268] sm:$0xff] %v360_v13  ;;  %v362_v14 = vld [vmem:[%s2812_s28 + $0x9c0] sm:$0xff]  ;;  %v364_v15 = vld [vmem:[%s2812_s28 + $0x9c8] sm:$0xff] }
  0x3b   : > { %v366_v16 = vld [vmem:[%s2812_s28 + $0xa00] sm:$0xff]  ;;  %363 = vst [vmem:[%s2817_s29 + $0x270] sm:$0xff] %v362_v14  ;;  %365 = vst [vmem:[%s2817_s29 + $0x278] sm:$0xff] %v364_v15  ;;  %v368_v17 = vld [vmem:[%s2812_s28 + $0xa08] sm:$0xff] }
  0x3c   : > { %367 = vst [vmem:[%s2817_s29 + $0x280] sm:$0xff] %v366_v16  ;;  %v370_v18 = vld [vmem:[%s2812_s28 + $0xa40] sm:$0xff]  ;;  %v372_v19 = vld [vmem:[%s2812_s28 + $0xa48] sm:$0xff]  ;;  %369 = vst [vmem:[%s2817_s29 + $0x288] sm:$0xff] %v368_v17 }
  0x3d   : > { %371 = vst [vmem:[%s2817_s29 + $0x290] sm:$0xff] %v370_v18  ;;  %373 = vst [vmem:[%s2817_s29 + $0x298] sm:$0xff] %v372_v19  ;;  %v374_v20 = vld [vmem:[%s2812_s28 + $0xa80] sm:$0xff]  ;;  %v376_v21 = vld [vmem:[%s2812_s28 + $0xa88] sm:$0xff] }
  0x3e   : > { %v378_v22 = vld [vmem:[%s2812_s28 + $0xac0] sm:$0xff]  ;;  %375 = vst [vmem:[%s2817_s29 + $0x2a0] sm:$0xff] %v374_v20  ;;  %377 = vst [vmem:[%s2817_s29 + $0x2a8] sm:$0xff] %v376_v21  ;;  %v380_v23 = vld [vmem:[%s2812_s28 + $0xac8] sm:$0xff] }
  0x3f   : > { %379 = vst [vmem:[%s2817_s29 + $0x2b0] sm:$0xff] %v378_v22  ;;  %v382_v24 = vld [vmem:[%s2812_s28 + $0xb00] sm:$0xff]  ;;  %v384_v25 = vld [vmem:[%s2812_s28 + $0xb08] sm:$0xff]  ;;  %381 = vst [vmem:[%s2817_s29 + $0x2b8] sm:$0xff] %v380_v23 }
  0x40   : > { %383 = vst [vmem:[%s2817_s29 + $0x2c0] sm:$0xff] %v382_v24  ;;  %385 = vst [vmem:[%s2817_s29 + $0x2c8] sm:$0xff] %v384_v25  ;;  %v386_v26 = vld [vmem:[%s2812_s28 + $0xb40] sm:$0xff]  ;;  %v388_v27 = vld [vmem:[%s2812_s28 + $0xb48] sm:$0xff] }
  0x41   : > { %v390_v28 = vld [vmem:[%s2812_s28 + $0xb80] sm:$0xff]  ;;  %387 = vst [vmem:[%s2817_s29 + $0x2d0] sm:$0xff] %v386_v26  ;;  %389 = vst [vmem:[%s2817_s29 + $0x2d8] sm:$0xff] %v388_v27  ;;  %v392_v29 = vld [vmem:[%s2812_s28 + $0xb88] sm:$0xff] }
  0x42   : > { %391 = vst [vmem:[%s2817_s29 + $0x2e0] sm:$0xff] %v390_v28  ;;  %v394_v30 = vld [vmem:[%s2812_s28 + $0xbc0] sm:$0xff]  ;;  %v396_v31 = vld [vmem:[%s2812_s28 + $0xbc8] sm:$0xff]  ;;  %393 = vst [vmem:[%s2817_s29 + $0x2e8] sm:$0xff] %v392_v29 }
  0x43   : > { %395 = vst [vmem:[%s2817_s29 + $0x2f0] sm:$0xff] %v394_v30  ;;  %397 = vst [vmem:[%s2817_s29 + $0x2f8] sm:$0xff] %v396_v31  ;;  %v398_v32 = vld [vmem:[%s2812_s28 + $0xc00] sm:$0xff]  ;;  %v400_v33 = vld [vmem:[%s2812_s28 + $0xc08] sm:$0xff] }
  0x44   : > { %v402_v34 = vld [vmem:[%s2812_s28 + $0xc40] sm:$0xff]  ;;  %399 = vst [vmem:[%s2817_s29 + $0x300] sm:$0xff] %v398_v32  ;;  %401 = vst [vmem:[%s2817_s29 + $0x308] sm:$0xff] %v400_v33  ;;  %v404_v35 = vld [vmem:[%s2812_s28 + $0xc48] sm:$0xff] }
  0x45   : > { %403 = vst [vmem:[%s2817_s29 + $0x310] sm:$0xff] %v402_v34  ;;  %v406_v36 = vld [vmem:[%s2812_s28 + $0xc80] sm:$0xff]  ;;  %v408_v37 = vld [vmem:[%s2812_s28 + $0xc88] sm:$0xff]  ;;  %405 = vst [vmem:[%s2817_s29 + $0x318] sm:$0xff] %v404_v35 }
  0x46   : > { %407 = vst [vmem:[%s2817_s29 + $0x320] sm:$0xff] %v406_v36  ;;  %409 = vst [vmem:[%s2817_s29 + $0x328] sm:$0xff] %v408_v37  ;;  %v410_v38 = vld [vmem:[%s2812_s28 + $0xcc0] sm:$0xff]  ;;  %v412_v39 = vld [vmem:[%s2812_s28 + $0xcc8] sm:$0xff] }
  0x47   : > { %v414_v40 = vld [vmem:[%s2812_s28 + $0xd00] sm:$0xff]  ;;  %411 = vst [vmem:[%s2817_s29 + $0x330] sm:$0xff] %v410_v38  ;;  %413 = vst [vmem:[%s2817_s29 + $0x338] sm:$0xff] %v412_v39  ;;  %v416_v41 = vld [vmem:[%s2812_s28 + $0xd08] sm:$0xff] }
  0x48   : > { %415 = vst [vmem:[%s2817_s29 + $0x340] sm:$0xff] %v414_v40  ;;  %v418_v42 = vld [vmem:[%s2812_s28 + $0xd40] sm:$0xff]  ;;  %v420_v43 = vld [vmem:[%s2812_s28 + $0xd48] sm:$0xff]  ;;  %417 = vst [vmem:[%s2817_s29 + $0x348] sm:$0xff] %v416_v41 }
  0x49   : > { %419 = vst [vmem:[%s2817_s29 + $0x350] sm:$0xff] %v418_v42  ;;  %421 = vst [vmem:[%s2817_s29 + $0x358] sm:$0xff] %v420_v43  ;;  %v422_v44 = vld [vmem:[%s2812_s28 + $0xd80] sm:$0xff]  ;;  %v424_v45 = vld [vmem:[%s2812_s28 + $0xd88] sm:$0xff] }
  0x4a   : > { %v426_v46 = vld [vmem:[%s2812_s28 + $0xdc0] sm:$0xff]  ;;  %423 = vst [vmem:[%s2817_s29 + $0x360] sm:$0xff] %v422_v44  ;;  %425 = vst [vmem:[%s2817_s29 + $0x368] sm:$0xff] %v424_v45  ;;  %v428_v47 = vld [vmem:[%s2812_s28 + $0xdc8] sm:$0xff] }
  0x4b   : > { %427 = vst [vmem:[%s2817_s29 + $0x370] sm:$0xff] %v426_v46  ;;  %v430_v48 = vld [vmem:[%s2812_s28 + $0xe00] sm:$0xff]  ;;  %v432_v49 = vld [vmem:[%s2812_s28 + $0xe08] sm:$0xff]  ;;  %429 = vst [vmem:[%s2817_s29 + $0x378] sm:$0xff] %v428_v47 }
  0x4c   : > { %431 = vst [vmem:[%s2817_s29 + $0x380] sm:$0xff] %v430_v48  ;;  %433 = vst [vmem:[%s2817_s29 + $0x388] sm:$0xff] %v432_v49  ;;  %v434_v50 = vld [vmem:[%s2812_s28 + $0xe40] sm:$0xff]  ;;  %v436_v51 = vld [vmem:[%s2812_s28 + $0xe48] sm:$0xff] }
  0x4d   : > { %v438_v52 = vld [vmem:[%s2812_s28 + $0xe80] sm:$0xff]  ;;  %435 = vst [vmem:[%s2817_s29 + $0x390] sm:$0xff] %v434_v50  ;;  %437 = vst [vmem:[%s2817_s29 + $0x398] sm:$0xff] %v436_v51  ;;  %v440_v53 = vld [vmem:[%s2812_s28 + $0xe88] sm:$0xff] }
  0x4e   : > { %439 = vst [vmem:[%s2817_s29 + $0x3a0] sm:$0xff] %v438_v52  ;;  %v442_v54 = vld [vmem:[%s2812_s28 + $0xec0] sm:$0xff]  ;;  %v444_v55 = vld [vmem:[%s2812_s28 + $0xec8] sm:$0xff]  ;;  %441 = vst [vmem:[%s2817_s29 + $0x3a8] sm:$0xff] %v440_v53 }
  0x4f   : > { %443 = vst [vmem:[%s2817_s29 + $0x3b0] sm:$0xff] %v442_v54  ;;  %445 = vst [vmem:[%s2817_s29 + $0x3b8] sm:$0xff] %v444_v55  ;;  %v446_v56 = vld [vmem:[%s2812_s28 + $0xf00] sm:$0xff]  ;;  %v448_v57 = vld [vmem:[%s2812_s28 + $0xf08] sm:$0xff] }
  0x50   : > { %v450_v58 = vld [vmem:[%s2812_s28 + $0xf40] sm:$0xff]  ;;  %447 = vst [vmem:[%s2817_s29 + $0x3c0] sm:$0xff] %v446_v56  ;;  %449 = vst [vmem:[%s2817_s29 + $0x3c8] sm:$0xff] %v448_v57  ;;  %v452_v59 = vld [vmem:[%s2812_s28 + $0xf48] sm:$0xff] }
  0x51   : > { %451 = vst [vmem:[%s2817_s29 + $0x3d0] sm:$0xff] %v450_v58  ;;  %v454_v60 = vld [vmem:[%s2812_s28 + $0xf80] sm:$0xff]  ;;  %v456_v61 = vld [vmem:[%s2812_s28 + $0xf88] sm:$0xff]  ;;  %453 = vst [vmem:[%s2817_s29 + $0x3d8] sm:$0xff] %v452_v59 }
  0x52   : > { %455 = vst [vmem:[%s2817_s29 + $0x3e0] sm:$0xff] %v454_v60  ;;  %457 = vst [vmem:[%s2817_s29 + $0x3e8] sm:$0xff] %v456_v61  ;;  %v458_v62 = vld [vmem:[%s2812_s28 + $0xfc0] sm:$0xff]  ;;  %v460_v63 = vld [vmem:[%s2812_s28 + $0xfc8] sm:$0xff] }
  0x53   : > { %459 = vst [vmem:[%s2817_s29 + $0x3f0] sm:$0xff] %v458_v62  ;;  %461 = vst [vmem:[%s2817_s29 + $0x3f8] sm:$0xff] %v460_v63 }
  0x54 PF: > { %p2258_p8 = scmp.ge.s32.totalorder %s2741_s16, 1  ;;  %p466_p9 = scmp.lt.s32.totalorder %s2741_s16, 5 }
  0x56   : > { %p467_p10 = pnand %p2258_p8, %p466_p9 }
  0x57   : > { %s473_s30 = sand.u32 (!%p467_p10), 1, %s2725_s12  }
  0x58   : > { %470 = sbr.rel (%p467_p10) target bundleno = 464 (0x1d0), region = 51  ;;  %s2259_s4 = sshll.u32 (!%p467_p10), %s473_s30, 10 }
  0x59   : > { %s3087_s9 = scalar_lea.vmem (!%p467_p10), [#allocation3], %s2259_s4 }
  0x5d   : > { %v3080_v0 = vld [vmem:[%s3448_s0 + $0x4] ss:$16 sps:$4 sm:$0xff]   ;;  %v3085_v1 = vld [vmem:[%s3448_s0 + $0xc] ss:$16 sps:$4 sm:$0xff]   ;;  %v2491_v4 = vld [vmem:[%s3087_s9 + $0xe0] ss:$16 sps:$4 sm:$0xff]  }
  0x5e   : > { %v2487_v2 = vld [vmem:[%s3087_s9 + $0xe4] ss:$16 sps:$4 sm:$0xff]   ;;  %1496 = vmatprep.mubr.bf16.mxu0 %v3080_v0  ;;  %1569 = vmatprep.mubr.bf16.mxu1 %v3085_v1  ;;  %v2492_v5 = vld [vmem:[%s3087_s9 + $0x2e0] ss:$16 sps:$4 sm:$0xff]   ;;  %v2743_v10 = vmov 0  }
  0x5f   : > { %v2489_v3 = vld [vmem:[%s3087_s9 + $0x2e4] ss:$16 sps:$4 sm:$0xff]   ;;  %1464 = vmatprep.subr.bf16.mxu0 %v2487_v2  ;;  %v2497_v8 = vld [vmem:[%s3087_s9 + $0xc0] ss:$16 sps:$4 sm:$0xff]   ;;  %2485 = vset.pattern.permute.xlu0 %v2743_v10 }
  0x60   : > { %1537 = vmatprep.subr.bf16.mxu1 %v2489_v3  ;;  %v2493_v6 = vld [vmem:[%s3087_s9 + $0xc4] ss:$16 sps:$4 sm:$0xff]   ;;  %1465 = vmatpush1.bf16.msra.mxu0 %v2491_v4  ;;  %v2498_v9 = vld [vmem:[%s3087_s9 + $0x2c0] ss:$16 sps:$4 sm:$0xff]  }
  0x61   : > { %1538 = vmatpush1.bf16.msra.mxu1 %v2492_v5  ;;  %v2495_v7 = vld [vmem:[%s3087_s9 + $0x2c4] ss:$16 sps:$4 sm:$0xff]   ;;  %1466 = vmatprep.subr.bf16.mxu0 %v2493_v6  ;;  %v2503_v13 = vld [vmem:[%s3087_s9 + $0xa0] ss:$16 sps:$4 sm:$0xff]   ;;  %v2591_v5 = vld [vmem:[%s3087_s9 + $0xec] ss:$16 sps:$4 sm:$0xff]  }
  0x62   : > { %1539 = vmatprep.subr.bf16.mxu1 %v2495_v7  ;;  %v2499_v11 = vld [vmem:[%s3087_s9 + $0xa4] ss:$16 sps:$4 sm:$0xff]   ;;  %2486 = vset.pattern.permute.xlu1 %v2743_v10  ;;  %v2504_v14 = vld [vmem:[%s3087_s9 + $0x2a0] ss:$16 sps:$4 sm:$0xff]   ;;  %v2594_v6 = vld [vmem:[%s3087_s9 + $0x2ec] ss:$16 sps:$4 sm:$0xff]  }
  0x63   : > { %v2501_v12 = vld [vmem:[%s3087_s9 + $0x2a4] ss:$16 sps:$4 sm:$0xff]   ;;  %v2509_v17 = vld [vmem:[%s3087_s9 + $0x80] ss:$16 sps:$4 sm:$0xff]   ;;  %v2592_v10 = vld [vmem:[%s3087_s9 + $0x2e8] ss:$16 sps:$4 sm:$0xff]  }
  0x64   : > { %1467 = vmatpush1.bf16.msra.mxu0 %v2497_v8  ;;  %v2505_v15 = vld [vmem:[%s3087_s9 + $0x84] ss:$16 sps:$4 sm:$0xff]   ;;  %v2510_v18 = vld [vmem:[%s3087_s9 + $0x280] ss:$16 sps:$4 sm:$0xff]   ;;  %v3165_v8 = vld [vmem:[%s3448_s0 + $0x8] ss:$16 sps:$4 sm:$0xff]  }
  0x65   : > { %1540 = vmatpush1.bf16.msra.mxu1 %v2498_v9  ;;  %1468 = vmatprep.subr.bf16.mxu0 %v2499_v11  ;;  %v2507_v16 = vld [vmem:[%s3087_s9 + $0x284] ss:$16 sps:$4 sm:$0xff]   ;;  %v2515_v21 = vld [vmem:[%s3087_s9 + $0x60] ss:$16 sps:$4 sm:$0xff]   ;;  %v2589_v9 = vld [vmem:[%s3087_s9 + $0xe8] ss:$16 sps:$4 sm:$0xff]  }
  0x66   : > { %1541 = vmatprep.subr.bf16.mxu1 %v2501_v12  ;;  %v2511_v19 = vld [vmem:[%s3087_s9 + $0x64] ss:$16 sps:$4 sm:$0xff]   ;;  %v2516_v22 = vld [vmem:[%s3087_s9 + $0x260] ss:$16 sps:$4 sm:$0xff]   ;;  %v2597_v11 = vld [vmem:[%s3087_s9 + $0xcc] ss:$16 sps:$4 sm:$0xff]  }
  0x67   : > { %v2513_v20 = vld [vmem:[%s3087_s9 + $0x264] ss:$16 sps:$4 sm:$0xff]   ;;  %v2521_v25 = vld [vmem:[%s3087_s9 + $0x40] ss:$16 sps:$4 sm:$0xff]   ;;  %v2600_v12 = vld [vmem:[%s3087_s9 + $0x2cc] ss:$16 sps:$4 sm:$0xff]  }
  0x68   : > { %1469 = vmatpush1.bf16.msra.mxu0 %v2503_v13  ;;  %v2517_v23 = vld [vmem:[%s3087_s9 + $0x44] ss:$16 sps:$4 sm:$0xff]   ;;  %v2522_v26 = vld [vmem:[%s3087_s9 + $0x240] ss:$16 sps:$4 sm:$0xff]   ;;  %v2595_v13 = vld [vmem:[%s3087_s9 + $0xc8] ss:$16 sps:$4 sm:$0xff]  }
  0x69   : > { %1542 = vmatpush1.bf16.msra.mxu1 %v2504_v14  ;;  %1470 = vmatprep.subr.bf16.mxu0 %v2505_v15  ;;  %v2519_v24 = vld [vmem:[%s3087_s9 + $0x244] ss:$16 sps:$4 sm:$0xff]   ;;  %v2527_v29 = vld [vmem:[%s3087_s9 + $0x20] ss:$16 sps:$4 sm:$0xff]   ;;  %v2598_v15 = vld [vmem:[%s3087_s9 + $0x2c8] ss:$16 sps:$4 sm:$0xff]  }
  0x6a   : > { %1543 = vmatprep.subr.bf16.mxu1 %v2507_v16  ;;  %v2523_v27 = vld [vmem:[%s3087_s9 + $0x24] ss:$16 sps:$4 sm:$0xff]   ;;  %v2528_v30 = vld [vmem:[%s3087_s9 + $0x220] ss:$16 sps:$4 sm:$0xff]   ;;  %v2603_v16 = vld [vmem:[%s3087_s9 + $0xac] ss:$16 sps:$4 sm:$0xff]  }
  0x6b   : > { %v2525_v28 = vld [vmem:[%s3087_s9 + $0x224] ss:$16 sps:$4 sm:$0xff]   ;;  %v2533_v33 = vld [vmem:[%s3087_s9] ss:$16 sps:$4 sm:$0xff]  }
  0x6c   : > { %1471 = vmatpush1.bf16.msra.mxu0 %v2509_v17  ;;  %v2529_v31 = vld [vmem:[%s3087_s9 + $0x4] ss:$16 sps:$4 sm:$0xff]   ;;  %v2534_v34 = vld [vmem:[%s3087_s9 + $0x200] ss:$16 sps:$4 sm:$0xff]   ;;  %v3184_v17 = vld [vmem:[%s3448_s0 + $0x2c] ss:$16 sps:$4 sm:$0xff]  }
  0x6d   : > { %1544 = vmatpush1.bf16.msra.mxu1 %v2510_v18  ;;  %1472 = vmatprep.subr.bf16.mxu0 %v2511_v19  ;;  %v2531_v32 = vld [vmem:[%s3087_s9 + $0x204] ss:$16 sps:$4 sm:$0xff]   ;;  %v2539_v37 = vld [vmem:[%s3087_s9 + $0x1e0] ss:$16 sps:$4 sm:$0xff]   ;;  %v2606_v18 = vld [vmem:[%s3087_s9 + $0x2ac] ss:$16 sps:$4 sm:$0xff]  }
  0x6e   : > { %1545 = vmatprep.subr.bf16.mxu1 %v2513_v20  ;;  %v2535_v35 = vld [vmem:[%s3087_s9 + $0x1e4] ss:$16 sps:$4 sm:$0xff]   ;;  %v2540_v38 = vld [vmem:[%s3087_s9 + $0x3e0] ss:$16 sps:$4 sm:$0xff]   ;;  %v2601_v19 = vld [vmem:[%s3087_s9 + $0xa8] ss:$16 sps:$4 sm:$0xff]  }
  0x6f   : > { %v2537_v36 = vld [vmem:[%s3087_s9 + $0x3e4] ss:$16 sps:$4 sm:$0xff]   ;;  %v2545_v41 = vld [vmem:[%s3087_s9 + $0x1c0] ss:$16 sps:$4 sm:$0xff]  }
  0x70   : > { %1473 = vmatpush1.bf16.msra.mxu0 %v2515_v21  ;;  %v2541_v39 = vld [vmem:[%s3087_s9 + $0x1c4] ss:$16 sps:$4 sm:$0xff]   ;;  %v2546_v42 = vld [vmem:[%s3087_s9 + $0x3c0] ss:$16 sps:$4 sm:$0xff]   ;;  %v3198_v21 = vld [vmem:[%s3448_s0 + $0x28] ss:$16 sps:$4 sm:$0xff]  }
  0x71   : > { %1546 = vmatpush1.bf16.msra.mxu1 %v2516_v22  ;;  %1474 = vmatprep.subr.bf16.mxu0 %v2517_v23  ;;  %v2543_v40 = vld [vmem:[%s3087_s9 + $0x3c4] ss:$16 sps:$4 sm:$0xff]   ;;  %v2551_v45 = vld [vmem:[%s3087_s9 + $0x1a0] ss:$16 sps:$4 sm:$0xff]   ;;  %v2604_v22 = vld [vmem:[%s3087_s9 + $0x2a8] ss:$16 sps:$4 sm:$0xff]  }
  0x72   : > { %1547 = vmatprep.subr.bf16.mxu1 %v2519_v24  ;;  %v2547_v43 = vld [vmem:[%s3087_s9 + $0x1a4] ss:$16 sps:$4 sm:$0xff]   ;;  %v2552_v46 = vld [vmem:[%s3087_s9 + $0x3a0] ss:$16 sps:$4 sm:$0xff]   ;;  %v2609_v23 = vld [vmem:[%s3087_s9 + $0x8c] ss:$16 sps:$4 sm:$0xff]  }
  0x73   : > { %v2549_v44 = vld [vmem:[%s3087_s9 + $0x3a4] ss:$16 sps:$4 sm:$0xff]   ;;  %v2557_v49 = vld [vmem:[%s3087_s9 + $0x180] ss:$16 sps:$4 sm:$0xff]   ;;  %v2612_v24 = vld [vmem:[%s3087_s9 + $0x28c] ss:$16 sps:$4 sm:$0xff]  }
  0x74   : > { %1475 = vmatpush1.bf16.msra.mxu0 %v2521_v25  ;;  %v2553_v47 = vld [vmem:[%s3087_s9 + $0x184] ss:$16 sps:$4 sm:$0xff]   ;;  %v2558_v50 = vld [vmem:[%s3087_s9 + $0x380] ss:$16 sps:$4 sm:$0xff]   ;;  %v2607_v25 = vld [vmem:[%s3087_s9 + $0x88] ss:$16 sps:$4 sm:$0xff]  }
  0x75   : > { %1548 = vmatpush1.bf16.msra.mxu1 %v2522_v26  ;;  %1476 = vmatprep.subr.bf16.mxu0 %v2523_v27  ;;  %v2555_v48 = vld [vmem:[%s3087_s9 + $0x384] ss:$16 sps:$4 sm:$0xff]   ;;  %v2563_v53 = vld [vmem:[%s3087_s9 + $0x160] ss:$16 sps:$4 sm:$0xff]   ;;  %v2610_v27 = vld [vmem:[%s3087_s9 + $0x288] ss:$16 sps:$4 sm:$0xff]  }
  0x76   : > { %1549 = vmatprep.subr.bf16.mxu1 %v2525_v28  ;;  %v2559_v51 = vld [vmem:[%s3087_s9 + $0x164] ss:$16 sps:$4 sm:$0xff]   ;;  %v2564_v54 = vld [vmem:[%s3087_s9 + $0x360] ss:$16 sps:$4 sm:$0xff]   ;;  %v2615_v28 = vld [vmem:[%s3087_s9 + $0x6c] ss:$16 sps:$4 sm:$0xff]  }
  0x77   : > { %v2561_v52 = vld [vmem:[%s3087_s9 + $0x364] ss:$16 sps:$4 sm:$0xff]   ;;  %v2569_v57 = vld [vmem:[%s3087_s9 + $0x140] ss:$16 sps:$4 sm:$0xff]  }
  0x78   : > { %1477 = vmatpush1.bf16.msra.mxu0 %v2527_v29  ;;  %v2565_v55 = vld [vmem:[%s3087_s9 + $0x144] ss:$16 sps:$4 sm:$0xff]   ;;  %v2570_v58 = vld [vmem:[%s3087_s9 + $0x340] ss:$16 sps:$4 sm:$0xff]   ;;  %v3216_v29 = vld [vmem:[%s3448_s0 + $0x4c] ss:$16 sps:$4 sm:$0xff]  }
  0x79   : > { %1550 = vmatpush1.bf16.msra.mxu1 %v2528_v30  ;;  %1478 = vmatprep.subr.bf16.mxu0 %v2529_v31  ;;  %v2567_v56 = vld [vmem:[%s3087_s9 + $0x344] ss:$16 sps:$4 sm:$0xff]   ;;  %v2575_v61 = vld [vmem:[%s3087_s9 + $0x120] ss:$16 sps:$4 sm:$0xff]   ;;  %v2618_v30 = vld [vmem:[%s3087_s9 + $0x26c] ss:$16 sps:$4 sm:$0xff]  }
  0x7a   : > { %1551 = vmatprep.subr.bf16.mxu1 %v2531_v32  ;;  %v2571_v59 = vld [vmem:[%s3087_s9 + $0x124] ss:$16 sps:$4 sm:$0xff]   ;;  %v2576_v62 = vld [vmem:[%s3087_s9 + $0x320] ss:$16 sps:$4 sm:$0xff]   ;;  %v2613_v31 = vld [vmem:[%s3087_s9 + $0x68] ss:$16 sps:$4 sm:$0xff]  }
  0x7b   : > { %v2573_v60 = vld [vmem:[%s3087_s9 + $0x324] ss:$16 sps:$4 sm:$0xff]   ;;  %v2581_v3 = vld [vmem:[%s3087_s9 + $0x100] ss:$16 sps:$4 sm:$0xff]  }
  0x7c   : > { %1479 = vmatpush1.bf16.msra.mxu0 %v2533_v33  ;;  %v2577_v63 = vld [vmem:[%s3087_s9 + $0x104] ss:$16 sps:$4 sm:$0xff]   ;;  %v2582_v4 = vld [vmem:[%s3087_s9 + $0x300] ss:$16 sps:$4 sm:$0xff]   ;;  %v3230_v33 = vld [vmem:[%s3448_s0 + $0x48] ss:$16 sps:$4 sm:$0xff]  }
  0x7d   : > { %1552 = vmatpush1.bf16.msra.mxu1 %v2534_v34  ;;  %1480 = vmatprep.subr.bf16.mxu0 %v2535_v35  ;;  %v2579_v2 = vld [vmem:[%s3087_s9 + $0x304] ss:$16 sps:$4 sm:$0xff]   ;;  %v3160_v7 = vld [vmem:[%s3448_s0] ss:$16 sps:$4 sm:$0xff]   ;;  %v2616_v34 = vld [vmem:[%s3087_s9 + $0x268] ss:$16 sps:$4 sm:$0xff]  }
  0x7e   : > { %1553 = vmatprep.subr.bf16.mxu1 %v2537_v36  ;;  %v3177_v14 = vld [vmem:[%s3448_s0 + $0x24] ss:$16 sps:$4 sm:$0xff]   ;;  %v3193_v20 = vld [vmem:[%s3448_s0 + $0x20] ss:$16 sps:$4 sm:$0xff]   ;;  %v2621_v35 = vld [vmem:[%s3087_s9 + $0x4c] ss:$16 sps:$4 sm:$0xff]  }
  0x7f   : > { %v3209_v26 = vld [vmem:[%s3448_s0 + $0x44] ss:$16 sps:$4 sm:$0xff]   ;;  %v3225_v32 = vld [vmem:[%s3448_s0 + $0x40] ss:$16 sps:$4 sm:$0xff]   ;;  %v2624_v36 = vld [vmem:[%s3087_s9 + $0x24c] ss:$16 sps:$4 sm:$0xff]  }
  0x80   : > { %1481 = vmatpush2.bf16.msra.mxu0 %v2539_v37  ;;  %v2619_v37 = vld [vmem:[%s3087_s9 + $0x48] ss:$16 sps:$4 sm:$0xff]  }
  0x81   : > { %1554 = vmatpush2.bf16.msra.mxu1 %v2540_v38  ;;  %1482 = vmatprep.subr.bf16.mxu0 %v2541_v39  ;;  %v3241_v38 = vld [vmem:[%s3448_s0 + $0x64] ss:$16 sps:$4 sm:$0xff]   ;;  %v2622_v39 = vld [vmem:[%s3087_s9 + $0x248] ss:$16 sps:$4 sm:$0xff]  }
  0x82   : > { %1555 = vmatprep.subr.bf16.mxu1 %v2543_v40  ;;  %v2627_v40 = vld [vmem:[%s3087_s9 + $0x2c] ss:$16 sps:$4 sm:$0xff]  }
  0x84   : > { %1483 = vmatpush2.bf16.msra.mxu0 %v2545_v41  ;;  %v3248_v41 = vld [vmem:[%s3448_s0 + $0x6c] ss:$16 sps:$4 sm:$0xff]  }
  0x85   : > { %1556 = vmatpush2.bf16.msra.mxu1 %v2546_v42  ;;  %1484 = vmatprep.subr.bf16.mxu0 %v2547_v43  ;;  %v2630_v42 = vld [vmem:[%s3087_s9 + $0x22c] ss:$16 sps:$4 sm:$0xff]   ;;  %v2625_v43 = vld [vmem:[%s3087_s9 + $0x28] ss:$16 sps:$4 sm:$0xff]  }
  0x86   : > { %1557 = vmatprep.subr.bf16.mxu1 %v2549_v44  ;;  %v3257_v44 = vld [vmem:[%s3448_s0 + $0x60] ss:$16 sps:$4 sm:$0xff]  }
  0x88   : > { %1485 = vmatpush2.bf16.msra.mxu0 %v2551_v45  ;;  %v3262_v45 = vld [vmem:[%s3448_s0 + $0x68] ss:$16 sps:$4 sm:$0xff]  }
  0x89   : > { %1558 = vmatpush2.bf16.msra.mxu1 %v2552_v46  ;;  %1486 = vmatprep.subr.bf16.mxu0 %v2553_v47  ;;  %v2628_v46 = vld [vmem:[%s3087_s9 + $0x228] ss:$16 sps:$4 sm:$0xff]   ;;  %v2633_v47 = vld [vmem:[%s3087_s9 + $0xc] ss:$16 sps:$4 sm:$0xff]  }
  0x8a   : > { %1559 = vmatprep.subr.bf16.mxu1 %v2555_v48  ;;  %v2636_v48 = vld [vmem:[%s3087_s9 + $0x20c] ss:$16 sps:$4 sm:$0xff]  }
  0x8c   : > { %1487 = vmatpush2.bf16.msra.mxu0 %v2557_v49  ;;  %v2631_v49 = vld [vmem:[%s3087_s9 + $0x8] ss:$16 sps:$4 sm:$0xff]  }
  0x8d   : > { %1560 = vmatpush2.bf16.msra.mxu1 %v2558_v50  ;;  %1488 = vmatprep.subr.bf16.mxu0 %v2559_v51  ;;  %v2634_v50 = vld [vmem:[%s3087_s9 + $0x208] ss:$16 sps:$4 sm:$0xff]   ;;  %v2639_v51 = vld [vmem:[%s3087_s9 + $0x1ec] ss:$16 sps:$4 sm:$0xff]  }
  0x8e   : > { %1561 = vmatprep.subr.bf16.mxu1 %v2561_v52  ;;  %v2642_v52 = vld [vmem:[%s3087_s9 + $0x3ec] ss:$16 sps:$4 sm:$0xff]  }
  0x90   : > { %1489 = vmatpush2.bf16.msra.mxu0 %v2563_v53  ;;  %v1855_v53 = vld [vmem:[%s3450_s2] sm:$0xff] }
  0x91   : > { %1562 = vmatpush2.bf16.msra.mxu1 %v2564_v54  ;;  %1490 = vmatprep.subr.bf16.mxu0 %v2565_v55  ;;  %v1857_v54 = vld [vmem:[%s3450_s2 + $0x10] sm:$0xff]  ;;  %v2637_v55 = vld [vmem:[%s3087_s9 + $0x1e8] ss:$16 sps:$4 sm:$0xff]  }
  0x92   : > { %1563 = vmatprep.subr.bf16.mxu1 %v2567_v56  ;;  %1865 = vperm.xlu0 %2485, %v1855_v53   ;;  %v2640_v56 = vld [vmem:[%s3087_s9 + $0x3e8] ss:$16 sps:$4 sm:$0xff]  }
  0x93   : > { %1875 = vperm.xlu1 %2486, %v1857_v54  }
  0x94   : > { %1491 = vmatpush2.bf16.msra.mxu0 %v2569_v57  ;;  %v1856_v57 = vld [vmem:[%s3450_s2 + $0x8] sm:$0xff] }
  0x95   : > { %1564 = vmatpush2.bf16.msra.mxu1 %v2570_v58  ;;  %1492 = vmatprep.subr.bf16.mxu0 %v2571_v59  ;;  %v1858_v58 = vld [vmem:[%s3450_s2 + $0x18] sm:$0xff] }
  0x96   : > { %1565 = vmatprep.subr.bf16.mxu1 %v2573_v60  ;;  %v2649_v59 = vld [vmem:[%s3087_s9 + $0x1c8] ss:$16 sps:$4 sm:$0xff]   ;;  %1870 = vperm.xlu0 %2485, %v1856_v57  }
  0x97   : > { %1880 = vperm.xlu1 %2486, %v1858_v58   ;;  %v2652_v60 = vld [vmem:[%s3087_s9 + $0x3c8] ss:$16 sps:$4 sm:$0xff]  }
  0x98   : > { %1493 = vmatpush2.bf16.msra.mxu0 %v2575_v61  ;;  %v1860_v61 = vld [vmem:[%s3450_s2 + $0x28] sm:$0xff] }
  0x99   : > { %1566 = vmatpush2.bf16.msra.mxu1 %v2576_v62  ;;  %1494 = vmatprep.subr.bf16.mxu0 %v2577_v63  ;;  %v1859_v62 = vld [vmem:[%s3450_s2 + $0x20] sm:$0xff]  ;;  %v2657_v63 = vld [vmem:[%s3087_s9 + $0x1ac] ss:$16 sps:$4 sm:$0xff]  }
  0x9a   : > { %1567 = vmatprep.subr.bf16.mxu1 %v2579_v2  ;;  %v2660_v2 = vld [vmem:[%s3087_s9 + $0x3ac] ss:$16 sps:$4 sm:$0xff]   ;;  %1885 = vperm.xlu0 %2485, %v1859_v62  }
  0x9b   : > { %1890 = vperm.xlu1 %2486, %v1860_v61  }
  0x9c   : > { %1495 = vmatpush2.bf16.msra.mxu0 %v2581_v3  ;;  %v2655_v3 = vld [vmem:[%s3087_s9 + $0x1a8] ss:$16 sps:$4 sm:$0xff]  }
  0x9d   : > { %1568 = vmatpush2.bf16.msra.mxu1 %v2582_v4  ;;  %1610 = vmatprep.subr.bf16.mxu0 %v2591_v5  ;;  %v2658_v4 = vld [vmem:[%s3087_s9 + $0x3a8] ss:$16 sps:$4 sm:$0xff]  }
  0x9e   : > { %1683 = vmatprep.subr.bf16.mxu1 %v2594_v6  ;;  %v1862_v5 = vld [vmem:[%s3450_s2 + $0x38] sm:$0xff]  ;;  %v1861_v6 = vld [vmem:[%s3450_s2 + $0x30] sm:$0xff] }
  0x9f   : > { %1497 = vmatmul.mubr.bf16.vlgmr.msra.gmra.mxu0 %v3160_v7  ;;  %1900 = vperm.xlu1 %2486, %v1862_v5  }
  0xa0   : > { %1570 = vmatmul.mubr.bf16.vlgmr.msra.gmra.mxu1 %v3165_v8  ;;  %1611 = vmatpush1.bf16.msra.mxu0 %v2589_v9  ;;  %v2669_v9 = vld [vmem:[%s3087_s9 + $0x18c] ss:$16 sps:$4 sm:$0xff]  }
  0xa1   : > { %1684 = vmatpush1.bf16.msra.mxu1 %v2592_v10  ;;  %1612 = vmatprep.subr.bf16.mxu0 %v2597_v11  ;;  %v2672_v10 = vld [vmem:[%s3087_s9 + $0x38c] ss:$16 sps:$4 sm:$0xff]   ;;  %v2667_v11 = vld [vmem:[%s3087_s9 + $0x188] ss:$16 sps:$4 sm:$0xff]  }
  0xa2   : > { %1685 = vmatprep.subr.bf16.mxu1 %v2600_v12  ;;  %1506 = vmatprep.mubr.bf16.mxu0 %v3177_v14  ;;  %v2670_v12 = vld [vmem:[%s3087_s9 + $0x388] ss:$16 sps:$4 sm:$0xff]  }
  0xa3   : > { %1579 = vmatprep.mubr.bf16.mxu1 %v3184_v17  ;;  %1895 = vperm.xlu0 %2485, %v1861_v6  }
  0xa4   : > { %1613 = vmatpush1.bf16.msra.mxu0 %v2595_v13  ;;  %v2675_v13 = vld [vmem:[%s3087_s9 + $0x16c] ss:$16 sps:$4 sm:$0xff]  }
  0xa5   : > { %1686 = vmatpush1.bf16.msra.mxu1 %v2598_v15  ;;  %1614 = vmatprep.subr.bf16.mxu0 %v2603_v16  ;;  %v2678_v15 = vld [vmem:[%s3087_s9 + $0x36c] ss:$16 sps:$4 sm:$0xff]   ;;  %v2673_v16 = vld [vmem:[%s3087_s9 + $0x168] ss:$16 sps:$4 sm:$0xff]  }
  0xa6   : > { %1687 = vmatprep.subr.bf16.mxu1 %v2606_v18  ;;  %v2676_v18 = vld [vmem:[%s3087_s9 + $0x368] ss:$16 sps:$4 sm:$0xff]  }
  0xa7   : > { %1507 = vmatmul.mubr.bf16.gmra.mxu0 %v3193_v20 }
  0xa8   : > { %1580 = vmatmul.mubr.bf16.gmra.mxu1 %v3198_v21  ;;  %1615 = vmatpush1.bf16.msra.mxu0 %v2601_v19  ;;  %v2687_v19 = vld [vmem:[%s3087_s9 + $0x14c] ss:$16 sps:$4 sm:$0xff]  }
  0xa9   : > { %1688 = vmatpush1.bf16.msra.mxu1 %v2604_v22  ;;  %1616 = vmatprep.subr.bf16.mxu0 %v2609_v23  ;;  %v2690_v22 = vld [vmem:[%s3087_s9 + $0x34c] ss:$16 sps:$4 sm:$0xff]   ;;  %v2685_v23 = vld [vmem:[%s3087_s9 + $0x148] ss:$16 sps:$4 sm:$0xff]  }
  0xaa   : > { %1689 = vmatprep.subr.bf16.mxu1 %v2612_v24  ;;  %1516 = vmatprep.mubr.bf16.mxu0 %v3209_v26  ;;  %v2688_v24 = vld [vmem:[%s3087_s9 + $0x348] ss:$16 sps:$4 sm:$0xff]  }
  0xab   : > { %1589 = vmatprep.mubr.bf16.mxu1 %v3216_v29 }
  0xac   : > { %1617 = vmatpush1.bf16.msra.mxu0 %v2607_v25  ;;  %v2693_v25 = vld [vmem:[%s3087_s9 + $0x12c] ss:$16 sps:$4 sm:$0xff]  }
  0xad   : > { %1690 = vmatpush1.bf16.msra.mxu1 %v2610_v27  ;;  %1618 = vmatprep.subr.bf16.mxu0 %v2615_v28  ;;  %v2696_v27 = vld [vmem:[%s3087_s9 + $0x32c] ss:$16 sps:$4 sm:$0xff]   ;;  %v2691_v28 = vld [vmem:[%s3087_s9 + $0x128] ss:$16 sps:$4 sm:$0xff]  }
  0xae   : > { %1691 = vmatprep.subr.bf16.mxu1 %v2618_v30  ;;  %v2694_v30 = vld [vmem:[%s3087_s9 + $0x328] ss:$16 sps:$4 sm:$0xff]  }
  0xaf   : > { %1517 = vmatmul.mubr.bf16.gmra.mxu0 %v3225_v32 }
  0xb0   : > { %1590 = vmatmul.mubr.bf16.gmra.mxu1 %v3230_v33  ;;  %1619 = vmatpush1.bf16.msra.mxu0 %v2613_v31  ;;  %v2699_v31 = vld [vmem:[%s3087_s9 + $0x10c] ss:$16 sps:$4 sm:$0xff]  }
  0xb1   : > { %1692 = vmatpush1.bf16.msra.mxu1 %v2616_v34  ;;  %1620 = vmatprep.subr.bf16.mxu0 %v2621_v35  ;;  %v2702_v34 = vld [vmem:[%s3087_s9 + $0x30c] ss:$16 sps:$4 sm:$0xff]   ;;  %v2697_v35 = vld [vmem:[%s3087_s9 + $0x108] ss:$16 sps:$4 sm:$0xff]  }
  0xb2   : > { %1693 = vmatprep.subr.bf16.mxu1 %v2624_v36  ;;  %1526 = vmatprep.mubr.bf16.mxu0 %v3241_v38  ;;  %v2700_v36 = vld [vmem:[%s3087_s9 + $0x308] ss:$16 sps:$4 sm:$0xff]  }
  0xb3   : > { %1599 = vmatprep.mubr.bf16.mxu1 %v3248_v41 }
  0xb4   : > { %1621 = vmatpush1.bf16.msra.mxu0 %v2619_v37 }
  0xb5   : > { %1694 = vmatpush1.bf16.msra.mxu1 %v2622_v39  ;;  %1622 = vmatprep.subr.bf16.mxu0 %v2627_v40 }
  0xb6   : > { %1695 = vmatprep.subr.bf16.mxu1 %v2630_v42 }
  0xb7   : > { %1527 = vmatmul.mubr.bf16.gmra.mxu0 %v3257_v44 }
  0xb8   : > { %1600 = vmatmul.mubr.bf16.gmra.mxu1 %v3262_v45  ;;  %1623 = vmatpush1.bf16.msra.mxu0 %v2625_v43 }
  0xb9   : > { %1696 = vmatpush1.bf16.msra.mxu1 %v2628_v46  ;;  %1624 = vmatprep.subr.bf16.mxu0 %v2633_v47 }
  0xba   : > { %1697 = vmatprep.subr.bf16.mxu1 %v2636_v48  ;;  %1642 = vmatprep.mubr.bf16.mxu0 %v3080_v0  ;;  %v2651_v0 = vld [vmem:[%s3087_s9 + $0x1cc] ss:$16 sps:$4 sm:$0xff]  }
  0xbb   : > { %1715 = vmatprep.mubr.bf16.mxu1 %v3085_v1  ;;  %v2654_v1 = vld [vmem:[%s3087_s9 + $0x3cc] ss:$16 sps:$4 sm:$0xff]   ;;  %s2260_s9 = sshll.u32 %s473_s30, 7  ;;  %s2443_s30 = sshll.u32 (%p2799_p6), %s2733_s14, 4 }
  0xbc   : > { %1625 = vmatpush1.bf16.msra.mxu0 %v2631_v49  ;;  %s3355_s12 = scalar_lea.vmem [#allocation4], %s2260_s9  ;;  %s2091_s4 = scalar_lea.vmem (%p2799_p6), %s3451_s3, %s2443_s30 }
  0xbd   : > { %1698 = vmatpush1.bf16.msra.mxu1 %v2634_v50  ;;  %1626 = vmatprep.subr.bf16.mxu0 %v2639_v51 }
  0xbe   : > { %1699 = vmatprep.subr.bf16.mxu1 %v2642_v52 }
  0xc0   : > { %1627 = vmatpush2.bf16.msra.mxu0 %v2637_v55 }
  0xc1   : > { %1700 = vmatpush2.bf16.msra.mxu1 %v2640_v56  ;;  %1628 = vmatprep.subr.bf16.mxu0 %v2651_v0 }
  0xc2   : > { %1701 = vmatprep.subr.bf16.mxu1 %v2654_v1 }
  0xc4   : > { %1629 = vmatpush2.bf16.msra.mxu0 %v2649_v59 }
  0xc5   : > { %1702 = vmatpush2.bf16.msra.mxu1 %v2652_v60  ;;  %1630 = vmatprep.subr.bf16.mxu0 %v2657_v63 }
  0xc6   : > { %1703 = vmatprep.subr.bf16.mxu1 %v2660_v2 }
  0xc8   : > { %1631 = vmatpush2.bf16.msra.mxu0 %v2655_v3 }
  0xc9   : > { %1704 = vmatpush2.bf16.msra.mxu1 %v2658_v4  ;;  %1632 = vmatprep.subr.bf16.mxu0 %v2669_v9 }
  0xca   : > { %1705 = vmatprep.subr.bf16.mxu1 %v2672_v10 }
  0xcc   : > { %1633 = vmatpush2.bf16.msra.mxu0 %v2667_v11 }
  0xcd   : > { %1706 = vmatpush2.bf16.msra.mxu1 %v2670_v12  ;;  %1634 = vmatprep.subr.bf16.mxu0 %v2675_v13 }
  0xce   : > { %1707 = vmatprep.subr.bf16.mxu1 %v2678_v15 }
  0xd0   : > { %1635 = vmatpush2.bf16.msra.mxu0 %v2673_v16 }
  0xd1   : > { %1708 = vmatpush2.bf16.msra.mxu1 %v2676_v18  ;;  %1636 = vmatprep.subr.bf16.mxu0 %v2687_v19 }
  0xd2   : > { %1709 = vmatprep.subr.bf16.mxu1 %v2690_v22 }
  0xd4   : > { %1637 = vmatpush2.bf16.msra.mxu0 %v2685_v23 }
  0xd5   : > { %1710 = vmatpush2.bf16.msra.mxu1 %v2688_v24  ;;  %1638 = vmatprep.subr.bf16.mxu0 %v2693_v25 }
  0xd6   : > { %1711 = vmatprep.subr.bf16.mxu1 %v2696_v27 }
  0xd8   : > { %1639 = vmatpush2.bf16.msra.mxu0 %v2691_v28 }
  0xd9   : > { %1712 = vmatpush2.bf16.msra.mxu1 %v2694_v30  ;;  %1640 = vmatprep.subr.bf16.mxu0 %v2699_v31 }
  0xda   : > { %1713 = vmatprep.subr.bf16.mxu1 %v2702_v34 }
  0xdc   : > { %1641 = vmatpush2.bf16.msra.mxu0 %v2697_v35 }
  0xdd   : > { %1714 = vmatpush2.bf16.msra.mxu1 %v2700_v36 }
  0xdf   : > { %1643 = vmatmul.mubr.bf16.vlgmr.msra.gmra.mxu0 %v3160_v7 }
  0xe0   : > { %1716 = vmatmul.mubr.bf16.vlgmr.msra.gmra.mxu1 %v3165_v8  ;;  %1652 = vmatprep.mubr.bf16.mxu0 %v3177_v14 }
  0xe1   : > { %1725 = vmatprep.mubr.bf16.mxu1 %v3184_v17 }
  0xe7   : > { %1653 = vmatmul.mubr.bf16.gmra.mxu0 %v3193_v20 }
  0xe8   : > { %1726 = vmatmul.mubr.bf16.gmra.mxu1 %v3198_v21  ;;  %1662 = vmatprep.mubr.bf16.mxu0 %v3209_v26 }
  0xe9   : > { %1735 = vmatprep.mubr.bf16.mxu1 %v3216_v29 }
  0xef   : > { %1663 = vmatmul.mubr.bf16.gmra.mxu0 %v3225_v32 }
  0xf0   : > { %1736 = vmatmul.mubr.bf16.gmra.mxu1 %v3230_v33  ;;  %1672 = vmatprep.mubr.bf16.mxu0 %v3241_v38 }
  0xf1   : > { %1745 = vmatprep.mubr.bf16.mxu1 %v3248_v41 }
  0xf7   : > { %1673 = vmatmul.mubr.bf16.gmra.mxu0 %v3257_v44 }
  0xf8   : > { %1746 = vmatmul.mubr.bf16.gmra.mxu1 %v3262_v45 }
 0x10d   : > { %v3343_v7 = vpop.permute.xlu0 %1865 }
 0x10e   : > { %v3351_v41 = vpop.permute.xlu1 %1875 }
 0x111   : > { %v3346_v32 = vpop.permute.xlu0 %1870 }
 0x112   : > { %v3359_v58 = vpop.permute.xlu1 %1880 }
 0x115   : > { %v3364_v6 = vpop.permute.xlu0 %1885 }
 0x116   : > { %v3368_v23 = vpop.permute.xlu1 %1890 }
 0x15f   : > { %v1498_v8 = vpop.f32.mrf.mxu0 }
 0x160   : > { %v1571_v14 = vpop.f32.mrf.mxu1 }
 0x161   : > { %v1572_v17 = vadd.f32 %v1571_v14, %v1498_v8  ;;  %v1500_v20 = vpop.f32.mrf.mxu0 }
 0x162   : > { %v1573_v21 = vpop.f32.mrf.mxu1 }
 0x163   : > { %v1903_v26 = vadd.f32 %v3343_v7, %v1572_v17  ;;  %v1574_v29 = vadd.f32 %v1573_v21, %v1500_v20  ;;  %v1502_v33 = vpop.f32.mrf.mxu0  ;;  %v3374_v20 = vpop.permute.xlu0 %1895 }
 0x164   : > { %v1575_v37 = vpop.f32.mrf.mxu1 }
 0x165   : > { %v1935_v38 = vmax.f32 %v1903_v26, 0.0  ;;  %v1904_v39 = vadd.f32 %v3343_v7, %v1574_v29  ;;  %v1576_v40 = vadd.f32 %v1575_v37, %v1502_v33  ;;  %v1504_v42 = vpop.f32.mrf.mxu0 }
 0x166   : > { %v1577_v43 = vpop.f32.mrf.mxu1 }
 0x167   : > { %v1936_v44 = vmax.f32 %v1904_v39, 0.0  ;;  %v1907_v45 = vadd.f32 %v3346_v32, %v1576_v40  ;;  %v1578_v46 = vadd.f32 %v1577_v43, %v1504_v42  ;;  %v1508_v47 = vpop.f32.mrf.mxu0 }
 0x168   : > { %v1581_v48 = vpop.f32.mrf.mxu1 }
 0x169   : > { %v2427_v49 = vpack.c.bf16 %v1936_v44, %v1935_v38  ;;  %v1908_v50 = vadd.f32 %v3346_v32, %v1578_v46  ;;  %v1582_v51 = vadd.f32 %v1581_v48, %v1508_v47  ;;  %v1510_v52 = vpop.f32.mrf.mxu0  ;;  %v1939_v54 = vmax.f32 %v1907_v45, 0.0  ;;  %v3378_v44 = vpop.permute.xlu1 %1900 }
 0x16a   : > { %v1583_v53 = vpop.f32.mrf.mxu1 }
 0x16b   : > { %2063 = vst [vmem:[%s3355_s12] sm:$0xff] %v2427_v49  ;;  %v1940_v55 = vmax.f32 %v1908_v50, 0.0  ;;  %v1584_v56 = vadd.f32 %v1583_v53, %v1510_v52  ;;  %v1911_v57 = vadd.f32 %v3351_v41, %v1582_v51  ;;  %v1512_v0 = vpop.f32.mrf.mxu0 }
 0x16c   : > { %v1585_v1 = vpop.f32.mrf.mxu1 }
 0x16d   : > { %v2429_v59 = vpack.c.bf16 %v1940_v55, %v1939_v54  ;;  %v1912_v60 = vadd.f32 %v3351_v41, %v1584_v56  ;;  %v1943_v61 = vmax.f32 %v1911_v57, 0.0  ;;  %v1586_v62 = vadd.f32 %v1585_v1, %v1512_v0  ;;  %v1514_v63 = vpop.f32.mrf.mxu0 }
 0x16e   : > { %v1587_v2 = vpop.f32.mrf.mxu1 }
 0x16f   : > { %2065 = vst [vmem:[%s3355_s12 + $0x10] sm:$0xff] %v2429_v59  ;;  %v1944_v3 = vmax.f32 %v1912_v60, 0.0  ;;  %v1588_v4 = vadd.f32 %v1587_v2, %v1514_v63  ;;  %v1915_v5 = vadd.f32 %v3359_v58, %v1586_v62  ;;  %v1518_v9 = vpop.f32.mrf.mxu0 }
 0x170   : > { %v1591_v10 = vpop.f32.mrf.mxu1 }
 0x171   : > { %v2431_v11 = vpack.c.bf16 %v1944_v3, %v1943_v61  ;;  %v1916_v12 = vadd.f32 %v3359_v58, %v1588_v4  ;;  %v1947_v13 = vmax.f32 %v1915_v5, 0.0  ;;  %v1592_v15 = vadd.f32 %v1591_v10, %v1518_v9  ;;  %v1520_v16 = vpop.f32.mrf.mxu0 }
 0x172   : > { %v1593_v18 = vpop.f32.mrf.mxu1 }
 0x173   : > { %2067 = vst [vmem:[%s3355_s12 + $0x20] sm:$0xff] %v2431_v11  ;;  %v1948_v19 = vmax.f32 %v1916_v12, 0.0  ;;  %v1594_v22 = vadd.f32 %v1593_v18, %v1520_v16  ;;  %v1919_v24 = vadd.f32 %v3364_v6, %v1592_v15  ;;  %v1522_v25 = vpop.f32.mrf.mxu0 }
 0x174   : > { %v1595_v27 = vpop.f32.mrf.mxu1 }
 0x175   : > { %v2433_v28 = vpack.c.bf16 %v1948_v19, %v1947_v13  ;;  %v1596_v30 = vadd.f32 %v1595_v27, %v1522_v25  ;;  %v1920_v31 = vadd.f32 %v3364_v6, %v1594_v22  ;;  %v1951_v34 = vmax.f32 %v1919_v24, 0.0  ;;  %v1524_v35 = vpop.f32.mrf.mxu0 }
 0x176   : > { %v1597_v36 = vpop.f32.mrf.mxu1 }
 0x177   : > { %2069 = vst [vmem:[%s3355_s12 + $0x30] sm:$0xff] %v2433_v28  ;;  %v1598_v8 = vadd.f32 %v1597_v36, %v1524_v35  ;;  %v1923_v14 = vadd.f32 %v3368_v23, %v1596_v30  ;;  %v1952_v17 = vmax.f32 %v1920_v31, 0.0  ;;  %v1528_v21 = vpop.f32.mrf.mxu0 }
 0x178   : > { %v1601_v26 = vpop.f32.mrf.mxu1 }
 0x179   : > { %v1924_v29 = vadd.f32 %v3368_v23, %v1598_v8  ;;  %v1955_v33 = vmax.f32 %v1923_v14, 0.0  ;;  %v2435_v37 = vpack.c.bf16 %v1952_v17, %v1951_v34  ;;  %v1602_v38 = vadd.f32 %v1601_v26, %v1528_v21  ;;  %v1530_v39 = vpop.f32.mrf.mxu0 }
 0x17a   : > { %v1603_v40 = vpop.f32.mrf.mxu1 }
 0x17b   : > { %v1956_v42 = vmax.f32 %v1924_v29, 0.0  ;;  %2071 = vst [vmem:[%s3355_s12 + $0x40] sm:$0xff] %v2435_v37  ;;  %v1604_v43 = vadd.f32 %v1603_v40, %v1530_v39  ;;  %v1927_v45 = vadd.f32 %v3374_v20, %v1602_v38  ;;  %v1532_v46 = vpop.f32.mrf.mxu0 }
 0x17c   : > { %v1605_v47 = vpop.f32.mrf.mxu1 }
 0x17d   : > { %v2437_v48 = vpack.c.bf16 %v1956_v42, %v1955_v33  ;;  %v1606_v49 = vadd.f32 %v1605_v47, %v1532_v46  ;;  %v1928_v50 = vadd.f32 %v3374_v20, %v1604_v43  ;;  %v1959_v51 = vmax.f32 %v1927_v45, 0.0  ;;  %v1534_v52 = vpop.f32.mrf.mxu0 }
 0x17e   : > { %v1607_v53 = vpop.f32.mrf.mxu1 }
 0x17f   : > { %2073 = vst [vmem:[%s3355_s12 + $0x50] sm:$0xff] %v2437_v48  ;;  %v1608_v54 = vadd.f32 %v1607_v53, %v1534_v52  ;;  %v1931_v55 = vadd.f32 %v3378_v44, %v1606_v49  ;;  %v1960_v56 = vmax.f32 %v1928_v50, 0.0 }
 0x181   : > { %v1932_v57 = vadd.f32 %v3378_v44, %v1608_v54  ;;  %v1963_v0 = vmax.f32 %v1931_v55, 0.0  ;;  %v2439_v1 = vpack.c.bf16 %v1960_v56, %v1959_v51 }
 0x183   : > { %v1964_v59 = vmax.f32 %v1932_v57, 0.0  ;;  %2075 = vst [vmem:[%s3355_s12 + $0x60] sm:$0xff] %v2439_v1 }
 0x185   : > { %v2441_v60 = vpack.c.bf16 %v1964_v59, %v1963_v0 }
 0x187   : > { %2077 = vst [vmem:[%s3355_s12 + $0x70] sm:$0xff] %v2441_v60 }
 0x19f   : > { %v1644_v61 = vpop.f32.mrf.mxu0 }
 0x1a0   : > { %v1717_v62 = vpop.f32.mrf.mxu1 }
 0x1a1   : > { %v1718_v63 = vadd.f32 %v1717_v62, %v1644_v61  ;;  %v1646_v2 = vpop.f32.mrf.mxu0 }
 0x1a2   : > { %v1719_v3 = vpop.f32.mrf.mxu1 }
 0x1a3   : > { %v1905_v4 = vadd.f32 %v3343_v7, %v1718_v63  ;;  %v1720_v5 = vadd.f32 %v1719_v3, %v1646_v2  ;;  %v1648_v9 = vpop.f32.mrf.mxu0 }
 0x1a4   : > { %v1721_v10 = vpop.f32.mrf.mxu1 }
 0x1a5   : > { %v1906_v11 = vadd.f32 %v3343_v7, %v1720_v5  ;;  %v1722_v12 = vadd.f32 %v1721_v10, %v1648_v9  ;;  %v1650_v13 = vpop.f32.mrf.mxu0  ;;  %v1937_v16 = vmax.f32 %v1905_v4, 0.0 }
 0x1a6   : > { %v1723_v15 = vpop.f32.mrf.mxu1 }
 0x1a7   : > { %v1938_v18 = vmax.f32 %v1906_v11, 0.0  ;;  %v1909_v19 = vadd.f32 %v3346_v32, %v1722_v12  ;;  %v1724_v22 = vadd.f32 %v1723_v15, %v1650_v13  ;;  %v1654_v24 = vpop.f32.mrf.mxu0 }
 0x1a8   : > { %v1727_v25 = vpop.f32.mrf.mxu1 }
 0x1a9   : > { %v2428_v27 = vpack.c.bf16 %v1938_v18, %v1937_v16  ;;  %v1910_v28 = vadd.f32 %v3346_v32, %v1724_v22  ;;  %v1728_v30 = vadd.f32 %v1727_v25, %v1654_v24  ;;  %v1656_v31 = vpop.f32.mrf.mxu0  ;;  %v1941_v35 = vmax.f32 %v1909_v19, 0.0 }
 0x1aa   : > { %v1729_v34 = vpop.f32.mrf.mxu1 }
 0x1ab   : > { %2064 = vst [vmem:[%s3355_s12 + $0x8] sm:$0xff] %v2428_v27  ;;  %v1942_v7 = vmax.f32 %v1910_v28, 0.0  ;;  %v1913_v36 = vadd.f32 %v3351_v41, %v1728_v30  ;;  %v1730_v8 = vadd.f32 %v1729_v34, %v1656_v31  ;;  %v1658_v14 = vpop.f32.mrf.mxu0 }
 0x1ac   : > { %v1731_v17 = vpop.f32.mrf.mxu1 }
 0x1ad   : > { %v2430_v21 = vpack.c.bf16 %v1942_v7, %v1941_v35  ;;  %v1914_v26 = vadd.f32 %v3351_v41, %v1730_v8  ;;  %v1732_v29 = vadd.f32 %v1731_v17, %v1658_v14  ;;  %v1660_v33 = vpop.f32.mrf.mxu0  ;;  %v1945_v32 = vmax.f32 %v1913_v36, 0.0  ;;  %v2108_v36 = vld [vmem:[%s3355_s12 + $0x10] sm:$0xff] (%p2799_p6)  ;;  %v2112_v14 = vld [vmem:[%s3355_s12 + $0x20] sm:$0xff] (%p2799_p6) }
 0x1ae   : > { %v1733_v37 = vpop.f32.mrf.mxu1  ;;  %2109 = vst [vmem:[%s2091_s4 + $0x40] sm:$0xff] (%p2799_p6), %v2108_v36  ;;  %2113 = vst [vmem:[%s2091_s4 + $0x80] sm:$0xff] (%p2799_p6), %v2112_v14 }
 0x1af   : > { %2066 = vst [vmem:[%s3355_s12 + $0x18] sm:$0xff] %v2430_v21  ;;  %v1946_v38 = vmax.f32 %v1914_v26, 0.0  ;;  %v1917_v39 = vadd.f32 %v3359_v58, %v1732_v29  ;;  %v1734_v40 = vadd.f32 %v1733_v37, %v1660_v33  ;;  %v1664_v42 = vpop.f32.mrf.mxu0  ;;  %v2116_v21 = vld [vmem:[%s3355_s12 + $0x30] sm:$0xff] (%p2799_p6)  ;;  %v2120_v29 = vld [vmem:[%s3355_s12 + $0x40] sm:$0xff] (%p2799_p6) }
 0x1b0   : > { %v1737_v43 = vpop.f32.mrf.mxu1  ;;  %2117 = vst [vmem:[%s2091_s4 + $0xc0] sm:$0xff] (%p2799_p6), %v2116_v21  ;;  %2121 = vst [vmem:[%s2091_s4 + $0x100] sm:$0xff] (%p2799_p6), %v2120_v29  ;;  %v2124_v37 = vld [vmem:[%s3355_s12 + $0x50] sm:$0xff] (%p2799_p6) }
 0x1b1   : > { %v2432_v45 = vpack.c.bf16 %v1946_v38, %v1945_v32  ;;  %v1918_v46 = vadd.f32 %v3359_v58, %v1734_v40  ;;  %v1738_v47 = vadd.f32 %v1737_v43, %v1664_v42  ;;  %v1666_v48 = vpop.f32.mrf.mxu0  ;;  %v1949_v41 = vmax.f32 %v1917_v39, 0.0  ;;  %2125 = vst [vmem:[%s2091_s4 + $0x140] sm:$0xff] (%p2799_p6), %v2124_v37  ;;  %v2128_v38 = vld [vmem:[%s3355_s12 + $0x60] sm:$0xff] (%p2799_p6)  ;;  %v2132_v40 = vld [vmem:[%s3355_s12 + $0x70] sm:$0xff] (%p2799_p6) }
 0x1b2   : > { %v1739_v49 = vpop.f32.mrf.mxu1  ;;  %2129 = vst [vmem:[%s2091_s4 + $0x180] sm:$0xff] (%p2799_p6), %v2128_v38  ;;  %2133 = vst [vmem:[%s2091_s4 + $0x1c0] sm:$0xff] (%p2799_p6), %v2132_v40 }
 0x1b3   : > { %2068 = vst [vmem:[%s3355_s12 + $0x28] sm:$0xff] %v2432_v45  ;;  %v1950_v50 = vmax.f32 %v1918_v46, 0.0  ;;  %v1921_v51 = vadd.f32 %v3364_v6, %v1738_v47  ;;  %v1740_v52 = vadd.f32 %v1739_v49, %v1666_v48  ;;  %v1668_v53 = vpop.f32.mrf.mxu0 }
 0x1b4   : > { %v1741_v54 = vpop.f32.mrf.mxu1 }
 0x1b5   : > { %v2434_v55 = vpack.c.bf16 %v1950_v50, %v1949_v41  ;;  %v1922_v56 = vadd.f32 %v3364_v6, %v1740_v52  ;;  %v1742_v57 = vadd.f32 %v1741_v54, %v1668_v53  ;;  %v1670_v0 = vpop.f32.mrf.mxu0  ;;  %v1953_v58 = vmax.f32 %v1921_v51, 0.0 }
 0x1b6   : > { %v1743_v1 = vpop.f32.mrf.mxu1  ;;  %v2110_v8 = vld [vmem:[%s3355_s12 + $0x18] sm:$0xff] (%p2799_p6) }
 0x1b7   : > { %2070 = vst [vmem:[%s3355_s12 + $0x38] sm:$0xff] %v2434_v55  ;;  %v1954_v59 = vmax.f32 %v1922_v56, 0.0  ;;  %v1925_v60 = vadd.f32 %v3368_v23, %v1742_v57  ;;  %v1744_v61 = vadd.f32 %v1743_v1, %v1670_v0  ;;  %v1674_v62 = vpop.f32.mrf.mxu0  ;;  %2111 = vst [vmem:[%s2091_s4 + $0x48] sm:$0xff] (%p2799_p6), %v2110_v8 }
 0x1b8   : > { %v1747_v63 = vpop.f32.mrf.mxu1 }
 0x1b9   : > { %v2436_v2 = vpack.c.bf16 %v1954_v59, %v1953_v58  ;;  %v1926_v3 = vadd.f32 %v3368_v23, %v1744_v61  ;;  %v1748_v4 = vadd.f32 %v1747_v63, %v1674_v62  ;;  %v1676_v5 = vpop.f32.mrf.mxu0  ;;  %v1957_v6 = vmax.f32 %v1925_v60, 0.0 }
 0x1ba   : > { %v1749_v9 = vpop.f32.mrf.mxu1  ;;  %v2114_v17 = vld [vmem:[%s3355_s12 + $0x28] sm:$0xff] (%p2799_p6) }
 0x1bb   : > { %2072 = vst [vmem:[%s3355_s12 + $0x48] sm:$0xff] %v2436_v2  ;;  %v1958_v10 = vmax.f32 %v1926_v3, 0.0  ;;  %v1929_v11 = vadd.f32 %v3374_v20, %v1748_v4  ;;  %v1750_v12 = vadd.f32 %v1749_v9, %v1676_v5  ;;  %v1678_v13 = vpop.f32.mrf.mxu0  ;;  %2115 = vst [vmem:[%s2091_s4 + $0x88] sm:$0xff] (%p2799_p6), %v2114_v17 }
 0x1bc   : > { %v1751_v15 = vpop.f32.mrf.mxu1 }
 0x1bd   : > { %v2438_v16 = vpack.c.bf16 %v1958_v10, %v1957_v6  ;;  %v1930_v18 = vadd.f32 %v3374_v20, %v1750_v12  ;;  %v1752_v19 = vadd.f32 %v1751_v15, %v1678_v13  ;;  %v1680_v22 = vpop.f32.mrf.mxu0  ;;  %v1961_v24 = vmax.f32 %v1929_v11, 0.0  ;;  %v2104_v20 = vld [vmem:[%s3355_s12] sm:$0xff] (%p2799_p6) }
 0x1be   : > { %v1753_v23 = vpop.f32.mrf.mxu1  ;;  %2105 = vst [vmem:[%s2091_s4] sm:$0xff] (%p2799_p6), %v2104_v20  ;;  %v2118_v26 = vld [vmem:[%s3355_s12 + $0x38] sm:$0xff] (%p2799_p6) }
 0x1bf   : > { %2074 = vst [vmem:[%s3355_s12 + $0x58] sm:$0xff] %v2438_v16  ;;  %v1962_v25 = vmax.f32 %v1930_v18, 0.0  ;;  %v1933_v27 = vadd.f32 %v3378_v44, %v1752_v19  ;;  %v1754_v28 = vadd.f32 %v1753_v23, %v1680_v22  ;;  %2119 = vst [vmem:[%s2091_s4 + $0xc8] sm:$0xff] (%p2799_p6), %v2118_v26 }
 0x1c1   : > { %v2440_v30 = vpack.c.bf16 %v1962_v25, %v1961_v24  ;;  %v1934_v31 = vadd.f32 %v3378_v44, %v1754_v28  ;;  %v1965_v34 = vmax.f32 %v1933_v27, 0.0  ;;  %v2106_v44 = vld [vmem:[%s3355_s12 + $0x8] sm:$0xff] (%p2799_p6) }
 0x1c2   : > { %2107 = vst [vmem:[%s2091_s4 + $0x8] sm:$0xff] (%p2799_p6), %v2106_v44  ;;  %v2122_v33 = vld [vmem:[%s3355_s12 + $0x48] sm:$0xff] (%p2799_p6) }
 0x1c3   : > { %2076 = vst [vmem:[%s3355_s12 + $0x68] sm:$0xff] %v2440_v30  ;;  %v1966_v35 = vmax.f32 %v1934_v31, 0.0  ;;  %2085 = sbr.rel (!%p2799_p6) target bundleno = 464 (0x1d0), region = 67  ;;  %2123 = vst [vmem:[%s2091_s4 + $0x108] sm:$0xff] (%p2799_p6), %v2122_v33 }
 0x1c5   : > { %v2442_v7 = vpack.c.bf16 %v1966_v35, %v1965_v34 }
 0x1c6   : > { %v2126_v32 = vld [vmem:[%s3355_s12 + $0x58] sm:$0xff] (%p2799_p6) }
 0x1c7   : > { %2078 = vst [vmem:[%s3355_s12 + $0x78] sm:$0xff] %v2442_v7  ;;  %2127 = vst [vmem:[%s2091_s4 + $0x148] sm:$0xff] (%p2799_p6), %v2126_v32 }
 0x1ca   : > { %v2130_v39 = vld [vmem:[%s3355_s12 + $0x68] sm:$0xff] }
 0x1cb   : > { %2131 = vst [vmem:[%s2091_s4 + $0x188] sm:$0xff] %v2130_v39 }
 0x1ce   : > { %v2134_v42 = vld [vmem:[%s3355_s12 + $0x78] sm:$0xff] }
 0x1cf   : > { %2135 = vst [vmem:[%s2091_s4 + $0x1c8] sm:$0xff] %v2134_v42 }
 0x1d0 PF: > { %s13_s16 = sadd.s32 1, %s2741_s16   ;;  %s3453_s12 = smov %s2729_s13 }
 0x1d1   : > { %p10_p11 = scmp.ge.s32.totalorder %s13_s16, 6   ;;  %s3454_s13 = smov %s2804_s22 }
 0x1d2   : > { %s3455_s14 = smov %s2737_s15  ;;  %s3456_s15 = smov %s3458_s17 }
 0x1d3   :  { %12 = sbr.rel (!%p10_p11) target bundleno = 3 (0x3), region = 127 }

// kernel: conv_vae_forward.28
= control target key start
LH: loop header
LB: loop body
LE: loop exit
PB: predicated region body
PF: predicated region fallthrough
CT: control target
= control target key end

     0   :  { %s1580_s12 = smov 0   ;;  %s1582_s13 = smov 0   ;;  %s1896_s0 = inlined_call_operand.vmem [shape: bf16[32,256], index: 0, kind: input, shape index: {}]   ;;  %s1897_s1 = inlined_call_operand.vmem [shape: bf16[256,8192], index: 1, kind: input, shape index: {}]   ;;  %s1898_s2 = inlined_call_operand.vmem [shape: f32[32,1], index: 2, kind: input, shape index: {}]   ;;  %s1899_s3 = inlined_call_operand.vmem [shape: bf16[32,8192], index: 3, kind: output, shape index: {}]  }
   0x1   :  { %s1584_s14 = smov 0   ;;  %s1586_s15 = smov 0  }
   0x2   :  { %s1588_s16 = smov 0  }
   0x3 LB: > { %s28_s17 = sadd.s32 1, %s1553_s15  ;;  %s1271_s18 = sadd.s32 4294967295, %s1557_s16   ;;  %s1557_s16 = sphi %s1588_s16, %s13_s16   ;;  %s1553_s15 = sphi %s1586_s15, %s1904_s15   ;;  %s1549_s14 = sphi %s1584_s14, %s1903_s14   ;;  %s1545_s13 = sphi %s1582_s13, %s1902_s13   ;;  %s1541_s12 = sphi %s1580_s12, %s1901_s12  }
   0x4   : > { %p30_p0 = scmp.ge.s32.totalorder %s28_s17, 16  ;;  %p76_p1 = scmp.ne.s32.totalorder %s1545_s13, %s1541_s12 }
   0x5   : > { %p77_p2 = scmp.eq.s32.totalorder %s1557_s16, 0  ;;  %p134_p4 = scmp.eq.s32.totalorder %s1271_s18, 15 }
   0x6   : > { %s1906_s17 = smov (%p30_p0, %s28_s17), 0  ;;  %s69_s20 = sadd.s32 1, %s1545_s13 }
   0x7   : > { %p78_p3 = por %p77_p2, %p76_p1  ;;  %s65_s19 = ssub.s32 %s1553_s15, %s1906_s17 }
   0x8   : > { %p67_p5 = scmp.eq.s32.totalorder %s65_s19, 0  ;;  %p1615_p6 = por %p134_p4, %p76_p1 }
   0x9   : > { %p1276_p7 = scmp.ge.s32.totalorder %s1557_s16, 16 }
   0xa   : > { %s1620_s22 = scalar_select %p67_p5, %s1545_s13, %s69_s20  }
   0xb   : > { %180 = sbr.rel (%p1276_p7) target bundleno = 52 (0x34), region = 24 }
  0x10   : > { %183 = sbr.rel (!%p78_p3) target bundleno = 52 (0x34), region = 28  ;;  %s185_s23 = sand.u32 (%p78_p3), 1, %s1545_s13  }
  0x11   : > { %s1364_s24 = sshll.u32 (%p78_p3), %s1553_s15, 4  ;;  %s1277_s25 = sshll.u32 (%p78_p3), %s185_s23, 9 }
  0x12   : > { %s1628_s28 = scalar_lea.vmem (%p78_p3), %s1897_s1, %s1364_s24  ;;  %s1633_s29 = scalar_lea.vmem (%p78_p3), [#allocation3], %s1277_s25 }
  0x13   : > { %v206_v0 = vld [vmem:[%s1628_s28] sm:$0xff] (%p78_p3)  ;;  %v208_v1 = vld [vmem:[%s1628_s28 + $0x8] sm:$0xff] (%p78_p3) }
  0x14   : > { %v210_v2 = vld [vmem:[%s1628_s28 + $0x100] sm:$0xff] (%p78_p3)  ;;  %207 = vst [vmem:[%s1633_s29] sm:$0xff] (%p78_p3), %v206_v0  ;;  %209 = vst [vmem:[%s1633_s29 + $0x8] sm:$0xff] (%p78_p3), %v208_v1  ;;  %v212_v3 = vld [vmem:[%s1628_s28 + $0x108] sm:$0xff] (%p78_p3) }
  0x15   : > { %211 = vst [vmem:[%s1633_s29 + $0x10] sm:$0xff] %v210_v2  ;;  %v214_v4 = vld [vmem:[%s1628_s28 + $0x200] sm:$0xff]  ;;  %v216_v5 = vld [vmem:[%s1628_s28 + $0x208] sm:$0xff]  ;;  %213 = vst [vmem:[%s1633_s29 + $0x18] sm:$0xff] %v212_v3 }
  0x16   : > { %215 = vst [vmem:[%s1633_s29 + $0x20] sm:$0xff] %v214_v4  ;;  %217 = vst [vmem:[%s1633_s29 + $0x28] sm:$0xff] %v216_v5  ;;  %v218_v6 = vld [vmem:[%s1628_s28 + $0x300] sm:$0xff]  ;;  %v220_v7 = vld [vmem:[%s1628_s28 + $0x308] sm:$0xff] }
  0x17   : > { %v222_v8 = vld [vmem:[%s1628_s28 + $0x400] sm:$0xff]  ;;  %219 = vst [vmem:[%s1633_s29 + $0x30] sm:$0xff] %v218_v6  ;;  %221 = vst [vmem:[%s1633_s29 + $0x38] sm:$0xff] %v220_v7  ;;  %v224_v9 = vld [vmem:[%s1628_s28 + $0x408] sm:$0xff] }
  0x18   : > { %223 = vst [vmem:[%s1633_s29 + $0x40] sm:$0xff] %v222_v8  ;;  %v226_v10 = vld [vmem:[%s1628_s28 + $0x500] sm:$0xff]  ;;  %v228_v11 = vld [vmem:[%s1628_s28 + $0x508] sm:$0xff]  ;;  %225 = vst [vmem:[%s1633_s29 + $0x48] sm:$0xff] %v224_v9 }
  0x19   : > { %227 = vst [vmem:[%s1633_s29 + $0x50] sm:$0xff] %v226_v10  ;;  %229 = vst [vmem:[%s1633_s29 + $0x58] sm:$0xff] %v228_v11  ;;  %v230_v12 = vld [vmem:[%s1628_s28 + $0x600] sm:$0xff]  ;;  %v232_v13 = vld [vmem:[%s1628_s28 + $0x608] sm:$0xff] }
  0x1a   : > { %v234_v14 = vld [vmem:[%s1628_s28 + $0x700] sm:$0xff]  ;;  %231 = vst [vmem:[%s1633_s29 + $0x60] sm:$0xff] %v230_v12  ;;  %233 = vst [vmem:[%s1633_s29 + $0x68] sm:$0xff] %v232_v13  ;;  %v236_v15 = vld [vmem:[%s1628_s28 + $0x708] sm:$0xff] }
  0x1b   : > { %235 = vst [vmem:[%s1633_s29 + $0x70] sm:$0xff] %v234_v14  ;;  %v238_v16 = vld [vmem:[%s1628_s28 + $0x800] sm:$0xff]  ;;  %v240_v17 = vld [vmem:[%s1628_s28 + $0x808] sm:$0xff]  ;;  %237 = vst [vmem:[%s1633_s29 + $0x78] sm:$0xff] %v236_v15 }
  0x1c   : > { %239 = vst [vmem:[%s1633_s29 + $0x80] sm:$0xff] %v238_v16  ;;  %241 = vst [vmem:[%s1633_s29 + $0x88] sm:$0xff] %v240_v17  ;;  %v242_v18 = vld [vmem:[%s1628_s28 + $0x900] sm:$0xff]  ;;  %v244_v19 = vld [vmem:[%s1628_s28 + $0x908] sm:$0xff] }
  0x1d   : > { %v246_v20 = vld [vmem:[%s1628_s28 + $0xa00] sm:$0xff]  ;;  %243 = vst [vmem:[%s1633_s29 + $0x90] sm:$0xff] %v242_v18  ;;  %245 = vst [vmem:[%s1633_s29 + $0x98] sm:$0xff] %v244_v19  ;;  %v248_v21 = vld [vmem:[%s1628_s28 + $0xa08] sm:$0xff] }
  0x1e   : > { %247 = vst [vmem:[%s1633_s29 + $0xa0] sm:$0xff] %v246_v20  ;;  %v250_v22 = vld [vmem:[%s1628_s28 + $0xb00] sm:$0xff]  ;;  %v252_v23 = vld [vmem:[%s1628_s28 + $0xb08] sm:$0xff]  ;;  %249 = vst [vmem:[%s1633_s29 + $0xa8] sm:$0xff] %v248_v21 }
  0x1f   : > { %251 = vst [vmem:[%s1633_s29 + $0xb0] sm:$0xff] %v250_v22  ;;  %253 = vst [vmem:[%s1633_s29 + $0xb8] sm:$0xff] %v252_v23  ;;  %v254_v24 = vld [vmem:[%s1628_s28 + $0xc00] sm:$0xff]  ;;  %v256_v25 = vld [vmem:[%s1628_s28 + $0xc08] sm:$0xff] }
  0x20   : > { %v258_v26 = vld [vmem:[%s1628_s28 + $0xd00] sm:$0xff]  ;;  %255 = vst [vmem:[%s1633_s29 + $0xc0] sm:$0xff] %v254_v24  ;;  %257 = vst [vmem:[%s1633_s29 + $0xc8] sm:$0xff] %v256_v25  ;;  %v260_v27 = vld [vmem:[%s1628_s28 + $0xd08] sm:$0xff] }
  0x21   : > { %259 = vst [vmem:[%s1633_s29 + $0xd0] sm:$0xff] %v258_v26  ;;  %v262_v28 = vld [vmem:[%s1628_s28 + $0xe00] sm:$0xff]  ;;  %v264_v29 = vld [vmem:[%s1628_s28 + $0xe08] sm:$0xff]  ;;  %261 = vst [vmem:[%s1633_s29 + $0xd8] sm:$0xff] %v260_v27 }
  0x22   : > { %263 = vst [vmem:[%s1633_s29 + $0xe0] sm:$0xff] %v262_v28  ;;  %265 = vst [vmem:[%s1633_s29 + $0xe8] sm:$0xff] %v264_v29  ;;  %v266_v30 = vld [vmem:[%s1628_s28 + $0xf00] sm:$0xff]  ;;  %v268_v31 = vld [vmem:[%s1628_s28 + $0xf08] sm:$0xff] }
  0x23   : > { %v270_v32 = vld [vmem:[%s1628_s28 + $0x1000] sm:$0xff]  ;;  %267 = vst [vmem:[%s1633_s29 + $0xf0] sm:$0xff] %v266_v30  ;;  %269 = vst [vmem:[%s1633_s29 + $0xf8] sm:$0xff] %v268_v31  ;;  %v272_v33 = vld [vmem:[%s1628_s28 + $0x1008] sm:$0xff] }
  0x24   : > { %271 = vst [vmem:[%s1633_s29 + $0x100] sm:$0xff] %v270_v32  ;;  %v274_v34 = vld [vmem:[%s1628_s28 + $0x1100] sm:$0xff]  ;;  %v276_v35 = vld [vmem:[%s1628_s28 + $0x1108] sm:$0xff]  ;;  %273 = vst [vmem:[%s1633_s29 + $0x108] sm:$0xff] %v272_v33 }
  0x25   : > { %275 = vst [vmem:[%s1633_s29 + $0x110] sm:$0xff] %v274_v34  ;;  %277 = vst [vmem:[%s1633_s29 + $0x118] sm:$0xff] %v276_v35  ;;  %v278_v36 = vld [vmem:[%s1628_s28 + $0x1200] sm:$0xff]  ;;  %v280_v37 = vld [vmem:[%s1628_s28 + $0x1208] sm:$0xff] }
  0x26   : > { %v282_v38 = vld [vmem:[%s1628_s28 + $0x1300] sm:$0xff]  ;;  %279 = vst [vmem:[%s1633_s29 + $0x120] sm:$0xff] %v278_v36  ;;  %281 = vst [vmem:[%s1633_s29 + $0x128] sm:$0xff] %v280_v37  ;;  %v284_v39 = vld [vmem:[%s1628_s28 + $0x1308] sm:$0xff] }
  0x27   : > { %283 = vst [vmem:[%s1633_s29 + $0x130] sm:$0xff] %v282_v38  ;;  %v286_v40 = vld [vmem:[%s1628_s28 + $0x1400] sm:$0xff]  ;;  %v288_v41 = vld [vmem:[%s1628_s28 + $0x1408] sm:$0xff]  ;;  %285 = vst [vmem:[%s1633_s29 + $0x138] sm:$0xff] %v284_v39 }
  0x28   : > { %287 = vst [vmem:[%s1633_s29 + $0x140] sm:$0xff] %v286_v40  ;;  %289 = vst [vmem:[%s1633_s29 + $0x148] sm:$0xff] %v288_v41  ;;  %v290_v42 = vld [vmem:[%s1628_s28 + $0x1500] sm:$0xff]  ;;  %v292_v43 = vld [vmem:[%s1628_s28 + $0x1508] sm:$0xff] }
  0x29   : > { %v294_v44 = vld [vmem:[%s1628_s28 + $0x1600] sm:$0xff]  ;;  %291 = vst [vmem:[%s1633_s29 + $0x150] sm:$0xff] %v290_v42  ;;  %293 = vst [vmem:[%s1633_s29 + $0x158] sm:$0xff] %v292_v43  ;;  %v296_v45 = vld [vmem:[%s1628_s28 + $0x1608] sm:$0xff] }
  0x2a   : > { %295 = vst [vmem:[%s1633_s29 + $0x160] sm:$0xff] %v294_v44  ;;  %v298_v46 = vld [vmem:[%s1628_s28 + $0x1700] sm:$0xff]  ;;  %v300_v47 = vld [vmem:[%s1628_s28 + $0x1708] sm:$0xff]  ;;  %297 = vst [vmem:[%s1633_s29 + $0x168] sm:$0xff] %v296_v45 }
  0x2b   : > { %299 = vst [vmem:[%s1633_s29 + $0x170] sm:$0xff] %v298_v46  ;;  %301 = vst [vmem:[%s1633_s29 + $0x178] sm:$0xff] %v300_v47  ;;  %v302_v48 = vld [vmem:[%s1628_s28 + $0x1800] sm:$0xff]  ;;  %v304_v49 = vld [vmem:[%s1628_s28 + $0x1808] sm:$0xff] }
  0x2c   : > { %v306_v50 = vld [vmem:[%s1628_s28 + $0x1900] sm:$0xff]  ;;  %303 = vst [vmem:[%s1633_s29 + $0x180] sm:$0xff] %v302_v48  ;;  %305 = vst [vmem:[%s1633_s29 + $0x188] sm:$0xff] %v304_v49  ;;  %v308_v51 = vld [vmem:[%s1628_s28 + $0x1908] sm:$0xff] }
  0x2d   : > { %307 = vst [vmem:[%s1633_s29 + $0x190] sm:$0xff] %v306_v50  ;;  %v310_v52 = vld [vmem:[%s1628_s28 + $0x1a00] sm:$0xff]  ;;  %v312_v53 = vld [vmem:[%s1628_s28 + $0x1a08] sm:$0xff]  ;;  %309 = vst [vmem:[%s1633_s29 + $0x198] sm:$0xff] %v308_v51 }
  0x2e   : > { %311 = vst [vmem:[%s1633_s29 + $0x1a0] sm:$0xff] %v310_v52  ;;  %313 = vst [vmem:[%s1633_s29 + $0x1a8] sm:$0xff] %v312_v53  ;;  %v314_v54 = vld [vmem:[%s1628_s28 + $0x1b00] sm:$0xff]  ;;  %v316_v55 = vld [vmem:[%s1628_s28 + $0x1b08] sm:$0xff] }
  0x2f   : > { %v318_v56 = vld [vmem:[%s1628_s28 + $0x1c00] sm:$0xff]  ;;  %315 = vst [vmem:[%s1633_s29 + $0x1b0] sm:$0xff] %v314_v54  ;;  %317 = vst [vmem:[%s1633_s29 + $0x1b8] sm:$0xff] %v316_v55  ;;  %v320_v57 = vld [vmem:[%s1628_s28 + $0x1c08] sm:$0xff] }
  0x30   : > { %319 = vst [vmem:[%s1633_s29 + $0x1c0] sm:$0xff] %v318_v56  ;;  %v322_v58 = vld [vmem:[%s1628_s28 + $0x1d00] sm:$0xff]  ;;  %v324_v59 = vld [vmem:[%s1628_s28 + $0x1d08] sm:$0xff]  ;;  %321 = vst [vmem:[%s1633_s29 + $0x1c8] sm:$0xff] %v320_v57 }
  0x31   : > { %323 = vst [vmem:[%s1633_s29 + $0x1d0] sm:$0xff] %v322_v58  ;;  %325 = vst [vmem:[%s1633_s29 + $0x1d8] sm:$0xff] %v324_v59  ;;  %v326_v60 = vld [vmem:[%s1628_s28 + $0x1e00] sm:$0xff]  ;;  %v328_v61 = vld [vmem:[%s1628_s28 + $0x1e08] sm:$0xff] }
  0x32   : > { %v330_v62 = vld [vmem:[%s1628_s28 + $0x1f00] sm:$0xff]  ;;  %327 = vst [vmem:[%s1633_s29 + $0x1e0] sm:$0xff] %v326_v60  ;;  %329 = vst [vmem:[%s1633_s29 + $0x1e8] sm:$0xff] %v328_v61  ;;  %v332_v63 = vld [vmem:[%s1628_s28 + $0x1f08] sm:$0xff] }
  0x33   : > { %331 = vst [vmem:[%s1633_s29 + $0x1f0] sm:$0xff] %v330_v62  ;;  %333 = vst [vmem:[%s1633_s29 + $0x1f8] sm:$0xff] %v332_v63 }
  0x34 PF: > { %p1280_p8 = scmp.ge.s32.totalorder %s1557_s16, 1  ;;  %p338_p9 = scmp.lt.s32.totalorder %s1557_s16, 17 }
  0x36   : > { %p339_p10 = pnand %p1280_p8, %p338_p9 }
  0x37   : > { %s345_s30 = sand.u32 (!%p339_p10), 1, %s1541_s12  }
  0x38   : > { %342 = sbr.rel (%p339_p10) target bundleno = 351 (0x15f), region = 51  ;;  %s1281_s4 = sshll.u32 (!%p339_p10), %s345_s30, 9 }
  0x39   : > { %s1771_s9 = scalar_lea.vmem (!%p339_p10), [#allocation3], %s1281_s4  ;;  %s1282_s4 = sshll.u32 (!%p339_p10), %s345_s30, 6 }
  0x3a   : > { %s1857_s12 = scalar_lea.vmem (!%p339_p10), [#allocation4], %s1282_s4 }
  0x3d   : > { %v1515_v0 = vld [vmem:[%s1896_s0 + $0x4] ss:$8 sps:$4 sm:$0xff]   ;;  %v1559_v1 = vmov 0   ;;  %v1421_v5 = vld [vmem:[%s1771_s9 + $0xe0] ss:$16 sps:$4 sm:$0xff]   ;;  %v1008_v55 = vld [vmem:[%s1898_s2 + $0x18] sm:$0xff] }
  0x3e   : > { %1415 = vset.pattern.permute.xlu0 %v1559_v1  ;;  %1416 = vset.pattern.permute.xlu1 %v1559_v1  ;;  %v1005_v2 = vld [vmem:[%s1898_s2] sm:$0xff]  ;;  %v1419_v4 = vld [vmem:[%s1771_s9 + $0xec] ss:$16 sps:$4 sm:$0xff]   ;;  %v1422_v6 = vld [vmem:[%s1771_s9 + $0xe8] ss:$16 sps:$4 sm:$0xff]   ;;  %s1373_s30 = sshll.u32 (%p1615_p6), %s1549_s14, 4 }
  0x3f   : > { %v1417_v3 = vld [vmem:[%s1771_s9 + $0xe4] ss:$16 sps:$4 sm:$0xff]   ;;  %880 = vmatprep.mubr.bf16.mxu0 %v1515_v0  ;;  %933 = vmatprep.mubr.bf16.mxu1 %v1515_v0  ;;  %v1425_v8 = vld [vmem:[%s1771_s9 + $0xcc] ss:$16 sps:$4 sm:$0xff]   ;;  %v1427_v9 = vld [vmem:[%s1771_s9 + $0xc0] ss:$16 sps:$4 sm:$0xff]   ;;  %s1129_s7 = scalar_lea.vmem (%p1615_p6), %s1899_s3, %s1373_s30 }
  0x40   : > { %1011 = vperm.xlu0 %1415, %v1005_v2   ;;  %848 = vmatprep.subr.bf16.mxu0 %v1417_v3  ;;  %v1423_v7 = vld [vmem:[%s1771_s9 + $0xc4] ss:$16 sps:$4 sm:$0xff]   ;;  %v1428_v10 = vld [vmem:[%s1771_s9 + $0xc8] ss:$16 sps:$4 sm:$0xff]   ;;  %v1431_v12 = vld [vmem:[%s1771_s9 + $0xac] ss:$16 sps:$4 sm:$0xff]  }
  0x41   : > { %901 = vmatprep.subr.bf16.mxu1 %v1419_v4  ;;  %849 = vmatpush1.bf16.msra.mxu0 %v1421_v5  ;;  %v1429_v11 = vld [vmem:[%s1771_s9 + $0xa4] ss:$16 sps:$4 sm:$0xff]   ;;  %v1433_v13 = vld [vmem:[%s1771_s9 + $0xa0] ss:$16 sps:$4 sm:$0xff]   ;;  %v1434_v14 = vld [vmem:[%s1771_s9 + $0xa8] ss:$16 sps:$4 sm:$0xff]  }
  0x42   : > { %902 = vmatpush1.bf16.msra.mxu1 %v1422_v6  ;;  %850 = vmatprep.subr.bf16.mxu0 %v1423_v7  ;;  %v1435_v15 = vld [vmem:[%s1771_s9 + $0x84] ss:$16 sps:$4 sm:$0xff]   ;;  %v1437_v16 = vld [vmem:[%s1771_s9 + $0x8c] ss:$16 sps:$4 sm:$0xff]   ;;  %v1439_v17 = vld [vmem:[%s1771_s9 + $0x80] ss:$16 sps:$4 sm:$0xff]  }
  0x43   : > { %903 = vmatprep.subr.bf16.mxu1 %v1425_v8  ;;  %v1440_v18 = vld [vmem:[%s1771_s9 + $0x88] ss:$16 sps:$4 sm:$0xff]   ;;  %v1441_v19 = vld [vmem:[%s1771_s9 + $0x64] ss:$16 sps:$4 sm:$0xff]   ;;  %v1443_v20 = vld [vmem:[%s1771_s9 + $0x6c] ss:$16 sps:$4 sm:$0xff]  }
  0x44   : > { %v1445_v21 = vld [vmem:[%s1771_s9 + $0x60] ss:$16 sps:$4 sm:$0xff]   ;;  %v1446_v22 = vld [vmem:[%s1771_s9 + $0x68] ss:$16 sps:$4 sm:$0xff]   ;;  %v1447_v23 = vld [vmem:[%s1771_s9 + $0x44] ss:$16 sps:$4 sm:$0xff]  }
  0x45   : > { %851 = vmatpush1.bf16.msra.mxu0 %v1427_v9  ;;  %v1449_v24 = vld [vmem:[%s1771_s9 + $0x4c] ss:$16 sps:$4 sm:$0xff]   ;;  %v1451_v25 = vld [vmem:[%s1771_s9 + $0x40] ss:$16 sps:$4 sm:$0xff]   ;;  %v1452_v26 = vld [vmem:[%s1771_s9 + $0x48] ss:$16 sps:$4 sm:$0xff]  }
  0x46   : > { %904 = vmatpush1.bf16.msra.mxu1 %v1428_v10  ;;  %852 = vmatprep.subr.bf16.mxu0 %v1429_v11  ;;  %v1453_v27 = vld [vmem:[%s1771_s9 + $0x24] ss:$16 sps:$4 sm:$0xff]   ;;  %v1455_v28 = vld [vmem:[%s1771_s9 + $0x2c] ss:$16 sps:$4 sm:$0xff]   ;;  %v1457_v29 = vld [vmem:[%s1771_s9 + $0x20] ss:$16 sps:$4 sm:$0xff]  }
  0x47   : > { %905 = vmatprep.subr.bf16.mxu1 %v1431_v12  ;;  %v1458_v30 = vld [vmem:[%s1771_s9 + $0x28] ss:$16 sps:$4 sm:$0xff]   ;;  %v1459_v31 = vld [vmem:[%s1771_s9 + $0x4] ss:$16 sps:$4 sm:$0xff]   ;;  %v1461_v32 = vld [vmem:[%s1771_s9 + $0xc] ss:$16 sps:$4 sm:$0xff]  }
  0x48   : > { %v1463_v33 = vld [vmem:[%s1771_s9] ss:$16 sps:$4 sm:$0xff]   ;;  %v1464_v34 = vld [vmem:[%s1771_s9 + $0x8] ss:$16 sps:$4 sm:$0xff]   ;;  %v1465_v35 = vld [vmem:[%s1771_s9 + $0x1e4] ss:$16 sps:$4 sm:$0xff]  }
  0x49   : > { %853 = vmatpush1.bf16.msra.mxu0 %v1433_v13  ;;  %v1467_v36 = vld [vmem:[%s1771_s9 + $0x1ec] ss:$16 sps:$4 sm:$0xff]   ;;  %v1469_v37 = vld [vmem:[%s1771_s9 + $0x1e0] ss:$16 sps:$4 sm:$0xff]   ;;  %v1470_v38 = vld [vmem:[%s1771_s9 + $0x1e8] ss:$16 sps:$4 sm:$0xff]  }
  0x4a   : > { %906 = vmatpush1.bf16.msra.mxu1 %v1434_v14  ;;  %854 = vmatprep.subr.bf16.mxu0 %v1435_v15  ;;  %v1471_v39 = vld [vmem:[%s1771_s9 + $0x1c4] ss:$16 sps:$4 sm:$0xff]   ;;  %v1473_v40 = vld [vmem:[%s1771_s9 + $0x1cc] ss:$16 sps:$4 sm:$0xff]   ;;  %v1475_v41 = vld [vmem:[%s1771_s9 + $0x1c0] ss:$16 sps:$4 sm:$0xff]  }
  0x4b   : > { %907 = vmatprep.subr.bf16.mxu1 %v1437_v16  ;;  %v1476_v42 = vld [vmem:[%s1771_s9 + $0x1c8] ss:$16 sps:$4 sm:$0xff]   ;;  %v1477_v43 = vld [vmem:[%s1771_s9 + $0x1a4] ss:$16 sps:$4 sm:$0xff]   ;;  %v1479_v44 = vld [vmem:[%s1771_s9 + $0x1ac] ss:$16 sps:$4 sm:$0xff]  }
  0x4c   : > { %v1481_v45 = vld [vmem:[%s1771_s9 + $0x1a0] ss:$16 sps:$4 sm:$0xff]   ;;  %v1482_v46 = vld [vmem:[%s1771_s9 + $0x1a8] ss:$16 sps:$4 sm:$0xff]   ;;  %v1483_v47 = vld [vmem:[%s1771_s9 + $0x184] ss:$16 sps:$4 sm:$0xff]  }
  0x4d   : > { %855 = vmatpush1.bf16.msra.mxu0 %v1439_v17  ;;  %v1485_v48 = vld [vmem:[%s1771_s9 + $0x18c] ss:$16 sps:$4 sm:$0xff]   ;;  %v1007_v50 = vld [vmem:[%s1898_s2 + $0x10] sm:$0xff]  ;;  %v1488_v52 = vld [vmem:[%s1771_s9 + $0x188] ss:$16 sps:$4 sm:$0xff]  }
  0x4e   : > { %908 = vmatpush1.bf16.msra.mxu1 %v1440_v18  ;;  %856 = vmatprep.subr.bf16.mxu0 %v1441_v19  ;;  %v1006_v49 = vld [vmem:[%s1898_s2 + $0x8] sm:$0xff]  ;;  %v1487_v51 = vld [vmem:[%s1771_s9 + $0x180] ss:$16 sps:$4 sm:$0xff]   ;;  %v1489_v53 = vld [vmem:[%s1771_s9 + $0x164] ss:$16 sps:$4 sm:$0xff]  }
  0x4f   : > { %909 = vmatprep.subr.bf16.mxu1 %v1443_v20  ;;  %1016 = vperm.xlu0 %1415, %v1006_v49   ;;  %v1491_v54 = vld [vmem:[%s1771_s9 + $0x16c] ss:$16 sps:$4 sm:$0xff]   ;;  %v1493_v56 = vld [vmem:[%s1771_s9 + $0x160] ss:$16 sps:$4 sm:$0xff]   ;;  %v1494_v57 = vld [vmem:[%s1771_s9 + $0x168] ss:$16 sps:$4 sm:$0xff]  }
  0x50   : > { %1021 = vperm.xlu1 %1416, %v1007_v50   ;;  %v1495_v58 = vld [vmem:[%s1771_s9 + $0x144] ss:$16 sps:$4 sm:$0xff]   ;;  %v1497_v59 = vld [vmem:[%s1771_s9 + $0x14c] ss:$16 sps:$4 sm:$0xff]   ;;  %v1499_v60 = vld [vmem:[%s1771_s9 + $0x140] ss:$16 sps:$4 sm:$0xff]  }
  0x51   : > { %857 = vmatpush1.bf16.msra.mxu0 %v1445_v21  ;;  %v1500_v61 = vld [vmem:[%s1771_s9 + $0x148] ss:$16 sps:$4 sm:$0xff]   ;;  %v1501_v62 = vld [vmem:[%s1771_s9 + $0x124] ss:$16 sps:$4 sm:$0xff]   ;;  %v1503_v63 = vld [vmem:[%s1771_s9 + $0x12c] ss:$16 sps:$4 sm:$0xff]  }
  0x52   : > { %910 = vmatpush1.bf16.msra.mxu1 %v1446_v22  ;;  %858 = vmatprep.subr.bf16.mxu0 %v1447_v23  ;;  %v1505_v0 = vld [vmem:[%s1771_s9 + $0x120] ss:$16 sps:$4 sm:$0xff]   ;;  %v1506_v1 = vld [vmem:[%s1771_s9 + $0x128] ss:$16 sps:$4 sm:$0xff]   ;;  %v1507_v2 = vld [vmem:[%s1771_s9 + $0x104] ss:$16 sps:$4 sm:$0xff]  }
  0x53   : > { %911 = vmatprep.subr.bf16.mxu1 %v1449_v24  ;;  %v1509_v3 = vld [vmem:[%s1771_s9 + $0x10c] ss:$16 sps:$4 sm:$0xff]   ;;  %v1511_v4 = vld [vmem:[%s1771_s9 + $0x100] ss:$16 sps:$4 sm:$0xff]   ;;  %v1512_v5 = vld [vmem:[%s1771_s9 + $0x108] ss:$16 sps:$4 sm:$0xff]  }
  0x54   : > { %1026 = vperm.xlu1 %1416, %v1008_v55   ;;  %v1513_v6 = vld [vmem:[%s1896_s0] ss:$8 sps:$4 sm:$0xff]   ;;  %v1516_v7 = vld [vmem:[%s1896_s0 + $0x14] ss:$8 sps:$4 sm:$0xff]   ;;  %v1518_v8 = vld [vmem:[%s1896_s0 + $0x10] ss:$8 sps:$4 sm:$0xff]  }
  0x55   : > { %859 = vmatpush1.bf16.msra.mxu0 %v1451_v25 }
  0x56   : > { %912 = vmatpush1.bf16.msra.mxu1 %v1452_v26  ;;  %860 = vmatprep.subr.bf16.mxu0 %v1453_v27 }
  0x57   : > { %913 = vmatprep.subr.bf16.mxu1 %v1455_v28 }
  0x59   : > { %861 = vmatpush1.bf16.msra.mxu0 %v1457_v29 }
  0x5a   : > { %914 = vmatpush1.bf16.msra.mxu1 %v1458_v30  ;;  %862 = vmatprep.subr.bf16.mxu0 %v1459_v31 }
  0x5b   : > { %915 = vmatprep.subr.bf16.mxu1 %v1461_v32 }
  0x5d   : > { %863 = vmatpush1.bf16.msra.mxu0 %v1463_v33 }
  0x5e   : > { %916 = vmatpush1.bf16.msra.mxu1 %v1464_v34  ;;  %864 = vmatprep.subr.bf16.mxu0 %v1465_v35 }
  0x5f   : > { %917 = vmatprep.subr.bf16.mxu1 %v1467_v36 }
  0x61   : > { %865 = vmatpush2.bf16.msra.mxu0 %v1469_v37 }
  0x62   : > { %918 = vmatpush2.bf16.msra.mxu1 %v1470_v38  ;;  %866 = vmatprep.subr.bf16.mxu0 %v1471_v39 }
  0x63   : > { %919 = vmatprep.subr.bf16.mxu1 %v1473_v40 }
  0x65   : > { %867 = vmatpush2.bf16.msra.mxu0 %v1475_v41 }
  0x66   : > { %920 = vmatpush2.bf16.msra.mxu1 %v1476_v42  ;;  %868 = vmatprep.subr.bf16.mxu0 %v1477_v43 }
  0x67   : > { %921 = vmatprep.subr.bf16.mxu1 %v1479_v44 }
  0x69   : > { %869 = vmatpush2.bf16.msra.mxu0 %v1481_v45 }
  0x6a   : > { %922 = vmatpush2.bf16.msra.mxu1 %v1482_v46  ;;  %870 = vmatprep.subr.bf16.mxu0 %v1483_v47 }
  0x6b   : > { %923 = vmatprep.subr.bf16.mxu1 %v1485_v48 }
  0x6d   : > { %871 = vmatpush2.bf16.msra.mxu0 %v1487_v51 }
  0x6e   : > { %924 = vmatpush2.bf16.msra.mxu1 %v1488_v52  ;;  %872 = vmatprep.subr.bf16.mxu0 %v1489_v53 }
  0x6f   : > { %925 = vmatprep.subr.bf16.mxu1 %v1491_v54 }
  0x71   : > { %873 = vmatpush2.bf16.msra.mxu0 %v1493_v56 }
  0x72   : > { %926 = vmatpush2.bf16.msra.mxu1 %v1494_v57  ;;  %874 = vmatprep.subr.bf16.mxu0 %v1495_v58 }
  0x73   : > { %927 = vmatprep.subr.bf16.mxu1 %v1497_v59 }
  0x75   : > { %875 = vmatpush2.bf16.msra.mxu0 %v1499_v60 }
  0x76   : > { %928 = vmatpush2.bf16.msra.mxu1 %v1500_v61  ;;  %876 = vmatprep.subr.bf16.mxu0 %v1501_v62 }
  0x77   : > { %929 = vmatprep.subr.bf16.mxu1 %v1503_v63 }
  0x79   : > { %877 = vmatpush2.bf16.msra.mxu0 %v1505_v0 }
  0x7a   : > { %930 = vmatpush2.bf16.msra.mxu1 %v1506_v1  ;;  %878 = vmatprep.subr.bf16.mxu0 %v1507_v2 }
  0x7b   : > { %931 = vmatprep.subr.bf16.mxu1 %v1509_v3 }
  0x7d   : > { %879 = vmatpush2.bf16.msra.mxu0 %v1511_v4 }
  0x7e   : > { %932 = vmatpush2.bf16.msra.mxu1 %v1512_v5 }
  0x80   : > { %881 = vmatmul.mubr.bf16.vlgmr.msra.gmra.mxu0 %v1513_v6 }
  0x81   : > { %934 = vmatmul.mubr.bf16.vlgmr.msra.gmra.mxu1 %v1513_v6  ;;  %890 = vmatprep.mubr.bf16.mxu0 %v1516_v7 }
  0x82   : > { %943 = vmatprep.mubr.bf16.mxu1 %v1516_v7 }
  0x88   : > { %891 = vmatmul.mubr.bf16.gmra.mxu0 %v1518_v8 }
  0x89   : > { %944 = vmatmul.mubr.bf16.gmra.mxu1 %v1518_v8 }
  0xbb   : > { %v1012_v9 = vpop.permute.xlu0 %1011 }
  0xca   : > { %v1017_v18 = vpop.permute.xlu0 %1016 }
  0xcb   : > { %v1022_v31 = vpop.permute.xlu1 %1021 }
  0xcf   : > { %v1027_v52 = vpop.permute.xlu1 %1026 }
 0x140   : > { %v882_v10 = vpop.f32.mrf.mxu0 }
 0x141   : > { %v935_v11 = vpop.f32.mrf.mxu1  ;;  %v1029_v12 = vadd.f32 %v1012_v9, %v882_v10 }
 0x142   : > { %v1031_v13 = vadd.f32 %v1012_v9, %v935_v11  ;;  %v884_v14 = vpop.f32.mrf.mxu0 }
 0x143   : > { %v937_v15 = vpop.f32.mrf.mxu1  ;;  %v1030_v16 = vadd.f32 %v1012_v9, %v884_v14  ;;  %v1045_v21 = vmax.f32 %v1029_v12, 0.0 }
 0x144   : > { %v1032_v17 = vadd.f32 %v1012_v9, %v937_v15  ;;  %v886_v19 = vpop.f32.mrf.mxu0  ;;  %v1047_v22 = vmax.f32 %v1031_v13, 0.0 }
 0x145   : > { %v939_v20 = vpop.f32.mrf.mxu1  ;;  %v1046_v23 = vmax.f32 %v1030_v16, 0.0  ;;  %v1033_v25 = vadd.f32 %v1017_v18, %v886_v19 }
 0x146   : > { %v1048_v24 = vmax.f32 %v1032_v17, 0.0  ;;  %v1035_v26 = vadd.f32 %v1017_v18, %v939_v20  ;;  %v888_v27 = vpop.f32.mrf.mxu0 }
 0x147   : > { %v941_v28 = vpop.f32.mrf.mxu1  ;;  %v1365_v29 = vpack.c.bf16 %v1046_v23, %v1045_v21  ;;  %v1034_v32 = vadd.f32 %v1017_v18, %v888_v27  ;;  %v1049_v38 = vmax.f32 %v1033_v25, 0.0 }
 0x148   : > { %v1366_v30 = vpack.c.bf16 %v1048_v24, %v1047_v22  ;;  %v1036_v33 = vadd.f32 %v1017_v18, %v941_v28  ;;  %v892_v34 = vpop.f32.mrf.mxu0  ;;  %v1051_v39 = vmax.f32 %v1035_v26, 0.0 }
 0x149   : > { %v945_v35 = vpop.f32.mrf.mxu1  ;;  %1109 = vst [vmem:[%s1857_s12] sm:$0xff] %v1365_v29  ;;  %v1037_v36 = vadd.f32 %v1022_v31, %v892_v34  ;;  %v1050_v40 = vmax.f32 %v1034_v32, 0.0 }
 0x14a   : > { %1110 = vst [vmem:[%s1857_s12 + $0x8] sm:$0xff] %v1366_v30  ;;  %v1039_v37 = vadd.f32 %v1022_v31, %v945_v35  ;;  %v1052_v41 = vmax.f32 %v1036_v33, 0.0  ;;  %v894_v42 = vpop.f32.mrf.mxu0 }
 0x14b   : > { %v947_v43 = vpop.f32.mrf.mxu1  ;;  %v1038_v44 = vadd.f32 %v1022_v31, %v894_v42  ;;  %v1367_v46 = vpack.c.bf16 %v1050_v40, %v1049_v38  ;;  %v1053_v50 = vmax.f32 %v1037_v36, 0.0 }
 0x14c   : > { %v1040_v45 = vadd.f32 %v1022_v31, %v947_v43  ;;  %v1368_v47 = vpack.c.bf16 %v1052_v41, %v1051_v39  ;;  %v896_v48 = vpop.f32.mrf.mxu0  ;;  %v1055_v51 = vmax.f32 %v1039_v37, 0.0 }
 0x14d   : > { %v949_v49 = vpop.f32.mrf.mxu1  ;;  %v1054_v53 = vmax.f32 %v1038_v44, 0.0  ;;  %1111 = vst [vmem:[%s1857_s12 + $0x10] sm:$0xff] %v1367_v46  ;;  %v1041_v55 = vadd.f32 %v1027_v52, %v896_v48 }
 0x14e   : > { %v1056_v54 = vmax.f32 %v1040_v45, 0.0  ;;  %1112 = vst [vmem:[%s1857_s12 + $0x18] sm:$0xff] %v1368_v47  ;;  %v1043_v56 = vadd.f32 %v1027_v52, %v949_v49  ;;  %v898_v57 = vpop.f32.mrf.mxu0 }
 0x14f   : > { %v951_v58 = vpop.f32.mrf.mxu1  ;;  %v1369_v59 = vpack.c.bf16 %v1054_v53, %v1053_v50  ;;  %v1042_v61 = vadd.f32 %v1027_v52, %v898_v57  ;;  %v1057_v63 = vmax.f32 %v1041_v55, 0.0 }
 0x150   : > { %v1370_v60 = vpack.c.bf16 %v1056_v54, %v1055_v51  ;;  %v1044_v62 = vadd.f32 %v1027_v52, %v951_v58  ;;  %v1059_v0 = vmax.f32 %v1043_v56, 0.0  ;;  %v1142_v5 = vld [vmem:[%s1857_s12] sm:$0xff] (%p1615_p6) }
 0x151   : > { %1113 = vst [vmem:[%s1857_s12 + $0x20] sm:$0xff] %v1369_v59  ;;  %v1058_v1 = vmax.f32 %v1042_v61, 0.0  ;;  %v1144_v6 = vld [vmem:[%s1857_s12 + $0x8] sm:$0xff] (%p1615_p6)  ;;  %1143 = vst [vmem:[%s1129_s7] sm:$0xff] (%p1615_p6), %v1142_v5 }
 0x152   : > { %1114 = vst [vmem:[%s1857_s12 + $0x28] sm:$0xff] %v1370_v60  ;;  %v1060_v2 = vmax.f32 %v1044_v62, 0.0  ;;  %1123 = sbr.rel (!%p1615_p6) target bundleno = 351 (0x15f), region = 67  ;;  %1145 = vst [vmem:[%s1129_s7 + $0x8] sm:$0xff] (%p1615_p6), %v1144_v6 }
 0x153   : > { %v1371_v3 = vpack.c.bf16 %v1058_v1, %v1057_v63 }
 0x154   : > { %v1372_v4 = vpack.c.bf16 %v1060_v2, %v1059_v0  ;;  %v1146_v7 = vld [vmem:[%s1857_s12 + $0x10] sm:$0xff] (%p1615_p6) }
 0x155   : > { %1115 = vst [vmem:[%s1857_s12 + $0x30] sm:$0xff] %v1371_v3  ;;  %v1148_v8 = vld [vmem:[%s1857_s12 + $0x18] sm:$0xff] (%p1615_p6)  ;;  %1147 = vst [vmem:[%s1129_s7 + $0x100] sm:$0xff] (%p1615_p6), %v1146_v7 }
 0x156   : > { %1116 = vst [vmem:[%s1857_s12 + $0x38] sm:$0xff] %v1372_v4  ;;  %1149 = vst [vmem:[%s1129_s7 + $0x108] sm:$0xff] (%p1615_p6), %v1148_v8 }
 0x158   : > { %v1150_v9 = vld [vmem:[%s1857_s12 + $0x20] sm:$0xff] }
 0x159   : > { %v1152_v10 = vld [vmem:[%s1857_s12 + $0x28] sm:$0xff]  ;;  %1151 = vst [vmem:[%s1129_s7 + $0x200] sm:$0xff] %v1150_v9 }
 0x15a   : > { %1153 = vst [vmem:[%s1129_s7 + $0x208] sm:$0xff] %v1152_v10 }
 0x15c   : > { %v1154_v11 = vld [vmem:[%s1857_s12 + $0x30] sm:$0xff] }
 0x15d   : > { %v1156_v12 = vld [vmem:[%s1857_s12 + $0x38] sm:$0xff]  ;;  %1155 = vst [vmem:[%s1129_s7 + $0x300] sm:$0xff] %v1154_v11 }
 0x15e   : > { %1157 = vst [vmem:[%s1129_s7 + $0x308] sm:$0xff] %v1156_v12 }
 0x15f PF: > { %s13_s16 = sadd.s32 1, %s1557_s16   ;;  %s1901_s12 = smov %s1545_s13 }
 0x160   : > { %p10_p11 = scmp.ge.s32.totalorder %s13_s16, 18   ;;  %s1902_s13 = smov %s1620_s22 }
 0x161   : > { %s1903_s14 = smov %s1553_s15  ;;  %s1904_s15 = smov %s1906_s17 }
 0x162   :  { %12 = sbr.rel (!%p10_p11) target bundleno = 3 (0x3), region = 127 }

// kernel: conv_vae_forward.32
= control target key start
LH: loop header
LB: loop body
LE: loop exit
PB: predicated region body
PF: predicated region fallthrough
CT: control target
= control target key end

     0   :  { %s1073_s12 = smov 0   ;;  %s1075_s13 = smov 0   ;;  %s1278_s0 = inlined_call_operand.vmem [shape: bf16[16,128], index: 0, kind: input, shape index: {}]   ;;  %s1279_s1 = inlined_call_operand.vmem [shape: bf16[128,32768], index: 1, kind: input, shape index: {}]   ;;  %s1280_s2 = inlined_call_operand.vmem [shape: f32[16,1], index: 2, kind: input, shape index: {}]   ;;  %s1281_s3 = inlined_call_operand.vmem [shape: f32[16,32768], index: 3, kind: output, shape index: {}]  }
   0x1   :  { %s1077_s14 = smov 0   ;;  %s1079_s15 = smov 0  }
   0x2   :  { %s1081_s16 = smov 0  }
   0x3 LB: > { %s28_s17 = sadd.s32 1, %s1046_s15  ;;  %s853_s18 = sadd.s32 4294967295, %s1050_s16   ;;  %s1050_s16 = sphi %s1081_s16, %s13_s16   ;;  %s1046_s15 = sphi %s1079_s15, %s1286_s15   ;;  %s1042_s14 = sphi %s1077_s14, %s1285_s14   ;;  %s1038_s13 = sphi %s1075_s13, %s1284_s13   ;;  %s1034_s12 = sphi %s1073_s12, %s1283_s12  }
   0x4   : > { %p30_p0 = scmp.ge.s32.totalorder %s28_s17, 64  ;;  %p76_p1 = scmp.ne.s32.totalorder %s1038_s13, %s1034_s12 }
   0x5   : > { %p77_p2 = scmp.eq.s32.totalorder %s1050_s16, 0  ;;  %p134_p4 = scmp.eq.s32.totalorder %s853_s18, 63 }
   0x6   : > { %s1288_s17 = smov (%p30_p0, %s28_s17), 0  ;;  %s69_s20 = sadd.s32 1, %s1038_s13 }
   0x7   : > { %p78_p3 = por %p77_p2, %p76_p1  ;;  %s65_s19 = ssub.s32 %s1046_s15, %s1288_s17 }
   0x8   : > { %p67_p5 = scmp.eq.s32.totalorder %s65_s19, 0  ;;  %p1108_p6 = por %p134_p4, %p76_p1 }
   0x9   : > { %p858_p7 = scmp.ge.s32.totalorder %s1050_s16, 64 }
   0xa   : > { %s1113_s22 = scalar_select %p67_p5, %s1038_s13, %s69_s20  }
   0xb   : > { %177 = sbr.rel (%p858_p7) target bundleno = 36 (0x24), region = 24 }
  0x10   : > { %180 = sbr.rel (!%p78_p3) target bundleno = 36 (0x24), region = 28  ;;  %s182_s23 = sand.u32 (%p78_p3), 1, %s1038_s13  }
  0x11   : > { %s903_s24 = sshll.u32 (%p78_p3), %s1046_s15, 4  ;;  %s859_s25 = sshll.u32 (%p78_p3), %s182_s23, 8 }
  0x12   : > { %s1121_s28 = scalar_lea.vmem (%p78_p3), %s1279_s1, %s903_s24  ;;  %s1126_s29 = scalar_lea.vmem (%p78_p3), [#allocation3], %s859_s25 }
  0x13   : > { %v203_v0 = vld [vmem:[%s1121_s28] sm:$0xff] (%p78_p3)  ;;  %v205_v1 = vld [vmem:[%s1121_s28 + $0x8] sm:$0xff] (%p78_p3) }
  0x14   : > { %v207_v2 = vld [vmem:[%s1121_s28 + $0x400] sm:$0xff] (%p78_p3)  ;;  %204 = vst [vmem:[%s1126_s29] sm:$0xff] (%p78_p3), %v203_v0  ;;  %206 = vst [vmem:[%s1126_s29 + $0x8] sm:$0xff] (%p78_p3), %v205_v1  ;;  %v209_v3 = vld [vmem:[%s1121_s28 + $0x408] sm:$0xff] (%p78_p3) }
  0x15   : > { %208 = vst [vmem:[%s1126_s29 + $0x10] sm:$0xff] %v207_v2  ;;  %v211_v4 = vld [vmem:[%s1121_s28 + $0x800] sm:$0xff]  ;;  %v213_v5 = vld [vmem:[%s1121_s28 + $0x808] sm:$0xff]  ;;  %210 = vst [vmem:[%s1126_s29 + $0x18] sm:$0xff] %v209_v3 }
  0x16   : > { %212 = vst [vmem:[%s1126_s29 + $0x20] sm:$0xff] %v211_v4  ;;  %214 = vst [vmem:[%s1126_s29 + $0x28] sm:$0xff] %v213_v5  ;;  %v215_v6 = vld [vmem:[%s1121_s28 + $0xc00] sm:$0xff]  ;;  %v217_v7 = vld [vmem:[%s1121_s28 + $0xc08] sm:$0xff] }
  0x17   : > { %v219_v8 = vld [vmem:[%s1121_s28 + $0x1000] sm:$0xff]  ;;  %216 = vst [vmem:[%s1126_s29 + $0x30] sm:$0xff] %v215_v6  ;;  %218 = vst [vmem:[%s1126_s29 + $0x38] sm:$0xff] %v217_v7  ;;  %v221_v9 = vld [vmem:[%s1121_s28 + $0x1008] sm:$0xff] }
  0x18   : > { %220 = vst [vmem:[%s1126_s29 + $0x40] sm:$0xff] %v219_v8  ;;  %v223_v10 = vld [vmem:[%s1121_s28 + $0x1400] sm:$0xff]  ;;  %v225_v11 = vld [vmem:[%s1121_s28 + $0x1408] sm:$0xff]  ;;  %222 = vst [vmem:[%s1126_s29 + $0x48] sm:$0xff] %v221_v9 }
  0x19   : > { %224 = vst [vmem:[%s1126_s29 + $0x50] sm:$0xff] %v223_v10  ;;  %226 = vst [vmem:[%s1126_s29 + $0x58] sm:$0xff] %v225_v11  ;;  %v227_v12 = vld [vmem:[%s1121_s28 + $0x1800] sm:$0xff]  ;;  %v229_v13 = vld [vmem:[%s1121_s28 + $0x1808] sm:$0xff] }
  0x1a   : > { %v231_v14 = vld [vmem:[%s1121_s28 + $0x1c00] sm:$0xff]  ;;  %228 = vst [vmem:[%s1126_s29 + $0x60] sm:$0xff] %v227_v12  ;;  %230 = vst [vmem:[%s1126_s29 + $0x68] sm:$0xff] %v229_v13  ;;  %v233_v15 = vld [vmem:[%s1121_s28 + $0x1c08] sm:$0xff] }
  0x1b   : > { %232 = vst [vmem:[%s1126_s29 + $0x70] sm:$0xff] %v231_v14  ;;  %v235_v16 = vld [vmem:[%s1121_s28 + $0x2000] sm:$0xff]  ;;  %v237_v17 = vld [vmem:[%s1121_s28 + $0x2008] sm:$0xff]  ;;  %234 = vst [vmem:[%s1126_s29 + $0x78] sm:$0xff] %v233_v15 }
  0x1c   : > { %236 = vst [vmem:[%s1126_s29 + $0x80] sm:$0xff] %v235_v16  ;;  %238 = vst [vmem:[%s1126_s29 + $0x88] sm:$0xff] %v237_v17  ;;  %v239_v18 = vld [vmem:[%s1121_s28 + $0x2400] sm:$0xff]  ;;  %v241_v19 = vld [vmem:[%s1121_s28 + $0x2408] sm:$0xff] }
  0x1d   : > { %v243_v20 = vld [vmem:[%s1121_s28 + $0x2800] sm:$0xff]  ;;  %240 = vst [vmem:[%s1126_s29 + $0x90] sm:$0xff] %v239_v18  ;;  %242 = vst [vmem:[%s1126_s29 + $0x98] sm:$0xff] %v241_v19  ;;  %v245_v21 = vld [vmem:[%s1121_s28 + $0x2808] sm:$0xff] }
  0x1e   : > { %244 = vst [vmem:[%s1126_s29 + $0xa0] sm:$0xff] %v243_v20  ;;  %v247_v22 = vld [vmem:[%s1121_s28 + $0x2c00] sm:$0xff]  ;;  %v249_v23 = vld [vmem:[%s1121_s28 + $0x2c08] sm:$0xff]  ;;  %246 = vst [vmem:[%s1126_s29 + $0xa8] sm:$0xff] %v245_v21 }
  0x1f   : > { %248 = vst [vmem:[%s1126_s29 + $0xb0] sm:$0xff] %v247_v22  ;;  %250 = vst [vmem:[%s1126_s29 + $0xb8] sm:$0xff] %v249_v23  ;;  %v251_v24 = vld [vmem:[%s1121_s28 + $0x3000] sm:$0xff]  ;;  %v253_v25 = vld [vmem:[%s1121_s28 + $0x3008] sm:$0xff] }
  0x20   : > { %v255_v26 = vld [vmem:[%s1121_s28 + $0x3400] sm:$0xff]  ;;  %252 = vst [vmem:[%s1126_s29 + $0xc0] sm:$0xff] %v251_v24  ;;  %254 = vst [vmem:[%s1126_s29 + $0xc8] sm:$0xff] %v253_v25  ;;  %v257_v27 = vld [vmem:[%s1121_s28 + $0x3408] sm:$0xff] }
  0x21   : > { %256 = vst [vmem:[%s1126_s29 + $0xd0] sm:$0xff] %v255_v26  ;;  %v259_v28 = vld [vmem:[%s1121_s28 + $0x3800] sm:$0xff]  ;;  %v261_v29 = vld [vmem:[%s1121_s28 + $0x3808] sm:$0xff]  ;;  %258 = vst [vmem:[%s1126_s29 + $0xd8] sm:$0xff] %v257_v27 }
  0x22   : > { %260 = vst [vmem:[%s1126_s29 + $0xe0] sm:$0xff] %v259_v28  ;;  %262 = vst [vmem:[%s1126_s29 + $0xe8] sm:$0xff] %v261_v29  ;;  %v263_v30 = vld [vmem:[%s1121_s28 + $0x3c00] sm:$0xff]  ;;  %v265_v31 = vld [vmem:[%s1121_s28 + $0x3c08] sm:$0xff] }
  0x23   : > { %264 = vst [vmem:[%s1126_s29 + $0xf0] sm:$0xff] %v263_v30  ;;  %266 = vst [vmem:[%s1126_s29 + $0xf8] sm:$0xff] %v265_v31 }
  0x24 PF: > { %p862_p8 = scmp.ge.s32.totalorder %s1050_s16, 1  ;;  %p271_p9 = scmp.lt.s32.totalorder %s1050_s16, 65 }
  0x26   : > { %p272_p10 = pnand %p862_p8, %p271_p9 }
  0x27   : > { %s278_s30 = sand.u32 (!%p272_p10), 1, %s1034_s12  }
  0x28   : > { %275 = sbr.rel (%p272_p10) target bundleno = 305 (0x131), region = 51  ;;  %s863_s4 = sshll.u32 (!%p272_p10), %s278_s30, 8 }
  0x29   : > { %s1197_s7 = scalar_lea.vmem (!%p272_p10), [#allocation3], %s863_s4  ;;  %s864_s18 = sshll.u32 (!%p272_p10), %s278_s30, 6 }
  0x2a   : > { %s1239_s19 = scalar_lea.vmem (!%p272_p10), [#allocation4], %s864_s18 }
  0x2d   : > { %v1052_v32 = vmov 0   ;;  %v666_v33 = vld [vmem:[%s1280_s2] sm:$0xff]  ;;  %v667_v35 = vld [vmem:[%s1280_s2 + $0x8] sm:$0xff]  ;;  %s904_s12 = sshll.u32 (%p1108_p6), %s1042_s14, 5 }
  0x2e   : > { %585 = vmatprep.mubr.bf16.mxu0 %v1052_v32  ;;  %628 = vmatprep.mubr.bf16.mxu1 %v1052_v32  ;;  %v947_v34 = vld [vmem:[%s1197_s7 + $0xe4] ss:$16 sps:$4 sm:$0xff]   ;;  %v949_v36 = vld [vmem:[%s1197_s7 + $0xec] ss:$16 sps:$4 sm:$0xff]   ;;  %v951_v37 = vld [vmem:[%s1197_s7 + $0xe0] ss:$16 sps:$4 sm:$0xff]   ;;  %s714_s24 = scalar_lea.vmem (%p1108_p6), %s1281_s3, %s904_s12 }
  0x2f   : > { %946 = vset.pattern.permute.xlu0 %v1052_v32  ;;  %553 = vmatprep.subr.bf16.mxu0 %v947_v34  ;;  %v952_v38 = vld [vmem:[%s1197_s7 + $0xe8] ss:$16 sps:$4 sm:$0xff]   ;;  %v953_v39 = vld [vmem:[%s1197_s7 + $0xc4] ss:$16 sps:$4 sm:$0xff]   ;;  %v955_v40 = vld [vmem:[%s1197_s7 + $0xcc] ss:$16 sps:$4 sm:$0xff]  }
  0x30   : > { %670 = vperm.xlu0 %946, %v666_v33   ;;  %596 = vmatprep.subr.bf16.mxu1 %v949_v36  ;;  %v957_v41 = vld [vmem:[%s1197_s7 + $0xc0] ss:$16 sps:$4 sm:$0xff]   ;;  %v958_v42 = vld [vmem:[%s1197_s7 + $0xc8] ss:$16 sps:$4 sm:$0xff]   ;;  %v959_v43 = vld [vmem:[%s1197_s7 + $0xa4] ss:$16 sps:$4 sm:$0xff]  }
  0x31   : > { %554 = vmatpush1.bf16.msra.mxu0 %v951_v37  ;;  %597 = vmatpush1.bf16.msra.mxu1 %v952_v38  ;;  %v961_v44 = vld [vmem:[%s1197_s7 + $0xac] ss:$16 sps:$4 sm:$0xff]   ;;  %v963_v45 = vld [vmem:[%s1197_s7 + $0xa0] ss:$16 sps:$4 sm:$0xff]   ;;  %v964_v46 = vld [vmem:[%s1197_s7 + $0xa8] ss:$16 sps:$4 sm:$0xff]  }
  0x32   : > { %555 = vmatprep.subr.bf16.mxu0 %v953_v39  ;;  %598 = vmatprep.subr.bf16.mxu1 %v955_v40  ;;  %v965_v47 = vld [vmem:[%s1197_s7 + $0x84] ss:$16 sps:$4 sm:$0xff]   ;;  %v967_v48 = vld [vmem:[%s1197_s7 + $0x8c] ss:$16 sps:$4 sm:$0xff]   ;;  %v969_v49 = vld [vmem:[%s1197_s7 + $0x80] ss:$16 sps:$4 sm:$0xff]  }
  0x33   : > { %v970_v50 = vld [vmem:[%s1197_s7 + $0x88] ss:$16 sps:$4 sm:$0xff]   ;;  %v971_v51 = vld [vmem:[%s1197_s7 + $0x64] ss:$16 sps:$4 sm:$0xff]   ;;  %v973_v52 = vld [vmem:[%s1197_s7 + $0x6c] ss:$16 sps:$4 sm:$0xff]  }
  0x34   : > { %675 = vperm.xlu0 %946, %v667_v35   ;;  %v975_v53 = vld [vmem:[%s1197_s7 + $0x60] ss:$16 sps:$4 sm:$0xff]   ;;  %v976_v54 = vld [vmem:[%s1197_s7 + $0x68] ss:$16 sps:$4 sm:$0xff]   ;;  %v977_v55 = vld [vmem:[%s1197_s7 + $0x44] ss:$16 sps:$4 sm:$0xff]  }
  0x35   : > { %556 = vmatpush1.bf16.msra.mxu0 %v957_v41  ;;  %599 = vmatpush1.bf16.msra.mxu1 %v958_v42  ;;  %v979_v56 = vld [vmem:[%s1197_s7 + $0x4c] ss:$16 sps:$4 sm:$0xff]   ;;  %v981_v57 = vld [vmem:[%s1197_s7 + $0x40] ss:$16 sps:$4 sm:$0xff]   ;;  %v982_v58 = vld [vmem:[%s1197_s7 + $0x48] ss:$16 sps:$4 sm:$0xff]  }
  0x36   : > { %557 = vmatprep.subr.bf16.mxu0 %v959_v43  ;;  %600 = vmatprep.subr.bf16.mxu1 %v961_v44  ;;  %v983_v59 = vld [vmem:[%s1197_s7 + $0x24] ss:$16 sps:$4 sm:$0xff]   ;;  %v985_v60 = vld [vmem:[%s1197_s7 + $0x2c] ss:$16 sps:$4 sm:$0xff]   ;;  %v987_v61 = vld [vmem:[%s1197_s7 + $0x20] ss:$16 sps:$4 sm:$0xff]  }
  0x37   : > { %v988_v62 = vld [vmem:[%s1197_s7 + $0x28] ss:$16 sps:$4 sm:$0xff]   ;;  %v989_v63 = vld [vmem:[%s1197_s7 + $0x4] ss:$16 sps:$4 sm:$0xff]   ;;  %v991_v0 = vld [vmem:[%s1197_s7 + $0xc] ss:$16 sps:$4 sm:$0xff]  }
  0x38   : > { %v993_v1 = vld [vmem:[%s1197_s7] ss:$16 sps:$4 sm:$0xff]   ;;  %v994_v2 = vld [vmem:[%s1197_s7 + $0x8] ss:$16 sps:$4 sm:$0xff]  }
  0x39   : > { %558 = vmatpush1.bf16.msra.mxu0 %v963_v45  ;;  %601 = vmatpush1.bf16.msra.mxu1 %v964_v46  ;;  %v995_v3 = vld [vmem:[%s1278_s0] sm:$0xff]  }
  0x3a   : > { %559 = vmatprep.subr.bf16.mxu0 %v965_v47  ;;  %602 = vmatprep.subr.bf16.mxu1 %v967_v48 }
  0x3d   : > { %560 = vmatpush1.bf16.msra.mxu0 %v969_v49  ;;  %603 = vmatpush1.bf16.msra.mxu1 %v970_v50 }
  0x3e   : > { %561 = vmatprep.subr.bf16.mxu0 %v971_v51  ;;  %604 = vmatprep.subr.bf16.mxu1 %v973_v52 }
  0x41   : > { %562 = vmatpush1.bf16.msra.mxu0 %v975_v53  ;;  %605 = vmatpush1.bf16.msra.mxu1 %v976_v54 }
  0x42   : > { %563 = vmatprep.subr.bf16.mxu0 %v977_v55  ;;  %606 = vmatprep.subr.bf16.mxu1 %v979_v56 }
  0x45   : > { %564 = vmatpush1.bf16.msra.mxu0 %v981_v57  ;;  %607 = vmatpush1.bf16.msra.mxu1 %v982_v58 }
  0x46   : > { %565 = vmatprep.subr.bf16.mxu0 %v983_v59  ;;  %608 = vmatprep.subr.bf16.mxu1 %v985_v60 }
  0x49   : > { %566 = vmatpush1.bf16.msra.mxu0 %v987_v61  ;;  %609 = vmatpush1.bf16.msra.mxu1 %v988_v62 }
  0x4a   : > { %567 = vmatprep.subr.bf16.mxu0 %v989_v63  ;;  %610 = vmatprep.subr.bf16.mxu1 %v991_v0 }
  0x4d   : > { %568 = vmatpush1.bf16.msra.mxu0 %v993_v1  ;;  %611 = vmatpush1.bf16.msra.mxu1 %v994_v2 }
  0x50   : > { %586 = vmatmul.mubr.bf16.vlgmr.msra.gmra.mxu0 %v995_v3  ;;  %629 = vmatmul.mubr.bf16.vlgmr.msra.gmra.mxu1 %v995_v3 }
  0xab   : > { %v671_v4 = vpop.permute.xlu0 %670 }
  0xaf   : > { %v676_v11 = vpop.permute.xlu0 %675 }
 0x110   : > { %v587_v5 = vpop.f32.mrf.mxu0  ;;  %v630_v6 = vpop.f32.mrf.mxu1 }
 0x111   : > { %v678_v7 = vadd.f32 %v671_v4, %v587_v5  ;;  %v680_v8 = vadd.f32 %v671_v4, %v630_v6 }
 0x112   : > { %v589_v9 = vpop.f32.mrf.mxu0  ;;  %v632_v10 = vpop.f32.mrf.mxu1 }
 0x113   : > { %996 = vtanh.f32 %v678_v7  ;;  %v679_v12 = vadd.f32 %v671_v4, %v589_v9  ;;  %v681_v13 = vadd.f32 %v671_v4, %v632_v10 }
 0x114   : > { %998 = vtanh.f32 %v680_v8  ;;  %v591_v14 = vpop.f32.mrf.mxu0  ;;  %v634_v15 = vpop.f32.mrf.mxu1 }
 0x115   : > { %1000 = vtanh.f32 %v679_v12  ;;  %v682_v16 = vadd.f32 %v676_v11, %v591_v14  ;;  %v684_v17 = vadd.f32 %v676_v11, %v634_v15 }
 0x116   : > { %1002 = vtanh.f32 %v681_v13  ;;  %v593_v18 = vpop.f32.mrf.mxu0  ;;  %v636_v19 = vpop.f32.mrf.mxu1 }
 0x117   : > { %1004 = vtanh.f32 %v682_v16  ;;  %v683_v20 = vadd.f32 %v676_v11, %v593_v18  ;;  %v685_v21 = vadd.f32 %v676_v11, %v636_v19 }
 0x118   : > { %1006 = vtanh.f32 %v684_v17 }
 0x119   : > { %1008 = vtanh.f32 %v683_v20 }
 0x11a   : > { %1010 = vtanh.f32 %v685_v21 }
 0x120   : > { %v997_v22 = vpop.eup %996 }
 0x121   : > { %v999_v23 = vpop.eup %998  ;;  %694 = vst [vmem:[%s1239_s19] sm:$0xff] %v997_v22 }
 0x122   : > { %v1001_v24 = vpop.eup %1000  ;;  %696 = vst [vmem:[%s1239_s19 + $0x10] sm:$0xff] %v999_v23 }
 0x123   : > { %v1003_v25 = vpop.eup %1002  ;;  %695 = vst [vmem:[%s1239_s19 + $0x8] sm:$0xff] %v1001_v24 }
 0x124   : > { %v1005_v26 = vpop.eup %1004  ;;  %697 = vst [vmem:[%s1239_s19 + $0x18] sm:$0xff] %v1003_v25  ;;  %708 = sbr.rel (!%p1108_p6) target bundleno = 305 (0x131), region = 67 }
 0x125   : > { %v1007_v27 = vpop.eup %1006  ;;  %698 = vst [vmem:[%s1239_s19 + $0x20] sm:$0xff] %v1005_v26 }
 0x126   : > { %v1009_v28 = vpop.eup %1008  ;;  %700 = vst [vmem:[%s1239_s19 + $0x30] sm:$0xff] %v1007_v27 }
 0x127   : > { %v1011_v29 = vpop.eup %1010  ;;  %699 = vst [vmem:[%s1239_s19 + $0x28] sm:$0xff] %v1009_v28 }
 0x128   : > { %701 = vst [vmem:[%s1239_s19 + $0x38] sm:$0xff] %v1011_v29  ;;  %v727_v30 = vld [vmem:[%s1239_s19] sm:$0xff] (%p1108_p6) }
 0x129   : > { %v731_v32 = vld [vmem:[%s1239_s19 + $0x10] sm:$0xff]  ;;  %728 = vst [vmem:[%s714_s24] sm:$0xff] %v727_v30 }
 0x12a   : > { %v729_v31 = vld [vmem:[%s1239_s19 + $0x8] sm:$0xff]  ;;  %732 = vst [vmem:[%s714_s24 + $0x10] sm:$0xff] %v731_v32 }
 0x12b   : > { %v733_v33 = vld [vmem:[%s1239_s19 + $0x18] sm:$0xff]  ;;  %730 = vst [vmem:[%s714_s24 + $0x8] sm:$0xff] %v729_v31 }
 0x12c   : > { %v735_v34 = vld [vmem:[%s1239_s19 + $0x20] sm:$0xff]  ;;  %734 = vst [vmem:[%s714_s24 + $0x18] sm:$0xff] %v733_v33 }
 0x12d   : > { %736 = vst [vmem:[%s714_s24 + $0x800] sm:$0xff] %v735_v34  ;;  %v739_v36 = vld [vmem:[%s1239_s19 + $0x30] sm:$0xff] }
 0x12e   : > { %v737_v35 = vld [vmem:[%s1239_s19 + $0x28] sm:$0xff]  ;;  %740 = vst [vmem:[%s714_s24 + $0x810] sm:$0xff] %v739_v36 }
 0x12f   : > { %738 = vst [vmem:[%s714_s24 + $0x808] sm:$0xff] %v737_v35  ;;  %v741_v37 = vld [vmem:[%s1239_s19 + $0x38] sm:$0xff] }
 0x130   : > { %742 = vst [vmem:[%s714_s24 + $0x818] sm:$0xff] %v741_v37 }
 0x131 PF: > { %s13_s16 = sadd.s32 1, %s1050_s16   ;;  %s1283_s12 = smov %s1038_s13 }
 0x132   : > { %p10_p11 = scmp.ge.s32.totalorder %s13_s16, 66   ;;  %s1284_s13 = smov %s1113_s22 }
 0x133   : > { %s1285_s14 = smov %s1046_s15  ;;  %s1286_s15 = smov %s1288_s17 }
 0x134   :  { %12 = sbr.rel (!%p10_p11) target bundleno = 3 (0x3), region = 127 }

</bundles_post_ra>
